<compile_context>
chip_gen: v6e
topology: v6e:2x2x1
jax: 0.10.0
libtpu: 0.0.40
codegen_flags: <defaults>
</compile_context>

<pallas_src>
import jax
import jax.numpy as jnp
from jax.experimental import pallas as pl
from jax.experimental.pallas import tpu as pltpu

EMBED_DIM = 300
EMBED_PAD = 384          # zero-padded to a multiple of 128 (lane aligned)
HIDDEN = 128
NUM_LAYERS = 2
FC_DIM = 32
NUM_CLASSES = 4
VOCAB = 64


# ------------------------------ LSTM cell math ------------------------------- #
def _lstm_cell(gates, c_prev):
    """gates: (B, 4H) pre-activations in PyTorch order [i|f|g|o]; c_prev: (B, H)."""
    H = c_prev.shape[-1]
    i = jax.nn.sigmoid(gates[:, 0 * H:1 * H])
    f = jax.nn.sigmoid(gates[:, 1 * H:2 * H])
    g = jnp.tanh(gates[:, 2 * H:3 * H])
    o = jax.nn.sigmoid(gates[:, 3 * H:4 * H])
    c = f * c_prev + i * g
    h = o * jnp.tanh(c)
    return h, c


# ------------------- Fused bidirectional LSTM layer (sequence out) ------------ #
def _bilstm_seq_kernel(x_ref, wih_ref, b_ref, whf_ref, whb_ref, out_ref):
    """One fused (fwd+bwd) LSTM layer, full hidden sequence output.

    x_ref:   (T*B, D)   time-major input, flattened
    wih_ref: (D, 8H)    [W_ih_fwd^T | W_ih_bwd^T]
    b_ref:   (1, 8H)    [(b_ih+b_hh)_fwd | (b_ih+b_hh)_bwd]
    whf_ref: (H, 4H)    W_hh_fwd^T
    whb_ref: (H, 4H)    W_hh_bwd^T
    out_ref: (T, B, 2H) [:, :, :H]=fwd hidden, [:, :, H:]=bwd hidden
    """
    T, B, twoH = out_ref.shape
    H = twoH // 2
    G = 4 * H

    # Phase 1: hoist the input projection out of the recurrence (one big matmul,
    # M = T*B, both directions at once).
    gx = jnp.dot(x_ref[...], wih_ref[...],
                 preferred_element_type=jnp.float32) + b_ref[...]      # (T*B, 8H)
    w_f = whf_ref[...]
    w_b = whb_ref[...]

    h_f = jnp.zeros((B, H), jnp.float32)
    c_f = jnp.zeros((B, H), jnp.float32)
    h_b = jnp.zeros((B, H), jnp.float32)
    c_b = jnp.zeros((B, H), jnp.float32)

    # Phase 2: sequential recurrence, fully unrolled (static T), fwd+bwd in lockstep.
    for t in range(T):
        tb = T - 1 - t
        gh_f = jnp.dot(h_f, w_f, preferred_element_type=jnp.float32)  # (B, 4H)
        gh_b = jnp.dot(h_b, w_b, preferred_element_type=jnp.float32)  # (B, 4H)
        g_f = gx[t * B:(t + 1) * B, 0:G] + gh_f
        g_b = gx[tb * B:(tb + 1) * B, G:2 * G] + gh_b
        h_f, c_f = _lstm_cell(g_f, c_f)
        h_b, c_b = _lstm_cell(g_b, c_b)
        out_ref[t, :, 0:H] = h_f
        out_ref[tb, :, H:2 * H] = h_b


def bilstm_layer(x_tm, wih, b, whh_f, whh_b):
    """x_tm: (T, B, D_in) time-major -> (T, B, 2H) bidirectional hidden sequence."""
    T, B, D = x_tm.shape
    H = whh_f.shape[0]
    x2d = x_tm.reshape(T * B, D)          # free (contiguous) reshape
    return pl.pallas_call(
        _bilstm_seq_kernel,
        out_shape=jax.ShapeDtypeStruct((T, B, 2 * H), jnp.float32),
    )(x2d, wih, b, whh_f, whh_b)


# ------- Fused final bidirectional LSTM layer + FC head (last step only) ------ #
def _bilstm_head_kernel(x_ref, wih_ref, b_ref, whf_ref, whb_ref,
                        fcw_ref, fcb_ref, fc2w_ref, fc2b_ref, out_ref):
    """Second LSTM layer fused with fc -> fc2; only out[:, -1, :] is consumed.

    The fwd direction runs the full recurrence (final hidden needed); the bwd
    direction at time T-1 is exactly one cell step from zero state.
    """
    TB, _ = x_ref.shape
    B = out_ref.shape[0]
    T = TB // B
    H = whf_ref.shape[0]
    G = 4 * H

    gx = jnp.dot(x_ref[...], wih_ref[...],
                 preferred_element_type=jnp.float32) + b_ref[...]      # (T*B, 8H)
    w_f = whf_ref[...]

    # Forward direction: full recurrence, keep only final hidden.
    h_f = jnp.zeros((B, H), jnp.float32)
    c_f = jnp.zeros((B, H), jnp.float32)
    for t in range(T):
        gh_f = jnp.dot(h_f, w_f, preferred_element_type=jnp.float32)
        g_f = gx[t * B:(t + 1) * B, 0:G] + gh_f
        h_f, c_f = _lstm_cell(g_f, c_f)

    # Backward direction, hidden at time T-1: single step from zero state
    # (h_prev = 0 so the h @ W_hh term vanishes).
    g_b = gx[(T - 1) * B:T * B, G:2 * G]
    h_b, _ = _lstm_cell(g_b, jnp.zeros((B, H), jnp.float32))

    # FC head on concat(h_fwd_last, h_bwd_last); avoid an in-kernel concat by
    # splitting fc_w into its fwd/bwd row blocks.
    fcw = fcw_ref[...]                                                 # (2H, 32)
    hid = (jnp.dot(h_f, fcw[0:H, :], preferred_element_type=jnp.float32)
           + jnp.dot(h_b, fcw[H:2 * H, :], preferred_element_type=jnp.float32)
           + fcb_ref[...])                                             # (B, 32)
    # TODO(synk): nn.Dropout(0.3) between fc and fc2 is identity at inference.
    out_ref[...] = (jnp.dot(hid, fc2w_ref[...],
                            preferred_element_type=jnp.float32)
                    + fc2b_ref[...]).astype(out_ref.dtype)


def bilstm_head_layer(x_tm, wih, b, whh_f, whh_b, fc_w, fc_b, fc2_w, fc2_b):
    T, B, D = x_tm.shape
    x2d = x_tm.reshape(T * B, D)
    return pl.pallas_call(
        _bilstm_head_kernel,
        out_shape=jax.ShapeDtypeStruct((B, NUM_CLASSES), jnp.float32),
    )(x2d, wih, b, whh_f, whh_b,
      fc_w, fc_b.reshape(1, -1), fc2_w, fc2_b.reshape(1, -1))


# ------------------------------ Parameter setup ------------------------------ #
def init_params(key):
    """Deterministic synthetic parameters with PyTorch-like shapes/init, packed
    into the kernel-friendly layouts (pre-transposed, directions stacked)."""
    params = {}
    keys = jax.random.split(key, 32)
    k_iter = iter(keys)

    def unif(k, shape, bound):
        return jax.random.uniform(k, shape, jnp.float32, -bound, bound)

    # Embedding table (vocab x 300); original loads SougouNews embeddings.
    emb = unif(next(k_iter), (VOCAB, EMBED_DIM), 0.1)
    params["embedding"] = jnp.pad(emb, ((0, 0), (0, EMBED_PAD - EMBED_DIM)))

    bound = 1.0 / (HIDDEN ** 0.5)
    for layer in range(NUM_LAYERS):
        d_in = EMBED_DIM if layer == 0 else 2 * HIDDEN
        d_in_pad = EMBED_PAD if layer == 0 else 2 * HIDDEN
        lp = {}
        wih_cols, b_cols = [], []
        for direction in ("f", "b"):
            w_ih = unif(next(k_iter), (4 * HIDDEN, d_in), bound)     # PyTorch layout
            w_hh = unif(next(k_iter), (4 * HIDDEN, HIDDEN), bound)
            b_ih = unif(next(k_iter), (4 * HIDDEN,), bound)
            b_hh = unif(next(k_iter), (4 * HIDDEN,), bound)
            w_ih_t = jnp.transpose(w_ih)                             # (d_in, 4H)
            if d_in_pad != d_in:                                     # zero rows: exact
                w_ih_t = jnp.pad(w_ih_t, ((0, d_in_pad - d_in), (0, 0)))
            wih_cols.append(w_ih_t)
            b_cols.append(b_ih + b_hh)
            lp[f"whh_{direction}"] = jnp.transpose(w_hh)             # (H, 4H)
        lp["wih"] = jnp.concatenate(wih_cols, axis=1)                # (d_in_pad, 8H)
        lp["b"] = jnp.concatenate(b_cols).reshape(1, -1)             # (1, 8H)
        params[f"lstm_l{layer}"] = lp

    fc_bound = 1.0 / ((2 * HIDDEN) ** 0.5)
    params["fc_w"] = jnp.transpose(unif(next(k_iter), (FC_DIM, 2 * HIDDEN), fc_bound))
    params["fc_b"] = unif(next(k_iter), (FC_DIM,), fc_bound)
    fc2_bound = 1.0 / (FC_DIM ** 0.5)
    params["fc2_w"] = jnp.transpose(unif(next(k_iter), (NUM_CLASSES, FC_DIM), fc2_bound))
    params["fc2_b"] = unif(next(k_iter), (NUM_CLASSES,), fc2_bound)
    return params


# --------------------------------- Forward ----------------------------------- #
@jax.jit
def lstm1_forward(params, x):
    """x: int32 [3, batch, seq]; mirrors `x = x[2]` in the PyTorch forward."""
    ids = x[2]                                   # (B, T) token ids
    ids_tm = ids.T                               # (T, B) time-major
    out = params["embedding"][ids_tm]            # (T, B, 384) embedding lookup (glue)

    p0 = params["lstm_l0"]
    out = bilstm_layer(out, p0["wih"], p0["b"], p0["whh_f"], p0["whh_b"])  # (T, B, 256)
    # TODO(synk): inter-layer LSTM dropout (p=0.3) only active in training; skipped.

    p1 = params["lstm_l1"]
    return bilstm_head_layer(out, p1["wih"], p1["b"], p1["whh_f"], p1["whh_b"],
                             params["fc_w"], params["fc_b"],
                             params["fc2_w"], params["fc2_b"])             # (B, 4)


if __name__ == "__main__":
    key = jax.random.PRNGKey(0)
    pkey, xkey = jax.random.split(key)
    params = init_params(pkey)

    batch, seq = 2, 8
    # x packed as [3, batch, seq]; the model consumes x[2].
    x = jax.random.randint(xkey, (3, batch, seq), 0, VOCAB, dtype=jnp.int32)

    out = lstm1_forward(params, x)
    jax.block_until_ready(out)
    assert out.shape == (batch, NUM_CLASSES) and out.dtype == jnp.float32
    print("KERNEL_OK")
</pallas_src>

<mosaic_0001>
module attributes {stable_mosaic.version = 11 : i64} {
  func.func @_bilstm_head_kernel(%arg0: memref<16x256xf32, #tpu.memory_space<vmem>>, %arg1: memref<256x1024xf32, #tpu.memory_space<vmem>>, %arg2: memref<1x1024xf32, #tpu.memory_space<vmem>>, %arg3: memref<128x512xf32, #tpu.memory_space<vmem>>, %arg4: memref<128x512xf32, #tpu.memory_space<vmem>>, %arg5: memref<256x32xf32, #tpu.memory_space<vmem>>, %arg6: memref<1x32xf32, #tpu.memory_space<vmem>>, %arg7: memref<32x4xf32, #tpu.memory_space<vmem>>, %arg8: memref<1x4xf32, #tpu.memory_space<vmem>>, %arg9: memref<2x4xf32, #tpu.memory_space<vmem>>) attributes {dimension_semantics = [], scalar_prefetch = 0 : i64, scratch_operands = 0 : i64, tpu.core_type = #tpu.core_type<tc>} {
    %c0 = arith.constant 0 : index
    %c0_0 = arith.constant 0 : index
    %0 = vector.load %arg0[%c0, %c0_0] : memref<16x256xf32, #tpu.memory_space<vmem>>, vector<16x256xf32>
    %c0_1 = arith.constant 0 : index
    %c0_2 = arith.constant 0 : index
    %1 = vector.load %arg1[%c0_1, %c0_2] : memref<256x1024xf32, #tpu.memory_space<vmem>>, vector<256x1024xf32>
    %cst = arith.constant dense<0.000000e+00> : vector<16x1024xf32>
    %2 = tpu.matmul %0, %1, %cst {dimension_numbers = #tpu.dot_dimension_numbers<[1], [0], [0], [1], [0, 0, 1, 1], [], []>} : vector<16x256xf32>, vector<256x1024xf32>, vector<16x1024xf32> -> vector<16x1024xf32>
    %c0_3 = arith.constant 0 : index
    %c0_4 = arith.constant 0 : index
    %3 = vector.load %arg2[%c0_3, %c0_4] : memref<1x1024xf32, #tpu.memory_space<vmem>>, vector<1x1024xf32>
    %4 = vector.broadcast %3 : vector<1x1024xf32> to vector<16x1024xf32>
    %5 = arith.addf %2, %4 : vector<16x1024xf32>
    %c0_5 = arith.constant 0 : index
    %c0_6 = arith.constant 0 : index
    %6 = vector.load %arg3[%c0_5, %c0_6] : memref<128x512xf32, #tpu.memory_space<vmem>>, vector<128x512xf32>
    %cst_7 = arith.constant 0.000000e+00 : f32
    %7 = vector.broadcast %cst_7 : f32 to vector<2x128xf32>
    %cst_8 = arith.constant 0.000000e+00 : f32
    %8 = vector.broadcast %cst_8 : f32 to vector<2x128xf32>
    %cst_9 = arith.constant dense<0.000000e+00> : vector<2x512xf32>
    %9 = tpu.matmul %7, %6, %cst_9 {dimension_numbers = #tpu.dot_dimension_numbers<[1], [0], [0], [1], [0, 0, 1, 1], [], []>} : vector<2x128xf32>, vector<128x512xf32>, vector<2x512xf32> -> vector<2x512xf32>
    %10 = vector.extract_strided_slice %5 {offsets = [0, 0], sizes = [2, 512], strides = [1, 1]} : vector<16x1024xf32> to vector<2x512xf32>
    %11 = arith.addf %10, %9 : vector<2x512xf32>
    %12 = vector.extract_strided_slice %11 {offsets = [0, 0], sizes = [2, 128], strides = [1, 1]} : vector<2x512xf32> to vector<2x128xf32>
    %13 = arith.negf %12 : vector<2x128xf32>
    %14 = math.exp %13 : vector<2x128xf32>
    %cst_10 = arith.constant 1.000000e+00 : f32
    %15 = vector.broadcast %cst_10 : f32 to vector<2x128xf32>
    %16 = arith.addf %15, %14 : vector<2x128xf32>
    %17 = arith.divf %15, %16 : vector<2x128xf32>
    %18 = vector.extract_strided_slice %11 {offsets = [0, 128], sizes = [2, 128], strides = [1, 1]} : vector<2x512xf32> to vector<2x128xf32>
    %19 = arith.negf %18 : vector<2x128xf32>
    %20 = math.exp %19 : vector<2x128xf32>
    %cst_11 = arith.constant 1.000000e+00 : f32
    %21 = vector.broadcast %cst_11 : f32 to vector<2x128xf32>
    %22 = arith.addf %21, %20 : vector<2x128xf32>
    %23 = arith.divf %21, %22 : vector<2x128xf32>
    %24 = vector.extract_strided_slice %11 {offsets = [0, 256], sizes = [2, 128], strides = [1, 1]} : vector<2x512xf32> to vector<2x128xf32>
    %25 = math.tanh %24 : vector<2x128xf32>
    %26 = vector.extract_strided_slice %11 {offsets = [0, 384], sizes = [2, 128], strides = [1, 1]} : vector<2x512xf32> to vector<2x128xf32>
    %27 = arith.negf %26 : vector<2x128xf32>
    %28 = math.exp %27 : vector<2x128xf32>
    %cst_12 = arith.constant 1.000000e+00 : f32
    %29 = vector.broadcast %cst_12 : f32 to vector<2x128xf32>
    %30 = arith.addf %29, %28 : vector<2x128xf32>
    %31 = arith.divf %29, %30 : vector<2x128xf32>
    %32 = arith.mulf %23, %8 : vector<2x128xf32>
    %33 = arith.mulf %17, %25 : vector<2x128xf32>
    %34 = arith.addf %32, %33 : vector<2x128xf32>
    %35 = math.tanh %34 : vector<2x128xf32>
    %36 = arith.mulf %31, %35 : vector<2x128xf32>
    %cst_13 = arith.constant dense<0.000000e+00> : vector<2x512xf32>
    %37 = tpu.matmul %36, %6, %cst_13 {dimension_numbers = #tpu.dot_dimension_numbers<[1], [0], [0], [1], [0, 0, 1, 1], [], []>} : vector<2x128xf32>, vector<128x512xf32>, vector<2x512xf32> -> vector<2x512xf32>
    %38 = vector.extract_strided_slice %5 {offsets = [2, 0], sizes = [2, 512], strides = [1, 1]} : vector<16x1024xf32> to vector<2x512xf32>
    %39 = arith.addf %38, %37 : vector<2x512xf32>
    %40 = vector.extract_strided_slice %39 {offsets = [0, 0], sizes = [2, 128], strides = [1, 1]} : vector<2x512xf32> to vector<2x128xf32>
    %41 = arith.negf %40 : vector<2x128xf32>
    %42 = math.exp %41 : vector<2x128xf32>
    %cst_14 = arith.constant 1.000000e+00 : f32
    %43 = vector.broadcast %cst_14 : f32 to vector<2x128xf32>
    %44 = arith.addf %43, %42 : vector<2x128xf32>
    %45 = arith.divf %43, %44 : vector<2x128xf32>
    %46 = vector.extract_strided_slice %39 {offsets = [0, 128], sizes = [2, 128], strides = [1, 1]} : vector<2x512xf32> to vector<2x128xf32>
    %47 = arith.negf %46 : vector<2x128xf32>
    %48 = math.exp %47 : vector<2x128xf32>
    %cst_15 = arith.constant 1.000000e+00 : f32
    %49 = vector.broadcast %cst_15 : f32 to vector<2x128xf32>
    %50 = arith.addf %49, %48 : vector<2x128xf32>
    %51 = arith.divf %49, %50 : vector<2x128xf32>
    %52 = vector.extract_strided_slice %39 {offsets = [0, 256], sizes = [2, 128], strides = [1, 1]} : vector<2x512xf32> to vector<2x128xf32>
    %53 = math.tanh %52 : vector<2x128xf32>
    %54 = vector.extract_strided_slice %39 {offsets = [0, 384], sizes = [2, 128], strides = [1, 1]} : vector<2x512xf32> to vector<2x128xf32>
    %55 = arith.negf %54 : vector<2x128xf32>
    %56 = math.exp %55 : vector<2x128xf32>
    %cst_16 = arith.constant 1.000000e+00 : f32
    %57 = vector.broadcast %cst_16 : f32 to vector<2x128xf32>
    %58 = arith.addf %57, %56 : vector<2x128xf32>
    %59 = arith.divf %57, %58 : vector<2x128xf32>
    %60 = arith.mulf %51, %34 : vector<2x128xf32>
    %61 = arith.mulf %45, %53 : vector<2x128xf32>
    %62 = arith.addf %60, %61 : vector<2x128xf32>
    %63 = math.tanh %62 : vector<2x128xf32>
    %64 = arith.mulf %59, %63 : vector<2x128xf32>
    %cst_17 = arith.constant dense<0.000000e+00> : vector<2x512xf32>
    %65 = tpu.matmul %64, %6, %cst_17 {dimension_numbers = #tpu.dot_dimension_numbers<[1], [0], [0], [1], [0, 0, 1, 1], [], []>} : vector<2x128xf32>, vector<128x512xf32>, vector<2x512xf32> -> vector<2x512xf32>
    %66 = vector.extract_strided_slice %5 {offsets = [4, 0], sizes = [2, 512], strides = [1, 1]} : vector<16x1024xf32> to vector<2x512xf32>
    %67 = arith.addf %66, %65 : vector<2x512xf32>
    %68 = vector.extract_strided_slice %67 {offsets = [0, 0], sizes = [2, 128], strides = [1, 1]} : vector<2x512xf32> to vector<2x128xf32>
    %69 = arith.negf %68 : vector<2x128xf32>
    %70 = math.exp %69 : vector<2x128xf32>
    %cst_18 = arith.constant 1.000000e+00 : f32
    %71 = vector.broadcast %cst_18 : f32 to vector<2x128xf32>
    %72 = arith.addf %71, %70 : vector<2x128xf32>
    %73 = arith.divf %71, %72 : vector<2x128xf32>
    %74 = vector.extract_strided_slice %67 {offsets = [0, 128], sizes = [2, 128], strides = [1, 1]} : vector<2x512xf32> to vector<2x128xf32>
    %75 = arith.negf %74 : vector<2x128xf32>
    %76 = math.exp %75 : vector<2x128xf32>
    %cst_19 = arith.constant 1.000000e+00 : f32
    %77 = vector.broadcast %cst_19 : f32 to vector<2x128xf32>
    %78 = arith.addf %77, %76 : vector<2x128xf32>
    %79 = arith.divf %77, %78 : vector<2x128xf32>
    %80 = vector.extract_strided_slice %67 {offsets = [0, 256], sizes = [2, 128], strides = [1, 1]} : vector<2x512xf32> to vector<2x128xf32>
    %81 = math.tanh %80 : vector<2x128xf32>
    %82 = vector.extract_strided_slice %67 {offsets = [0, 384], sizes = [2, 128], strides = [1, 1]} : vector<2x512xf32> to vector<2x128xf32>
    %83 = arith.negf %82 : vector<2x128xf32>
    %84 = math.exp %83 : vector<2x128xf32>
    %cst_20 = arith.constant 1.000000e+00 : f32
    %85 = vector.broadcast %cst_20 : f32 to vector<2x128xf32>
    %86 = arith.addf %85, %84 : vector<2x128xf32>
    %87 = arith.divf %85, %86 : vector<2x128xf32>
    %88 = arith.mulf %79, %62 : vector<2x128xf32>
    %89 = arith.mulf %73, %81 : vector<2x128xf32>
    %90 = arith.addf %88, %89 : vector<2x128xf32>
    %91 = math.tanh %90 : vector<2x128xf32>
    %92 = arith.mulf %87, %91 : vector<2x128xf32>
    %cst_21 = arith.constant dense<0.000000e+00> : vector<2x512xf32>
    %93 = tpu.matmul %92, %6, %cst_21 {dimension_numbers = #tpu.dot_dimension_numbers<[1], [0], [0], [1], [0, 0, 1, 1], [], []>} : vector<2x128xf32>, vector<128x512xf32>, vector<2x512xf32> -> vector<2x512xf32>
    %94 = vector.extract_strided_slice %5 {offsets = [6, 0], sizes = [2, 512], strides = [1, 1]} : vector<16x1024xf32> to vector<2x512xf32>
    %95 = arith.addf %94, %93 : vector<2x512xf32>
    %96 = vector.extract_strided_slice %95 {offsets = [0, 0], sizes = [2, 128], strides = [1, 1]} : vector<2x512xf32> to vector<2x128xf32>
    %97 = arith.negf %96 : vector<2x128xf32>
    %98 = math.exp %97 : vector<2x128xf32>
    %cst_22 = arith.constant 1.000000e+00 : f32
    %99 = vector.broadcast %cst_22 : f32 to vector<2x128xf32>
    %100 = arith.addf %99, %98 : vector<2x128xf32>
    %101 = arith.divf %99, %100 : vector<2x128xf32>
    %102 = vector.extract_strided_slice %95 {offsets = [0, 128], sizes = [2, 128], strides = [1, 1]} : vector<2x512xf32> to vector<2x128xf32>
    %103 = arith.negf %102 : vector<2x128xf32>
    %104 = math.exp %103 : vector<2x128xf32>
    %cst_23 = arith.constant 1.000000e+00 : f32
    %105 = vector.broadcast %cst_23 : f32 to vector<2x128xf32>
    %106 = arith.addf %105, %104 : vector<2x128xf32>
    %107 = arith.divf %105, %106 : vector<2x128xf32>
    %108 = vector.extract_strided_slice %95 {offsets = [0, 256], sizes = [2, 128], strides = [1, 1]} : vector<2x512xf32> to vector<2x128xf32>
    %109 = math.tanh %108 : vector<2x128xf32>
    %110 = vector.extract_strided_slice %95 {offsets = [0, 384], sizes = [2, 128], strides = [1, 1]} : vector<2x512xf32> to vector<2x128xf32>
    %111 = arith.negf %110 : vector<2x128xf32>
    %112 = math.exp %111 : vector<2x128xf32>
    %cst_24 = arith.constant 1.000000e+00 : f32
    %113 = vector.broadcast %cst_24 : f32 to vector<2x128xf32>
    %114 = arith.addf %113, %112 : vector<2x128xf32>
    %115 = arith.divf %113, %114 : vector<2x128xf32>
    %116 = arith.mulf %107, %90 : vector<2x128xf32>
    %117 = arith.mulf %101, %109 : vector<2x128xf32>
    %118 = arith.addf %116, %117 : vector<2x128xf32>
    %119 = math.tanh %118 : vector<2x128xf32>
    %120 = arith.mulf %115, %119 : vector<2x128xf32>
    %cst_25 = arith.constant dense<0.000000e+00> : vector<2x512xf32>
    %121 = tpu.matmul %120, %6, %cst_25 {dimension_numbers = #tpu.dot_dimension_numbers<[1], [0], [0], [1], [0, 0, 1, 1], [], []>} : vector<2x128xf32>, vector<128x512xf32>, vector<2x512xf32> -> vector<2x512xf32>
    %122 = vector.extract_strided_slice %5 {offsets = [8, 0], sizes = [2, 512], strides = [1, 1]} : vector<16x1024xf32> to vector<2x512xf32>
    %123 = arith.addf %122, %121 : vector<2x512xf32>
    %124 = vector.extract_strided_slice %123 {offsets = [0, 0], sizes = [2, 128], strides = [1, 1]} : vector<2x512xf32> to vector<2x128xf32>
    %125 = arith.negf %124 : vector<2x128xf32>
    %126 = math.exp %125 : vector<2x128xf32>
    %cst_26 = arith.constant 1.000000e+00 : f32
    %127 = vector.broadcast %cst_26 : f32 to vector<2x128xf32>
    %128 = arith.addf %127, %126 : vector<2x128xf32>
    %129 = arith.divf %127, %128 : vector<2x128xf32>
    %130 = vector.extract_strided_slice %123 {offsets = [0, 128], sizes = [2, 128], strides = [1, 1]} : vector<2x512xf32> to vector<2x128xf32>
    %131 = arith.negf %130 : vector<2x128xf32>
    %132 = math.exp %131 : vector<2x128xf32>
    %cst_27 = arith.constant 1.000000e+00 : f32
    %133 = vector.broadcast %cst_27 : f32 to vector<2x128xf32>
    %134 = arith.addf %133, %132 : vector<2x128xf32>
    %135 = arith.divf %133, %134 : vector<2x128xf32>
    %136 = vector.extract_strided_slice %123 {offsets = [0, 256], sizes = [2, 128], strides = [1, 1]} : vector<2x512xf32> to vector<2x128xf32>
    %137 = math.tanh %136 : vector<2x128xf32>
    %138 = vector.extract_strided_slice %123 {offsets = [0, 384], sizes = [2, 128], strides = [1, 1]} : vector<2x512xf32> to vector<2x128xf32>
    %139 = arith.negf %138 : vector<2x128xf32>
    %140 = math.exp %139 : vector<2x128xf32>
    %cst_28 = arith.constant 1.000000e+00 : f32
    %141 = vector.broadcast %cst_28 : f32 to vector<2x128xf32>
    %142 = arith.addf %141, %140 : vector<2x128xf32>
    %143 = arith.divf %141, %142 : vector<2x128xf32>
    %144 = arith.mulf %135, %118 : vector<2x128xf32>
    %145 = arith.mulf %129, %137 : vector<2x128xf32>
    %146 = arith.addf %144, %145 : vector<2x128xf32>
    %147 = math.tanh %146 : vector<2x128xf32>
    %148 = arith.mulf %143, %147 : vector<2x128xf32>
    %cst_29 = arith.constant dense<0.000000e+00> : vector<2x512xf32>
    %149 = tpu.matmul %148, %6, %cst_29 {dimension_numbers = #tpu.dot_dimension_numbers<[1], [0], [0], [1], [0, 0, 1, 1], [], []>} : vector<2x128xf32>, vector<128x512xf32>, vector<2x512xf32> -> vector<2x512xf32>
    %150 = vector.extract_strided_slice %5 {offsets = [10, 0], sizes = [2, 512], strides = [1, 1]} : vector<16x1024xf32> to vector<2x512xf32>
    %151 = arith.addf %150, %149 : vector<2x512xf32>
    %152 = vector.extract_strided_slice %151 {offsets = [0, 0], sizes = [2, 128], strides = [1, 1]} : vector<2x512xf32> to vector<2x128xf32>
    %153 = arith.negf %152 : vector<2x128xf32>
    %154 = math.exp %153 : vector<2x128xf32>
    %cst_30 = arith.constant 1.000000e+00 : f32
    %155 = vector.broadcast %cst_30 : f32 to vector<2x128xf32>
    %156 = arith.addf %155, %154 : vector<2x128xf32>
    %157 = arith.divf %155, %156 : vector<2x128xf32>
    %158 = vector.extract_strided_slice %151 {offsets = [0, 128], sizes = [2, 128], strides = [1, 1]} : vector<2x512xf32> to vector<2x128xf32>
    %159 = arith.negf %158 : vector<2x128xf32>
    %160 = math.exp %159 : vector<2x128xf32>
    %cst_31 = arith.constant 1.000000e+00 : f32
    %161 = vector.broadcast %cst_31 : f32 to vector<2x128xf32>
    %162 = arith.addf %161, %160 : vector<2x128xf32>
    %163 = arith.divf %161, %162 : vector<2x128xf32>
    %164 = vector.extract_strided_slice %151 {offsets = [0, 256], sizes = [2, 128], strides = [1, 1]} : vector<2x512xf32> to vector<2x128xf32>
    %165 = math.tanh %164 : vector<2x128xf32>
    %166 = vector.extract_strided_slice %151 {offsets = [0, 384], sizes = [2, 128], strides = [1, 1]} : vector<2x512xf32> to vector<2x128xf32>
    %167 = arith.negf %166 : vector<2x128xf32>
    %168 = math.exp %167 : vector<2x128xf32>
    %cst_32 = arith.constant 1.000000e+00 : f32
    %169 = vector.broadcast %cst_32 : f32 to vector<2x128xf32>
    %170 = arith.addf %169, %168 : vector<2x128xf32>
    %171 = arith.divf %169, %170 : vector<2x128xf32>
    %172 = arith.mulf %163, %146 : vector<2x128xf32>
    %173 = arith.mulf %157, %165 : vector<2x128xf32>
    %174 = arith.addf %172, %173 : vector<2x128xf32>
    %175 = math.tanh %174 : vector<2x128xf32>
    %176 = arith.mulf %171, %175 : vector<2x128xf32>
    %cst_33 = arith.constant dense<0.000000e+00> : vector<2x512xf32>
    %177 = tpu.matmul %176, %6, %cst_33 {dimension_numbers = #tpu.dot_dimension_numbers<[1], [0], [0], [1], [0, 0, 1, 1], [], []>} : vector<2x128xf32>, vector<128x512xf32>, vector<2x512xf32> -> vector<2x512xf32>
    %178 = vector.extract_strided_slice %5 {offsets = [12, 0], sizes = [2, 512], strides = [1, 1]} : vector<16x1024xf32> to vector<2x512xf32>
    %179 = arith.addf %178, %177 : vector<2x512xf32>
    %180 = vector.extract_strided_slice %179 {offsets = [0, 0], sizes = [2, 128], strides = [1, 1]} : vector<2x512xf32> to vector<2x128xf32>
    %181 = arith.negf %180 : vector<2x128xf32>
    %182 = math.exp %181 : vector<2x128xf32>
    %cst_34 = arith.constant 1.000000e+00 : f32
    %183 = vector.broadcast %cst_34 : f32 to vector<2x128xf32>
    %184 = arith.addf %183, %182 : vector<2x128xf32>
    %185 = arith.divf %183, %184 : vector<2x128xf32>
    %186 = vector.extract_strided_slice %179 {offsets = [0, 128], sizes = [2, 128], strides = [1, 1]} : vector<2x512xf32> to vector<2x128xf32>
    %187 = arith.negf %186 : vector<2x128xf32>
    %188 = math.exp %187 : vector<2x128xf32>
    %cst_35 = arith.constant 1.000000e+00 : f32
    %189 = vector.broadcast %cst_35 : f32 to vector<2x128xf32>
    %190 = arith.addf %189, %188 : vector<2x128xf32>
    %191 = arith.divf %189, %190 : vector<2x128xf32>
    %192 = vector.extract_strided_slice %179 {offsets = [0, 256], sizes = [2, 128], strides = [1, 1]} : vector<2x512xf32> to vector<2x128xf32>
    %193 = math.tanh %192 : vector<2x128xf32>
    %194 = vector.extract_strided_slice %179 {offsets = [0, 384], sizes = [2, 128], strides = [1, 1]} : vector<2x512xf32> to vector<2x128xf32>
    %195 = arith.negf %194 : vector<2x128xf32>
    %196 = math.exp %195 : vector<2x128xf32>
    %cst_36 = arith.constant 1.000000e+00 : f32
    %197 = vector.broadcast %cst_36 : f32 to vector<2x128xf32>
    %198 = arith.addf %197, %196 : vector<2x128xf32>
    %199 = arith.divf %197, %198 : vector<2x128xf32>
    %200 = arith.mulf %191, %174 : vector<2x128xf32>
    %201 = arith.mulf %185, %193 : vector<2x128xf32>
    %202 = arith.addf %200, %201 : vector<2x128xf32>
    %203 = math.tanh %202 : vector<2x128xf32>
    %204 = arith.mulf %199, %203 : vector<2x128xf32>
    %cst_37 = arith.constant dense<0.000000e+00> : vector<2x512xf32>
    %205 = tpu.matmul %204, %6, %cst_37 {dimension_numbers = #tpu.dot_dimension_numbers<[1], [0], [0], [1], [0, 0, 1, 1], [], []>} : vector<2x128xf32>, vector<128x512xf32>, vector<2x512xf32> -> vector<2x512xf32>
    %206 = vector.extract_strided_slice %5 {offsets = [14, 0], sizes = [2, 512], strides = [1, 1]} : vector<16x1024xf32> to vector<2x512xf32>
    %207 = arith.addf %206, %205 : vector<2x512xf32>
    %208 = vector.extract_strided_slice %207 {offsets = [0, 0], sizes = [2, 128], strides = [1, 1]} : vector<2x512xf32> to vector<2x128xf32>
    %209 = arith.negf %208 : vector<2x128xf32>
    %210 = math.exp %209 : vector<2x128xf32>
    %cst_38 = arith.constant 1.000000e+00 : f32
    %211 = vector.broadcast %cst_38 : f32 to vector<2x128xf32>
    %212 = arith.addf %211, %210 : vector<2x128xf32>
    %213 = arith.divf %211, %212 : vector<2x128xf32>
    %214 = vector.extract_strided_slice %207 {offsets = [0, 128], sizes = [2, 128], strides = [1, 1]} : vector<2x512xf32> to vector<2x128xf32>
    %215 = arith.negf %214 : vector<2x128xf32>
    %216 = math.exp %215 : vector<2x128xf32>
    %cst_39 = arith.constant 1.000000e+00 : f32
    %217 = vector.broadcast %cst_39 : f32 to vector<2x128xf32>
    %218 = arith.addf %217, %216 : vector<2x128xf32>
    %219 = arith.divf %217, %218 : vector<2x128xf32>
    %220 = vector.extract_strided_slice %207 {offsets = [0, 256], sizes = [2, 128], strides = [1, 1]} : vector<2x512xf32> to vector<2x128xf32>
    %221 = math.tanh %220 : vector<2x128xf32>
    %222 = vector.extract_strided_slice %207 {offsets = [0, 384], sizes = [2, 128], strides = [1, 1]} : vector<2x512xf32> to vector<2x128xf32>
    %223 = arith.negf %222 : vector<2x128xf32>
    %224 = math.exp %223 : vector<2x128xf32>
    %cst_40 = arith.constant 1.000000e+00 : f32
    %225 = vector.broadcast %cst_40 : f32 to vector<2x128xf32>
    %226 = arith.addf %225, %224 : vector<2x128xf32>
    %227 = arith.divf %225, %226 : vector<2x128xf32>
    %228 = arith.mulf %219, %202 : vector<2x128xf32>
    %229 = arith.mulf %213, %221 : vector<2x128xf32>
    %230 = arith.addf %228, %229 : vector<2x128xf32>
    %231 = math.tanh %230 : vector<2x128xf32>
    %232 = arith.mulf %227, %231 : vector<2x128xf32>
    %233 = vector.extract_strided_slice %5 {offsets = [14, 512], sizes = [2, 512], strides = [1, 1]} : vector<16x1024xf32> to vector<2x512xf32>
    %cst_41 = arith.constant 0.000000e+00 : f32
    %234 = vector.broadcast %cst_41 : f32 to vector<2x128xf32>
    %235 = vector.extract_strided_slice %233 {offsets = [0, 0], sizes = [2, 128], strides = [1, 1]} : vector<2x512xf32> to vector<2x128xf32>
    %236 = arith.negf %235 : vector<2x128xf32>
    %237 = math.exp %236 : vector<2x128xf32>
    %cst_42 = arith.constant 1.000000e+00 : f32
    %238 = vector.broadcast %cst_42 : f32 to vector<2x128xf32>
    %239 = arith.addf %238, %237 : vector<2x128xf32>
    %240 = arith.divf %238, %239 : vector<2x128xf32>
    %241 = vector.extract_strided_slice %233 {offsets = [0, 128], sizes = [2, 128], strides = [1, 1]} : vector<2x512xf32> to vector<2x128xf32>
    %242 = arith.negf %241 : vector<2x128xf32>
    %243 = math.exp %242 : vector<2x128xf32>
    %cst_43 = arith.constant 1.000000e+00 : f32
    %244 = vector.broadcast %cst_43 : f32 to vector<2x128xf32>
    %245 = arith.addf %244, %243 : vector<2x128xf32>
    %246 = arith.divf %244, %245 : vector<2x128xf32>
    %247 = vector.extract_strided_slice %233 {offsets = [0, 256], sizes = [2, 128], strides = [1, 1]} : vector<2x512xf32> to vector<2x128xf32>
    %248 = math.tanh %247 : vector<2x128xf32>
    %249 = vector.extract_strided_slice %233 {offsets = [0, 384], sizes = [2, 128], strides = [1, 1]} : vector<2x512xf32> to vector<2x128xf32>
    %250 = arith.negf %249 : vector<2x128xf32>
    %251 = math.exp %250 : vector<2x128xf32>
    %cst_44 = arith.constant 1.000000e+00 : f32
    %252 = vector.broadcast %cst_44 : f32 to vector<2x128xf32>
    %253 = arith.addf %252, %251 : vector<2x128xf32>
    %254 = arith.divf %252, %253 : vector<2x128xf32>
    %255 = arith.mulf %246, %234 : vector<2x128xf32>
    %256 = arith.mulf %240, %248 : vector<2x128xf32>
    %257 = arith.addf %255, %256 : vector<2x128xf32>
    %258 = math.tanh %257 : vector<2x128xf32>
    %259 = arith.mulf %254, %258 : vector<2x128xf32>
    %c0_45 = arith.constant 0 : index
    %c0_46 = arith.constant 0 : index
    %260 = vector.load %arg5[%c0_45, %c0_46] : memref<256x32xf32, #tpu.memory_space<vmem>>, vector<256x32xf32>
    %261 = vector.extract_strided_slice %260 {offsets = [0, 0], sizes = [128, 32], strides = [1, 1]} : vector<256x32xf32> to vector<128x32xf32>
    %cst_47 = arith.constant dense<0.000000e+00> : vector<2x32xf32>
    %262 = tpu.matmul %232, %261, %cst_47 {dimension_numbers = #tpu.dot_dimension_numbers<[1], [0], [0], [1], [0, 0, 1, 1], [], []>} : vector<2x128xf32>, vector<128x32xf32>, vector<2x32xf32> -> vector<2x32xf32>
    %263 = vector.extract_strided_slice %260 {offsets = [128, 0], sizes = [128, 32], strides = [1, 1]} : vector<256x32xf32> to vector<128x32xf32>
    %cst_48 = arith.constant dense<0.000000e+00> : vector<2x32xf32>
    %264 = tpu.matmul %259, %263, %cst_48 {dimension_numbers = #tpu.dot_dimension_numbers<[1], [0], [0], [1], [0, 0, 1, 1], [], []>} : vector<2x128xf32>, vector<128x32xf32>, vector<2x32xf32> -> vector<2x32xf32>
    %265 = arith.addf %262, %264 : vector<2x32xf32>
    %c0_49 = arith.constant 0 : index
    %c0_50 = arith.constant 0 : index
    %266 = vector.load %arg6[%c0_49, %c0_50] : memref<1x32xf32, #tpu.memory_space<vmem>>, vector<1x32xf32>
    %267 = vector.broadcast %266 : vector<1x32xf32> to vector<2x32xf32>
    %268 = arith.addf %265, %267 : vector<2x32xf32>
    %c0_51 = arith.constant 0 : index
    %c0_52 = arith.constant 0 : index
    %269 = vector.load %arg7[%c0_51, %c0_52] : memref<32x4xf32, #tpu.memory_space<vmem>>, vector<32x4xf32>
    %cst_53 = arith.constant dense<0.000000e+00> : vector<2x4xf32>
    %270 = tpu.matmul %268, %269, %cst_53 {dimension_numbers = #tpu.dot_dimension_numbers<[1], [0], [0], [1], [0, 0, 1, 1], [], []>} : vector<2x32xf32>, vector<32x4xf32>, vector<2x4xf32> -> vector<2x4xf32>
    %c0_54 = arith.constant 0 : index
    %c0_55 = arith.constant 0 : index
    %271 = vector.load %arg8[%c0_54, %c0_55] : memref<1x4xf32, #tpu.memory_space<vmem>>, vector<1x4xf32>
    %272 = vector.broadcast %271 : vector<1x4xf32> to vector<2x4xf32>
    %273 = arith.addf %270, %272 : vector<2x4xf32>
    %c0_56 = arith.constant 0 : index
    %c0_57 = arith.constant 0 : index
    %274 = vector.load %arg9[%c0_56, %c0_57] : memref<2x4xf32, #tpu.memory_space<vmem>>, vector<2x4xf32>
    tpu.vector_store %arg9[%c0_56, %c0_57], %273 {strides = array<i32>} : memref<2x4xf32, #tpu.memory_space<vmem>>, vector<2x4xf32>,
    return
  }
}

module attributes {stable_mosaic.version = 11 : i64} {
  func.func @_bilstm_seq_kernel(%arg0: memref<16x384xf32, #tpu.memory_space<vmem>>, %arg1: memref<384x1024xf32, #tpu.memory_space<vmem>>, %arg2: memref<1x1024xf32, #tpu.memory_space<vmem>>, %arg3: memref<128x512xf32, #tpu.memory_space<vmem>>, %arg4: memref<128x512xf32, #tpu.memory_space<vmem>>, %arg5: memref<8x2x256xf32, #tpu.memory_space<vmem>>) attributes {dimension_semantics = [], scalar_prefetch = 0 : i64, scratch_operands = 0 : i64, tpu.core_type = #tpu.core_type<tc>} {
    %c0 = arith.constant 0 : index
    %c0_0 = arith.constant 0 : index
    %0 = vector.load %arg0[%c0, %c0_0] : memref<16x384xf32, #tpu.memory_space<vmem>>, vector<16x384xf32>
    %c0_1 = arith.constant 0 : index
    %c0_2 = arith.constant 0 : index
    %1 = vector.load %arg1[%c0_1, %c0_2] : memref<384x1024xf32, #tpu.memory_space<vmem>>, vector<384x1024xf32>
    %cst = arith.constant dense<0.000000e+00> : vector<16x1024xf32>
    %2 = tpu.matmul %0, %1, %cst {dimension_numbers = #tpu.dot_dimension_numbers<[1], [0], [0], [1], [0, 0, 1, 1], [], []>} : vector<16x384xf32>, vector<384x1024xf32>, vector<16x1024xf32> -> vector<16x1024xf32>
    %c0_3 = arith.constant 0 : index
    %c0_4 = arith.constant 0 : index
    %3 = vector.load %arg2[%c0_3, %c0_4] : memref<1x1024xf32, #tpu.memory_space<vmem>>, vector<1x1024xf32>
    %4 = vector.broadcast %3 : vector<1x1024xf32> to vector<16x1024xf32>
    %5 = arith.addf %2, %4 : vector<16x1024xf32>
    %c0_5 = arith.constant 0 : index
    %c0_6 = arith.constant 0 : index
    %6 = vector.load %arg3[%c0_5, %c0_6] : memref<128x512xf32, #tpu.memory_space<vmem>>, vector<128x512xf32>
    %c0_7 = arith.constant 0 : index
    %c0_8 = arith.constant 0 : index
    %7 = vector.load %arg4[%c0_7, %c0_8] : memref<128x512xf32, #tpu.memory_space<vmem>>, vector<128x512xf32>
    %cst_9 = arith.constant 0.000000e+00 : f32
    %8 = vector.broadcast %cst_9 : f32 to vector<2x128xf32>
    %cst_10 = arith.constant 0.000000e+00 : f32
    %9 = vector.broadcast %cst_10 : f32 to vector<2x128xf32>
    %cst_11 = arith.constant 0.000000e+00 : f32
    %10 = vector.broadcast %cst_11 : f32 to vector<2x128xf32>
    %cst_12 = arith.constant 0.000000e+00 : f32
    %11 = vector.broadcast %cst_12 : f32 to vector<2x128xf32>
    %cst_13 = arith.constant dense<0.000000e+00> : vector<2x512xf32>
    %12 = tpu.matmul %8, %6, %cst_13 {dimension_numbers = #tpu.dot_dimension_numbers<[1], [0], [0], [1], [0, 0, 1, 1], [], []>} : vector<2x128xf32>, vector<128x512xf32>, vector<2x512xf32> -> vector<2x512xf32>
    %cst_14 = arith.constant dense<0.000000e+00> : vector<2x512xf32>
    %13 = tpu.matmul %10, %7, %cst_14 {dimension_numbers = #tpu.dot_dimension_numbers<[1], [0], [0], [1], [0, 0, 1, 1], [], []>} : vector<2x128xf32>, vector<128x512xf32>, vector<2x512xf32> -> vector<2x512xf32>
    %14 = vector.extract_strided_slice %5 {offsets = [0, 0], sizes = [2, 512], strides = [1, 1]} : vector<16x1024xf32> to vector<2x512xf32>
    %15 = arith.addf %14, %12 : vector<2x512xf32>
    %16 = vector.extract_strided_slice %5 {offsets = [14, 512], sizes = [2, 512], strides = [1, 1]} : vector<16x1024xf32> to vector<2x512xf32>
    %17 = arith.addf %16, %13 : vector<2x512xf32>
    %18 = vector.extract_strided_slice %15 {offsets = [0, 0], sizes = [2, 128], strides = [1, 1]} : vector<2x512xf32> to vector<2x128xf32>
    %19 = arith.negf %18 : vector<2x128xf32>
    %20 = math.exp %19 : vector<2x128xf32>
    %cst_15 = arith.constant 1.000000e+00 : f32
    %21 = vector.broadcast %cst_15 : f32 to vector<2x128xf32>
    %22 = arith.addf %21, %20 : vector<2x128xf32>
    %23 = arith.divf %21, %22 : vector<2x128xf32>
    %24 = vector.extract_strided_slice %15 {offsets = [0, 128], sizes = [2, 128], strides = [1, 1]} : vector<2x512xf32> to vector<2x128xf32>
    %25 = arith.negf %24 : vector<2x128xf32>
    %26 = math.exp %25 : vector<2x128xf32>
    %cst_16 = arith.constant 1.000000e+00 : f32
    %27 = vector.broadcast %cst_16 : f32 to vector<2x128xf32>
    %28 = arith.addf %27, %26 : vector<2x128xf32>
    %29 = arith.divf %27, %28 : vector<2x128xf32>
    %30 = vector.extract_strided_slice %15 {offsets = [0, 256], sizes = [2, 128], strides = [1, 1]} : vector<2x512xf32> to vector<2x128xf32>
    %31 = math.tanh %30 : vector<2x128xf32>
    %32 = vector.extract_strided_slice %15 {offsets = [0, 384], sizes = [2, 128], strides = [1, 1]} : vector<2x512xf32> to vector<2x128xf32>
    %33 = arith.negf %32 : vector<2x128xf32>
    %34 = math.exp %33 : vector<2x128xf32>
    %cst_17 = arith.constant 1.000000e+00 : f32
    %35 = vector.broadcast %cst_17 : f32 to vector<2x128xf32>
    %36 = arith.addf %35, %34 : vector<2x128xf32>
    %37 = arith.divf %35, %36 : vector<2x128xf32>
    %38 = arith.mulf %29, %9 : vector<2x128xf32>
    %39 = arith.mulf %23, %31 : vector<2x128xf32>
    %40 = arith.addf %38, %39 : vector<2x128xf32>
    %41 = math.tanh %40 : vector<2x128xf32>
    %42 = arith.mulf %37, %41 : vector<2x128xf32>
    %43 = vector.extract_strided_slice %17 {offsets = [0, 0], sizes = [2, 128], strides = [1, 1]} : vector<2x512xf32> to vector<2x128xf32>
    %44 = arith.negf %43 : vector<2x128xf32>
    %45 = math.exp %44 : vector<2x128xf32>
    %cst_18 = arith.constant 1.000000e+00 : f32
    %46 = vector.broadcast %cst_18 : f32 to vector<2x128xf32>
    %47 = arith.addf %46, %45 : vector<2x128xf32>
    %48 = arith.divf %46, %47 : vector<2x128xf32>
    %49 = vector.extract_strided_slice %17 {offsets = [0, 128], sizes = [2, 128], strides = [1, 1]} : vector<2x512xf32> to vector<2x128xf32>
    %50 = arith.negf %49 : vector<2x128xf32>
    %51 = math.exp %50 : vector<2x128xf32>
    %cst_19 = arith.constant 1.000000e+00 : f32
    %52 = vector.broadcast %cst_19 : f32 to vector<2x128xf32>
    %53 = arith.addf %52, %51 : vector<2x128xf32>
    %54 = arith.divf %52, %53 : vector<2x128xf32>
    %55 = vector.extract_strided_slice %17 {offsets = [0, 256], sizes = [2, 128], strides = [1, 1]} : vector<2x512xf32> to vector<2x128xf32>
    %56 = math.tanh %55 : vector<2x128xf32>
    %57 = vector.extract_strided_slice %17 {offsets = [0, 384], sizes = [2, 128], strides = [1, 1]} : vector<2x512xf32> to vector<2x128xf32>
    %58 = arith.negf %57 : vector<2x128xf32>
    %59 = math.exp %58 : vector<2x128xf32>
    %cst_20 = arith.constant 1.000000e+00 : f32
    %60 = vector.broadcast %cst_20 : f32 to vector<2x128xf32>
    %61 = arith.addf %60, %59 : vector<2x128xf32>
    %62 = arith.divf %60, %61 : vector<2x128xf32>
    %63 = arith.mulf %54, %11 : vector<2x128xf32>
    %64 = arith.mulf %48, %56 : vector<2x128xf32>
    %65 = arith.addf %63, %64 : vector<2x128xf32>
    %66 = math.tanh %65 : vector<2x128xf32>
    %67 = arith.mulf %62, %66 : vector<2x128xf32>
    %c0_21 = arith.constant 0 : index
    %c0_22 = arith.constant 0 : index
    %c0_23 = arith.constant 0 : index
    %68 = vector.load %arg5[%c0_21, %c0_22, %c0_23] : memref<8x2x256xf32, #tpu.memory_space<vmem>>, vector<1x2x128xf32>
    %69 = vector.shape_cast %68 : vector<1x2x128xf32> to vector<2x128xf32>
    %70 = vector.shape_cast %42 : vector<2x128xf32> to vector<1x2x128xf32>
    tpu.vector_store %arg5[%c0_21, %c0_22, %c0_23], %70 {strides = array<i32>} : memref<8x2x256xf32, #tpu.memory_space<vmem>>, vector<1x2x128xf32>,
    %c7 = arith.constant 7 : index
    %c0_24 = arith.constant 0 : index
    %c128 = arith.constant 128 : index
    %71 = vector.load %arg5[%c7, %c0_24, %c128] : memref<8x2x256xf32, #tpu.memory_space<vmem>>, vector<1x2x128xf32>
    %72 = vector.shape_cast %71 : vector<1x2x128xf32> to vector<2x128xf32>
    %73 = vector.shape_cast %67 : vector<2x128xf32> to vector<1x2x128xf32>
    tpu.vector_store %arg5[%c7, %c0_24, %c128], %73 {strides = array<i32>} : memref<8x2x256xf32, #tpu.memory_space<vmem>>, vector<1x2x128xf32>,
    %cst_25 = arith.constant dense<0.000000e+00> : vector<2x512xf32>
    %74 = tpu.matmul %42, %6, %cst_25 {dimension_numbers = #tpu.dot_dimension_numbers<[1], [0], [0], [1], [0, 0, 1, 1], [], []>} : vector<2x128xf32>, vector<128x512xf32>, vector<2x512xf32> -> vector<2x512xf32>
    %cst_26 = arith.constant dense<0.000000e+00> : vector<2x512xf32>
    %75 = tpu.matmul %67, %7, %cst_26 {dimension_numbers = #tpu.dot_dimension_numbers<[1], [0], [0], [1], [0, 0, 1, 1], [], []>} : vector<2x128xf32>, vector<128x512xf32>, vector<2x512xf32> -> vector<2x512xf32>
    %76 = vector.extract_strided_slice %5 {offsets = [2, 0], sizes = [2, 512], strides = [1, 1]} : vector<16x1024xf32> to vector<2x512xf32>
    %77 = arith.addf %76, %74 : vector<2x512xf32>
    %78 = vector.extract_strided_slice %5 {offsets = [12, 512], sizes = [2, 512], strides = [1, 1]} : vector<16x1024xf32> to vector<2x512xf32>
    %79 = arith.addf %78, %75 : vector<2x512xf32>
    %80 = vector.extract_strided_slice %77 {offsets = [0, 0], sizes = [2, 128], strides = [1, 1]} : vector<2x512xf32> to vector<2x128xf32>
    %81 = arith.negf %80 : vector<2x128xf32>
    %82 = math.exp %81 : vector<2x128xf32>
    %cst_27 = arith.constant 1.000000e+00 : f32
    %83 = vector.broadcast %cst_27 : f32 to vector<2x128xf32>
    %84 = arith.addf %83, %82 : vector<2x128xf32>
    %85 = arith.divf %83, %84 : vector<2x128xf32>
    %86 = vector.extract_strided_slice %77 {offsets = [0, 128], sizes = [2, 128], strides = [1, 1]} : vector<2x512xf32> to vector<2x128xf32>
    %87 = arith.negf %86 : vector<2x128xf32>
    %88 = math.exp %87 : vector<2x128xf32>
    %cst_28 = arith.constant 1.000000e+00 : f32
    %89 = vector.broadcast %cst_28 : f32 to vector<2x128xf32>
    %90 = arith.addf %89, %88 : vector<2x128xf32>
    %91 = arith.divf %89, %90 : vector<2x128xf32>
    %92 = vector.extract_strided_slice %77 {offsets = [0, 256], sizes = [2, 128], strides = [1, 1]} : vector<2x512xf32> to vector<2x128xf32>
    %93 = math.tanh %92 : vector<2x128xf32>
    %94 = vector.extract_strided_slice %77 {offsets = [0, 384], sizes = [2, 128], strides = [1, 1]} : vector<2x512xf32> to vector<2x128xf32>
    %95 = arith.negf %94 : vector<2x128xf32>
    %96 = math.exp %95 : vector<2x128xf32>
    %cst_29 = arith.constant 1.000000e+00 : f32
    %97 = vector.broadcast %cst_29 : f32 to vector<2x128xf32>
    %98 = arith.addf %97, %96 : vector<2x128xf32>
    %99 = arith.divf %97, %98 : vector<2x128xf32>
    %100 = arith.mulf %91, %40 : vector<2x128xf32>
    %101 = arith.mulf %85, %93 : vector<2x128xf32>
    %102 = arith.addf %100, %101 : vector<2x128xf32>
    %103 = math.tanh %102 : vector<2x128xf32>
    %104 = arith.mulf %99, %103 : vector<2x128xf32>
    %105 = vector.extract_strided_slice %79 {offsets = [0, 0], sizes = [2, 128], strides = [1, 1]} : vector<2x512xf32> to vector<2x128xf32>
    %106 = arith.negf %105 : vector<2x128xf32>
    %107 = math.exp %106 : vector<2x128xf32>
    %cst_30 = arith.constant 1.000000e+00 : f32
    %108 = vector.broadcast %cst_30 : f32 to vector<2x128xf32>
    %109 = arith.addf %108, %107 : vector<2x128xf32>
    %110 = arith.divf %108, %109 : vector<2x128xf32>
    %111 = vector.extract_strided_slice %79 {offsets = [0, 128], sizes = [2, 128], strides = [1, 1]} : vector<2x512xf32> to vector<2x128xf32>
    %112 = arith.negf %111 : vector<2x128xf32>
    %113 = math.exp %112 : vector<2x128xf32>
    %cst_31 = arith.constant 1.000000e+00 : f32
    %114 = vector.broadcast %cst_31 : f32 to vector<2x128xf32>
    %115 = arith.addf %114, %113 : vector<2x128xf32>
    %116 = arith.divf %114, %115 : vector<2x128xf32>
    %117 = vector.extract_strided_slice %79 {offsets = [0, 256], sizes = [2, 128], strides = [1, 1]} : vector<2x512xf32> to vector<2x128xf32>
    %118 = math.tanh %117 : vector<2x128xf32>
    %119 = vector.extract_strided_slice %79 {offsets = [0, 384], sizes = [2, 128], strides = [1, 1]} : vector<2x512xf32> to vector<2x128xf32>
    %120 = arith.negf %119 : vector<2x128xf32>
    %121 = math.exp %120 : vector<2x128xf32>
    %cst_32 = arith.constant 1.000000e+00 : f32
    %122 = vector.broadcast %cst_32 : f32 to vector<2x128xf32>
    %123 = arith.addf %122, %121 : vector<2x128xf32>
    %124 = arith.divf %122, %123 : vector<2x128xf32>
    %125 = arith.mulf %116, %65 : vector<2x128xf32>
    %126 = arith.mulf %110, %118 : vector<2x128xf32>
    %127 = arith.addf %125, %126 : vector<2x128xf32>
    %128 = math.tanh %127 : vector<2x128xf32>
    %129 = arith.mulf %124, %128 : vector<2x128xf32>
    %c1 = arith.constant 1 : index
    %c0_33 = arith.constant 0 : index
    %c0_34 = arith.constant 0 : index
    %130 = vector.load %arg5[%c1, %c0_33, %c0_34] : memref<8x2x256xf32, #tpu.memory_space<vmem>>, vector<1x2x128xf32>
    %131 = vector.shape_cast %130 : vector<1x2x128xf32> to vector<2x128xf32>
    %132 = vector.shape_cast %104 : vector<2x128xf32> to vector<1x2x128xf32>
    tpu.vector_store %arg5[%c1, %c0_33, %c0_34], %132 {strides = array<i32>} : memref<8x2x256xf32, #tpu.memory_space<vmem>>, vector<1x2x128xf32>,
    %c6 = arith.constant 6 : index
    %c0_35 = arith.constant 0 : index
    %c128_36 = arith.constant 128 : index
    %133 = vector.load %arg5[%c6, %c0_35, %c128_36] : memref<8x2x256xf32, #tpu.memory_space<vmem>>, vector<1x2x128xf32>
    %134 = vector.shape_cast %133 : vector<1x2x128xf32> to vector<2x128xf32>
    %135 = vector.shape_cast %129 : vector<2x128xf32> to vector<1x2x128xf32>
    tpu.vector_store %arg5[%c6, %c0_35, %c128_36], %135 {strides = array<i32>} : memref<8x2x256xf32, #tpu.memory_space<vmem>>, vector<1x2x128xf32>,
    %cst_37 = arith.constant dense<0.000000e+00> : vector<2x512xf32>
    %136 = tpu.matmul %104, %6, %cst_37 {dimension_numbers = #tpu.dot_dimension_numbers<[1], [0], [0], [1], [0, 0, 1, 1], [], []>} : vector<2x128xf32>, vector<128x512xf32>, vector<2x512xf32> -> vector<2x512xf32>
    %cst_38 = arith.constant dense<0.000000e+00> : vector<2x512xf32>
    %137 = tpu.matmul %129, %7, %cst_38 {dimension_numbers = #tpu.dot_dimension_numbers<[1], [0], [0], [1], [0, 0, 1, 1], [], []>} : vector<2x128xf32>, vector<128x512xf32>, vector<2x512xf32> -> vector<2x512xf32>
    %138 = vector.extract_strided_slice %5 {offsets = [4, 0], sizes = [2, 512], strides = [1, 1]} : vector<16x1024xf32> to vector<2x512xf32>
    %139 = arith.addf %138, %136 : vector<2x512xf32>
    %140 = vector.extract_strided_slice %5 {offsets = [10, 512], sizes = [2, 512], strides = [1, 1]} : vector<16x1024xf32> to vector<2x512xf32>
    %141 = arith.addf %140, %137 : vector<2x512xf32>
    %142 = vector.extract_strided_slice %139 {offsets = [0, 0], sizes = [2, 128], strides = [1, 1]} : vector<2x512xf32> to vector<2x128xf32>
    %143 = arith.negf %142 : vector<2x128xf32>
    %144 = math.exp %143 : vector<2x128xf32>
    %cst_39 = arith.constant 1.000000e+00 : f32
    %145 = vector.broadcast %cst_39 : f32 to vector<2x128xf32>
    %146 = arith.addf %145, %144 : vector<2x128xf32>
    %147 = arith.divf %145, %146 : vector<2x128xf32>
    %148 = vector.extract_strided_slice %139 {offsets = [0, 128], sizes = [2, 128], strides = [1, 1]} : vector<2x512xf32> to vector<2x128xf32>
    %149 = arith.negf %148 : vector<2x128xf32>
    %150 = math.exp %149 : vector<2x128xf32>
    %cst_40 = arith.constant 1.000000e+00 : f32
    %151 = vector.broadcast %cst_40 : f32 to vector<2x128xf32>
    %152 = arith.addf %151, %150 : vector<2x128xf32>
    %153 = arith.divf %151, %152 : vector<2x128xf32>
    %154 = vector.extract_strided_slice %139 {offsets = [0, 256], sizes = [2, 128], strides = [1, 1]} : vector<2x512xf32> to vector<2x128xf32>
    %155 = math.tanh %154 : vector<2x128xf32>
    %156 = vector.extract_strided_slice %139 {offsets = [0, 384], sizes = [2, 128], strides = [1, 1]} : vector<2x512xf32> to vector<2x128xf32>
    %157 = arith.negf %156 : vector<2x128xf32>
    %158 = math.exp %157 : vector<2x128xf32>
    %cst_41 = arith.constant 1.000000e+00 : f32
    %159 = vector.broadcast %cst_41 : f32 to vector<2x128xf32>
    %160 = arith.addf %159, %158 : vector<2x128xf32>
    %161 = arith.divf %159, %160 : vector<2x128xf32>
    %162 = arith.mulf %153, %102 : vector<2x128xf32>
    %163 = arith.mulf %147, %155 : vector<2x128xf32>
    %164 = arith.addf %162, %163 : vector<2x128xf32>
    %165 = math.tanh %164 : vector<2x128xf32>
    %166 = arith.mulf %161, %165 : vector<2x128xf32>
    %167 = vector.extract_strided_slice %141 {offsets = [0, 0], sizes = [2, 128], strides = [1, 1]} : vector<2x512xf32> to vector<2x128xf32>
    %168 = arith.negf %167 : vector<2x128xf32>
    %169 = math.exp %168 : vector<2x128xf32>
    %cst_42 = arith.constant 1.000000e+00 : f32
    %170 = vector.broadcast %cst_42 : f32 to vector<2x128xf32>
    %171 = arith.addf %170, %169 : vector<2x128xf32>
    %172 = arith.divf %170, %171 : vector<2x128xf32>
    %173 = vector.extract_strided_slice %141 {offsets = [0, 128], sizes = [2, 128], strides = [1, 1]} : vector<2x512xf32> to vector<2x128xf32>
    %174 = arith.negf %173 : vector<2x128xf32>
    %175 = math.exp %174 : vector<2x128xf32>
    %cst_43 = arith.constant 1.000000e+00 : f32
    %176 = vector.broadcast %cst_43 : f32 to vector<2x128xf32>
    %177 = arith.addf %176, %175 : vector<2x128xf32>
    %178 = arith.divf %176, %177 : vector<2x128xf32>
    %179 = vector.extract_strided_slice %141 {offsets = [0, 256], sizes = [2, 128], strides = [1, 1]} : vector<2x512xf32> to vector<2x128xf32>
    %180 = math.tanh %179 : vector<2x128xf32>
    %181 = vector.extract_strided_slice %141 {offsets = [0, 384], sizes = [2, 128], strides = [1, 1]} : vector<2x512xf32> to vector<2x128xf32>
    %182 = arith.negf %181 : vector<2x128xf32>
    %183 = math.exp %182 : vector<2x128xf32>
    %cst_44 = arith.constant 1.000000e+00 : f32
    %184 = vector.broadcast %cst_44 : f32 to vector<2x128xf32>
    %185 = arith.addf %184, %183 : vector<2x128xf32>
    %186 = arith.divf %184, %185 : vector<2x128xf32>
    %187 = arith.mulf %178, %127 : vector<2x128xf32>
    %188 = arith.mulf %172, %180 : vector<2x128xf32>
    %189 = arith.addf %187, %188 : vector<2x128xf32>
    %190 = math.tanh %189 : vector<2x128xf32>
    %191 = arith.mulf %186, %190 : vector<2x128xf32>
    %c2 = arith.constant 2 : index
    %c0_45 = arith.constant 0 : index
    %c0_46 = arith.constant 0 : index
    %192 = vector.load %arg5[%c2, %c0_45, %c0_46] : memref<8x2x256xf32, #tpu.memory_space<vmem>>, vector<1x2x128xf32>
    %193 = vector.shape_cast %192 : vector<1x2x128xf32> to vector<2x128xf32>
    %194 = vector.shape_cast %166 : vector<2x128xf32> to vector<1x2x128xf32>
    tpu.vector_store %arg5[%c2, %c0_45, %c0_46], %194 {strides = array<i32>} : memref<8x2x256xf32, #tpu.memory_space<vmem>>, vector<1x2x128xf32>,
    %c5 = arith.constant 5 : index
    %c0_47 = arith.constant 0 : index
    %c128_48 = arith.constant 128 : index
    %195 = vector.load %arg5[%c5, %c0_47, %c128_48] : memref<8x2x256xf32, #tpu.memory_space<vmem>>, vector<1x2x128xf32>
    %196 = vector.shape_cast %195 : vector<1x2x128xf32> to vector<2x128xf32>
    %197 = vector.shape_cast %191 : vector<2x128xf32> to vector<1x2x128xf32>
    tpu.vector_store %arg5[%c5, %c0_47, %c128_48], %197 {strides = array<i32>} : memref<8x2x256xf32, #tpu.memory_space<vmem>>, vector<1x2x128xf32>,
    %cst_49 = arith.constant dense<0.000000e+00> : vector<2x512xf32>
    %198 = tpu.matmul %166, %6, %cst_49 {dimension_numbers = #tpu.dot_dimension_numbers<[1], [0], [0], [1], [0, 0, 1, 1], [], []>} : vector<2x128xf32>, vector<128x512xf32>, vector<2x512xf32> -> vector<2x512xf32>
    %cst_50 = arith.constant dense<0.000000e+00> : vector<2x512xf32>
    %199 = tpu.matmul %191, %7, %cst_50 {dimension_numbers = #tpu.dot_dimension_numbers<[1], [0], [0], [1], [0, 0, 1, 1], [], []>} : vector<2x128xf32>, vector<128x512xf32>, vector<2x512xf32> -> vector<2x512xf32>
    %200 = vector.extract_strided_slice %5 {offsets = [6, 0], sizes = [2, 512], strides = [1, 1]} : vector<16x1024xf32> to vector<2x512xf32>
    %201 = arith.addf %200, %198 : vector<2x512xf32>
    %202 = vector.extract_strided_slice %5 {offsets = [8, 512], sizes = [2, 512], strides = [1, 1]} : vector<16x1024xf32> to vector<2x512xf32>
    %203 = arith.addf %202, %199 : vector<2x512xf32>
    %204 = vector.extract_strided_slice %201 {offsets = [0, 0], sizes = [2, 128], strides = [1, 1]} : vector<2x512xf32> to vector<2x128xf32>
    %205 = arith.negf %204 : vector<2x128xf32>
    %206 = math.exp %205 : vector<2x128xf32>
    %cst_51 = arith.constant 1.000000e+00 : f32
    %207 = vector.broadcast %cst_51 : f32 to vector<2x128xf32>
    %208 = arith.addf %207, %206 : vector<2x128xf32>
    %209 = arith.divf %207, %208 : vector<2x128xf32>
    %210 = vector.extract_strided_slice %201 {offsets = [0, 128], sizes = [2, 128], strides = [1, 1]} : vector<2x512xf32> to vector<2x128xf32>
    %211 = arith.negf %210 : vector<2x128xf32>
    %212 = math.exp %211 : vector<2x128xf32>
    %cst_52 = arith.constant 1.000000e+00 : f32
    %213 = vector.broadcast %cst_52 : f32 to vector<2x128xf32>
    %214 = arith.addf %213, %212 : vector<2x128xf32>
    %215 = arith.divf %213, %214 : vector<2x128xf32>
    %216 = vector.extract_strided_slice %201 {offsets = [0, 256], sizes = [2, 128], strides = [1, 1]} : vector<2x512xf32> to vector<2x128xf32>
    %217 = math.tanh %216 : vector<2x128xf32>
    %218 = vector.extract_strided_slice %201 {offsets = [0, 384], sizes = [2, 128], strides = [1, 1]} : vector<2x512xf32> to vector<2x128xf32>
    %219 = arith.negf %218 : vector<2x128xf32>
    %220 = math.exp %219 : vector<2x128xf32>
    %cst_53 = arith.constant 1.000000e+00 : f32
    %221 = vector.broadcast %cst_53 : f32 to vector<2x128xf32>
    %222 = arith.addf %221, %220 : vector<2x128xf32>
    %223 = arith.divf %221, %222 : vector<2x128xf32>
    %224 = arith.mulf %215, %164 : vector<2x128xf32>
    %225 = arith.mulf %209, %217 : vector<2x128xf32>
    %226 = arith.addf %224, %225 : vector<2x128xf32>
    %227 = math.tanh %226 : vector<2x128xf32>
    %228 = arith.mulf %223, %227 : vector<2x128xf32>
    %229 = vector.extract_strided_slice %203 {offsets = [0, 0], sizes = [2, 128], strides = [1, 1]} : vector<2x512xf32> to vector<2x128xf32>
    %230 = arith.negf %229 : vector<2x128xf32>
    %231 = math.exp %230 : vector<2x128xf32>
    %cst_54 = arith.constant 1.000000e+00 : f32
    %232 = vector.broadcast %cst_54 : f32 to vector<2x128xf32>
    %233 = arith.addf %232, %231 : vector<2x128xf32>
    %234 = arith.divf %232, %233 : vector<2x128xf32>
    %235 = vector.extract_strided_slice %203 {offsets = [0, 128], sizes = [2, 128], strides = [1, 1]} : vector<2x512xf32> to vector<2x128xf32>
    %236 = arith.negf %235 : vector<2x128xf32>
    %237 = math.exp %236 : vector<2x128xf32>
    %cst_55 = arith.constant 1.000000e+00 : f32
    %238 = vector.broadcast %cst_55 : f32 to vector<2x128xf32>
    %239 = arith.addf %238, %237 : vector<2x128xf32>
    %240 = arith.divf %238, %239 : vector<2x128xf32>
    %241 = vector.extract_strided_slice %203 {offsets = [0, 256], sizes = [2, 128], strides = [1, 1]} : vector<2x512xf32> to vector<2x128xf32>
    %242 = math.tanh %241 : vector<2x128xf32>
    %243 = vector.extract_strided_slice %203 {offsets = [0, 384], sizes = [2, 128], strides = [1, 1]} : vector<2x512xf32> to vector<2x128xf32>
    %244 = arith.negf %243 : vector<2x128xf32>
    %245 = math.exp %244 : vector<2x128xf32>
    %cst_56 = arith.constant 1.000000e+00 : f32
    %246 = vector.broadcast %cst_56 : f32 to vector<2x128xf32>
    %247 = arith.addf %246, %245 : vector<2x128xf32>
    %248 = arith.divf %246, %247 : vector<2x128xf32>
    %249 = arith.mulf %240, %189 : vector<2x128xf32>
    %250 = arith.mulf %234, %242 : vector<2x128xf32>
    %251 = arith.addf %249, %250 : vector<2x128xf32>
    %252 = math.tanh %251 : vector<2x128xf32>
    %253 = arith.mulf %248, %252 : vector<2x128xf32>
    %c3 = arith.constant 3 : index
    %c0_57 = arith.constant 0 : index
    %c0_58 = arith.constant 0 : index
    %254 = vector.load %arg5[%c3, %c0_57, %c0_58] : memref<8x2x256xf32, #tpu.memory_space<vmem>>, vector<1x2x128xf32>
    %255 = vector.shape_cast %254 : vector<1x2x128xf32> to vector<2x128xf32>
    %256 = vector.shape_cast %228 : vector<2x128xf32> to vector<1x2x128xf32>
    tpu.vector_store %arg5[%c3, %c0_57, %c0_58], %256 {strides = array<i32>} : memref<8x2x256xf32, #tpu.memory_space<vmem>>, vector<1x2x128xf32>,
    %c4 = arith.constant 4 : index
    %c0_59 = arith.constant 0 : index
    %c128_60 = arith.constant 128 : index
    %257 = vector.load %arg5[%c4, %c0_59, %c128_60] : memref<8x2x256xf32, #tpu.memory_space<vmem>>, vector<1x2x128xf32>
    %258 = vector.shape_cast %257 : vector<1x2x128xf32> to vector<2x128xf32>
    %259 = vector.shape_cast %253 : vector<2x128xf32> to vector<1x2x128xf32>
    tpu.vector_store %arg5[%c4, %c0_59, %c128_60], %259 {strides = array<i32>} : memref<8x2x256xf32, #tpu.memory_space<vmem>>, vector<1x2x128xf32>,
    %cst_61 = arith.constant dense<0.000000e+00> : vector<2x512xf32>
    %260 = tpu.matmul %228, %6, %cst_61 {dimension_numbers = #tpu.dot_dimension_numbers<[1], [0], [0], [1], [0, 0, 1, 1], [], []>} : vector<2x128xf32>, vector<128x512xf32>, vector<2x512xf32> -> vector<2x512xf32>
    %cst_62 = arith.constant dense<0.000000e+00> : vector<2x512xf32>
    %261 = tpu.matmul %253, %7, %cst_62 {dimension_numbers = #tpu.dot_dimension_numbers<[1], [0], [0], [1], [0, 0, 1, 1], [], []>} : vector<2x128xf32>, vector<128x512xf32>, vector<2x512xf32> -> vector<2x512xf32>
    %262 = vector.extract_strided_slice %5 {offsets = [8, 0], sizes = [2, 512], strides = [1, 1]} : vector<16x1024xf32> to vector<2x512xf32>
    %263 = arith.addf %262, %260 : vector<2x512xf32>
    %264 = vector.extract_strided_slice %5 {offsets = [6, 512], sizes = [2, 512], strides = [1, 1]} : vector<16x1024xf32> to vector<2x512xf32>
    %265 = arith.addf %264, %261 : vector<2x512xf32>
    %266 = vector.extract_strided_slice %263 {offsets = [0, 0], sizes = [2, 128], strides = [1, 1]} : vector<2x512xf32> to vector<2x128xf32>
    %267 = arith.negf %266 : vector<2x128xf32>
    %268 = math.exp %267 : vector<2x128xf32>
    %cst_63 = arith.constant 1.000000e+00 : f32
    %269 = vector.broadcast %cst_63 : f32 to vector<2x128xf32>
    %270 = arith.addf %269, %268 : vector<2x128xf32>
    %271 = arith.divf %269, %270 : vector<2x128xf32>
    %272 = vector.extract_strided_slice %263 {offsets = [0, 128], sizes = [2, 128], strides = [1, 1]} : vector<2x512xf32> to vector<2x128xf32>
    %273 = arith.negf %272 : vector<2x128xf32>
    %274 = math.exp %273 : vector<2x128xf32>
    %cst_64 = arith.constant 1.000000e+00 : f32
    %275 = vector.broadcast %cst_64 : f32 to vector<2x128xf32>
    %276 = arith.addf %275, %274 : vector<2x128xf32>
    %277 = arith.divf %275, %276 : vector<2x128xf32>
    %278 = vector.extract_strided_slice %263 {offsets = [0, 256], sizes = [2, 128], strides = [1, 1]} : vector<2x512xf32> to vector<2x128xf32>
    %279 = math.tanh %278 : vector<2x128xf32>
    %280 = vector.extract_strided_slice %263 {offsets = [0, 384], sizes = [2, 128], strides = [1, 1]} : vector<2x512xf32> to vector<2x128xf32>
    %281 = arith.negf %280 : vector<2x128xf32>
    %282 = math.exp %281 : vector<2x128xf32>
    %cst_65 = arith.constant 1.000000e+00 : f32
    %283 = vector.broadcast %cst_65 : f32 to vector<2x128xf32>
    %284 = arith.addf %283, %282 : vector<2x128xf32>
    %285 = arith.divf %283, %284 : vector<2x128xf32>
    %286 = arith.mulf %277, %226 : vector<2x128xf32>
    %287 = arith.mulf %271, %279 : vector<2x128xf32>
    %288 = arith.addf %286, %287 : vector<2x128xf32>
    %289 = math.tanh %288 : vector<2x128xf32>
    %290 = arith.mulf %285, %289 : vector<2x128xf32>
    %291 = vector.extract_strided_slice %265 {offsets = [0, 0], sizes = [2, 128], strides = [1, 1]} : vector<2x512xf32> to vector<2x128xf32>
    %292 = arith.negf %291 : vector<2x128xf32>
    %293 = math.exp %292 : vector<2x128xf32>
    %cst_66 = arith.constant 1.000000e+00 : f32
    %294 = vector.broadcast %cst_66 : f32 to vector<2x128xf32>
    %295 = arith.addf %294, %293 : vector<2x128xf32>
    %296 = arith.divf %294, %295 : vector<2x128xf32>
    %297 = vector.extract_strided_slice %265 {offsets = [0, 128], sizes = [2, 128], strides = [1, 1]} : vector<2x512xf32> to vector<2x128xf32>
    %298 = arith.negf %297 : vector<2x128xf32>
    %299 = math.exp %298 : vector<2x128xf32>
    %cst_67 = arith.constant 1.000000e+00 : f32
    %300 = vector.broadcast %cst_67 : f32 to vector<2x128xf32>
    %301 = arith.addf %300, %299 : vector<2x128xf32>
    %302 = arith.divf %300, %301 : vector<2x128xf32>
    %303 = vector.extract_strided_slice %265 {offsets = [0, 256], sizes = [2, 128], strides = [1, 1]} : vector<2x512xf32> to vector<2x128xf32>
    %304 = math.tanh %303 : vector<2x128xf32>
    %305 = vector.extract_strided_slice %265 {offsets = [0, 384], sizes = [2, 128], strides = [1, 1]} : vector<2x512xf32> to vector<2x128xf32>
    %306 = arith.negf %305 : vector<2x128xf32>
    %307 = math.exp %306 : vector<2x128xf32>
    %cst_68 = arith.constant 1.000000e+00 : f32
    %308 = vector.broadcast %cst_68 : f32 to vector<2x128xf32>
    %309 = arith.addf %308, %307 : vector<2x128xf32>
    %310 = arith.divf %308, %309 : vector<2x128xf32>
    %311 = arith.mulf %302, %251 : vector<2x128xf32>
    %312 = arith.mulf %296, %304 : vector<2x128xf32>
    %313 = arith.addf %311, %312 : vector<2x128xf32>
    %314 = math.tanh %313 : vector<2x128xf32>
    %315 = arith.mulf %310, %314 : vector<2x128xf32>
    %c4_69 = arith.constant 4 : index
    %c0_70 = arith.constant 0 : index
    %c0_71 = arith.constant 0 : index
    %316 = vector.load %arg5[%c4_69, %c0_70, %c0_71] : memref<8x2x256xf32, #tpu.memory_space<vmem>>, vector<1x2x128xf32>
    %317 = vector.shape_cast %316 : vector<1x2x128xf32> to vector<2x128xf32>
    %318 = vector.shape_cast %290 : vector<2x128xf32> to vector<1x2x128xf32>
    tpu.vector_store %arg5[%c4_69, %c0_70, %c0_71], %318 {strides = array<i32>} : memref<8x2x256xf32, #tpu.memory_space<vmem>>, vector<1x2x128xf32>,
    %c3_72 = arith.constant 3 : index
    %c0_73 = arith.constant 0 : index
    %c128_74 = arith.constant 128 : index
    %319 = vector.load %arg5[%c3_72, %c0_73, %c128_74] : memref<8x2x256xf32, #tpu.memory_space<vmem>>, vector<1x2x128xf32>
    %320 = vector.shape_cast %319 : vector<1x2x128xf32> to vector<2x128xf32>
    %321 = vector.shape_cast %315 : vector<2x128xf32> to vector<1x2x128xf32>
    tpu.vector_store %arg5[%c3_72, %c0_73, %c128_74], %321 {strides = array<i32>} : memref<8x2x256xf32, #tpu.memory_space<vmem>>, vector<1x2x128xf32>,
    %cst_75 = arith.constant dense<0.000000e+00> : vector<2x512xf32>
    %322 = tpu.matmul %290, %6, %cst_75 {dimension_numbers = #tpu.dot_dimension_numbers<[1], [0], [0], [1], [0, 0, 1, 1], [], []>} : vector<2x128xf32>, vector<128x512xf32>, vector<2x512xf32> -> vector<2x512xf32>
    %cst_76 = arith.constant dense<0.000000e+00> : vector<2x512xf32>
    %323 = tpu.matmul %315, %7, %cst_76 {dimension_numbers = #tpu.dot_dimension_numbers<[1], [0], [0], [1], [0, 0, 1, 1], [], []>} : vector<2x128xf32>, vector<128x512xf32>, vector<2x512xf32> -> vector<2x512xf32>
    %324 = vector.extract_strided_slice %5 {offsets = [10, 0], sizes = [2, 512], strides = [1, 1]} : vector<16x1024xf32> to vector<2x512xf32>
    %325 = arith.addf %324, %322 : vector<2x512xf32>
    %326 = vector.extract_strided_slice %5 {offsets = [4, 512], sizes = [2, 512], strides = [1, 1]} : vector<16x1024xf32> to vector<2x512xf32>
    %327 = arith.addf %326, %323 : vector<2x512xf32>
    %328 = vector.extract_strided_slice %325 {offsets = [0, 0], sizes = [2, 128], strides = [1, 1]} : vector<2x512xf32> to vector<2x128xf32>
    %329 = arith.negf %328 : vector<2x128xf32>
    %330 = math.exp %329 : vector<2x128xf32>
    %cst_77 = arith.constant 1.000000e+00 : f32
    %331 = vector.broadcast %cst_77 : f32 to vector<2x128xf32>
    %332 = arith.addf %331, %330 : vector<2x128xf32>
    %333 = arith.divf %331, %332 : vector<2x128xf32>
    %334 = vector.extract_strided_slice %325 {offsets = [0, 128], sizes = [2, 128], strides = [1, 1]} : vector<2x512xf32> to vector<2x128xf32>
    %335 = arith.negf %334 : vector<2x128xf32>
    %336 = math.exp %335 : vector<2x128xf32>
    %cst_78 = arith.constant 1.000000e+00 : f32
    %337 = vector.broadcast %cst_78 : f32 to vector<2x128xf32>
    %338 = arith.addf %337, %336 : vector<2x128xf32>
    %339 = arith.divf %337, %338 : vector<2x128xf32>
    %340 = vector.extract_strided_slice %325 {offsets = [0, 256], sizes = [2, 128], strides = [1, 1]} : vector<2x512xf32> to vector<2x128xf32>
    %341 = math.tanh %340 : vector<2x128xf32>
    %342 = vector.extract_strided_slice %325 {offsets = [0, 384], sizes = [2, 128], strides = [1, 1]} : vector<2x512xf32> to vector<2x128xf32>
    %343 = arith.negf %342 : vector<2x128xf32>
    %344 = math.exp %343 : vector<2x128xf32>
    %cst_79 = arith.constant 1.000000e+00 : f32
    %345 = vector.broadcast %cst_79 : f32 to vector<2x128xf32>
    %346 = arith.addf %345, %344 : vector<2x128xf32>
    %347 = arith.divf %345, %346 : vector<2x128xf32>
    %348 = arith.mulf %339, %288 : vector<2x128xf32>
    %349 = arith.mulf %333, %341 : vector<2x128xf32>
    %350 = arith.addf %348, %349 : vector<2x128xf32>
    %351 = math.tanh %350 : vector<2x128xf32>
    %352 = arith.mulf %347, %351 : vector<2x128xf32>
    %353 = vector.extract_strided_slice %327 {offsets = [0, 0], sizes = [2, 128], strides = [1, 1]} : vector<2x512xf32> to vector<2x128xf32>
    %354 = arith.negf %353 : vector<2x128xf32>
    %355 = math.exp %354 : vector<2x128xf32>
    %cst_80 = arith.constant 1.000000e+00 : f32
    %356 = vector.broadcast %cst_80 : f32 to vector<2x128xf32>
    %357 = arith.addf %356, %355 : vector<2x128xf32>
    %358 = arith.divf %356, %357 : vector<2x128xf32>
    %359 = vector.extract_strided_slice %327 {offsets = [0, 128], sizes = [2, 128], strides = [1, 1]} : vector<2x512xf32> to vector<2x128xf32>
    %360 = arith.negf %359 : vector<2x128xf32>
    %361 = math.exp %360 : vector<2x128xf32>
    %cst_81 = arith.constant 1.000000e+00 : f32
    %362 = vector.broadcast %cst_81 : f32 to vector<2x128xf32>
    %363 = arith.addf %362, %361 : vector<2x128xf32>
    %364 = arith.divf %362, %363 : vector<2x128xf32>
    %365 = vector.extract_strided_slice %327 {offsets = [0, 256], sizes = [2, 128], strides = [1, 1]} : vector<2x512xf32> to vector<2x128xf32>
    %366 = math.tanh %365 : vector<2x128xf32>
    %367 = vector.extract_strided_slice %327 {offsets = [0, 384], sizes = [2, 128], strides = [1, 1]} : vector<2x512xf32> to vector<2x128xf32>
    %368 = arith.negf %367 : vector<2x128xf32>
    %369 = math.exp %368 : vector<2x128xf32>
    %cst_82 = arith.constant 1.000000e+00 : f32
    %370 = vector.broadcast %cst_82 : f32 to vector<2x128xf32>
    %371 = arith.addf %370, %369 : vector<2x128xf32>
    %372 = arith.divf %370, %371 : vector<2x128xf32>
    %373 = arith.mulf %364, %313 : vector<2x128xf32>
    %374 = arith.mulf %358, %366 : vector<2x128xf32>
    %375 = arith.addf %373, %374 : vector<2x128xf32>
    %376 = math.tanh %375 : vector<2x128xf32>
    %377 = arith.mulf %372, %376 : vector<2x128xf32>
    %c5_83 = arith.constant 5 : index
    %c0_84 = arith.constant 0 : index
    %c0_85 = arith.constant 0 : index
    %378 = vector.load %arg5[%c5_83, %c0_84, %c0_85] : memref<8x2x256xf32, #tpu.memory_space<vmem>>, vector<1x2x128xf32>
    %379 = vector.shape_cast %378 : vector<1x2x128xf32> to vector<2x128xf32>
    %380 = vector.shape_cast %352 : vector<2x128xf32> to vector<1x2x128xf32>
    tpu.vector_store %arg5[%c5_83, %c0_84, %c0_85], %380 {strides = array<i32>} : memref<8x2x256xf32, #tpu.memory_space<vmem>>, vector<1x2x128xf32>,
    %c2_86 = arith.constant 2 : index
    %c0_87 = arith.constant 0 : index
    %c128_88 = arith.constant 128 : index
    %381 = vector.load %arg5[%c2_86, %c0_87, %c128_88] : memref<8x2x256xf32, #tpu.memory_space<vmem>>, vector<1x2x128xf32>
    %382 = vector.shape_cast %381 : vector<1x2x128xf32> to vector<2x128xf32>
    %383 = vector.shape_cast %377 : vector<2x128xf32> to vector<1x2x128xf32>
    tpu.vector_store %arg5[%c2_86, %c0_87, %c128_88], %383 {strides = array<i32>} : memref<8x2x256xf32, #tpu.memory_space<vmem>>, vector<1x2x128xf32>,
    %cst_89 = arith.constant dense<0.000000e+00> : vector<2x512xf32>
    %384 = tpu.matmul %352, %6, %cst_89 {dimension_numbers = #tpu.dot_dimension_numbers<[1], [0], [0], [1], [0, 0, 1, 1], [], []>} : vector<2x128xf32>, vector<128x512xf32>, vector<2x512xf32> -> vector<2x512xf32>
    %cst_90 = arith.constant dense<0.000000e+00> : vector<2x512xf32>
    %385 = tpu.matmul %377, %7, %cst_90 {dimension_numbers = #tpu.dot_dimension_numbers<[1], [0], [0], [1], [0, 0, 1, 1], [], []>} : vector<2x128xf32>, vector<128x512xf32>, vector<2x512xf32> -> vector<2x512xf32>
    %386 = vector.extract_strided_slice %5 {offsets = [12, 0], sizes = [2, 512], strides = [1, 1]} : vector<16x1024xf32> to vector<2x512xf32>
    %387 = arith.addf %386, %384 : vector<2x512xf32>
    %388 = vector.extract_strided_slice %5 {offsets = [2, 512], sizes = [2, 512], strides = [1, 1]} : vector<16x1024xf32> to vector<2x512xf32>
    %389 = arith.addf %388, %385 : vector<2x512xf32>
    %390 = vector.extract_strided_slice %387 {offsets = [0, 0], sizes = [2, 128], strides = [1, 1]} : vector<2x512xf32> to vector<2x128xf32>
    %391 = arith.negf %390 : vector<2x128xf32>
    %392 = math.exp %391 : vector<2x128xf32>
    %cst_91 = arith.constant 1.000000e+00 : f32
    %393 = vector.broadcast %cst_91 : f32 to vector<2x128xf32>
    %394 = arith.addf %393, %392 : vector<2x128xf32>
    %395 = arith.divf %393, %394 : vector<2x128xf32>
    %396 = vector.extract_strided_slice %387 {offsets = [0, 128], sizes = [2, 128], strides = [1, 1]} : vector<2x512xf32> to vector<2x128xf32>
    %397 = arith.negf %396 : vector<2x128xf32>
    %398 = math.exp %397 : vector<2x128xf32>
    %cst_92 = arith.constant 1.000000e+00 : f32
    %399 = vector.broadcast %cst_92 : f32 to vector<2x128xf32>
    %400 = arith.addf %399, %398 : vector<2x128xf32>
    %401 = arith.divf %399, %400 : vector<2x128xf32>
    %402 = vector.extract_strided_slice %387 {offsets = [0, 256], sizes = [2, 128], strides = [1, 1]} : vector<2x512xf32> to vector<2x128xf32>
    %403 = math.tanh %402 : vector<2x128xf32>
    %404 = vector.extract_strided_slice %387 {offsets = [0, 384], sizes = [2, 128], strides = [1, 1]} : vector<2x512xf32> to vector<2x128xf32>
    %405 = arith.negf %404 : vector<2x128xf32>
    %406 = math.exp %405 : vector<2x128xf32>
    %cst_93 = arith.constant 1.000000e+00 : f32
    %407 = vector.broadcast %cst_93 : f32 to vector<2x128xf32>
    %408 = arith.addf %407, %406 : vector<2x128xf32>
    %409 = arith.divf %407, %408 : vector<2x128xf32>
    %410 = arith.mulf %401, %350 : vector<2x128xf32>
    %411 = arith.mulf %395, %403 : vector<2x128xf32>
    %412 = arith.addf %410, %411 : vector<2x128xf32>
    %413 = math.tanh %412 : vector<2x128xf32>
    %414 = arith.mulf %409, %413 : vector<2x128xf32>
    %415 = vector.extract_strided_slice %389 {offsets = [0, 0], sizes = [2, 128], strides = [1, 1]} : vector<2x512xf32> to vector<2x128xf32>
    %416 = arith.negf %415 : vector<2x128xf32>
    %417 = math.exp %416 : vector<2x128xf32>
    %cst_94 = arith.constant 1.000000e+00 : f32
    %418 = vector.broadcast %cst_94 : f32 to vector<2x128xf32>
    %419 = arith.addf %418, %417 : vector<2x128xf32>
    %420 = arith.divf %418, %419 : vector<2x128xf32>
    %421 = vector.extract_strided_slice %389 {offsets = [0, 128], sizes = [2, 128], strides = [1, 1]} : vector<2x512xf32> to vector<2x128xf32>
    %422 = arith.negf %421 : vector<2x128xf32>
    %423 = math.exp %422 : vector<2x128xf32>
    %cst_95 = arith.constant 1.000000e+00 : f32
    %424 = vector.broadcast %cst_95 : f32 to vector<2x128xf32>
    %425 = arith.addf %424, %423 : vector<2x128xf32>
    %426 = arith.divf %424, %425 : vector<2x128xf32>
    %427 = vector.extract_strided_slice %389 {offsets = [0, 256], sizes = [2, 128], strides = [1, 1]} : vector<2x512xf32> to vector<2x128xf32>
    %428 = math.tanh %427 : vector<2x128xf32>
    %429 = vector.extract_strided_slice %389 {offsets = [0, 384], sizes = [2, 128], strides = [1, 1]} : vector<2x512xf32> to vector<2x128xf32>
    %430 = arith.negf %429 : vector<2x128xf32>
    %431 = math.exp %430 : vector<2x128xf32>
    %cst_96 = arith.constant 1.000000e+00 : f32
    %432 = vector.broadcast %cst_96 : f32 to vector<2x128xf32>
    %433 = arith.addf %432, %431 : vector<2x128xf32>
    %434 = arith.divf %432, %433 : vector<2x128xf32>
    %435 = arith.mulf %426, %375 : vector<2x128xf32>
    %436 = arith.mulf %420, %428 : vector<2x128xf32>
    %437 = arith.addf %435, %436 : vector<2x128xf32>
    %438 = math.tanh %437 : vector<2x128xf32>
    %439 = arith.mulf %434, %438 : vector<2x128xf32>
    %c6_97 = arith.constant 6 : index
    %c0_98 = arith.constant 0 : index
    %c0_99 = arith.constant 0 : index
    %440 = vector.load %arg5[%c6_97, %c0_98, %c0_99] : memref<8x2x256xf32, #tpu.memory_space<vmem>>, vector<1x2x128xf32>
    %441 = vector.shape_cast %440 : vector<1x2x128xf32> to vector<2x128xf32>
    %442 = vector.shape_cast %414 : vector<2x128xf32> to vector<1x2x128xf32>
    tpu.vector_store %arg5[%c6_97, %c0_98, %c0_99], %442 {strides = array<i32>} : memref<8x2x256xf32, #tpu.memory_space<vmem>>, vector<1x2x128xf32>,
    %c1_100 = arith.constant 1 : index
    %c0_101 = arith.constant 0 : index
    %c128_102 = arith.constant 128 : index
    %443 = vector.load %arg5[%c1_100, %c0_101, %c128_102] : memref<8x2x256xf32, #tpu.memory_space<vmem>>, vector<1x2x128xf32>
    %444 = vector.shape_cast %443 : vector<1x2x128xf32> to vector<2x128xf32>
    %445 = vector.shape_cast %439 : vector<2x128xf32> to vector<1x2x128xf32>
    tpu.vector_store %arg5[%c1_100, %c0_101, %c128_102], %445 {strides = array<i32>} : memref<8x2x256xf32, #tpu.memory_space<vmem>>, vector<1x2x128xf32>,
    %cst_103 = arith.constant dense<0.000000e+00> : vector<2x512xf32>
    %446 = tpu.matmul %414, %6, %cst_103 {dimension_numbers = #tpu.dot_dimension_numbers<[1], [0], [0], [1], [0, 0, 1, 1], [], []>} : vector<2x128xf32>, vector<128x512xf32>, vector<2x512xf32> -> vector<2x512xf32>
    %cst_104 = arith.constant dense<0.000000e+00> : vector<2x512xf32>
    %447 = tpu.matmul %439, %7, %cst_104 {dimension_numbers = #tpu.dot_dimension_numbers<[1], [0], [0], [1], [0, 0, 1, 1], [], []>} : vector<2x128xf32>, vector<128x512xf32>, vector<2x512xf32> -> vector<2x512xf32>
    %448 = vector.extract_strided_slice %5 {offsets = [14, 0], sizes = [2, 512], strides = [1, 1]} : vector<16x1024xf32> to vector<2x512xf32>
    %449 = arith.addf %448, %446 : vector<2x512xf32>
    %450 = vector.extract_strided_slice %5 {offsets = [0, 512], sizes = [2, 512], strides = [1, 1]} : vector<16x1024xf32> to vector<2x512xf32>
    %451 = arith.addf %450, %447 : vector<2x512xf32>
    %452 = vector.extract_strided_slice %449 {offsets = [0, 0], sizes = [2, 128], strides = [1, 1]} : vector<2x512xf32> to vector<2x128xf32>
    %453 = arith.negf %452 : vector<2x128xf32>
    %454 = math.exp %453 : vector<2x128xf32>
    %cst_105 = arith.constant 1.000000e+00 : f32
    %455 = vector.broadcast %cst_105 : f32 to vector<2x128xf32>
    %456 = arith.addf %455, %454 : vector<2x128xf32>
    %457 = arith.divf %455, %456 : vector<2x128xf32>
    %458 = vector.extract_strided_slice %449 {offsets = [0, 128], sizes = [2, 128], strides = [1, 1]} : vector<2x512xf32> to vector<2x128xf32>
    %459 = arith.negf %458 : vector<2x128xf32>
    %460 = math.exp %459 : vector<2x128xf32>
    %cst_106 = arith.constant 1.000000e+00 : f32
    %461 = vector.broadcast %cst_106 : f32 to vector<2x128xf32>
    %462 = arith.addf %461, %460 : vector<2x128xf32>
    %463 = arith.divf %461, %462 : vector<2x128xf32>
    %464 = vector.extract_strided_slice %449 {offsets = [0, 256], sizes = [2, 128], strides = [1, 1]} : vector<2x512xf32> to vector<2x128xf32>
    %465 = math.tanh %464 : vector<2x128xf32>
    %466 = vector.extract_strided_slice %449 {offsets = [0, 384], sizes = [2, 128], strides = [1, 1]} : vector<2x512xf32> to vector<2x128xf32>
    %467 = arith.negf %466 : vector<2x128xf32>
    %468 = math.exp %467 : vector<2x128xf32>
    %cst_107 = arith.constant 1.000000e+00 : f32
    %469 = vector.broadcast %cst_107 : f32 to vector<2x128xf32>
    %470 = arith.addf %469, %468 : vector<2x128xf32>
    %471 = arith.divf %469, %470 : vector<2x128xf32>
    %472 = arith.mulf %463, %412 : vector<2x128xf32>
    %473 = arith.mulf %457, %465 : vector<2x128xf32>
    %474 = arith.addf %472, %473 : vector<2x128xf32>
    %475 = math.tanh %474 : vector<2x128xf32>
    %476 = arith.mulf %471, %475 : vector<2x128xf32>
    %477 = vector.extract_strided_slice %451 {offsets = [0, 0], sizes = [2, 128], strides = [1, 1]} : vector<2x512xf32> to vector<2x128xf32>
    %478 = arith.negf %477 : vector<2x128xf32>
    %479 = math.exp %478 : vector<2x128xf32>
    %cst_108 = arith.constant 1.000000e+00 : f32
    %480 = vector.broadcast %cst_108 : f32 to vector<2x128xf32>
    %481 = arith.addf %480, %479 : vector<2x128xf32>
    %482 = arith.divf %480, %481 : vector<2x128xf32>
    %483 = vector.extract_strided_slice %451 {offsets = [0, 128], sizes = [2, 128], strides = [1, 1]} : vector<2x512xf32> to vector<2x128xf32>
    %484 = arith.negf %483 : vector<2x128xf32>
    %485 = math.exp %484 : vector<2x128xf32>
    %cst_109 = arith.constant 1.000000e+00 : f32
    %486 = vector.broadcast %cst_109 : f32 to vector<2x128xf32>
    %487 = arith.addf %486, %485 : vector<2x128xf32>
    %488 = arith.divf %486, %487 : vector<2x128xf32>
    %489 = vector.extract_strided_slice %451 {offsets = [0, 256], sizes = [2, 128], strides = [1, 1]} : vector<2x512xf32> to vector<2x128xf32>
    %490 = math.tanh %489 : vector<2x128xf32>
    %491 = vector.extract_strided_slice %451 {offsets = [0, 384], sizes = [2, 128], strides = [1, 1]} : vector<2x512xf32> to vector<2x128xf32>
    %492 = arith.negf %491 : vector<2x128xf32>
    %493 = math.exp %492 : vector<2x128xf32>
    %cst_110 = arith.constant 1.000000e+00 : f32
    %494 = vector.broadcast %cst_110 : f32 to vector<2x128xf32>
    %495 = arith.addf %494, %493 : vector<2x128xf32>
    %496 = arith.divf %494, %495 : vector<2x128xf32>
    %497 = arith.mulf %488, %437 : vector<2x128xf32>
    %498 = arith.mulf %482, %490 : vector<2x128xf32>
    %499 = arith.addf %497, %498 : vector<2x128xf32>
    %500 = math.tanh %499 : vector<2x128xf32>
    %501 = arith.mulf %496, %500 : vector<2x128xf32>
    %c7_111 = arith.constant 7 : index
    %c0_112 = arith.constant 0 : index
    %c0_113 = arith.constant 0 : index
    %502 = vector.load %arg5[%c7_111, %c0_112, %c0_113] : memref<8x2x256xf32, #tpu.memory_space<vmem>>, vector<1x2x128xf32>
    %503 = vector.shape_cast %502 : vector<1x2x128xf32> to vector<2x128xf32>
    %504 = vector.shape_cast %476 : vector<2x128xf32> to vector<1x2x128xf32>
    tpu.vector_store %arg5[%c7_111, %c0_112, %c0_113], %504 {strides = array<i32>} : memref<8x2x256xf32, #tpu.memory_space<vmem>>, vector<1x2x128xf32>,
    %c0_114 = arith.constant 0 : index
    %c0_115 = arith.constant 0 : index
    %c128_116 = arith.constant 128 : index
    %505 = vector.load %arg5[%c0_114, %c0_115, %c128_116] : memref<8x2x256xf32, #tpu.memory_space<vmem>>, vector<1x2x128xf32>
    %506 = vector.shape_cast %505 : vector<1x2x128xf32> to vector<2x128xf32>
    %507 = vector.shape_cast %501 : vector<2x128xf32> to vector<1x2x128xf32>
    tpu.vector_store %arg5[%c0_114, %c0_115, %c128_116], %507 {strides = array<i32>} : memref<8x2x256xf32, #tpu.memory_space<vmem>>, vector<1x2x128xf32>,
    return
  }
}

</mosaic_0001>

<bundles_post_ra>
// kernel: lstm1_forward.3
= control target key start
LH: loop header
LB: loop body
LE: loop exit
PB: predicated region body
PF: predicated region fallthrough
CT: control target
= control target key end

     0   :  { %s5136_s0 = inlined_call_operand.vmem [shape: f32[16,256], index: 0, kind: input, shape index: {}]   ;;  %s5137_s1 = inlined_call_operand.vmem [shape: f32[256,1024], index: 1, kind: input, shape index: {}]   ;;  %s5138_s2 = inlined_call_operand.vmem [shape: f32[1,1024], index: 2, kind: input, shape index: {}]   ;;  %s5139_s3 = inlined_call_operand.vmem [shape: f32[128,512], index: 3, kind: input, shape index: {}]   ;;  %s5140_s4 = inlined_call_operand.vmem [shape: f32[128,512], index: 4, kind: input, shape index: {}]   ;;  %s5141_s5 = inlined_call_operand.vmem [shape: f32[256,32], index: 5, kind: input, shape index: {}]   ;;  %s5142_s6 = inlined_call_operand.vmem [shape: f32[1,32], index: 6, kind: input, shape index: {}]   ;;  %s5143_s7 = inlined_call_operand.vmem [shape: f32[32,4], index: 7, kind: input, shape index: {}]   ;;  %s5144_s8 = inlined_call_operand.vmem [shape: f32[1,4], index: 8, kind: input, shape index: {}]   ;;  %s5145_s9 = inlined_call_operand.hbm [shape: f32[2,4], index: 9, kind: output, shape index: {}]  }
   0x1   :  { %v158_v0 = vld [vmem:[%s5137_s1 + $0x3c8] sm:$0xff]  ;;  %v160_v1 = vld [vmem:[%s5137_s1 + $0x3d8] sm:$0xff]  ;;  %v157_v2 = vld [vmem:[%s5137_s1 + $0x3c0] sm:$0xff] }
   0x2   :  { %335 = vmatprep.subr.mxu0 %v158_v0  ;;  %412 = vmatprep.subr.mxu1 %v160_v1  ;;  %v159_v3 = vld [vmem:[%s5137_s1 + $0x3d0] sm:$0xff]  ;;  %v150_v4 = vld [vmem:[%s5137_s1 + $0x388] sm:$0xff]  ;;  %v152_v5 = vld [vmem:[%s5137_s1 + $0x398] sm:$0xff] }
   0x3   :  { %336 = vmatpush1.msra.mxu0 %v157_v2  ;;  %413 = vmatpush1.msra.mxu1 %v159_v3  ;;  %v149_v6 = vld [vmem:[%s5137_s1 + $0x380] sm:$0xff]  ;;  %v151_v7 = vld [vmem:[%s5137_s1 + $0x390] sm:$0xff]  ;;  %v142_v8 = vld [vmem:[%s5137_s1 + $0x348] sm:$0xff] }
   0x4   :  { %337 = vmatprep.subr.mxu0 %v150_v4  ;;  %414 = vmatprep.subr.mxu1 %v152_v5  ;;  %v144_v9 = vld [vmem:[%s5137_s1 + $0x358] sm:$0xff]  ;;  %v141_v10 = vld [vmem:[%s5137_s1 + $0x340] sm:$0xff]  ;;  %v143_v11 = vld [vmem:[%s5137_s1 + $0x350] sm:$0xff] }
   0x5   :  { %338 = vmatpush1.msra.mxu0 %v149_v6  ;;  %415 = vmatpush1.msra.mxu1 %v151_v7  ;;  %v134_v12 = vld [vmem:[%s5137_s1 + $0x308] sm:$0xff]  ;;  %v136_v13 = vld [vmem:[%s5137_s1 + $0x318] sm:$0xff]  ;;  %v133_v14 = vld [vmem:[%s5137_s1 + $0x300] sm:$0xff] }
   0x6   :  { %339 = vmatprep.subr.mxu0 %v142_v8  ;;  %416 = vmatprep.subr.mxu1 %v144_v9  ;;  %v135_v15 = vld [vmem:[%s5137_s1 + $0x310] sm:$0xff]  ;;  %v126_v16 = vld [vmem:[%s5137_s1 + $0x2c8] sm:$0xff]  ;;  %v128_v17 = vld [vmem:[%s5137_s1 + $0x2d8] sm:$0xff] }
   0x7   :  { %340 = vmatpush1.msra.mxu0 %v141_v10  ;;  %417 = vmatpush1.msra.mxu1 %v143_v11  ;;  %v125_v18 = vld [vmem:[%s5137_s1 + $0x2c0] sm:$0xff]  ;;  %v127_v19 = vld [vmem:[%s5137_s1 + $0x2d0] sm:$0xff]  ;;  %v118_v20 = vld [vmem:[%s5137_s1 + $0x288] sm:$0xff] }
   0x8   :  { %341 = vmatprep.subr.mxu0 %v134_v12  ;;  %418 = vmatprep.subr.mxu1 %v136_v13  ;;  %v120_v21 = vld [vmem:[%s5137_s1 + $0x298] sm:$0xff]  ;;  %v117_v22 = vld [vmem:[%s5137_s1 + $0x280] sm:$0xff]  ;;  %v119_v23 = vld [vmem:[%s5137_s1 + $0x290] sm:$0xff] }
   0x9   :  { %342 = vmatpush1.msra.mxu0 %v133_v14  ;;  %419 = vmatpush1.msra.mxu1 %v135_v15  ;;  %v110_v24 = vld [vmem:[%s5137_s1 + $0x248] sm:$0xff]  ;;  %v112_v25 = vld [vmem:[%s5137_s1 + $0x258] sm:$0xff]  ;;  %v109_v26 = vld [vmem:[%s5137_s1 + $0x240] sm:$0xff] }
   0xa   :  { %343 = vmatprep.subr.mxu0 %v126_v16  ;;  %420 = vmatprep.subr.mxu1 %v128_v17  ;;  %v111_v27 = vld [vmem:[%s5137_s1 + $0x250] sm:$0xff]  ;;  %v102_v28 = vld [vmem:[%s5137_s1 + $0x208] sm:$0xff]  ;;  %v104_v29 = vld [vmem:[%s5137_s1 + $0x218] sm:$0xff] }
   0xb   :  { %344 = vmatpush1.msra.mxu0 %v125_v18  ;;  %421 = vmatpush1.msra.mxu1 %v127_v19  ;;  %v101_v30 = vld [vmem:[%s5137_s1 + $0x200] sm:$0xff]  ;;  %v103_v31 = vld [vmem:[%s5137_s1 + $0x210] sm:$0xff]  ;;  %v94_v32 = vld [vmem:[%s5137_s1 + $0x1c8] sm:$0xff] }
   0xc   :  { %345 = vmatprep.subr.mxu0 %v118_v20  ;;  %422 = vmatprep.subr.mxu1 %v120_v21  ;;  %v96_v33 = vld [vmem:[%s5137_s1 + $0x1d8] sm:$0xff]  ;;  %v93_v34 = vld [vmem:[%s5137_s1 + $0x1c0] sm:$0xff]  ;;  %v95_v35 = vld [vmem:[%s5137_s1 + $0x1d0] sm:$0xff] }
   0xd   :  { %346 = vmatpush1.msra.mxu0 %v117_v22  ;;  %423 = vmatpush1.msra.mxu1 %v119_v23  ;;  %v86_v36 = vld [vmem:[%s5137_s1 + $0x188] sm:$0xff]  ;;  %v88_v37 = vld [vmem:[%s5137_s1 + $0x198] sm:$0xff]  ;;  %v85_v38 = vld [vmem:[%s5137_s1 + $0x180] sm:$0xff] }
   0xe   :  { %347 = vmatprep.subr.mxu0 %v110_v24  ;;  %424 = vmatprep.subr.mxu1 %v112_v25  ;;  %v87_v39 = vld [vmem:[%s5137_s1 + $0x190] sm:$0xff]  ;;  %v78_v40 = vld [vmem:[%s5137_s1 + $0x148] sm:$0xff]  ;;  %v80_v41 = vld [vmem:[%s5137_s1 + $0x158] sm:$0xff] }
   0xf   :  { %348 = vmatpush1.msra.mxu0 %v109_v26  ;;  %425 = vmatpush1.msra.mxu1 %v111_v27  ;;  %v77_v42 = vld [vmem:[%s5137_s1 + $0x140] sm:$0xff]  ;;  %v79_v43 = vld [vmem:[%s5137_s1 + $0x150] sm:$0xff]  ;;  %v70_v44 = vld [vmem:[%s5137_s1 + $0x108] sm:$0xff] }
  0x10   :  { %349 = vmatprep.subr.mxu0 %v102_v28  ;;  %426 = vmatprep.subr.mxu1 %v104_v29  ;;  %v72_v45 = vld [vmem:[%s5137_s1 + $0x118] sm:$0xff]  ;;  %v69_v46 = vld [vmem:[%s5137_s1 + $0x100] sm:$0xff]  ;;  %v71_v47 = vld [vmem:[%s5137_s1 + $0x110] sm:$0xff] }
  0x11   :  { %350 = vmatpush1.msra.mxu0 %v101_v30  ;;  %427 = vmatpush1.msra.mxu1 %v103_v31  ;;  %v62_v48 = vld [vmem:[%s5137_s1 + $0xc8] sm:$0xff]  ;;  %v64_v49 = vld [vmem:[%s5137_s1 + $0xd8] sm:$0xff]  ;;  %v61_v50 = vld [vmem:[%s5137_s1 + $0xc0] sm:$0xff] }
  0x12   :  { %351 = vmatprep.subr.mxu0 %v94_v32  ;;  %428 = vmatprep.subr.mxu1 %v96_v33  ;;  %v63_v51 = vld [vmem:[%s5137_s1 + $0xd0] sm:$0xff]  ;;  %v54_v52 = vld [vmem:[%s5137_s1 + $0x88] sm:$0xff]  ;;  %v56_v53 = vld [vmem:[%s5137_s1 + $0x98] sm:$0xff] }
  0x13   :  { %352 = vmatpush1.msra.mxu0 %v93_v34  ;;  %429 = vmatpush1.msra.mxu1 %v95_v35  ;;  %v53_v54 = vld [vmem:[%s5137_s1 + $0x80] sm:$0xff]  ;;  %v55_v55 = vld [vmem:[%s5137_s1 + $0x90] sm:$0xff]  ;;  %v46_v56 = vld [vmem:[%s5137_s1 + $0x48] sm:$0xff] }
  0x14   :  { %353 = vmatprep.subr.mxu0 %v86_v36  ;;  %430 = vmatprep.subr.mxu1 %v88_v37  ;;  %v48_v57 = vld [vmem:[%s5137_s1 + $0x58] sm:$0xff]  ;;  %v45_v58 = vld [vmem:[%s5137_s1 + $0x40] sm:$0xff]  ;;  %v47_v59 = vld [vmem:[%s5137_s1 + $0x50] sm:$0xff] }
  0x15   :  { %354 = vmatpush1.msra.mxu0 %v85_v38  ;;  %431 = vmatpush1.msra.mxu1 %v87_v39  ;;  %v38_v60 = vld [vmem:[%s5137_s1 + $0x8] sm:$0xff]  ;;  %v40_v61 = vld [vmem:[%s5137_s1 + $0x18] sm:$0xff]  ;;  %v37_v62 = vld [vmem:[%s5137_s1] sm:$0xff] }
  0x16   :  { %355 = vmatprep.subr.mxu0 %v78_v40  ;;  %432 = vmatprep.subr.mxu1 %v80_v41  ;;  %v39_v63 = vld [vmem:[%s5137_s1 + $0x10] sm:$0xff]  ;;  %v286_v0 = vld [vmem:[%s5137_s1 + $0x7c8] sm:$0xff]  ;;  %v288_v1 = vld [vmem:[%s5137_s1 + $0x7d8] sm:$0xff] }
  0x17   :  { %356 = vmatpush1.msra.mxu0 %v77_v42  ;;  %433 = vmatpush1.msra.mxu1 %v79_v43  ;;  %v285_v2 = vld [vmem:[%s5137_s1 + $0x7c0] sm:$0xff]  ;;  %v287_v3 = vld [vmem:[%s5137_s1 + $0x7d0] sm:$0xff]  ;;  %v278_v4 = vld [vmem:[%s5137_s1 + $0x788] sm:$0xff] }
  0x18   :  { %357 = vmatprep.subr.mxu0 %v70_v44  ;;  %434 = vmatprep.subr.mxu1 %v72_v45  ;;  %v280_v5 = vld [vmem:[%s5137_s1 + $0x798] sm:$0xff]  ;;  %v277_v6 = vld [vmem:[%s5137_s1 + $0x780] sm:$0xff]  ;;  %v279_v7 = vld [vmem:[%s5137_s1 + $0x790] sm:$0xff] }
  0x19   :  { %358 = vmatpush1.msra.mxu0 %v69_v46  ;;  %435 = vmatpush1.msra.mxu1 %v71_v47  ;;  %v270_v8 = vld [vmem:[%s5137_s1 + $0x748] sm:$0xff]  ;;  %v272_v9 = vld [vmem:[%s5137_s1 + $0x758] sm:$0xff]  ;;  %v269_v10 = vld [vmem:[%s5137_s1 + $0x740] sm:$0xff] }
  0x1a   :  { %359 = vmatprep.subr.mxu0 %v62_v48  ;;  %436 = vmatprep.subr.mxu1 %v64_v49  ;;  %v271_v11 = vld [vmem:[%s5137_s1 + $0x750] sm:$0xff]  ;;  %v262_v12 = vld [vmem:[%s5137_s1 + $0x708] sm:$0xff]  ;;  %v264_v13 = vld [vmem:[%s5137_s1 + $0x718] sm:$0xff] }
  0x1b   :  { %360 = vmatpush1.msra.mxu0 %v61_v50  ;;  %437 = vmatpush1.msra.mxu1 %v63_v51  ;;  %v261_v14 = vld [vmem:[%s5137_s1 + $0x700] sm:$0xff]  ;;  %v263_v15 = vld [vmem:[%s5137_s1 + $0x710] sm:$0xff]  ;;  %v254_v16 = vld [vmem:[%s5137_s1 + $0x6c8] sm:$0xff] }
  0x1c   :  { %361 = vmatprep.subr.mxu0 %v54_v52  ;;  %438 = vmatprep.subr.mxu1 %v56_v53  ;;  %v256_v17 = vld [vmem:[%s5137_s1 + $0x6d8] sm:$0xff]  ;;  %v253_v18 = vld [vmem:[%s5137_s1 + $0x6c0] sm:$0xff]  ;;  %v255_v19 = vld [vmem:[%s5137_s1 + $0x6d0] sm:$0xff] }
  0x1d   :  { %362 = vmatpush1.msra.mxu0 %v53_v54  ;;  %439 = vmatpush1.msra.mxu1 %v55_v55  ;;  %v246_v20 = vld [vmem:[%s5137_s1 + $0x688] sm:$0xff]  ;;  %v248_v21 = vld [vmem:[%s5137_s1 + $0x698] sm:$0xff]  ;;  %v245_v22 = vld [vmem:[%s5137_s1 + $0x680] sm:$0xff] }
  0x1e   :  { %363 = vmatprep.subr.mxu0 %v46_v56  ;;  %440 = vmatprep.subr.mxu1 %v48_v57  ;;  %v247_v23 = vld [vmem:[%s5137_s1 + $0x690] sm:$0xff]  ;;  %v238_v24 = vld [vmem:[%s5137_s1 + $0x648] sm:$0xff]  ;;  %v240_v25 = vld [vmem:[%s5137_s1 + $0x658] sm:$0xff] }
  0x1f   :  { %364 = vmatpush1.msra.mxu0 %v45_v58  ;;  %441 = vmatpush1.msra.mxu1 %v47_v59  ;;  %v237_v26 = vld [vmem:[%s5137_s1 + $0x640] sm:$0xff]  ;;  %v239_v27 = vld [vmem:[%s5137_s1 + $0x650] sm:$0xff]  ;;  %v230_v28 = vld [vmem:[%s5137_s1 + $0x608] sm:$0xff] }
  0x20   :  { %365 = vmatprep.subr.mxu0 %v38_v60  ;;  %442 = vmatprep.subr.mxu1 %v40_v61  ;;  %v232_v29 = vld [vmem:[%s5137_s1 + $0x618] sm:$0xff]  ;;  %v229_v30 = vld [vmem:[%s5137_s1 + $0x600] sm:$0xff]  ;;  %v231_v31 = vld [vmem:[%s5137_s1 + $0x610] sm:$0xff] }
  0x21   :  { %366 = vmatpush1.msra.mxu0 %v37_v62  ;;  %443 = vmatpush1.msra.mxu1 %v39_v63  ;;  %v222_v32 = vld [vmem:[%s5137_s1 + $0x5c8] sm:$0xff]  ;;  %v224_v33 = vld [vmem:[%s5137_s1 + $0x5d8] sm:$0xff]  ;;  %v221_v34 = vld [vmem:[%s5137_s1 + $0x5c0] sm:$0xff] }
  0x22   :  { %367 = vmatprep.subr.mxu0 %v286_v0  ;;  %444 = vmatprep.subr.mxu1 %v288_v1  ;;  %v223_v35 = vld [vmem:[%s5137_s1 + $0x5d0] sm:$0xff]  ;;  %v214_v36 = vld [vmem:[%s5137_s1 + $0x588] sm:$0xff]  ;;  %v216_v37 = vld [vmem:[%s5137_s1 + $0x598] sm:$0xff] }
  0x23   :  { %368 = vmatpush2.msra.mxu0 %v285_v2  ;;  %445 = vmatpush2.msra.mxu1 %v287_v3  ;;  %v213_v38 = vld [vmem:[%s5137_s1 + $0x580] sm:$0xff]  ;;  %v215_v39 = vld [vmem:[%s5137_s1 + $0x590] sm:$0xff]  ;;  %v206_v40 = vld [vmem:[%s5137_s1 + $0x548] sm:$0xff] }
  0x24   :  { %369 = vmatprep.subr.mxu0 %v278_v4  ;;  %446 = vmatprep.subr.mxu1 %v280_v5  ;;  %v208_v41 = vld [vmem:[%s5137_s1 + $0x558] sm:$0xff]  ;;  %v205_v42 = vld [vmem:[%s5137_s1 + $0x540] sm:$0xff]  ;;  %v207_v43 = vld [vmem:[%s5137_s1 + $0x550] sm:$0xff] }
  0x25   :  { %370 = vmatpush2.msra.mxu0 %v277_v6  ;;  %447 = vmatpush2.msra.mxu1 %v279_v7  ;;  %v198_v44 = vld [vmem:[%s5137_s1 + $0x508] sm:$0xff]  ;;  %v200_v45 = vld [vmem:[%s5137_s1 + $0x518] sm:$0xff]  ;;  %v197_v46 = vld [vmem:[%s5137_s1 + $0x500] sm:$0xff] }
  0x26   :  { %371 = vmatprep.subr.mxu0 %v270_v8  ;;  %448 = vmatprep.subr.mxu1 %v272_v9  ;;  %v199_v47 = vld [vmem:[%s5137_s1 + $0x510] sm:$0xff]  ;;  %v190_v48 = vld [vmem:[%s5137_s1 + $0x4c8] sm:$0xff]  ;;  %v192_v49 = vld [vmem:[%s5137_s1 + $0x4d8] sm:$0xff] }
  0x27   :  { %372 = vmatpush2.msra.mxu0 %v269_v10  ;;  %449 = vmatpush2.msra.mxu1 %v271_v11  ;;  %v189_v50 = vld [vmem:[%s5137_s1 + $0x4c0] sm:$0xff]  ;;  %v191_v51 = vld [vmem:[%s5137_s1 + $0x4d0] sm:$0xff]  ;;  %v182_v52 = vld [vmem:[%s5137_s1 + $0x488] sm:$0xff] }
  0x28   :  { %373 = vmatprep.subr.mxu0 %v262_v12  ;;  %450 = vmatprep.subr.mxu1 %v264_v13  ;;  %v184_v53 = vld [vmem:[%s5137_s1 + $0x498] sm:$0xff]  ;;  %v181_v54 = vld [vmem:[%s5137_s1 + $0x480] sm:$0xff]  ;;  %v183_v55 = vld [vmem:[%s5137_s1 + $0x490] sm:$0xff] }
  0x29   :  { %374 = vmatpush2.msra.mxu0 %v261_v14  ;;  %451 = vmatpush2.msra.mxu1 %v263_v15  ;;  %v174_v56 = vld [vmem:[%s5137_s1 + $0x448] sm:$0xff]  ;;  %v176_v57 = vld [vmem:[%s5137_s1 + $0x458] sm:$0xff]  ;;  %v173_v58 = vld [vmem:[%s5137_s1 + $0x440] sm:$0xff] }
  0x2a   :  { %375 = vmatprep.subr.mxu0 %v254_v16  ;;  %452 = vmatprep.subr.mxu1 %v256_v17  ;;  %v175_v59 = vld [vmem:[%s5137_s1 + $0x450] sm:$0xff]  ;;  %v166_v60 = vld [vmem:[%s5137_s1 + $0x408] sm:$0xff]  ;;  %v168_v61 = vld [vmem:[%s5137_s1 + $0x418] sm:$0xff] }
  0x2b   :  { %376 = vmatpush2.msra.mxu0 %v253_v18  ;;  %453 = vmatpush2.msra.mxu1 %v255_v19  ;;  %v165_v62 = vld [vmem:[%s5137_s1 + $0x400] sm:$0xff]  ;;  %v3302_v63 = vld [vmem:[%s5136_s0 + $0x8] sm:$0xff]  ;;  %v167_v0 = vld [vmem:[%s5137_s1 + $0x410] sm:$0xff] }
  0x2c   :  { %377 = vmatprep.subr.mxu0 %v246_v20  ;;  %454 = vmatprep.subr.mxu1 %v248_v21  ;;  %v3310_v1 = vld [vmem:[%s5136_s0] sm:$0xff]  ;;  %v162_v2 = vld [vmem:[%s5137_s1 + $0x3e8] sm:$0xff]  ;;  %v164_v3 = vld [vmem:[%s5137_s1 + $0x3f8] sm:$0xff] }
  0x2d   :  { %378 = vmatpush2.msra.mxu0 %v245_v22  ;;  %455 = vmatpush2.msra.mxu1 %v247_v23  ;;  %v161_v4 = vld [vmem:[%s5137_s1 + $0x3e0] sm:$0xff]  ;;  %v163_v5 = vld [vmem:[%s5137_s1 + $0x3f0] sm:$0xff]  ;;  %v154_v6 = vld [vmem:[%s5137_s1 + $0x3a8] sm:$0xff] }
  0x2e   :  { %379 = vmatprep.subr.mxu0 %v238_v24  ;;  %456 = vmatprep.subr.mxu1 %v240_v25  ;;  %v156_v7 = vld [vmem:[%s5137_s1 + $0x3b8] sm:$0xff]  ;;  %v153_v8 = vld [vmem:[%s5137_s1 + $0x3a0] sm:$0xff]  ;;  %v155_v9 = vld [vmem:[%s5137_s1 + $0x3b0] sm:$0xff] }
  0x2f   :  { %380 = vmatpush2.msra.mxu0 %v237_v26  ;;  %457 = vmatpush2.msra.mxu1 %v239_v27  ;;  %v146_v10 = vld [vmem:[%s5137_s1 + $0x368] sm:$0xff]  ;;  %v148_v11 = vld [vmem:[%s5137_s1 + $0x378] sm:$0xff]  ;;  %v145_v12 = vld [vmem:[%s5137_s1 + $0x360] sm:$0xff] }
  0x30   :  { %381 = vmatprep.subr.mxu0 %v230_v28  ;;  %458 = vmatprep.subr.mxu1 %v232_v29  ;;  %v147_v13 = vld [vmem:[%s5137_s1 + $0x370] sm:$0xff]  ;;  %v138_v14 = vld [vmem:[%s5137_s1 + $0x328] sm:$0xff]  ;;  %v140_v15 = vld [vmem:[%s5137_s1 + $0x338] sm:$0xff] }
  0x31   :  { %382 = vmatpush2.msra.mxu0 %v229_v30  ;;  %459 = vmatpush2.msra.mxu1 %v231_v31  ;;  %v137_v16 = vld [vmem:[%s5137_s1 + $0x320] sm:$0xff]  ;;  %v139_v17 = vld [vmem:[%s5137_s1 + $0x330] sm:$0xff]  ;;  %v130_v18 = vld [vmem:[%s5137_s1 + $0x2e8] sm:$0xff] }
  0x32   :  { %383 = vmatprep.subr.mxu0 %v222_v32  ;;  %460 = vmatprep.subr.mxu1 %v224_v33  ;;  %v132_v19 = vld [vmem:[%s5137_s1 + $0x2f8] sm:$0xff]  ;;  %v129_v20 = vld [vmem:[%s5137_s1 + $0x2e0] sm:$0xff]  ;;  %v131_v21 = vld [vmem:[%s5137_s1 + $0x2f0] sm:$0xff] }
  0x33   :  { %384 = vmatpush2.msra.mxu0 %v221_v34  ;;  %461 = vmatpush2.msra.mxu1 %v223_v35  ;;  %v122_v22 = vld [vmem:[%s5137_s1 + $0x2a8] sm:$0xff]  ;;  %v124_v23 = vld [vmem:[%s5137_s1 + $0x2b8] sm:$0xff]  ;;  %v121_v24 = vld [vmem:[%s5137_s1 + $0x2a0] sm:$0xff] }
  0x34   :  { %385 = vmatprep.subr.mxu0 %v214_v36  ;;  %462 = vmatprep.subr.mxu1 %v216_v37  ;;  %v123_v25 = vld [vmem:[%s5137_s1 + $0x2b0] sm:$0xff]  ;;  %v114_v26 = vld [vmem:[%s5137_s1 + $0x268] sm:$0xff]  ;;  %v116_v27 = vld [vmem:[%s5137_s1 + $0x278] sm:$0xff] }
  0x35   :  { %386 = vmatpush2.msra.mxu0 %v213_v38  ;;  %463 = vmatpush2.msra.mxu1 %v215_v39  ;;  %v113_v28 = vld [vmem:[%s5137_s1 + $0x260] sm:$0xff]  ;;  %v115_v29 = vld [vmem:[%s5137_s1 + $0x270] sm:$0xff]  ;;  %v106_v30 = vld [vmem:[%s5137_s1 + $0x228] sm:$0xff] }
  0x36   :  { %387 = vmatprep.subr.mxu0 %v206_v40  ;;  %464 = vmatprep.subr.mxu1 %v208_v41  ;;  %v108_v31 = vld [vmem:[%s5137_s1 + $0x238] sm:$0xff]  ;;  %v105_v32 = vld [vmem:[%s5137_s1 + $0x220] sm:$0xff]  ;;  %v107_v33 = vld [vmem:[%s5137_s1 + $0x230] sm:$0xff] }
  0x37   :  { %388 = vmatpush2.msra.mxu0 %v205_v42  ;;  %465 = vmatpush2.msra.mxu1 %v207_v43  ;;  %v98_v34 = vld [vmem:[%s5137_s1 + $0x1e8] sm:$0xff]  ;;  %v100_v35 = vld [vmem:[%s5137_s1 + $0x1f8] sm:$0xff]  ;;  %v97_v36 = vld [vmem:[%s5137_s1 + $0x1e0] sm:$0xff] }
  0x38   :  { %389 = vmatprep.subr.mxu0 %v198_v44  ;;  %466 = vmatprep.subr.mxu1 %v200_v45  ;;  %v99_v37 = vld [vmem:[%s5137_s1 + $0x1f0] sm:$0xff]  ;;  %v90_v38 = vld [vmem:[%s5137_s1 + $0x1a8] sm:$0xff]  ;;  %v92_v39 = vld [vmem:[%s5137_s1 + $0x1b8] sm:$0xff] }
  0x39   :  { %390 = vmatpush2.msra.mxu0 %v197_v46  ;;  %467 = vmatpush2.msra.mxu1 %v199_v47  ;;  %v89_v40 = vld [vmem:[%s5137_s1 + $0x1a0] sm:$0xff]  ;;  %v91_v41 = vld [vmem:[%s5137_s1 + $0x1b0] sm:$0xff]  ;;  %v82_v42 = vld [vmem:[%s5137_s1 + $0x168] sm:$0xff] }
  0x3a   :  { %391 = vmatprep.subr.mxu0 %v190_v48  ;;  %468 = vmatprep.subr.mxu1 %v192_v49  ;;  %v84_v43 = vld [vmem:[%s5137_s1 + $0x178] sm:$0xff]  ;;  %v81_v44 = vld [vmem:[%s5137_s1 + $0x160] sm:$0xff]  ;;  %v83_v45 = vld [vmem:[%s5137_s1 + $0x170] sm:$0xff] }
  0x3b   :  { %392 = vmatpush2.msra.mxu0 %v189_v50  ;;  %469 = vmatpush2.msra.mxu1 %v191_v51  ;;  %v74_v46 = vld [vmem:[%s5137_s1 + $0x128] sm:$0xff]  ;;  %v76_v47 = vld [vmem:[%s5137_s1 + $0x138] sm:$0xff]  ;;  %v73_v48 = vld [vmem:[%s5137_s1 + $0x120] sm:$0xff] }
  0x3c   :  { %393 = vmatprep.subr.mxu0 %v182_v52  ;;  %470 = vmatprep.subr.mxu1 %v184_v53  ;;  %v75_v49 = vld [vmem:[%s5137_s1 + $0x130] sm:$0xff]  ;;  %v66_v50 = vld [vmem:[%s5137_s1 + $0xe8] sm:$0xff]  ;;  %v68_v51 = vld [vmem:[%s5137_s1 + $0xf8] sm:$0xff] }
  0x3d   :  { %394 = vmatpush2.msra.mxu0 %v181_v54  ;;  %471 = vmatpush2.msra.mxu1 %v183_v55  ;;  %v65_v52 = vld [vmem:[%s5137_s1 + $0xe0] sm:$0xff]  ;;  %v67_v53 = vld [vmem:[%s5137_s1 + $0xf0] sm:$0xff]  ;;  %v58_v54 = vld [vmem:[%s5137_s1 + $0xa8] sm:$0xff] }
  0x3e   :  { %395 = vmatprep.subr.mxu0 %v174_v56  ;;  %472 = vmatprep.subr.mxu1 %v176_v57  ;;  %v60_v55 = vld [vmem:[%s5137_s1 + $0xb8] sm:$0xff]  ;;  %v57_v56 = vld [vmem:[%s5137_s1 + $0xa0] sm:$0xff]  ;;  %v59_v57 = vld [vmem:[%s5137_s1 + $0xb0] sm:$0xff] }
  0x3f   :  { %396 = vmatpush2.msra.mxu0 %v173_v58  ;;  %473 = vmatpush2.msra.mxu1 %v175_v59  ;;  %v50_v58 = vld [vmem:[%s5137_s1 + $0x68] sm:$0xff]  ;;  %v52_v59 = vld [vmem:[%s5137_s1 + $0x78] sm:$0xff] }
  0x40   :  { %397 = vmatprep.subr.mxu0 %v166_v60  ;;  %474 = vmatprep.subr.mxu1 %v168_v61  ;;  %v49_v60 = vld [vmem:[%s5137_s1 + $0x60] sm:$0xff]  ;;  %v51_v61 = vld [vmem:[%s5137_s1 + $0x70] sm:$0xff] }
  0x41   :  { %398 = vmatpush2.msra.mxu0 %v165_v62  ;;  %399 = vmatprep.mubr.f32.mxu0 %v3302_v63  ;;  %v42_v62 = vld [vmem:[%s5137_s1 + $0x28] sm:$0xff] }
  0x42   :  { %475 = vmatpush2.msra.mxu1 %v167_v0  ;;  %400 = vmatmul.mubr.f32.vlgmr.msra.gmra.mxu0 %v3310_v1  ;;  %v44_v0 = vld [vmem:[%s5137_s1 + $0x38] sm:$0xff] }
  0x43   :  { %476 = vmatprep.mubr.f32.mxu1 %v3302_v63  ;;  %489 = vmatprep.subr.mxu0 %v162_v2  ;;  %v41_v2 = vld [vmem:[%s5137_s1 + $0x20] sm:$0xff] }
  0x44   :  { %564 = vmatprep.subr.mxu1 %v164_v3  ;;  %477 = vmatmul.mubr.f32.vlgmr.msra.gmra.mxu1 %v3310_v1  ;;  %v43_v3 = vld [vmem:[%s5137_s1 + $0x30] sm:$0xff] }
  0x45   :  { %490 = vmatpush1.msra.mxu0 %v161_v4  ;;  %565 = vmatpush1.msra.mxu1 %v163_v5  ;;  %v290_v4 = vld [vmem:[%s5137_s1 + $0x7e8] sm:$0xff]  ;;  %v292_v5 = vld [vmem:[%s5137_s1 + $0x7f8] sm:$0xff] }
  0x46   :  { %491 = vmatprep.subr.mxu0 %v154_v6  ;;  %566 = vmatprep.subr.mxu1 %v156_v7  ;;  %v289_v6 = vld [vmem:[%s5137_s1 + $0x7e0] sm:$0xff]  ;;  %v291_v7 = vld [vmem:[%s5137_s1 + $0x7f0] sm:$0xff] }
  0x47   :  { %492 = vmatpush1.msra.mxu0 %v153_v8  ;;  %567 = vmatpush1.msra.mxu1 %v155_v9  ;;  %v282_v8 = vld [vmem:[%s5137_s1 + $0x7a8] sm:$0xff]  ;;  %v284_v9 = vld [vmem:[%s5137_s1 + $0x7b8] sm:$0xff] }
  0x48   :  { %493 = vmatprep.subr.mxu0 %v146_v10  ;;  %568 = vmatprep.subr.mxu1 %v148_v11  ;;  %v281_v10 = vld [vmem:[%s5137_s1 + $0x7a0] sm:$0xff]  ;;  %v283_v11 = vld [vmem:[%s5137_s1 + $0x7b0] sm:$0xff] }
  0x49   :  { %494 = vmatpush1.msra.mxu0 %v145_v12  ;;  %569 = vmatpush1.msra.mxu1 %v147_v13  ;;  %v274_v12 = vld [vmem:[%s5137_s1 + $0x768] sm:$0xff]  ;;  %v276_v13 = vld [vmem:[%s5137_s1 + $0x778] sm:$0xff] }
  0x4a   :  { %495 = vmatprep.subr.mxu0 %v138_v14  ;;  %570 = vmatprep.subr.mxu1 %v140_v15  ;;  %v273_v14 = vld [vmem:[%s5137_s1 + $0x760] sm:$0xff]  ;;  %v275_v15 = vld [vmem:[%s5137_s1 + $0x770] sm:$0xff] }
  0x4b   :  { %496 = vmatpush1.msra.mxu0 %v137_v16  ;;  %571 = vmatpush1.msra.mxu1 %v139_v17  ;;  %v266_v16 = vld [vmem:[%s5137_s1 + $0x728] sm:$0xff]  ;;  %v268_v17 = vld [vmem:[%s5137_s1 + $0x738] sm:$0xff] }
  0x4c   :  { %497 = vmatprep.subr.mxu0 %v130_v18  ;;  %572 = vmatprep.subr.mxu1 %v132_v19  ;;  %v265_v18 = vld [vmem:[%s5137_s1 + $0x720] sm:$0xff]  ;;  %v267_v19 = vld [vmem:[%s5137_s1 + $0x730] sm:$0xff] }
  0x4d   :  { %498 = vmatpush1.msra.mxu0 %v129_v20  ;;  %573 = vmatpush1.msra.mxu1 %v131_v21  ;;  %v258_v20 = vld [vmem:[%s5137_s1 + $0x6e8] sm:$0xff]  ;;  %v260_v21 = vld [vmem:[%s5137_s1 + $0x6f8] sm:$0xff] }
  0x4e   :  { %499 = vmatprep.subr.mxu0 %v122_v22  ;;  %574 = vmatprep.subr.mxu1 %v124_v23  ;;  %v257_v22 = vld [vmem:[%s5137_s1 + $0x6e0] sm:$0xff]  ;;  %v259_v23 = vld [vmem:[%s5137_s1 + $0x6f0] sm:$0xff] }
  0x4f   :  { %500 = vmatpush1.msra.mxu0 %v121_v24  ;;  %575 = vmatpush1.msra.mxu1 %v123_v25  ;;  %v250_v24 = vld [vmem:[%s5137_s1 + $0x6a8] sm:$0xff]  ;;  %v252_v25 = vld [vmem:[%s5137_s1 + $0x6b8] sm:$0xff] }
  0x50   :  { %501 = vmatprep.subr.mxu0 %v114_v26  ;;  %576 = vmatprep.subr.mxu1 %v116_v27  ;;  %v249_v26 = vld [vmem:[%s5137_s1 + $0x6a0] sm:$0xff]  ;;  %v251_v27 = vld [vmem:[%s5137_s1 + $0x6b0] sm:$0xff] }
  0x51   :  { %502 = vmatpush1.msra.mxu0 %v113_v28  ;;  %577 = vmatpush1.msra.mxu1 %v115_v29  ;;  %v242_v28 = vld [vmem:[%s5137_s1 + $0x668] sm:$0xff]  ;;  %v244_v29 = vld [vmem:[%s5137_s1 + $0x678] sm:$0xff] }
  0x52   :  { %503 = vmatprep.subr.mxu0 %v106_v30  ;;  %578 = vmatprep.subr.mxu1 %v108_v31 }
  0x53   :  { %504 = vmatpush1.msra.mxu0 %v105_v32  ;;  %579 = vmatpush1.msra.mxu1 %v107_v33 }
  0x54   :  { %505 = vmatprep.subr.mxu0 %v98_v34  ;;  %580 = vmatprep.subr.mxu1 %v100_v35 }
  0x55   :  { %506 = vmatpush1.msra.mxu0 %v97_v36  ;;  %581 = vmatpush1.msra.mxu1 %v99_v37 }
  0x56   :  { %507 = vmatprep.subr.mxu0 %v90_v38  ;;  %582 = vmatprep.subr.mxu1 %v92_v39 }
  0x57   :  { %508 = vmatpush1.msra.mxu0 %v89_v40  ;;  %583 = vmatpush1.msra.mxu1 %v91_v41 }
  0x58   :  { %509 = vmatprep.subr.mxu0 %v82_v42  ;;  %584 = vmatprep.subr.mxu1 %v84_v43 }
  0x59   :  { %510 = vmatpush1.msra.mxu0 %v81_v44  ;;  %585 = vmatpush1.msra.mxu1 %v83_v45 }
  0x5a   :  { %511 = vmatprep.subr.mxu0 %v74_v46  ;;  %586 = vmatprep.subr.mxu1 %v76_v47 }
  0x5b   :  { %512 = vmatpush1.msra.mxu0 %v73_v48  ;;  %587 = vmatpush1.msra.mxu1 %v75_v49 }
  0x5c   :  { %513 = vmatprep.subr.mxu0 %v66_v50  ;;  %588 = vmatprep.subr.mxu1 %v68_v51 }
  0x5d   :  { %514 = vmatpush1.msra.mxu0 %v65_v52  ;;  %589 = vmatpush1.msra.mxu1 %v67_v53 }
  0x5e   :  { %515 = vmatprep.subr.mxu0 %v58_v54  ;;  %590 = vmatprep.subr.mxu1 %v60_v55 }
  0x5f   :  { %516 = vmatpush1.msra.mxu0 %v57_v56  ;;  %591 = vmatpush1.msra.mxu1 %v59_v57 }
  0x60   :  { %517 = vmatprep.subr.mxu0 %v50_v58  ;;  %592 = vmatprep.subr.mxu1 %v52_v59 }
  0x61   :  { %518 = vmatpush1.msra.mxu0 %v49_v60  ;;  %593 = vmatpush1.msra.mxu1 %v51_v61 }
  0x62   :  { %519 = vmatprep.subr.mxu0 %v42_v62  ;;  %594 = vmatprep.subr.mxu1 %v44_v0 }
  0x63   :  { %520 = vmatpush1.msra.mxu0 %v41_v2  ;;  %595 = vmatpush1.msra.mxu1 %v43_v3 }
  0x64   :  { %521 = vmatprep.subr.mxu0 %v290_v4  ;;  %596 = vmatprep.subr.mxu1 %v292_v5 }
  0x65   :  { %522 = vmatpush2.msra.mxu0 %v289_v6  ;;  %597 = vmatpush2.msra.mxu1 %v291_v7 }
  0x66   :  { %523 = vmatprep.subr.mxu0 %v282_v8  ;;  %598 = vmatprep.subr.mxu1 %v284_v9 }
  0x67   :  { %524 = vmatpush2.msra.mxu0 %v281_v10  ;;  %599 = vmatpush2.msra.mxu1 %v283_v11 }
  0x68   :  { %525 = vmatprep.subr.mxu0 %v274_v12  ;;  %600 = vmatprep.subr.mxu1 %v276_v13 }
  0x69   :  { %526 = vmatpush2.msra.mxu0 %v273_v14  ;;  %601 = vmatpush2.msra.mxu1 %v275_v15 }
  0x6a   :  { %527 = vmatprep.subr.mxu0 %v266_v16  ;;  %602 = vmatprep.subr.mxu1 %v268_v17 }
  0x6b   :  { %528 = vmatpush2.msra.mxu0 %v265_v18  ;;  %603 = vmatpush2.msra.mxu1 %v267_v19 }
  0x6c   :  { %529 = vmatprep.subr.mxu0 %v258_v20  ;;  %604 = vmatprep.subr.mxu1 %v260_v21 }
  0x6d   :  { %530 = vmatpush2.msra.mxu0 %v257_v22  ;;  %605 = vmatpush2.msra.mxu1 %v259_v23 }
  0x6e   :  { %14 = vsyncpa [#allocation3], 0  ;;  %531 = vmatprep.subr.mxu0 %v250_v24  ;;  %606 = vmatprep.subr.mxu1 %v252_v25  ;;  %v241_v30 = vld [vmem:[%s5137_s1 + $0x660] sm:$0xff]  ;;  %v243_v31 = vld [vmem:[%s5137_s1 + $0x670] sm:$0xff]  ;;  %vm2866_vm0 = vmmov 0   ;;  %vm2392_vm1 = vcmask 261120  }
  0x6f   :  { %532 = vmatpush2.msra.mxu0 %v249_v26  ;;  %607 = vmatpush2.msra.mxu1 %v251_v27  ;;  %v234_v32 = vld [vmem:[%s5137_s1 + $0x628] sm:$0xff]  ;;  %v236_v33 = vld [vmem:[%s5137_s1 + $0x638] sm:$0xff]  ;;  %v233_v34 = vld [vmem:[%s5137_s1 + $0x620] sm:$0xff]  ;;  %vm2466_vm2 = vcmask 25600  }
  0x70   :  { %533 = vmatprep.subr.mxu0 %v242_v28  ;;  %608 = vmatprep.subr.mxu1 %v244_v29  ;;  %v235_v35 = vld [vmem:[%s5137_s1 + $0x630] sm:$0xff]  ;;  %v226_v36 = vld [vmem:[%s5137_s1 + $0x5e8] sm:$0xff]  ;;  %v228_v37 = vld [vmem:[%s5137_s1 + $0x5f8] sm:$0xff] }
  0x71   :  { %534 = vmatpush2.msra.mxu0 %v241_v30  ;;  %609 = vmatpush2.msra.mxu1 %v243_v31  ;;  %v225_v38 = vld [vmem:[%s5137_s1 + $0x5e0] sm:$0xff]  ;;  %v227_v39 = vld [vmem:[%s5137_s1 + $0x5f0] sm:$0xff]  ;;  %v218_v40 = vld [vmem:[%s5137_s1 + $0x5a8] sm:$0xff] }
  0x72   :  { %535 = vmatprep.subr.mxu0 %v234_v32  ;;  %610 = vmatprep.subr.mxu1 %v236_v33  ;;  %v220_v41 = vld [vmem:[%s5137_s1 + $0x5b8] sm:$0xff]  ;;  %v217_v42 = vld [vmem:[%s5137_s1 + $0x5a0] sm:$0xff]  ;;  %v219_v43 = vld [vmem:[%s5137_s1 + $0x5b0] sm:$0xff] }
  0x73   :  { %536 = vmatpush2.msra.mxu0 %v233_v34  ;;  %611 = vmatpush2.msra.mxu1 %v235_v35  ;;  %v210_v44 = vld [vmem:[%s5137_s1 + $0x568] sm:$0xff]  ;;  %v212_v45 = vld [vmem:[%s5137_s1 + $0x578] sm:$0xff]  ;;  %v209_v46 = vld [vmem:[%s5137_s1 + $0x560] sm:$0xff] }
  0x74   :  { %537 = vmatprep.subr.mxu0 %v226_v36  ;;  %612 = vmatprep.subr.mxu1 %v228_v37  ;;  %v211_v47 = vld [vmem:[%s5137_s1 + $0x570] sm:$0xff]  ;;  %v202_v48 = vld [vmem:[%s5137_s1 + $0x528] sm:$0xff]  ;;  %v204_v49 = vld [vmem:[%s5137_s1 + $0x538] sm:$0xff] }
  0x75   :  { %538 = vmatpush2.msra.mxu0 %v225_v38  ;;  %613 = vmatpush2.msra.mxu1 %v227_v39  ;;  %v201_v50 = vld [vmem:[%s5137_s1 + $0x520] sm:$0xff]  ;;  %v203_v51 = vld [vmem:[%s5137_s1 + $0x530] sm:$0xff]  ;;  %v194_v52 = vld [vmem:[%s5137_s1 + $0x4e8] sm:$0xff] }
  0x76   :  { %539 = vmatprep.subr.mxu0 %v218_v40  ;;  %614 = vmatprep.subr.mxu1 %v220_v41  ;;  %v196_v53 = vld [vmem:[%s5137_s1 + $0x4f8] sm:$0xff]  ;;  %v193_v54 = vld [vmem:[%s5137_s1 + $0x4e0] sm:$0xff]  ;;  %v195_v55 = vld [vmem:[%s5137_s1 + $0x4f0] sm:$0xff] }
  0x77   :  { %540 = vmatpush2.msra.mxu0 %v217_v42  ;;  %615 = vmatpush2.msra.mxu1 %v219_v43  ;;  %v3667_v56 = vld [vmem:[%s5136_s0 + $0x18] sm:$0xff]  ;;  %v186_v57 = vld [vmem:[%s5137_s1 + $0x4a8] sm:$0xff]  ;;  %v3678_v59 = vld [vmem:[%s5136_s0 + $0x10] sm:$0xff] }
  0x78   :  { %541 = vmatprep.subr.mxu0 %v210_v44  ;;  %616 = vmatprep.subr.mxu1 %v212_v45  ;;  %v188_v58 = vld [vmem:[%s5137_s1 + $0x4b8] sm:$0xff]  ;;  %v185_v60 = vld [vmem:[%s5137_s1 + $0x4a0] sm:$0xff]  ;;  %v187_v61 = vld [vmem:[%s5137_s1 + $0x4b0] sm:$0xff] }
  0x79   :  { %542 = vmatpush2.msra.mxu0 %v209_v46  ;;  %617 = vmatpush2.msra.mxu1 %v211_v47  ;;  %v178_v62 = vld [vmem:[%s5137_s1 + $0x468] sm:$0xff]  ;;  %v180_v0 = vld [vmem:[%s5137_s1 + $0x478] sm:$0xff]  ;;  %v177_v2 = vld [vmem:[%s5137_s1 + $0x460] sm:$0xff] }
  0x7a   :  { %543 = vmatprep.subr.mxu0 %v202_v48  ;;  %618 = vmatprep.subr.mxu1 %v204_v49  ;;  %v179_v3 = vld [vmem:[%s5137_s1 + $0x470] sm:$0xff]  ;;  %v170_v4 = vld [vmem:[%s5137_s1 + $0x428] sm:$0xff]  ;;  %v172_v5 = vld [vmem:[%s5137_s1 + $0x438] sm:$0xff] }
  0x7b   :  { %544 = vmatpush2.msra.mxu0 %v201_v50  ;;  %619 = vmatpush2.msra.mxu1 %v203_v51  ;;  %v169_v6 = vld [vmem:[%s5137_s1 + $0x420] sm:$0xff]  ;;  %v171_v7 = vld [vmem:[%s5137_s1 + $0x430] sm:$0xff]  ;;  %v3717_v8 = vld [vmem:[%s5139_s3 + $0x1e8] sm:$0xff] }
  0x7c   :  { %545 = vmatprep.subr.mxu0 %v194_v52  ;;  %620 = vmatprep.subr.mxu1 %v196_v53  ;;  %5259 = vst [vmem:[#allocation5_spill] sm:$0xff] %v3717_v8  ;;  %v3723_v9 = vld [vmem:[%s5139_s3 + $0x1f8] sm:$0xff]  ;;  %v3729_v10 = vld [vmem:[%s5139_s3 + $0x1e0] sm:$0xff]  ;;  %v3734_v11 = vld [vmem:[%s5139_s3 + $0x1f0] sm:$0xff] }
  0x7d   :  { %546 = vmatpush2.msra.mxu0 %v193_v54  ;;  %621 = vmatpush2.msra.mxu1 %v195_v55  ;;  %5260 = vst [vmem:[#allocation6_spill] sm:$0xff] %v3723_v9  ;;  %v3741_v12 = vld [vmem:[%s5139_s3 + $0x1c8] sm:$0xff]  ;;  %v3746_v13 = vld [vmem:[%s5139_s3 + $0x1d8] sm:$0xff]  ;;  %v3758_v14 = vld [vmem:[%s5139_s3 + $0x1d0] sm:$0xff] }
  0x7e   :  { %405 = vmatprep.mubr.f32.mxu0 %v3667_v56  ;;  %547 = vmatprep.subr.mxu0 %v186_v57  ;;  %v3765_v15 = vld [vmem:[%s5139_s3 + $0x1a8] sm:$0xff]  ;;  %v3777_v16 = vld [vmem:[%s5139_s3 + $0x1a0] sm:$0xff]  ;;  %v3782_v17 = vld [vmem:[%s5139_s3 + $0x1b0] sm:$0xff] }
  0x7f   :  { %622 = vmatprep.subr.mxu1 %v188_v58  ;;  %406 = vmatmul.mubr.f32.gmra.mxu0 %v3678_v59  ;;  %v3789_v18 = vld [vmem:[%s5139_s3 + $0x188] sm:$0xff]  ;;  %v3794_v19 = vld [vmem:[%s5139_s3 + $0x198] sm:$0xff]  ;;  %v3801_v20 = vld [vmem:[%s5139_s3 + $0x180] sm:$0xff] }
  0x80   :  { %548 = vmatpush2.msra.mxu0 %v185_v60  ;;  %623 = vmatpush2.msra.mxu1 %v187_v61  ;;  %v3806_v21 = vld [vmem:[%s5139_s3 + $0x190] sm:$0xff]  ;;  %v3813_v22 = vld [vmem:[%s5139_s3 + $0x168] sm:$0xff]  ;;  %v3818_v23 = vld [vmem:[%s5139_s3 + $0x178] sm:$0xff] }
  0x81   :  { %482 = vmatprep.mubr.f32.mxu1 %v3667_v56  ;;  %549 = vmatprep.subr.mxu0 %v178_v62  ;;  %v3825_v24 = vld [vmem:[%s5139_s3 + $0x160] sm:$0xff]  ;;  %v3830_v25 = vld [vmem:[%s5139_s3 + $0x170] sm:$0xff]  ;;  %v3837_v26 = vld [vmem:[%s5139_s3 + $0x148] sm:$0xff] }
  0x82   :  { %624 = vmatprep.subr.mxu1 %v180_v0  ;;  %483 = vmatmul.mubr.f32.gmra.mxu1 %v3678_v59  ;;  %v3842_v27 = vld [vmem:[%s5139_s3 + $0x158] sm:$0xff]  ;;  %v3849_v28 = vld [vmem:[%s5139_s3 + $0x140] sm:$0xff]  ;;  %v3854_v29 = vld [vmem:[%s5139_s3 + $0x150] sm:$0xff] }
  0x83   :  { %550 = vmatpush2.msra.mxu0 %v177_v2  ;;  %625 = vmatpush2.msra.mxu1 %v179_v3  ;;  %v3861_v30 = vld [vmem:[%s5139_s3 + $0x128] sm:$0xff]  ;;  %v3866_v31 = vld [vmem:[%s5139_s3 + $0x138] sm:$0xff]  ;;  %v3873_v32 = vld [vmem:[%s5139_s3 + $0x120] sm:$0xff] }
  0x84   :  { %551 = vmatprep.subr.mxu0 %v170_v4  ;;  %626 = vmatprep.subr.mxu1 %v172_v5  ;;  %v3878_v33 = vld [vmem:[%s5139_s3 + $0x130] sm:$0xff]  ;;  %v3885_v34 = vld [vmem:[%s5139_s3 + $0x108] sm:$0xff]  ;;  %v3890_v35 = vld [vmem:[%s5139_s3 + $0x118] sm:$0xff] }
  0x85   :  { %552 = vmatpush2.msra.mxu0 %v169_v6  ;;  %553 = vmatprep.mubr.f32.mxu0 %v3302_v63  ;;  %v3897_v36 = vld [vmem:[%s5139_s3 + $0x100] sm:$0xff]  ;;  %v3902_v37 = vld [vmem:[%s5139_s3 + $0x110] sm:$0xff]  ;;  %v3909_v38 = vld [vmem:[%s5139_s3 + $0xe8] sm:$0xff] }
  0x86   :  { %627 = vmatpush2.msra.mxu1 %v171_v7  ;;  %554 = vmatmul.mubr.f32.vlgmr.msra.gmra.mxu0 %v3310_v1  ;;  %v3914_v39 = vld [vmem:[%s5139_s3 + $0xf8] sm:$0xff]  ;;  %v3921_v40 = vld [vmem:[%s5139_s3 + $0xe0] sm:$0xff]  ;;  %v3926_v41 = vld [vmem:[%s5139_s3 + $0xf0] sm:$0xff] }
  0x87   :  { %628 = vmatprep.mubr.f32.mxu1 %v3302_v63  ;;  %703 = vmatprep.subr.mxu0 %v3717_v8  ;;  %v3753_v63 = vld [vmem:[%s5139_s3 + $0x1c0] sm:$0xff]  ;;  %v3933_v42 = vld [vmem:[%s5139_s3 + $0xc8] sm:$0xff]  ;;  %v3938_v43 = vld [vmem:[%s5139_s3 + $0xd8] sm:$0xff] }
  0x88   :  { %774 = vmatprep.subr.mxu1 %v3723_v9  ;;  %629 = vmatmul.mubr.f32.vlgmr.msra.gmra.mxu1 %v3310_v1  ;;  %v3770_v1 = vld [vmem:[%s5139_s3 + $0x1b8] sm:$0xff]  ;;  %5261 = vst [vmem:[#allocation7_spill] sm:$0xff] %v3938_v43  ;;  %v3945_v44 = vld [vmem:[%s5139_s3 + $0xc0] sm:$0xff]  ;;  %v3950_v45 = vld [vmem:[%s5139_s3 + $0xd0] sm:$0xff] }
  0x89   :  { %704 = vmatpush1.msra.mxu0 %v3729_v10  ;;  %775 = vmatpush1.msra.mxu1 %v3734_v11  ;;  %5262 = vst [vmem:[#allocation8_spill] sm:$0xff] %v3945_v44  ;;  %5263 = vst [vmem:[#allocation9_spill] sm:$0xff] %v3950_v45  ;;  %v3957_v46 = vld [vmem:[%s5139_s3 + $0xa8] sm:$0xff]  ;;  %v3962_v47 = vld [vmem:[%s5139_s3 + $0xb8] sm:$0xff] }
  0x8a   :  { %705 = vmatprep.subr.mxu0 %v3741_v12  ;;  %776 = vmatprep.subr.mxu1 %v3746_v13  ;;  %5264 = vst [vmem:[#allocation10_spill] sm:$0xff] %v3957_v46  ;;  %5265 = vst [vmem:[#allocation11_spill] sm:$0xff] %v3962_v47  ;;  %v3969_v48 = vld [vmem:[%s5139_s3 + $0xa0] sm:$0xff]  ;;  %v3974_v49 = vld [vmem:[%s5139_s3 + $0xb0] sm:$0xff] }
  0x8b   :  { %706 = vmatpush1.msra.mxu0 %v3753_v63  ;;  %777 = vmatpush1.msra.mxu1 %v3758_v14  ;;  %5266 = vst [vmem:[#allocation12_spill] sm:$0xff] %v3969_v48  ;;  %5267 = vst [vmem:[#allocation13_spill] sm:$0xff] %v3974_v49  ;;  %v3981_v50 = vld [vmem:[%s5139_s3 + $0x88] sm:$0xff]  ;;  %v3986_v51 = vld [vmem:[%s5139_s3 + $0x98] sm:$0xff] }
  0x8c   :  { %707 = vmatprep.subr.mxu0 %v3765_v15  ;;  %778 = vmatprep.subr.mxu1 %v3770_v1  ;;  %5268 = vst [vmem:[#allocation14_spill] sm:$0xff] %v3981_v50  ;;  %5269 = vst [vmem:[#allocation15_spill] sm:$0xff] %v3986_v51  ;;  %v3993_v52 = vld [vmem:[%s5139_s3 + $0x80] sm:$0xff]  ;;  %v3998_v53 = vld [vmem:[%s5139_s3 + $0x90] sm:$0xff] }
  0x8d   :  { %708 = vmatpush1.msra.mxu0 %v3777_v16  ;;  %779 = vmatpush1.msra.mxu1 %v3782_v17  ;;  %5270 = vst [vmem:[#allocation16_spill] sm:$0xff] %v3993_v52  ;;  %5271 = vst [vmem:[#allocation17_spill] sm:$0xff] %v3998_v53  ;;  %v4005_v54 = vld [vmem:[%s5139_s3 + $0x68] sm:$0xff]  ;;  %v4010_v55 = vld [vmem:[%s5139_s3 + $0x78] sm:$0xff] }
  0x8e   :  { %709 = vmatprep.subr.mxu0 %v3789_v18  ;;  %780 = vmatprep.subr.mxu1 %v3794_v19  ;;  %5272 = vst [vmem:[#allocation18_spill] sm:$0xff] %v4005_v54  ;;  %5273 = vst [vmem:[#allocation19_spill] sm:$0xff] %v4010_v55  ;;  %v4017_v57 = vld [vmem:[%s5139_s3 + $0x60] sm:$0xff]  ;;  %v4024_v58 = vld [vmem:[%s5139_s3 + $0x70] sm:$0xff] }
  0x8f   :  { %710 = vmatpush1.msra.mxu0 %v3801_v20  ;;  %781 = vmatpush1.msra.mxu1 %v3806_v21  ;;  %5274 = vst [vmem:[#allocation20_spill] sm:$0xff] %v4017_v57  ;;  %5275 = vst [vmem:[#allocation21_spill] sm:$0xff] %v4024_v58  ;;  %v4031_v60 = vld [vmem:[%s5139_s3 + $0x48] sm:$0xff]  ;;  %v4036_v61 = vld [vmem:[%s5139_s3 + $0x58] sm:$0xff] }
  0x90   :  { %711 = vmatprep.subr.mxu0 %v3813_v22  ;;  %782 = vmatprep.subr.mxu1 %v3818_v23  ;;  %5276 = vst [vmem:[#allocation22_spill] sm:$0xff] %v4031_v60  ;;  %5277 = vst [vmem:[#allocation23_spill] sm:$0xff] %v4036_v61  ;;  %v4043_v62 = vld [vmem:[%s5139_s3 + $0x40] sm:$0xff]  ;;  %v4050_v0 = vld [vmem:[%s5139_s3 + $0x50] sm:$0xff] }
  0x91   :  { %712 = vmatpush1.msra.mxu0 %v3825_v24  ;;  %783 = vmatpush1.msra.mxu1 %v3830_v25  ;;  %5278 = vst [vmem:[#allocation24_spill] sm:$0xff] %v4043_v62  ;;  %5279 = vst [vmem:[#allocation25_spill] sm:$0xff] %v4050_v0  ;;  %v4055_v2 = vld [vmem:[%s5139_s3 + $0x28] sm:$0xff]  ;;  %v4062_v3 = vld [vmem:[%s5139_s3 + $0x38] sm:$0xff] }
  0x92   :  { %713 = vmatprep.subr.mxu0 %v3837_v26  ;;  %784 = vmatprep.subr.mxu1 %v3842_v27  ;;  %5280 = vst [vmem:[#allocation26_spill] sm:$0xff] %v4055_v2  ;;  %5281 = vst [vmem:[#allocation27_spill] sm:$0xff] %v4062_v3  ;;  %v4069_v4 = vld [vmem:[%s5139_s3 + $0x20] sm:$0xff]  ;;  %v4074_v5 = vld [vmem:[%s5139_s3 + $0x30] sm:$0xff] }
  0x93   :  { %714 = vmatpush1.msra.mxu0 %v3849_v28  ;;  %785 = vmatpush1.msra.mxu1 %v3854_v29  ;;  %5282 = vst [vmem:[#allocation28_spill] sm:$0xff] %v4069_v4  ;;  %5283 = vst [vmem:[#allocation29_spill] sm:$0xff] %v4074_v5  ;;  %v4086_v6 = vld [vmem:[%s5139_s3 + $0x18] sm:$0xff]  ;;  %v4093_v7 = vld [vmem:[%s5139_s3] sm:$0xff] }
  0x94   :  { %715 = vmatprep.subr.mxu0 %v3861_v30  ;;  %786 = vmatprep.subr.mxu1 %v3866_v31  ;;  %5285 = vst [vmem:[#allocation31_spill] sm:$0xff] %v4086_v6  ;;  %5286 = vst [vmem:[#allocation32_spill] sm:$0xff] %v4093_v7 }
  0x95   :  { %716 = vmatpush1.msra.mxu0 %v3873_v32  ;;  %787 = vmatpush1.msra.mxu1 %v3878_v33 }
  0x96   :  { %717 = vmatprep.subr.mxu0 %v3885_v34  ;;  %788 = vmatprep.subr.mxu1 %v3890_v35 }
  0x97   :  { %718 = vmatpush1.msra.mxu0 %v3897_v36  ;;  %789 = vmatpush1.msra.mxu1 %v3902_v37 }
  0x98   :  { %719 = vmatprep.subr.mxu0 %v3909_v38  ;;  %790 = vmatprep.subr.mxu1 %v3914_v39 }
  0x99   :  { %720 = vmatpush1.msra.mxu0 %v3921_v40  ;;  %791 = vmatpush1.msra.mxu1 %v3926_v41 }
  0x9a   :  { %721 = vmatprep.subr.mxu0 %v3933_v42  ;;  %792 = vmatprep.subr.mxu1 %v3938_v43 }
  0x9b   :  { %722 = vmatpush1.msra.mxu0 %v3945_v44  ;;  %793 = vmatpush1.msra.mxu1 %v3950_v45 }
  0x9c   :  { %723 = vmatprep.subr.mxu0 %v3957_v46  ;;  %794 = vmatprep.subr.mxu1 %v3962_v47 }
  0x9d   :  { %724 = vmatpush1.msra.mxu0 %v3969_v48  ;;  %795 = vmatpush1.msra.mxu1 %v3974_v49 }
  0x9e   :  { %725 = vmatprep.subr.mxu0 %v3981_v50  ;;  %796 = vmatprep.subr.mxu1 %v3986_v51 }
  0x9f   :  { %726 = vmatpush1.msra.mxu0 %v3993_v52  ;;  %797 = vmatpush1.msra.mxu1 %v3998_v53 }
  0xa0   :  { %727 = vmatprep.subr.mxu0 %v4005_v54  ;;  %798 = vmatprep.subr.mxu1 %v4010_v55 }
  0xa1   :  { %557 = vmatprep.mubr.f32.mxu0 %v3667_v56  ;;  %728 = vmatpush1.msra.mxu0 %v4017_v57 }
  0xa2   :  { %799 = vmatpush1.msra.mxu1 %v4024_v58  ;;  %558 = vmatmul.mubr.f32.gmra.mxu0 %v3678_v59 }
  0xa3   :  { %729 = vmatprep.subr.mxu0 %v4031_v60  ;;  %800 = vmatprep.subr.mxu1 %v4036_v61 }
  0xa4   :  { %632 = vmatprep.mubr.f32.mxu1 %v3667_v56  ;;  %730 = vmatpush1.msra.mxu0 %v4043_v62  ;;  %v4081_v56 = vld [vmem:[%s5139_s3 + $0x8] sm:$0xff] }
  0xa5   :  { %801 = vmatpush1.msra.mxu1 %v4050_v0  ;;  %731 = vmatprep.subr.mxu0 %v4055_v2  ;;  %5284 = vst [vmem:[#allocation30_spill] sm:$0xff] %v4081_v56  ;;  %v4100_v2 = vld [vmem:[%s5139_s3 + $0x10] sm:$0xff] }
  0xa6   :  { %633 = vmatmul.mubr.f32.gmra.mxu1 %v3678_v59  ;;  %802 = vmatprep.subr.mxu1 %v4062_v3  ;;  %5287 = vst [vmem:[#allocation33_spill] sm:$0xff] %v4100_v2  ;;  %v5148_v59 = vmov 0.0  }
  0xa7   :  { %732 = vmatpush1.msra.mxu0 %v4069_v4  ;;  %803 = vmatpush1.msra.mxu1 %v4074_v5 }
  0xa8   :  { %733 = vmatprep.subr.mxu0 %v4081_v56  ;;  %804 = vmatprep.subr.mxu1 %v4086_v6 }
  0xa9   :  { %734 = vmatpush1.msra.mxu0 %v4093_v7  ;;  %767 = vmatprep.mubr.f32.mxu0 %v5148_v59 }
  0xaa   :  { %805 = vmatpush1.msra.mxu1 %v4100_v2  ;;  %838 = vmatprep.mubr.f32.mxu1 %v5148_v59 }
  0xab   :  { %768 = vmatmul.mubr.f32.vlgmr.msra.gmra.mxu0 %v5148_v59  ;;  %839 = vmatmul.mubr.f32.vlgmr.msra.gmra.mxu1 %v5148_v59  ;;  %v5288_v59 = vld [vmem:[#allocation26_spill] sm:$0xff] }
  0xac   :  { %873 = vmatprep.subr.mxu0 %v3717_v8  ;;  %944 = vmatprep.subr.mxu1 %v3723_v9 }
  0xad   :  { %874 = vmatpush1.msra.mxu0 %v3729_v10  ;;  %945 = vmatpush1.msra.mxu1 %v3734_v11 }
  0xae   :  { %875 = vmatprep.subr.mxu0 %v3741_v12  ;;  %946 = vmatprep.subr.mxu1 %v3746_v13 }
  0xaf   :  { %876 = vmatpush1.msra.mxu0 %v3753_v63  ;;  %947 = vmatpush1.msra.mxu1 %v3758_v14 }
  0xb0   :  { %877 = vmatprep.subr.mxu0 %v3765_v15  ;;  %948 = vmatprep.subr.mxu1 %v3770_v1 }
  0xb1   :  { %878 = vmatpush1.msra.mxu0 %v3777_v16  ;;  %949 = vmatpush1.msra.mxu1 %v3782_v17 }
  0xb2   :  { %879 = vmatprep.subr.mxu0 %v3789_v18  ;;  %950 = vmatprep.subr.mxu1 %v3794_v19 }
  0xb3   :  { %880 = vmatpush1.msra.mxu0 %v3801_v20  ;;  %951 = vmatpush1.msra.mxu1 %v3806_v21 }
  0xb4   :  { %881 = vmatprep.subr.mxu0 %v3813_v22  ;;  %952 = vmatprep.subr.mxu1 %v3818_v23 }
  0xb5   :  { %882 = vmatpush1.msra.mxu0 %v3825_v24  ;;  %953 = vmatpush1.msra.mxu1 %v3830_v25 }
  0xb6   :  { %883 = vmatprep.subr.mxu0 %v3837_v26  ;;  %954 = vmatprep.subr.mxu1 %v3842_v27 }
  0xb7   :  { %884 = vmatpush1.msra.mxu0 %v3849_v28  ;;  %955 = vmatpush1.msra.mxu1 %v3854_v29 }
  0xb8   :  { %885 = vmatprep.subr.mxu0 %v3861_v30  ;;  %956 = vmatprep.subr.mxu1 %v3866_v31 }
  0xb9   :  { %886 = vmatpush1.msra.mxu0 %v3873_v32  ;;  %957 = vmatpush1.msra.mxu1 %v3878_v33 }
  0xba   :  { %887 = vmatprep.subr.mxu0 %v3885_v34  ;;  %958 = vmatprep.subr.mxu1 %v3890_v35 }
  0xbb   :  { %888 = vmatpush1.msra.mxu0 %v3897_v36  ;;  %959 = vmatpush1.msra.mxu1 %v3902_v37 }
  0xbc   :  { %889 = vmatprep.subr.mxu0 %v3909_v38  ;;  %960 = vmatprep.subr.mxu1 %v3914_v39 }
  0xbd   :  { %890 = vmatpush1.msra.mxu0 %v3921_v40  ;;  %961 = vmatpush1.msra.mxu1 %v3926_v41 }
  0xbe   :  { %891 = vmatprep.subr.mxu0 %v3933_v42  ;;  %962 = vmatprep.subr.mxu1 %v3938_v43 }
  0xbf   :  { %892 = vmatpush1.msra.mxu0 %v3945_v44  ;;  %963 = vmatpush1.msra.mxu1 %v3950_v45 }
  0xc0   :  { %893 = vmatprep.subr.mxu0 %v3957_v46  ;;  %964 = vmatprep.subr.mxu1 %v3962_v47 }
  0xc1   :  { %894 = vmatpush1.msra.mxu0 %v3969_v48  ;;  %965 = vmatpush1.msra.mxu1 %v3974_v49 }
  0xc2   :  { %895 = vmatprep.subr.mxu0 %v3981_v50  ;;  %966 = vmatprep.subr.mxu1 %v3986_v51 }
  0xc3   :  { %896 = vmatpush1.msra.mxu0 %v3993_v52  ;;  %967 = vmatpush1.msra.mxu1 %v3998_v53 }
  0xc4   :  { %897 = vmatprep.subr.mxu0 %v4005_v54  ;;  %968 = vmatprep.subr.mxu1 %v4010_v55 }
  0xc5   :  { %898 = vmatpush1.msra.mxu0 %v4017_v57  ;;  %969 = vmatpush1.msra.mxu1 %v4024_v58 }
  0xc6   :  { %899 = vmatprep.subr.mxu0 %v4031_v60  ;;  %970 = vmatprep.subr.mxu1 %v4036_v61  ;;  %v5289_v60 = vmov 0.0  }
  0xc7   :  { %900 = vmatpush1.msra.mxu0 %v4043_v62  ;;  %971 = vmatpush1.msra.mxu1 %v4050_v0 }
  0xc8   :  { %901 = vmatprep.subr.mxu0 %v5288_v59  ;;  %972 = vmatprep.subr.mxu1 %v4062_v3  ;;  %v295_v3 = vlaneseq }
  0xc9   :  { %902 = vmatpush1.msra.mxu0 %v4069_v4  ;;  %973 = vmatpush1.msra.mxu1 %v4074_v5 }
  0xca   :  { %903 = vmatprep.subr.mxu0 %v4081_v56  ;;  %974 = vmatprep.subr.mxu1 %v4086_v6  ;;  %v296_v4 = vshrl.u32 %v295_v3, 7  ;;  %v293_v6 = vld [vmem:[%s5138_s2] sm:$0xff]  ;;  %s2867_s2 = smov [#allocation2]  }
  0xcb   :  { %904 = vmatpush1.msra.mxu0 %v4093_v7  ;;  %937 = vmatprep.mubr.f32.mxu0 %v5289_v60  ;;  %s2474_s0 = sshll.u32 %s2867_s2, 4  ;;  %s2475_s0 = int_to_ptr.vmem [resolvable:$true] %s2474_s0 }
  0xcc   :  { %975 = vmatpush1.msra.mxu1 %v4100_v2  ;;  %1008 = vmatprep.mubr.f32.mxu1 %v5289_v60  ;;  %v297_v5 = vsub.s32 0, %v296_v4  ;;  %v301_v56 = vsub.s32 1, %v296_v4  ;;  %v305_v62 = vsub.s32 2, %v296_v4  ;;  %v309_v61 = vsub.s32 3, %v296_v4  ;;  %p2848_p1 = scmp.lt.s32.totalorder %s2475_s0, %s2475_s0 }
  0xcd   :  { %1061 = vmatprep.subr.mxu0 %v3717_v8  ;;  %1132 = vmatprep.subr.mxu1 %v3723_v9  ;;  %v313_v46 = vsub.s32 4, %v296_v4  ;;  %v325_v43 = vsub.s32 7, %v296_v4 }
  0xce   :  { %v298_v2 = vrot.slane %v293_v6, %v297_v5  ;;  %v302_v58 = vrot.slane %v293_v6, %v301_v56  ;;  %v306_v9 = vrot.slane %v293_v6, %v305_v62  ;;  %v310_v53 = vrot.slane %v293_v6, %v309_v61 }
  0xcf   :  { %v317_v56 = vsub.s32 5, %v296_v4  ;;  %v314_v45 = vrot.slane %v293_v6, %v313_v46  ;;  %v321_v61 = vsub.s32 6, %v296_v4 }
 0x102   :  { %v401_v59 = vpop.f32.mrf.mxu0 }
 0x104   :  { %v4181_v7 = vpop.f32.mrf.mxu1  ;;  %v403_v0 = vpop.f32.mrf.mxu0 }
 0x106   :  { %v480_v8 = vpop.f32.mrf.mxu1 }
 0x13f   :  { %v407_v60 = vpop.f32.mrf.mxu0 }
 0x140   :  { %v4183_v57 = vadd.f32 %v407_v60, %v298_v2  ;;  %v318_v60 = vrot.slane %v293_v6, %v317_v56 }
 0x141   :  { %v409_v3 = vpop.f32.mrf.mxu0 }
 0x142   :  { %5290 = vst [vmem:[#allocation34_spill] sm:$0xff] %v4183_v57  ;;  %v4185_v55 = vadd.f32 %v409_v3, %v302_v58  ;;  %v484_v54 = vpop.f32.mrf.mxu1 }
 0x143   :  { %v4187_v52 = vadd.f32 %v484_v54, %v306_v9 }
 0x144   :  { %5291 = vst [vmem:[#allocation35_spill] sm:$0xff] %v4185_v55  ;;  %v486_v51 = vpop.f32.mrf.mxu1 }
 0x145   :  { %5292 = vst [vmem:[#allocation36_spill] sm:$0xff] %v4187_v52  ;;  %v4189_v50 = vadd.f32 %v486_v51, %v310_v53  ;;  %v326_v51 = vrot.slane %v293_v6, %v325_v43 }
 0x146   :  { %v555_v49 = vpop.f32.mrf.mxu0 }
 0x147   :  { %5293 = vst [vmem:[#allocation37_spill] sm:$0xff] %v4189_v50  ;;  %v4191_v49 = vadd.f32 %v401_v59, %v298_v2  ;;  %v5318_v50 = vld [vmem:[#allocation30_spill] sm:$0xff] }
 0x148   :  { %v556_v48 = vpop.f32.mrf.mxu0  ;;  %v630_v5 = vpop.f32.mrf.mxu1 }
 0x149   :  { %v322_v5 = vrot.slane %v293_v6, %v321_v61 }
 0x14a   :  { %v631_v47 = vpop.f32.mrf.mxu1 }
 0x14b   :  { %v4193_v47 = vadd.f32 %v403_v0, %v302_v58  ;;  %v4197_v58 = vadd.f32 %v480_v8, %v310_v53 }
 0x162   :  { %v559_v57 = vpop.f32.mrf.mxu0 }
 0x163   :  { %v560_v62 = vadd.f32 %v559_v57, %v314_v45 }
 0x164   :  { %v561_v44 = vpop.f32.mrf.mxu0 }
 0x165   :  { %v2506_v3 = vmul.f32 -1.442695, %v560_v62  ;;  %v562_v55 = vadd.f32 %v561_v44, %v318_v60 }
 0x166   :  { %v634_v52 = vpop.f32.mrf.mxu1 }
 0x167   :  { %2635 = vpow2.f32 %v2506_v3  ;;  %v2507_v54 = vmul.f32 -1.442695, %v562_v55  ;;  %v635_v60 = vadd.f32 %v634_v52, %v322_v5  ;;  %v4201_v52 = vadd.f32 %v4181_v7, %v306_v9 }
 0x168   :  { %v636_v46 = vpop.f32.mrf.mxu1 }
 0x169   :  { %2637 = vpow2.f32 %v2507_v54  ;;  %v637_v45 = vadd.f32 %v636_v46, %v326_v51 }
 0x16b   :  { %v769_v48 = vpop.f32.mrf.mxu0  ;;  %v840_v55 = vpop.f32.mrf.mxu1  ;;  %v2508_v3 = vmul.f32 -1.442695, %v637_v45 }
 0x16c   :  { %v845_v56 = vadd.f32 %v769_v48, %v4191_v49  ;;  %v847_v48 = vadd.f32 %v840_v55, %v4201_v52 }
 0x16d   :  { %v771_v57 = vpop.f32.mrf.mxu0  ;;  %v842_v2 = vpop.f32.mrf.mxu1 }
 0x16e   :  { %v2482_v62 = vmul.f32 -1.442695, %v845_v56  ;;  %v846_v44 = vadd.f32 %v771_v57, %v4193_v47  ;;  %v848_v54 = vadd.f32 %v842_v2, %v4197_v58 }
 0x170   :  { %2639 = vpow2.f32 %v2482_v62  ;;  %v2483_v4 = vmul.f32 -1.442695, %v846_v44  ;;  %v2484_v61 = vmul.f32 -1.442695, %v848_v54 }
 0x172   :  { %2641 = vpow2.f32 %v2483_v4 }
 0x173   :  { %2643 = vtanh.f32 %v635_v60 }
 0x174   :  { %v2636_v43 = vpop.eup %2635  ;;  %2645 = vpow2.f32 %v2508_v3 }
 0x175   :  { %v2174_v0 = vadd.f32 1.0, %v2636_v43 }
 0x176   :  { %v2638_v6 = vpop.eup %2637 }
 0x177   :  { %2647 = vrcp.f32 %v2174_v0  ;;  %v2180_v59 = vadd.f32 1.0, %v2638_v6 }
 0x179   :  { %2649 = vrcp.f32 %v2180_v59 }
 0x17a   :  { %2651 = vpow2.f32 %v2484_v61 }
 0x17d   :  { %v2640_v51 = vpop.eup %2639 }
 0x17e   :  { %v852_v5 = vadd.f32 1.0, %v2640_v51 }
 0x17f   :  { %v2642_v46 = vpop.eup %2641 }
 0x180   :  { %2653 = vrcp.f32 %v852_v5  ;;  %v858_v8 = vadd.f32 1.0, %v2642_v46  ;;  %v2644_v53 = vpop.eup %2643  ;;  %v5295_v46 = vld [vmem:[#allocation7_spill] sm:$0xff] }
 0x181   :  { %2655 = vtanh.f32 %v847_v48  ;;  %v2646_v56 = vpop.eup %2645 }
 0x182   :  { %2657 = vrcp.f32 %v858_v8  ;;  %v2187_v62 = vadd.f32 1.0, %v2646_v56  ;;  %v5296_v8 = vld [vmem:[#allocation8_spill] sm:$0xff]  ;;  %v5298_v56 = vld [vmem:[#allocation10_spill] sm:$0xff] }
 0x184   :  { %v2648_v45 = vpop.eup %2647  ;;  %2659 = vrcp.f32 %v2187_v62  ;;  %v5301_v62 = vld [vmem:[#allocation13_spill] sm:$0xff] }
 0x185   :  { %v2191_v57 = vmul.f32 %v2648_v45, %v2644_v53  ;;  %v5297_v53 = vld [vmem:[#allocation9_spill] sm:$0xff]  ;;  %v5299_v45 = vld [vmem:[#allocation11_spill] sm:$0xff] }
 0x186   :  { %v2650_v44 = vpop.eup %2649 }
 0x187   :  { %v2190_v60 = vmul.f32 0.0, %v2650_v44  ;;  %v2652_v7 = vpop.eup %2651  ;;  %v5302_v44 = vld [vmem:[#allocation14_spill] sm:$0xff] }
 0x188   :  { %v865_v43 = vadd.f32 1.0, %v2652_v7  ;;  %v5305_v7 = vld [vmem:[#allocation17_spill] sm:$0xff] }
 0x189   :  { %v2192_v9 = vadd.f32 %v2191_v57, %v2190_v60  ;;  %v5300_v57 = vld [vmem:[#allocation12_spill] sm:$0xff]  ;;  %v5303_v60 = vld [vmem:[#allocation15_spill] sm:$0xff] }
 0x18b   :  { %2661 = vtanh.f32 %v2192_v9  ;;  %v5304_v9 = vld [vmem:[#allocation16_spill] sm:$0xff] }
 0x18c   :  { %2663 = vrcp.f32 %v865_v43  ;;  %v5309_v43 = vld [vmem:[#allocation21_spill] sm:$0xff] }
 0x18d   :  { %v2654_v4 = vpop.eup %2653 }
 0x18e   :  { %v2656_v55 = vpop.eup %2655 }
 0x18f   :  { %v2658_v3 = vpop.eup %2657  ;;  %v869_v0 = vmul.f32 %v2656_v55, %v2654_v4  ;;  %v5306_v4 = vld [vmem:[#allocation18_spill] sm:$0xff]  ;;  %v5307_v55 = vld [vmem:[#allocation19_spill] sm:$0xff] }
 0x190   :  { %v868_v2 = vmul.f32 0.0, %v2658_v3  ;;  %v5308_v3 = vld [vmem:[#allocation20_spill] sm:$0xff] }
 0x191   :  { %v2660_v59 = vpop.eup %2659 }
 0x192   :  { %v4204_v6 = vadd.f32 %v869_v0, %v868_v2  ;;  %v5310_v2 = vld [vmem:[#allocation22_spill] sm:$0xff]  ;;  %v5311_v0 = vld [vmem:[#allocation23_spill] sm:$0xff] }
 0x194   :  { %2665 = vtanh.f32 %v4204_v6 }
 0x198   :  { %v2662_v54 = vpop.eup %2661 }
 0x199   :  { %v4207_v61 = vmul.f32 %v2662_v54, %v2660_v59  ;;  %v2664_v51 = vpop.eup %2663  ;;  %v5312_v59 = vld [vmem:[#allocation24_spill] sm:$0xff]  ;;  %v5313_v54 = vld [vmem:[#allocation25_spill] sm:$0xff] }
 0x19b   :  { %5294 = vst [vmem:[#allocation38_spill] sm:$0xff] %v4207_v61  ;;  %v5317_v61 = vld [vmem:[#allocation29_spill] sm:$0xff] }
 0x1a1   :  { %v2666_v48 = vpop.eup %2665 }
 0x1a2   :  { %v872_v5 = vmul.f32 %v2666_v48, %v2664_v51  ;;  %v5314_v51 = vld [vmem:[#allocation26_spill] sm:$0xff]  ;;  %v5315_v48 = vld [vmem:[#allocation27_spill] sm:$0xff] }
 0x1a4   :  { %938 = vmatmul.mubr.f32.vlgmr.msra.gmra.mxu0 %v872_v5  ;;  %1009 = vmatmul.mubr.f32.vlgmr.msra.gmra.mxu1 %v872_v5  ;;  %v5316_v5 = vld [vmem:[#allocation28_spill] sm:$0xff] }
 0x1a5   :  { %1062 = vmatpush1.msra.mxu0 %v3729_v10  ;;  %1133 = vmatpush1.msra.mxu1 %v3734_v11 }
 0x1a6   :  { %1063 = vmatprep.subr.mxu0 %v3741_v12  ;;  %1134 = vmatprep.subr.mxu1 %v3746_v13 }
 0x1a7   :  { %1064 = vmatpush1.msra.mxu0 %v3753_v63  ;;  %1135 = vmatpush1.msra.mxu1 %v3758_v14 }
 0x1a8   :  { %1065 = vmatprep.subr.mxu0 %v3765_v15  ;;  %1136 = vmatprep.subr.mxu1 %v3770_v1 }
 0x1a9   :  { %1066 = vmatpush1.msra.mxu0 %v3777_v16  ;;  %1137 = vmatpush1.msra.mxu1 %v3782_v17 }
 0x1aa   :  { %1067 = vmatprep.subr.mxu0 %v3789_v18  ;;  %1138 = vmatprep.subr.mxu1 %v3794_v19 }
 0x1ab   :  { %1068 = vmatpush1.msra.mxu0 %v3801_v20  ;;  %1139 = vmatpush1.msra.mxu1 %v3806_v21 }
 0x1ac   :  { %1069 = vmatprep.subr.mxu0 %v3813_v22  ;;  %1140 = vmatprep.subr.mxu1 %v3818_v23 }
 0x1ad   :  { %1070 = vmatpush1.msra.mxu0 %v3825_v24  ;;  %1141 = vmatpush1.msra.mxu1 %v3830_v25 }
 0x1ae   :  { %1071 = vmatprep.subr.mxu0 %v3837_v26  ;;  %1142 = vmatprep.subr.mxu1 %v3842_v27 }
 0x1af   :  { %1072 = vmatpush1.msra.mxu0 %v3849_v28  ;;  %1143 = vmatpush1.msra.mxu1 %v3854_v29 }
 0x1b0   :  { %1073 = vmatprep.subr.mxu0 %v3861_v30  ;;  %1144 = vmatprep.subr.mxu1 %v3866_v31 }
 0x1b1   :  { %1074 = vmatpush1.msra.mxu0 %v3873_v32  ;;  %1145 = vmatpush1.msra.mxu1 %v3878_v33 }
 0x1b2   :  { %1075 = vmatprep.subr.mxu0 %v3885_v34  ;;  %1146 = vmatprep.subr.mxu1 %v3890_v35 }
 0x1b3   :  { %1076 = vmatpush1.msra.mxu0 %v3897_v36  ;;  %1147 = vmatpush1.msra.mxu1 %v3902_v37 }
 0x1b4   :  { %1077 = vmatprep.subr.mxu0 %v3909_v38  ;;  %1148 = vmatprep.subr.mxu1 %v3914_v39 }
 0x1b5   :  { %1078 = vmatpush1.msra.mxu0 %v3921_v40  ;;  %1149 = vmatpush1.msra.mxu1 %v3926_v41 }
 0x1b6   :  { %1079 = vmatprep.subr.mxu0 %v3933_v42  ;;  %1150 = vmatprep.subr.mxu1 %v5295_v46 }
 0x1b7   :  { %1080 = vmatpush1.msra.mxu0 %v5296_v8  ;;  %1151 = vmatpush1.msra.mxu1 %v5297_v53 }
 0x1b8   :  { %1081 = vmatprep.subr.mxu0 %v5298_v56  ;;  %1152 = vmatprep.subr.mxu1 %v5299_v45 }
 0x1b9   :  { %1082 = vmatpush1.msra.mxu0 %v5300_v57  ;;  %1153 = vmatpush1.msra.mxu1 %v5301_v62 }
 0x1ba   :  { %1083 = vmatprep.subr.mxu0 %v5302_v44  ;;  %1154 = vmatprep.subr.mxu1 %v5303_v60 }
 0x1bb   :  { %1084 = vmatpush1.msra.mxu0 %v5304_v9  ;;  %1155 = vmatpush1.msra.mxu1 %v5305_v7 }
 0x1bc   :  { %1085 = vmatprep.subr.mxu0 %v5306_v4  ;;  %1156 = vmatprep.subr.mxu1 %v5307_v55 }
 0x1bd   :  { %1086 = vmatpush1.msra.mxu0 %v5308_v3  ;;  %1157 = vmatpush1.msra.mxu1 %v5309_v43  ;;  %v5319_v3 = vld [vmem:[#allocation31_spill] sm:$0xff]  ;;  %v5320_v43 = vld [vmem:[#allocation32_spill] sm:$0xff] }
 0x1be   :  { %1087 = vmatprep.subr.mxu0 %v5310_v2  ;;  %1158 = vmatprep.subr.mxu1 %v5311_v0  ;;  %v5321_v2 = vmov 0.0   ;;  %v5322_v0 = vld [vmem:[#allocation33_spill] sm:$0xff] }
 0x1bf   :  { %1088 = vmatpush1.msra.mxu0 %v5312_v59  ;;  %1159 = vmatpush1.msra.mxu1 %v5313_v54  ;;  %v5323_v54 = vld [vmem:[#allocation5_spill] sm:$0xff] }
 0x1c0   :  { %1089 = vmatprep.subr.mxu0 %v5314_v51  ;;  %1160 = vmatprep.subr.mxu1 %v5315_v48  ;;  %v5324_v51 = vld [vmem:[#allocation6_spill] sm:$0xff] }
 0x1c1   :  { %1090 = vmatpush1.msra.mxu0 %v5316_v5  ;;  %1161 = vmatpush1.msra.mxu1 %v5317_v61 }
 0x1c2   :  { %1091 = vmatprep.subr.mxu0 %v5318_v50  ;;  %1162 = vmatprep.subr.mxu1 %v5319_v3 }
 0x1c3   :  { %1092 = vmatpush1.msra.mxu0 %v5320_v43  ;;  %1125 = vmatprep.mubr.f32.mxu0 %v5321_v2 }
 0x1c4   :  { %1163 = vmatpush1.msra.mxu1 %v5322_v0  ;;  %1196 = vmatprep.mubr.f32.mxu1 %v5321_v2 }
 0x1c5   :  { %1249 = vmatprep.subr.mxu0 %v5323_v54  ;;  %1320 = vmatprep.subr.mxu1 %v5324_v51 }
 0x264   :  { %v939_v48 = vpop.f32.mrf.mxu0  ;;  %v1010_v50 = vpop.f32.mrf.mxu1 }
 0x265   :  { %v1019_v5 = vrot.slane %v939_v48, 6  ;;  %v1021_v54 = vrot.slane %v1010_v50, 6 }
 0x266   :  { %v941_v59 = vpop.f32.mrf.mxu0  ;;  %v1012_v7 = vpop.f32.mrf.mxu1 }
 0x267   :  { %v1027_v61 = vadd.f32 %v1019_v5, %v4191_v49  ;;  %v1020_v55 = vrot.slane %v941_v59, 6  ;;  %v1022_v0 = vrot.slane %v1012_v7, 6  ;;  %v1029_v48 = vadd.f32 %v1021_v54, %v4201_v52  ;;  %v5347_v5 = vld [vmem:[#allocation6_spill] sm:$0xff] }
 0x269   :  { %v2485_v3 = vmul.f32 -1.442695, %v1027_v61  ;;  %v1028_v43 = vadd.f32 %v1020_v55, %v4193_v47  ;;  %v1030_v2 = vadd.f32 %v1022_v0, %v4197_v58 }
 0x26b   :  { %2667 = vpow2.f32 %v2485_v3  ;;  %v2486_v4 = vmul.f32 -1.442695, %v1028_v43  ;;  %v2487_v9 = vmul.f32 -1.442695, %v1030_v2 }
 0x26d   :  { %2669 = vpow2.f32 %v2486_v4  ;;  %v1051_v4 = vrot.slane %v4204_v6, 6  ;;  %v5345_v6 = vld [vmem:[#allocation33_spill] sm:$0xff] }
 0x26e   :  { %2671 = vpow2.f32 %v2487_v9 }
 0x278   :  { %v2668_v51 = vpop.eup %2667 }
 0x279   :  { %v1034_v60 = vadd.f32 1.0, %v2668_v51  ;;  %v5346_v51 = vld [vmem:[#allocation5_spill] sm:$0xff] }
 0x27a   :  { %v2670_v44 = vpop.eup %2669 }
 0x27b   :  { %2673 = vrcp.f32 %v1034_v60  ;;  %v1040_v59 = vadd.f32 1.0, %v2670_v44  ;;  %v2672_v61 = vpop.eup %2671 }
 0x27c   :  { %2675 = vtanh.f32 %v1029_v48  ;;  %v1047_v43 = vadd.f32 1.0, %v2672_v61 }
 0x27d   :  { %2677 = vrcp.f32 %v1040_v59 }
 0x27e   :  { %2679 = vrcp.f32 %v1047_v43 }
 0x288   :  { %v2674_v55 = vpop.eup %2673 }
 0x289   :  { %v2676_v3 = vpop.eup %2675 }
 0x28a   :  { %v2678_v7 = vpop.eup %2677  ;;  %v1054_v0 = vmul.f32 %v2676_v3, %v2674_v55 }
 0x28b   :  { %v1053_v50 = vmul.f32 %v2678_v7, %v1051_v4  ;;  %v2680_v54 = vpop.eup %2679 }
 0x28d   :  { %v4280_v2 = vadd.f32 %v1054_v0, %v1053_v50 }
 0x28f   :  { %2681 = vtanh.f32 %v4280_v2 }
 0x29c   :  { %v2682_v9 = vpop.eup %2681 }
 0x29d   :  { %v1057_v60 = vmul.f32 %v2682_v9, %v2680_v54 }
 0x29f   :  { %v1059_v44 = vrot.slane %v1057_v60, 2 }
 0x2a1   :  { %1126 = vmatmul.mubr.f32.vlgmr.msra.gmra.mxu0 %v1059_v44  ;;  %1197 = vmatmul.mubr.f32.vlgmr.msra.gmra.mxu1 %v1059_v44 }
 0x2a2   :  { %1250 = vmatpush1.msra.mxu0 %v3729_v10  ;;  %1321 = vmatpush1.msra.mxu1 %v3734_v11  ;;  %v5325_v10 = vld [vmem:[#allocation14_spill] sm:$0xff]  ;;  %v5326_v11 = vld [vmem:[#allocation15_spill] sm:$0xff] }
 0x2a3   :  { %1251 = vmatprep.subr.mxu0 %v3741_v12  ;;  %1322 = vmatprep.subr.mxu1 %v3746_v13  ;;  %v5327_v12 = vld [vmem:[#allocation16_spill] sm:$0xff]  ;;  %v5328_v13 = vld [vmem:[#allocation17_spill] sm:$0xff] }
 0x2a4   :  { %1252 = vmatpush1.msra.mxu0 %v3753_v63  ;;  %1323 = vmatpush1.msra.mxu1 %v3758_v14  ;;  %v5329_v63 = vld [vmem:[#allocation18_spill] sm:$0xff]  ;;  %v5330_v14 = vld [vmem:[#allocation19_spill] sm:$0xff] }
 0x2a5   :  { %1253 = vmatprep.subr.mxu0 %v3765_v15  ;;  %1324 = vmatprep.subr.mxu1 %v3770_v1  ;;  %v5331_v15 = vld [vmem:[#allocation20_spill] sm:$0xff]  ;;  %v5332_v1 = vld [vmem:[#allocation21_spill] sm:$0xff] }
 0x2a6   :  { %1254 = vmatpush1.msra.mxu0 %v3777_v16  ;;  %1325 = vmatpush1.msra.mxu1 %v3782_v17  ;;  %v5333_v16 = vld [vmem:[#allocation22_spill] sm:$0xff]  ;;  %v5334_v17 = vld [vmem:[#allocation23_spill] sm:$0xff] }
 0x2a7   :  { %1255 = vmatprep.subr.mxu0 %v3789_v18  ;;  %1326 = vmatprep.subr.mxu1 %v3794_v19  ;;  %v5335_v18 = vld [vmem:[#allocation24_spill] sm:$0xff]  ;;  %v5336_v19 = vld [vmem:[#allocation25_spill] sm:$0xff] }
 0x2a8   :  { %1256 = vmatpush1.msra.mxu0 %v3801_v20  ;;  %1327 = vmatpush1.msra.mxu1 %v3806_v21  ;;  %v5337_v20 = vld [vmem:[#allocation26_spill] sm:$0xff]  ;;  %v5338_v21 = vld [vmem:[#allocation27_spill] sm:$0xff] }
 0x2a9   :  { %1257 = vmatprep.subr.mxu0 %v3813_v22  ;;  %1328 = vmatprep.subr.mxu1 %v3818_v23  ;;  %v5339_v22 = vld [vmem:[#allocation28_spill] sm:$0xff]  ;;  %v5340_v23 = vld [vmem:[#allocation29_spill] sm:$0xff] }
 0x2aa   :  { %1258 = vmatpush1.msra.mxu0 %v3825_v24  ;;  %1329 = vmatpush1.msra.mxu1 %v3830_v25  ;;  %v5341_v24 = vld [vmem:[#allocation30_spill] sm:$0xff]  ;;  %v5342_v25 = vld [vmem:[#allocation31_spill] sm:$0xff] }
 0x2ab   :  { %1259 = vmatprep.subr.mxu0 %v3837_v26  ;;  %1330 = vmatprep.subr.mxu1 %v3842_v27  ;;  %v5343_v26 = vld [vmem:[#allocation32_spill] sm:$0xff]  ;;  %v5344_v27 = vmov 0.0  }
 0x2ac   :  { %1260 = vmatpush1.msra.mxu0 %v3849_v28  ;;  %1331 = vmatpush1.msra.mxu1 %v3854_v29 }
 0x2ad   :  { %1261 = vmatprep.subr.mxu0 %v3861_v30  ;;  %1332 = vmatprep.subr.mxu1 %v3866_v31 }
 0x2ae   :  { %1262 = vmatpush1.msra.mxu0 %v3873_v32  ;;  %1333 = vmatpush1.msra.mxu1 %v3878_v33 }
 0x2af   :  { %1263 = vmatprep.subr.mxu0 %v3885_v34  ;;  %1334 = vmatprep.subr.mxu1 %v3890_v35 }
 0x2b0   :  { %1264 = vmatpush1.msra.mxu0 %v3897_v36  ;;  %1335 = vmatpush1.msra.mxu1 %v3902_v37 }
 0x2b1   :  { %1265 = vmatprep.subr.mxu0 %v3909_v38  ;;  %1336 = vmatprep.subr.mxu1 %v3914_v39 }
 0x2b2   :  { %1266 = vmatpush1.msra.mxu0 %v3921_v40  ;;  %1337 = vmatpush1.msra.mxu1 %v3926_v41 }
 0x2b3   :  { %1267 = vmatprep.subr.mxu0 %v3933_v42  ;;  %1338 = vmatprep.subr.mxu1 %v5295_v46 }
 0x2b4   :  { %1268 = vmatpush1.msra.mxu0 %v5296_v8  ;;  %1339 = vmatpush1.msra.mxu1 %v5297_v53 }
 0x2b5   :  { %1269 = vmatprep.subr.mxu0 %v5298_v56  ;;  %1340 = vmatprep.subr.mxu1 %v5299_v45 }
 0x2b6   :  { %1270 = vmatpush1.msra.mxu0 %v5300_v57  ;;  %1341 = vmatpush1.msra.mxu1 %v5301_v62 }
 0x2b7   :  { %1271 = vmatprep.subr.mxu0 %v5325_v10  ;;  %1342 = vmatprep.subr.mxu1 %v5326_v11 }
 0x2b8   :  { %1272 = vmatpush1.msra.mxu0 %v5327_v12  ;;  %1343 = vmatpush1.msra.mxu1 %v5328_v13 }
 0x2b9   :  { %1273 = vmatprep.subr.mxu0 %v5329_v63  ;;  %1344 = vmatprep.subr.mxu1 %v5330_v14 }
 0x2ba   :  { %1274 = vmatpush1.msra.mxu0 %v5331_v15  ;;  %1345 = vmatpush1.msra.mxu1 %v5332_v1 }
 0x2bb   :  { %1275 = vmatprep.subr.mxu0 %v5333_v16  ;;  %1346 = vmatprep.subr.mxu1 %v5334_v17 }
 0x2bc   :  { %1276 = vmatpush1.msra.mxu0 %v5335_v18  ;;  %1347 = vmatpush1.msra.mxu1 %v5336_v19 }
 0x2bd   :  { %1277 = vmatprep.subr.mxu0 %v5337_v20  ;;  %1348 = vmatprep.subr.mxu1 %v5338_v21 }
 0x2be   :  { %1278 = vmatpush1.msra.mxu0 %v5339_v22  ;;  %1349 = vmatpush1.msra.mxu1 %v5340_v23 }
 0x2bf   :  { %1279 = vmatprep.subr.mxu0 %v5341_v24  ;;  %1350 = vmatprep.subr.mxu1 %v5342_v25 }
 0x2c0   :  { %1280 = vmatpush1.msra.mxu0 %v5343_v26  ;;  %1313 = vmatprep.mubr.f32.mxu0 %v5344_v27 }
 0x2c1   :  { %1351 = vmatpush1.msra.mxu1 %v5345_v6  ;;  %1384 = vmatprep.mubr.f32.mxu1 %v5344_v27 }
 0x2c2   :  { %1437 = vmatprep.subr.mxu0 %v5346_v51  ;;  %1508 = vmatprep.subr.mxu1 %v5347_v5 }
 0x361   :  { %v1127_v48 = vpop.f32.mrf.mxu0  ;;  %v1198_v3 = vpop.f32.mrf.mxu1 }
 0x362   :  { %v1207_v59 = vrot.slane %v1127_v48, 4  ;;  %v1209_v60 = vrot.slane %v1198_v3, 4 }
 0x363   :  { %v1129_v61 = vpop.f32.mrf.mxu0  ;;  %v1200_v50 = vpop.f32.mrf.mxu1 }
 0x364   :  { %v1215_v55 = vadd.f32 %v1207_v59, %v4191_v49  ;;  %v1208_v4 = vrot.slane %v1129_v61, 4  ;;  %v1210_v54 = vrot.slane %v1200_v50, 4  ;;  %v1217_v5 = vadd.f32 %v1209_v60, %v4201_v52 }
 0x366   :  { %v2488_v7 = vmul.f32 -1.442695, %v1215_v55  ;;  %v1216_v43 = vadd.f32 %v1208_v4, %v4193_v47  ;;  %v1218_v9 = vadd.f32 %v1210_v54, %v4197_v58 }
 0x368   :  { %2683 = vpow2.f32 %v2488_v7  ;;  %v2489_v0 = vmul.f32 -1.442695, %v1216_v43  ;;  %v2490_v44 = vmul.f32 -1.442695, %v1218_v9  ;;  %v1239_v7 = vrot.slane %v4280_v2, 6  ;;  %v4366_v2 = vld [vmem:[%s5139_s3 + $0x1f0] sm:$0xff] }
 0x36a   :  { %2685 = vpow2.f32 %v2489_v0 }
 0x36b   :  { %2687 = vpow2.f32 %v2490_v44 }
 0x375   :  { %v2684_v51 = vpop.eup %2683 }
 0x376   :  { %v1222_v48 = vadd.f32 1.0, %v2684_v51  ;;  %v4360_v51 = vld [vmem:[%s5139_s3 + $0x1e0] sm:$0xff] }
 0x377   :  { %v2686_v6 = vpop.eup %2685 }
 0x378   :  { %2689 = vrcp.f32 %v1222_v48  ;;  %v1228_v59 = vadd.f32 1.0, %v2686_v6  ;;  %v2688_v61 = vpop.eup %2687  ;;  %v4378_v48 = vld [vmem:[%s5139_s3 + $0x1d8] sm:$0xff] }
 0x379   :  { %2691 = vtanh.f32 %v1217_v5  ;;  %v1235_v0 = vadd.f32 1.0, %v2688_v61  ;;  %v4372_v5 = vld [vmem:[%s5139_s3 + $0x1c8] sm:$0xff]  ;;  %v4390_v61 = vld [vmem:[%s5139_s3 + $0x1d0] sm:$0xff] }
 0x37a   :  { %2693 = vrcp.f32 %v1228_v59  ;;  %v4384_v59 = vld [vmem:[%s5139_s3 + $0x1c0] sm:$0xff] }
 0x37b   :  { %2695 = vrcp.f32 %v1235_v0  ;;  %v4420_v0 = vld [vmem:[%s5139_s3 + $0x188] sm:$0xff] }
 0x385   :  { %v2690_v55 = vpop.eup %2689 }
 0x386   :  { %v2692_v4 = vpop.eup %2691 }
 0x387   :  { %v2694_v43 = vpop.eup %2693  ;;  %v1242_v50 = vmul.f32 %v2692_v4, %v2690_v55  ;;  %v4396_v55 = vld [vmem:[%s5139_s3 + $0x1a8] sm:$0xff]  ;;  %v4402_v4 = vld [vmem:[%s5139_s3 + $0x1b8] sm:$0xff] }
 0x388   :  { %v1241_v3 = vmul.f32 %v2694_v43, %v1239_v7  ;;  %v2696_v9 = vpop.eup %2695  ;;  %v4408_v7 = vld [vmem:[%s5139_s3 + $0x1a0] sm:$0xff]  ;;  %v4414_v43 = vld [vmem:[%s5139_s3 + $0x1b0] sm:$0xff] }
 0x38a   :  { %v4354_v54 = vadd.f32 %v1242_v50, %v1241_v3  ;;  %v4426_v50 = vld [vmem:[%s5139_s3 + $0x198] sm:$0xff]  ;;  %v4432_v3 = vld [vmem:[%s5139_s3 + $0x180] sm:$0xff] }
 0x38c   :  { %2697 = vtanh.f32 %v4354_v54 }
 0x399   :  { %v2698_v60 = vpop.eup %2697 }
 0x39a   :  { %v1245_v44 = vmul.f32 %v2698_v60, %v2696_v9  ;;  %v4438_v9 = vld [vmem:[%s5139_s3 + $0x190] sm:$0xff]  ;;  %v4444_v60 = vld [vmem:[%s5139_s3 + $0x168] sm:$0xff] }
 0x39b   :  { %5348 = vst [vmem:[#allocation7_spill] sm:$0xff] %v4438_v9  ;;  %5349 = vst [vmem:[#allocation8_spill] sm:$0xff] %v4444_v60 }
 0x39c   :  { %v1247_v6 = vrot.slane %v1245_v44, 4  ;;  %v4450_v44 = vld [vmem:[%s5139_s3 + $0x178] sm:$0xff] }
 0x39d   :  { %5350 = vst [vmem:[#allocation9_spill] sm:$0xff] %v4450_v44 }
 0x39e   :  { %1314 = vmatmul.mubr.f32.vlgmr.msra.gmra.mxu0 %v1247_v6  ;;  %1385 = vmatmul.mubr.f32.vlgmr.msra.gmra.mxu1 %v1247_v6  ;;  %v4456_v6 = vld [vmem:[%s5139_s3 + $0x160] sm:$0xff] }
 0x39f   :  { %1438 = vmatpush1.msra.mxu0 %v4360_v51  ;;  %1509 = vmatpush1.msra.mxu1 %v4366_v2 }
 0x3a0   :  { %1439 = vmatprep.subr.mxu0 %v4372_v5  ;;  %1510 = vmatprep.subr.mxu1 %v4378_v48 }
 0x3a1   :  { %1440 = vmatpush1.msra.mxu0 %v4384_v59  ;;  %1511 = vmatpush1.msra.mxu1 %v4390_v61 }
 0x3a2   :  { %1441 = vmatprep.subr.mxu0 %v4396_v55  ;;  %1512 = vmatprep.subr.mxu1 %v4402_v4 }
 0x3a3   :  { %1442 = vmatpush1.msra.mxu0 %v4408_v7  ;;  %1513 = vmatpush1.msra.mxu1 %v4414_v43 }
 0x3a4   :  { %1443 = vmatprep.subr.mxu0 %v4420_v0  ;;  %1514 = vmatprep.subr.mxu1 %v4426_v50 }
 0x3a5   :  { %1444 = vmatpush1.msra.mxu0 %v4432_v3  ;;  %1515 = vmatpush1.msra.mxu1 %v4438_v9  ;;  %v4462_v9 = vld [vmem:[%s5139_s3 + $0x170] sm:$0xff] }
 0x3a6   :  { %1445 = vmatprep.subr.mxu0 %v4444_v60  ;;  %1516 = vmatprep.subr.mxu1 %v4450_v44  ;;  %v4468_v60 = vld [vmem:[%s5139_s3 + $0x148] sm:$0xff]  ;;  %v4474_v44 = vld [vmem:[%s5139_s3 + $0x158] sm:$0xff] }
 0x3a7   :  { %1446 = vmatpush1.msra.mxu0 %v4456_v6  ;;  %1517 = vmatpush1.msra.mxu1 %v4462_v9 }
 0x3a8   :  { %1447 = vmatprep.subr.mxu0 %v4468_v60  ;;  %1518 = vmatprep.subr.mxu1 %v4474_v44 }
 0x3a9   :  { %1448 = vmatpush1.msra.mxu0 %v3849_v28  ;;  %1519 = vmatpush1.msra.mxu1 %v3854_v29  ;;  %v5351_v28 = vld [vmem:[#allocation33_spill] sm:$0xff] }
 0x3aa   :  { %1449 = vmatprep.subr.mxu0 %v3861_v30  ;;  %1520 = vmatprep.subr.mxu1 %v3866_v31  ;;  %v4524_v29 = vld [vmem:[%s5139_s3 + $0x1e8] sm:$0xff]  ;;  %v4530_v30 = vld [vmem:[%s5139_s3 + $0x1f8] sm:$0xff] }
 0x3ab   :  { %1450 = vmatpush1.msra.mxu0 %v3873_v32  ;;  %1521 = vmatpush1.msra.mxu1 %v3878_v33  ;;  %5352 = vst [vmem:[#allocation10_spill] sm:$0xff] %v4524_v29  ;;  %5353 = vst [vmem:[#allocation11_spill] sm:$0xff] %v4530_v30 }
 0x3ac   :  { %1451 = vmatprep.subr.mxu0 %v3885_v34  ;;  %1522 = vmatprep.subr.mxu1 %v3890_v35 }
 0x3ad   :  { %1452 = vmatpush1.msra.mxu0 %v3897_v36  ;;  %1523 = vmatpush1.msra.mxu1 %v3902_v37 }
 0x3ae   :  { %1453 = vmatprep.subr.mxu0 %v3909_v38  ;;  %1524 = vmatprep.subr.mxu1 %v3914_v39 }
 0x3af   :  { %1454 = vmatpush1.msra.mxu0 %v3921_v40  ;;  %1525 = vmatpush1.msra.mxu1 %v3926_v41 }
 0x3b0   :  { %1455 = vmatprep.subr.mxu0 %v3933_v42  ;;  %1526 = vmatprep.subr.mxu1 %v5295_v46 }
 0x3b1   :  { %1456 = vmatpush1.msra.mxu0 %v5296_v8  ;;  %1527 = vmatpush1.msra.mxu1 %v5297_v53 }
 0x3b2   :  { %1457 = vmatprep.subr.mxu0 %v5298_v56  ;;  %1528 = vmatprep.subr.mxu1 %v5299_v45 }
 0x3b3   :  { %1458 = vmatpush1.msra.mxu0 %v5300_v57  ;;  %1529 = vmatpush1.msra.mxu1 %v5301_v62 }
 0x3b4   :  { %1459 = vmatprep.subr.mxu0 %v5325_v10  ;;  %1530 = vmatprep.subr.mxu1 %v5326_v11  ;;  %v1427_v11 = vrot.slane %v4354_v54, 6  ;;  %v4606_v54 = vld [vmem:[%s5139_s3 + $0x118] sm:$0xff] }
 0x3b5   :  { %1460 = vmatpush1.msra.mxu0 %v5327_v12  ;;  %1531 = vmatpush1.msra.mxu1 %v5328_v13 }
 0x3b6   :  { %1461 = vmatprep.subr.mxu0 %v5329_v63  ;;  %1532 = vmatprep.subr.mxu1 %v5330_v14 }
 0x3b7   :  { %1462 = vmatpush1.msra.mxu0 %v5331_v15  ;;  %1533 = vmatpush1.msra.mxu1 %v5332_v1 }
 0x3b8   :  { %1463 = vmatprep.subr.mxu0 %v5333_v16  ;;  %1534 = vmatprep.subr.mxu1 %v5334_v17  ;;  %v5354_v17 = vld [vmem:[#allocation7_spill] sm:$0xff] }
 0x3b9   :  { %1464 = vmatpush1.msra.mxu0 %v5335_v18  ;;  %1535 = vmatpush1.msra.mxu1 %v5336_v19  ;;  %v5355_v18 = vld [vmem:[#allocation8_spill] sm:$0xff]  ;;  %v5356_v19 = vld [vmem:[#allocation9_spill] sm:$0xff] }
 0x3ba   :  { %1465 = vmatprep.subr.mxu0 %v5337_v20  ;;  %1536 = vmatprep.subr.mxu1 %v5338_v21  ;;  %v4564_v20 = vld [vmem:[%s5139_s3 + $0x140] sm:$0xff]  ;;  %v4570_v21 = vld [vmem:[%s5139_s3 + $0x150] sm:$0xff] }
 0x3bb   :  { %1466 = vmatpush1.msra.mxu0 %v5339_v22  ;;  %1537 = vmatpush1.msra.mxu1 %v5340_v23  ;;  %v4576_v22 = vld [vmem:[%s5139_s3 + $0x128] sm:$0xff]  ;;  %v4582_v23 = vld [vmem:[%s5139_s3 + $0x138] sm:$0xff] }
 0x3bc   :  { %1467 = vmatprep.subr.mxu0 %v5341_v24  ;;  %1538 = vmatprep.subr.mxu1 %v5342_v25  ;;  %v4588_v24 = vld [vmem:[%s5139_s3 + $0x120] sm:$0xff]  ;;  %v4594_v25 = vld [vmem:[%s5139_s3 + $0x130] sm:$0xff] }
 0x3bd   :  { %1468 = vmatpush1.msra.mxu0 %v5343_v26  ;;  %1501 = vmatprep.mubr.f32.mxu0 %v5344_v27  ;;  %v4600_v26 = vld [vmem:[%s5139_s3 + $0x108] sm:$0xff] }
 0x3be   :  { %1539 = vmatpush1.msra.mxu1 %v5351_v28  ;;  %1572 = vmatprep.mubr.f32.mxu1 %v5344_v27  ;;  %v4612_v28 = vld [vmem:[%s5139_s3 + $0x100] sm:$0xff] }
 0x3bf   :  { %1610 = vmatprep.subr.mxu0 %v4524_v29  ;;  %1681 = vmatprep.subr.mxu1 %v4530_v30 }
 0x45e   :  { %v1315_v31 = vpop.f32.mrf.mxu0  ;;  %v1386_v35 = vpop.f32.mrf.mxu1 }
 0x45f   :  { %v1395_v32 = vrot.slane %v1315_v31, 2  ;;  %v1397_v46 = vrot.slane %v1386_v35, 2  ;;  %v4618_v31 = vld [vmem:[%s5139_s3 + $0x110] sm:$0xff] }
 0x460   :  { %v1317_v33 = vpop.f32.mrf.mxu0  ;;  %v1388_v40 = vpop.f32.mrf.mxu1  ;;  %v4642_v35 = vld [vmem:[%s5139_s3 + $0xf0] sm:$0xff] }
 0x461   :  { %v1403_v34 = vadd.f32 %v1395_v32, %v4191_v49  ;;  %v1396_v36 = vrot.slane %v1317_v33, 2  ;;  %v1398_v41 = vrot.slane %v1388_v40, 2  ;;  %v1405_v56 = vadd.f32 %v1397_v46, %v4201_v52  ;;  %v4624_v32 = vld [vmem:[%s5139_s3 + $0xe8] sm:$0xff]  ;;  %v4630_v33 = vld [vmem:[%s5139_s3 + $0xf8] sm:$0xff]  ;;  %v4690_v46 = vld [vmem:[%s5139_s3 + $0xb0] sm:$0xff] }
 0x462   :  { %v4672_v40 = vld [vmem:[%s5139_s3 + $0xa8] sm:$0xff] }
 0x463   :  { %v2491_v37 = vmul.f32 -1.442695, %v1403_v34  ;;  %v1404_v38 = vadd.f32 %v1396_v36, %v4193_v47  ;;  %v1406_v42 = vadd.f32 %v1398_v41, %v4197_v58  ;;  %v4636_v34 = vld [vmem:[%s5139_s3 + $0xe0] sm:$0xff]  ;;  %v4648_v36 = vld [vmem:[%s5139_s3 + $0xc8] sm:$0xff]  ;;  %v4678_v41 = vld [vmem:[%s5139_s3 + $0xb8] sm:$0xff] }
 0x465   :  { %2699 = vpow2.f32 %v2491_v37  ;;  %v2492_v39 = vmul.f32 -1.442695, %v1404_v38  ;;  %v2493_v8 = vmul.f32 -1.442695, %v1406_v42  ;;  %v4654_v37 = vld [vmem:[%s5139_s3 + $0xd8] sm:$0xff]  ;;  %v4660_v38 = vld [vmem:[%s5139_s3 + $0xc0] sm:$0xff] }
 0x466   :  { %v4684_v42 = vld [vmem:[%s5139_s3 + $0xa0] sm:$0xff] }
 0x467   :  { %2701 = vpow2.f32 %v2492_v39  ;;  %v4666_v39 = vld [vmem:[%s5139_s3 + $0xd0] sm:$0xff] }
 0x468   :  { %2703 = vpow2.f32 %v2493_v8  ;;  %v4696_v8 = vld [vmem:[%s5139_s3 + $0x88] sm:$0xff] }
 0x469   :  { %5357 = vst [vmem:[#allocation12_spill] sm:$0xff] %v4696_v8 }
 0x472   :  { %v2700_v53 = vpop.eup %2699 }
 0x473   :  { %v1410_v45 = vadd.f32 1.0, %v2700_v53  ;;  %v4702_v53 = vld [vmem:[%s5139_s3 + $0x98] sm:$0xff] }
 0x474   :  { %v2702_v57 = vpop.eup %2701  ;;  %5358 = vst [vmem:[#allocation13_spill] sm:$0xff] %v4702_v53 }
 0x475   :  { %2705 = vrcp.f32 %v1410_v45  ;;  %v1416_v49 = vadd.f32 1.0, %v2702_v57  ;;  %v2704_v47 = vpop.eup %2703  ;;  %v4714_v45 = vld [vmem:[%s5139_s3 + $0x90] sm:$0xff]  ;;  %v4720_v57 = vld [vmem:[%s5139_s3 + $0x68] sm:$0xff] }
 0x476   :  { %2707 = vtanh.f32 %v1405_v56  ;;  %v1423_v13 = vadd.f32 1.0, %v2704_v47  ;;  %v4708_v56 = vld [vmem:[%s5139_s3 + $0x80] sm:$0xff]  ;;  %5360 = vst [vmem:[#allocation15_spill] sm:$0xff] %v4714_v45  ;;  %5361 = vst [vmem:[#allocation16_spill] sm:$0xff] %v4720_v57 }
 0x477   :  { %2709 = vrcp.f32 %v1416_v49  ;;  %5359 = vst [vmem:[#allocation14_spill] sm:$0xff] %v4708_v56  ;;  %v4726_v49 = vld [vmem:[%s5139_s3 + $0x78] sm:$0xff]  ;;  %v4732_v47 = vld [vmem:[%s5139_s3 + $0x60] sm:$0xff] }
 0x478   :  { %2711 = vrcp.f32 %v1423_v13  ;;  %5362 = vst [vmem:[#allocation17_spill] sm:$0xff] %v4726_v49  ;;  %5363 = vst [vmem:[#allocation18_spill] sm:$0xff] %v4732_v47  ;;  %v4762_v13 = vld [vmem:[%s5139_s3 + $0x50] sm:$0xff] }
 0x479   :  { %5368 = vst [vmem:[#allocation23_spill] sm:$0xff] %v4762_v13 }
 0x482   :  { %v2706_v62 = vpop.eup %2705 }
 0x483   :  { %v2708_v10 = vpop.eup %2707 }
 0x484   :  { %v2710_v12 = vpop.eup %2709  ;;  %v1430_v58 = vmul.f32 %v2708_v10, %v2706_v62  ;;  %v4738_v62 = vld [vmem:[%s5139_s3 + $0x70] sm:$0xff]  ;;  %v4744_v10 = vld [vmem:[%s5139_s3 + $0x48] sm:$0xff] }
 0x485   :  { %v1429_v63 = vmul.f32 %v2710_v12, %v1427_v11  ;;  %v2712_v52 = vpop.eup %2711  ;;  %5364 = vst [vmem:[#allocation19_spill] sm:$0xff] %v4738_v62  ;;  %5365 = vst [vmem:[#allocation20_spill] sm:$0xff] %v4744_v10  ;;  %v4750_v11 = vld [vmem:[%s5139_s3 + $0x58] sm:$0xff]  ;;  %v4756_v12 = vld [vmem:[%s5139_s3 + $0x40] sm:$0xff] }
 0x486   :  { %5366 = vst [vmem:[#allocation21_spill] sm:$0xff] %v4750_v11  ;;  %5367 = vst [vmem:[#allocation22_spill] sm:$0xff] %v4756_v12 }
 0x487   :  { %v4538_v14 = vadd.f32 %v1430_v58, %v1429_v63  ;;  %v4768_v58 = vld [vmem:[%s5139_s3 + $0x28] sm:$0xff]  ;;  %v4774_v63 = vld [vmem:[%s5139_s3 + $0x38] sm:$0xff] }
 0x488   :  { %5369 = vst [vmem:[#allocation24_spill] sm:$0xff] %v4768_v58  ;;  %5370 = vst [vmem:[#allocation25_spill] sm:$0xff] %v4774_v63 }
 0x489   :  { %2713 = vtanh.f32 %v4538_v14 }
 0x496   :  { %v2714_v15 = vpop.eup %2713 }
 0x497   :  { %v1433_v1 = vmul.f32 %v2714_v15, %v2712_v52  ;;  %v4780_v52 = vld [vmem:[%s5139_s3 + $0x20] sm:$0xff]  ;;  %v4786_v15 = vld [vmem:[%s5139_s3 + $0x30] sm:$0xff] }
 0x498   :  { %5371 = vst [vmem:[#allocation26_spill] sm:$0xff] %v4780_v52  ;;  %5372 = vst [vmem:[#allocation27_spill] sm:$0xff] %v4786_v15 }
 0x499   :  { %v1435_v16 = vrot.slane %v1433_v1, 6  ;;  %v4792_v1 = vld [vmem:[%s5139_s3 + $0x8] sm:$0xff] }
 0x49a   :  { %5373 = vst [vmem:[#allocation28_spill] sm:$0xff] %v4792_v1 }
 0x49b   :  { %1502 = vmatmul.mubr.f32.vlgmr.msra.gmra.mxu0 %v1435_v16  ;;  %1573 = vmatmul.mubr.f32.vlgmr.msra.gmra.mxu1 %v1435_v16  ;;  %v4798_v16 = vld [vmem:[%s5139_s3 + $0x18] sm:$0xff] }
 0x49c   :  { %1611 = vmatpush1.msra.mxu0 %v4360_v51  ;;  %1682 = vmatpush1.msra.mxu1 %v4366_v2  ;;  %5374 = vst [vmem:[#allocation29_spill] sm:$0xff] %v4798_v16 }
 0x49d   :  { %1612 = vmatprep.subr.mxu0 %v4372_v5  ;;  %1683 = vmatprep.subr.mxu1 %v4378_v48 }
 0x49e   :  { %1613 = vmatpush1.msra.mxu0 %v4384_v59  ;;  %1684 = vmatpush1.msra.mxu1 %v4390_v61 }
 0x49f   :  { %1614 = vmatprep.subr.mxu0 %v4396_v55  ;;  %1685 = vmatprep.subr.mxu1 %v4402_v4 }
 0x4a0   :  { %1615 = vmatpush1.msra.mxu0 %v4408_v7  ;;  %1686 = vmatpush1.msra.mxu1 %v4414_v43 }
 0x4a1   :  { %1616 = vmatprep.subr.mxu0 %v4420_v0  ;;  %1687 = vmatprep.subr.mxu1 %v4426_v50 }
 0x4a2   :  { %1617 = vmatpush1.msra.mxu0 %v4432_v3  ;;  %1688 = vmatpush1.msra.mxu1 %v5354_v17 }
 0x4a3   :  { %1618 = vmatprep.subr.mxu0 %v5355_v18  ;;  %1689 = vmatprep.subr.mxu1 %v5356_v19 }
 0x4a4   :  { %1619 = vmatpush1.msra.mxu0 %v4456_v6  ;;  %1690 = vmatpush1.msra.mxu1 %v4462_v9 }
 0x4a5   :  { %1620 = vmatprep.subr.mxu0 %v4468_v60  ;;  %1691 = vmatprep.subr.mxu1 %v4474_v44 }
 0x4a6   :  { %1621 = vmatpush1.msra.mxu0 %v4564_v20  ;;  %1692 = vmatpush1.msra.mxu1 %v4570_v21 }
 0x4a7   :  { %1622 = vmatprep.subr.mxu0 %v4576_v22  ;;  %1693 = vmatprep.subr.mxu1 %v4582_v23 }
 0x4a8   :  { %1623 = vmatpush1.msra.mxu0 %v4588_v24  ;;  %1694 = vmatpush1.msra.mxu1 %v4594_v25 }
 0x4a9   :  { %1624 = vmatprep.subr.mxu0 %v4600_v26  ;;  %1695 = vmatprep.subr.mxu1 %v4606_v54 }
 0x4aa   :  { %1625 = vmatpush1.msra.mxu0 %v4612_v28  ;;  %1696 = vmatpush1.msra.mxu1 %v4618_v31 }
 0x4ab   :  { %1626 = vmatprep.subr.mxu0 %v4624_v32  ;;  %1697 = vmatprep.subr.mxu1 %v4630_v33 }
 0x4ac   :  { %1627 = vmatpush1.msra.mxu0 %v4636_v34  ;;  %1698 = vmatpush1.msra.mxu1 %v4642_v35 }
 0x4ad   :  { %1628 = vmatprep.subr.mxu0 %v4648_v36  ;;  %1699 = vmatprep.subr.mxu1 %v4654_v37 }
 0x4ae   :  { %1629 = vmatpush1.msra.mxu0 %v4660_v38  ;;  %1700 = vmatpush1.msra.mxu1 %v4666_v39 }
 0x4af   :  { %1630 = vmatprep.subr.mxu0 %v4672_v40  ;;  %1701 = vmatprep.subr.mxu1 %v4678_v41 }
 0x4b0   :  { %1631 = vmatpush1.msra.mxu0 %v4684_v42  ;;  %1702 = vmatpush1.msra.mxu1 %v4690_v46 }
 0x4b1   :  { %1632 = vmatprep.subr.mxu0 %v4696_v8  ;;  %1703 = vmatprep.subr.mxu1 %v4702_v53 }
 0x4b2   :  { %1633 = vmatpush1.msra.mxu0 %v4708_v56  ;;  %1704 = vmatpush1.msra.mxu1 %v4714_v45 }
 0x4b3   :  { %1634 = vmatprep.subr.mxu0 %v4720_v57  ;;  %1705 = vmatprep.subr.mxu1 %v4726_v49  ;;  %v5380_v57 = vld [vmem:[#allocation36_spill] sm:$0xff] }
 0x4b4   :  { %1635 = vmatpush1.msra.mxu0 %v4732_v47  ;;  %1706 = vmatpush1.msra.mxu1 %v4738_v62  ;;  %v5379_v47 = vld [vmem:[#allocation37_spill] sm:$0xff] }
 0x4b5   :  { %1636 = vmatprep.subr.mxu0 %v4744_v10  ;;  %1707 = vmatprep.subr.mxu1 %v4750_v11 }
 0x4b6   :  { %1637 = vmatpush1.msra.mxu0 %v4756_v12  ;;  %1708 = vmatpush1.msra.mxu1 %v4762_v13  ;;  %v5378_v13 = vld [vmem:[#allocation35_spill] sm:$0xff] }
 0x4b7   :  { %1638 = vmatprep.subr.mxu0 %v4768_v58  ;;  %1709 = vmatprep.subr.mxu1 %v4774_v63 }
 0x4b8   :  { %1639 = vmatpush1.msra.mxu0 %v4780_v52  ;;  %1710 = vmatpush1.msra.mxu1 %v4786_v15  ;;  %v4804_v52 = vld [vmem:[%s5139_s3] sm:$0xff]  ;;  %v5377_v15 = vld [vmem:[#allocation34_spill] sm:$0xff] }
 0x4b9   :  { %1640 = vmatprep.subr.mxu0 %v4792_v1  ;;  %1711 = vmatprep.subr.mxu1 %v4798_v16  ;;  %5375 = vst [vmem:[#allocation30_spill] sm:$0xff] %v4804_v52  ;;  %v4811_v1 = vld [vmem:[%s5139_s3 + $0x10] sm:$0xff] }
 0x4ba   :  { %1641 = vmatpush1.msra.mxu0 %v4804_v52  ;;  %1674 = vmatprep.mubr.f32.mxu0 %v5344_v27  ;;  %5376 = vst [vmem:[#allocation31_spill] sm:$0xff] %v4811_v1 }
 0x4bb   :  { %1712 = vmatpush1.msra.mxu1 %v4811_v1  ;;  %1745 = vmatprep.mubr.f32.mxu1 %v5344_v27 }
 0x4bc   :  { %1798 = vmatprep.subr.mxu0 %v4524_v29  ;;  %1869 = vmatprep.subr.mxu1 %v4530_v30 }
 0x55b   :  { %v1503_v16 = vpop.f32.mrf.mxu0  ;;  %v1574_v11 = vpop.f32.mrf.mxu1 }
 0x55c   :  { %v1579_v63 = vadd.f32 %v1503_v16, %v5377_v15  ;;  %v1581_v29 = vadd.f32 %v1574_v11, %v5380_v57  ;;  %v5384_v11 = vld [vmem:[#allocation18_spill] sm:$0xff] }
 0x55d   :  { %v1505_v58 = vpop.f32.mrf.mxu0  ;;  %v1576_v62 = vpop.f32.mrf.mxu1 }
 0x55e   :  { %v2494_v52 = vmul.f32 -1.442695, %v1579_v63  ;;  %v1580_v12 = vadd.f32 %v1505_v58, %v5378_v13  ;;  %v1582_v1 = vadd.f32 %v1576_v62, %v5379_v47 }
 0x560   :  { %2715 = vpow2.f32 %v2494_v52  ;;  %v2495_v10 = vmul.f32 -1.442695, %v1580_v12  ;;  %v2496_v49 = vmul.f32 -1.442695, %v1582_v1  ;;  %v1603_v12 = vrot.slane %v4538_v14, 6  ;;  %v5383_v14 = vld [vmem:[#allocation17_spill] sm:$0xff] }
 0x562   :  { %2717 = vpow2.f32 %v2495_v10 }
 0x563   :  { %2719 = vpow2.f32 %v2496_v49 }
 0x56d   :  { %v2716_v27 = vpop.eup %2715 }
 0x56e   :  { %v1586_v45 = vadd.f32 1.0, %v2716_v27 }
 0x56f   :  { %v2718_v30 = vpop.eup %2717 }
 0x570   :  { %2721 = vrcp.f32 %v1586_v45  ;;  %v1592_v16 = vadd.f32 1.0, %v2718_v30  ;;  %v2720_v63 = vpop.eup %2719  ;;  %v5382_v30 = vld [vmem:[#allocation16_spill] sm:$0xff] }
 0x571   :  { %2723 = vtanh.f32 %v1581_v29  ;;  %v1599_v13 = vadd.f32 1.0, %v2720_v63  ;;  %v5381_v29 = vld [vmem:[#allocation15_spill] sm:$0xff]  ;;  %v5388_v63 = vld [vmem:[#allocation22_spill] sm:$0xff] }
 0x572   :  { %2725 = vrcp.f32 %v1592_v16  ;;  %v5387_v16 = vld [vmem:[#allocation21_spill] sm:$0xff] }
 0x573   :  { %2727 = vrcp.f32 %v1599_v13  ;;  %v5385_v13 = vld [vmem:[#allocation19_spill] sm:$0xff] }
 0x57d   :  { %v2722_v58 = vpop.eup %2721 }
 0x57e   :  { %v2724_v52 = vpop.eup %2723 }
 0x57f   :  { %v2726_v10 = vpop.eup %2725  ;;  %v1606_v15 = vmul.f32 %v2724_v52, %v2722_v58  ;;  %v5389_v58 = vld [vmem:[#allocation23_spill] sm:$0xff]  ;;  %v5390_v52 = vld [vmem:[#allocation24_spill] sm:$0xff] }
 0x580   :  { %v1605_v62 = vmul.f32 %v2726_v10, %v1603_v12  ;;  %v2728_v27 = vpop.eup %2727  ;;  %v5391_v12 = vld [vmem:[#allocation25_spill] sm:$0xff]  ;;  %v5392_v10 = vld [vmem:[#allocation26_spill] sm:$0xff] }
 0x582   :  { %v4822_v1 = vadd.f32 %v1606_v15, %v1605_v62  ;;  %v5386_v15 = vld [vmem:[#allocation20_spill] sm:$0xff]  ;;  %v5393_v62 = vld [vmem:[#allocation27_spill] sm:$0xff] }
 0x584   :  { %2729 = vtanh.f32 %v4822_v1 }
 0x591   :  { %v2730_v49 = vpop.eup %2729 }
 0x592   :  { %v1609_v45 = vmul.f32 %v2730_v49, %v2728_v27  ;;  %v5394_v27 = vld [vmem:[#allocation28_spill] sm:$0xff]  ;;  %v5395_v49 = vld [vmem:[#allocation29_spill] sm:$0xff] }
 0x594   :  { %1675 = vmatmul.mubr.f32.vlgmr.msra.gmra.mxu0 %v1609_v45  ;;  %1746 = vmatmul.mubr.f32.vlgmr.msra.gmra.mxu1 %v1609_v45  ;;  %v5396_v45 = vld [vmem:[#allocation30_spill] sm:$0xff] }
 0x595   :  { %1799 = vmatpush1.msra.mxu0 %v4360_v51  ;;  %1870 = vmatpush1.msra.mxu1 %v4366_v2 }
 0x596   :  { %1800 = vmatprep.subr.mxu0 %v4372_v5  ;;  %1871 = vmatprep.subr.mxu1 %v4378_v48 }
 0x597   :  { %1801 = vmatpush1.msra.mxu0 %v4384_v59  ;;  %1872 = vmatpush1.msra.mxu1 %v4390_v61 }
 0x598   :  { %1802 = vmatprep.subr.mxu0 %v4396_v55  ;;  %1873 = vmatprep.subr.mxu1 %v4402_v4 }
 0x599   :  { %1803 = vmatpush1.msra.mxu0 %v4408_v7  ;;  %1874 = vmatpush1.msra.mxu1 %v4414_v43 }
 0x59a   :  { %1804 = vmatprep.subr.mxu0 %v4420_v0  ;;  %1875 = vmatprep.subr.mxu1 %v4426_v50 }
 0x59b   :  { %1805 = vmatpush1.msra.mxu0 %v4432_v3  ;;  %1876 = vmatpush1.msra.mxu1 %v5354_v17 }
 0x59c   :  { %1806 = vmatprep.subr.mxu0 %v5355_v18  ;;  %1877 = vmatprep.subr.mxu1 %v5356_v19 }
 0x59d   :  { %1807 = vmatpush1.msra.mxu0 %v4456_v6  ;;  %1878 = vmatpush1.msra.mxu1 %v4462_v9 }
 0x59e   :  { %1808 = vmatprep.subr.mxu0 %v4468_v60  ;;  %1879 = vmatprep.subr.mxu1 %v4474_v44 }
 0x59f   :  { %1809 = vmatpush1.msra.mxu0 %v4564_v20  ;;  %1880 = vmatpush1.msra.mxu1 %v4570_v21 }
 0x5a0   :  { %1810 = vmatprep.subr.mxu0 %v4576_v22  ;;  %1881 = vmatprep.subr.mxu1 %v4582_v23 }
 0x5a1   :  { %1811 = vmatpush1.msra.mxu0 %v4588_v24  ;;  %1882 = vmatpush1.msra.mxu1 %v4594_v25 }
 0x5a2   :  { %1812 = vmatprep.subr.mxu0 %v4600_v26  ;;  %1883 = vmatprep.subr.mxu1 %v4606_v54 }
 0x5a3   :  { %1813 = vmatpush1.msra.mxu0 %v4612_v28  ;;  %1884 = vmatpush1.msra.mxu1 %v4618_v31 }
 0x5a4   :  { %1814 = vmatprep.subr.mxu0 %v4624_v32  ;;  %1885 = vmatprep.subr.mxu1 %v4630_v33 }
 0x5a5   :  { %1815 = vmatpush1.msra.mxu0 %v4636_v34  ;;  %1886 = vmatpush1.msra.mxu1 %v4642_v35 }
 0x5a6   :  { %1816 = vmatprep.subr.mxu0 %v4648_v36  ;;  %1887 = vmatprep.subr.mxu1 %v4654_v37 }
 0x5a7   :  { %1817 = vmatpush1.msra.mxu0 %v4660_v38  ;;  %1888 = vmatpush1.msra.mxu1 %v4666_v39 }
 0x5a8   :  { %1818 = vmatprep.subr.mxu0 %v4672_v40  ;;  %1889 = vmatprep.subr.mxu1 %v4678_v41 }
 0x5a9   :  { %1819 = vmatpush1.msra.mxu0 %v4684_v42  ;;  %1890 = vmatpush1.msra.mxu1 %v4690_v46 }
 0x5aa   :  { %1820 = vmatprep.subr.mxu0 %v4696_v8  ;;  %1891 = vmatprep.subr.mxu1 %v4702_v53 }
 0x5ab   :  { %1821 = vmatpush1.msra.mxu0 %v4708_v56  ;;  %1892 = vmatpush1.msra.mxu1 %v5381_v29 }
 0x5ac   :  { %1822 = vmatprep.subr.mxu0 %v5382_v30  ;;  %1893 = vmatprep.subr.mxu1 %v5383_v14  ;;  %v5402_v14 = vld [vmem:[#allocation35_spill] sm:$0xff] }
 0x5ad   :  { %1823 = vmatpush1.msra.mxu0 %v5384_v11  ;;  %1894 = vmatpush1.msra.mxu1 %v5385_v13 }
 0x5ae   :  { %1824 = vmatprep.subr.mxu0 %v5386_v15  ;;  %1895 = vmatprep.subr.mxu1 %v5387_v16  ;;  %v5397_v15 = vmov 0.0   ;;  %v5398_v16 = vld [vmem:[#allocation31_spill] sm:$0xff] }
 0x5af   :  { %1825 = vmatpush1.msra.mxu0 %v5388_v63  ;;  %1896 = vmatpush1.msra.mxu1 %v5389_v58  ;;  %v5399_v58 = vld [vmem:[#allocation10_spill] sm:$0xff] }
 0x5b0   :  { %1826 = vmatprep.subr.mxu0 %v5390_v52  ;;  %1897 = vmatprep.subr.mxu1 %v5391_v12  ;;  %v5400_v52 = vld [vmem:[#allocation11_spill] sm:$0xff] }
 0x5b1   :  { %1827 = vmatpush1.msra.mxu0 %v5392_v10  ;;  %1898 = vmatpush1.msra.mxu1 %v5393_v62  ;;  %v5401_v62 = vld [vmem:[#allocation34_spill] sm:$0xff] }
 0x5b2   :  { %1828 = vmatprep.subr.mxu0 %v5394_v27  ;;  %1899 = vmatprep.subr.mxu1 %v5395_v49 }
 0x5b3   :  { %1829 = vmatpush1.msra.mxu0 %v5396_v45  ;;  %1862 = vmatprep.mubr.f32.mxu0 %v5397_v15 }
 0x5b4   :  { %1900 = vmatpush1.msra.mxu1 %v5398_v16  ;;  %1933 = vmatprep.mubr.f32.mxu1 %v5397_v15 }
 0x5b5   :  { %1986 = vmatprep.subr.mxu0 %v5399_v58  ;;  %2057 = vmatprep.subr.mxu1 %v5400_v52 }
 0x654   :  { %v1676_v12 = vpop.f32.mrf.mxu0  ;;  %v1747_v27 = vpop.f32.mrf.mxu1 }
 0x655   :  { %v1756_v10 = vrot.slane %v1676_v12, 6  ;;  %v1758_v58 = vrot.slane %v1747_v27, 6 }
 0x656   :  { %v1678_v63 = vpop.f32.mrf.mxu0  ;;  %v1749_v29 = vpop.f32.mrf.mxu1 }
 0x657   :  { %v1764_v13 = vadd.f32 %v1756_v10, %v5401_v62  ;;  %v1757_v11 = vrot.slane %v1678_v63, 6  ;;  %v1759_v16 = vrot.slane %v1749_v29, 6  ;;  %v1766_v12 = vadd.f32 %v1758_v58, %v5380_v57 }
 0x659   :  { %v2497_v49 = vmul.f32 -1.442695, %v1764_v13  ;;  %v1765_v45 = vadd.f32 %v1757_v11, %v5402_v14  ;;  %v1767_v15 = vadd.f32 %v1759_v16, %v5379_v47 }
 0x65b   :  { %2731 = vpow2.f32 %v2497_v49  ;;  %v2498_v30 = vmul.f32 -1.442695, %v1765_v45  ;;  %v2499_v56 = vmul.f32 -1.442695, %v1767_v15 }
 0x65d   :  { %2733 = vpow2.f32 %v2498_v30  ;;  %v1788_v30 = vrot.slane %v4822_v1, 6 }
 0x65e   :  { %2735 = vpow2.f32 %v2499_v56 }
 0x668   :  { %v2732_v52 = vpop.eup %2731 }
 0x669   :  { %v1771_v53 = vadd.f32 1.0, %v2732_v52 }
 0x66a   :  { %v2734_v8 = vpop.eup %2733 }
 0x66b   :  { %2737 = vrcp.f32 %v1771_v53  ;;  %v1777_v63 = vadd.f32 1.0, %v2734_v8  ;;  %v2736_v11 = vpop.eup %2735 }
 0x66c   :  { %2739 = vtanh.f32 %v1766_v12  ;;  %v1784_v49 = vadd.f32 1.0, %v2736_v11 }
 0x66d   :  { %2741 = vrcp.f32 %v1777_v63 }
 0x66e   :  { %2743 = vrcp.f32 %v1784_v49 }
 0x678   :  { %v2738_v13 = vpop.eup %2737 }
 0x679   :  { %v2740_v10 = vpop.eup %2739 }
 0x67a   :  { %v2742_v29 = vpop.eup %2741  ;;  %v1791_v16 = vmul.f32 %v2740_v10, %v2738_v13 }
 0x67b   :  { %v1790_v27 = vmul.f32 %v2742_v29, %v1788_v30  ;;  %v2744_v45 = vpop.eup %2743 }
 0x67d   :  { %v4896_v15 = vadd.f32 %v1791_v16, %v1790_v27  ;;  %v2226_v16 = vld [vmem:[%s5141_s5 + $0xf8] sm:$0xff]  ;;  %v2225_v27 = vld [vmem:[%s5141_s5 + $0xf0] sm:$0xff] }
 0x67f   :  { %2745 = vtanh.f32 %v4896_v15  ;;  %v1976_v58 = vrot.slane %v4896_v15, 6  ;;  %v2224_v15 = vld [vmem:[%s5141_s5 + $0xe8] sm:$0xff] }
 0x68c   :  { %v2746_v56 = vpop.eup %2745 }
 0x68d   :  { %v1794_v53 = vmul.f32 %v2746_v56, %v2744_v45  ;;  %v2223_v45 = vld [vmem:[%s5141_s5 + $0xe0] sm:$0xff]  ;;  %v2222_v56 = vld [vmem:[%s5141_s5 + $0xd8] sm:$0xff] }
 0x68f   :  { %v1796_v8 = vrot.slane %v1794_v53, 2  ;;  %v2221_v53 = vld [vmem:[%s5141_s5 + $0xd0] sm:$0xff] }
 0x691   :  { %1863 = vmatmul.mubr.f32.vlgmr.msra.gmra.mxu0 %v1796_v8  ;;  %1934 = vmatmul.mubr.f32.vlgmr.msra.gmra.mxu1 %v1796_v8  ;;  %v2220_v8 = vld [vmem:[%s5141_s5 + $0xc8] sm:$0xff] }
 0x692   :  { %1987 = vmatpush1.msra.mxu0 %v4360_v51  ;;  %2058 = vmatpush1.msra.mxu1 %v4366_v2  ;;  %v5403_v51 = vld [vmem:[#allocation12_spill] sm:$0xff]  ;;  %v5404_v2 = vld [vmem:[#allocation13_spill] sm:$0xff] }
 0x693   :  { %1988 = vmatprep.subr.mxu0 %v4372_v5  ;;  %2059 = vmatprep.subr.mxu1 %v4378_v48  ;;  %v5405_v5 = vld [vmem:[#allocation14_spill] sm:$0xff]  ;;  %v5406_v48 = vld [vmem:[#allocation15_spill] sm:$0xff] }
 0x694   :  { %1989 = vmatpush1.msra.mxu0 %v4384_v59  ;;  %2060 = vmatpush1.msra.mxu1 %v4390_v61  ;;  %v5407_v59 = vld [vmem:[#allocation16_spill] sm:$0xff]  ;;  %v5408_v61 = vld [vmem:[#allocation17_spill] sm:$0xff] }
 0x695   :  { %1990 = vmatprep.subr.mxu0 %v4396_v55  ;;  %2061 = vmatprep.subr.mxu1 %v4402_v4  ;;  %v5409_v55 = vld [vmem:[#allocation18_spill] sm:$0xff]  ;;  %v5410_v4 = vld [vmem:[#allocation19_spill] sm:$0xff] }
 0x696   :  { %1991 = vmatpush1.msra.mxu0 %v4408_v7  ;;  %2062 = vmatpush1.msra.mxu1 %v4414_v43  ;;  %v5411_v7 = vld [vmem:[#allocation20_spill] sm:$0xff]  ;;  %v5412_v43 = vld [vmem:[#allocation21_spill] sm:$0xff] }
 0x697   :  { %1992 = vmatprep.subr.mxu0 %v4420_v0  ;;  %2063 = vmatprep.subr.mxu1 %v4426_v50  ;;  %v5413_v0 = vld [vmem:[#allocation22_spill] sm:$0xff]  ;;  %v5414_v50 = vld [vmem:[#allocation23_spill] sm:$0xff] }
 0x698   :  { %1993 = vmatpush1.msra.mxu0 %v4432_v3  ;;  %2064 = vmatpush1.msra.mxu1 %v5354_v17  ;;  %v5415_v3 = vld [vmem:[#allocation24_spill] sm:$0xff]  ;;  %v5420_v17 = vld [vmem:[#allocation29_spill] sm:$0xff] }
 0x699   :  { %1994 = vmatprep.subr.mxu0 %v5355_v18  ;;  %2065 = vmatprep.subr.mxu1 %v5356_v19  ;;  %v5421_v18 = vld [vmem:[#allocation30_spill] sm:$0xff]  ;;  %v5422_v19 = vmov 0.0  }
 0x69a   :  { %1995 = vmatpush1.msra.mxu0 %v4456_v6  ;;  %2066 = vmatpush1.msra.mxu1 %v4462_v9  ;;  %v5416_v9 = vld [vmem:[#allocation25_spill] sm:$0xff]  ;;  %v5419_v6 = vld [vmem:[#allocation28_spill] sm:$0xff] }
 0x69b   :  { %1996 = vmatprep.subr.mxu0 %v4468_v60  ;;  %2067 = vmatprep.subr.mxu1 %v4474_v44  ;;  %v5417_v60 = vld [vmem:[#allocation26_spill] sm:$0xff]  ;;  %v5418_v44 = vld [vmem:[#allocation27_spill] sm:$0xff] }
 0x69c   :  { %1997 = vmatpush1.msra.mxu0 %v4564_v20  ;;  %2068 = vmatpush1.msra.mxu1 %v4570_v21  ;;  %v5423_v20 = vld [vmem:[#allocation31_spill] sm:$0xff] }
 0x69d   :  { %1998 = vmatprep.subr.mxu0 %v4576_v22  ;;  %2069 = vmatprep.subr.mxu1 %v4582_v23 }
 0x69e   :  { %1999 = vmatpush1.msra.mxu0 %v4588_v24  ;;  %2070 = vmatpush1.msra.mxu1 %v4594_v25 }
 0x69f   :  { %2000 = vmatprep.subr.mxu0 %v4600_v26  ;;  %2071 = vmatprep.subr.mxu1 %v4606_v54 }
 0x6a0   :  { %2001 = vmatpush1.msra.mxu0 %v4612_v28  ;;  %2072 = vmatpush1.msra.mxu1 %v4618_v31 }
 0x6a1   :  { %2002 = vmatprep.subr.mxu0 %v4624_v32  ;;  %2073 = vmatprep.subr.mxu1 %v4630_v33 }
 0x6a2   :  { %2003 = vmatpush1.msra.mxu0 %v4636_v34  ;;  %2074 = vmatpush1.msra.mxu1 %v4642_v35 }
 0x6a3   :  { %2004 = vmatprep.subr.mxu0 %v4648_v36  ;;  %2075 = vmatprep.subr.mxu1 %v4654_v37 }
 0x6a4   :  { %2005 = vmatpush1.msra.mxu0 %v4660_v38  ;;  %2076 = vmatpush1.msra.mxu1 %v4666_v39 }
 0x6a5   :  { %2006 = vmatprep.subr.mxu0 %v4672_v40  ;;  %2077 = vmatprep.subr.mxu1 %v4678_v41 }
 0x6a6   :  { %2007 = vmatpush1.msra.mxu0 %v4684_v42  ;;  %2078 = vmatpush1.msra.mxu1 %v4690_v46 }
 0x6a7   :  { %2008 = vmatprep.subr.mxu0 %v5403_v51  ;;  %2079 = vmatprep.subr.mxu1 %v5404_v2  ;;  %v2219_v51 = vld [vmem:[%s5141_s5 + $0xc0] sm:$0xff]  ;;  %v2218_v2 = vld [vmem:[%s5141_s5 + $0xb8] sm:$0xff] }
 0x6a8   :  { %2009 = vmatpush1.msra.mxu0 %v5405_v5  ;;  %2080 = vmatpush1.msra.mxu1 %v5406_v48  ;;  %v2217_v5 = vld [vmem:[%s5141_s5 + $0xb0] sm:$0xff]  ;;  %v2216_v48 = vld [vmem:[%s5141_s5 + $0xa8] sm:$0xff] }
 0x6a9   :  { %2010 = vmatprep.subr.mxu0 %v5407_v59  ;;  %2081 = vmatprep.subr.mxu1 %v5408_v61  ;;  %v2215_v59 = vld [vmem:[%s5141_s5 + $0xa0] sm:$0xff]  ;;  %v2214_v61 = vld [vmem:[%s5141_s5 + $0x98] sm:$0xff] }
 0x6aa   :  { %2011 = vmatpush1.msra.mxu0 %v5409_v55  ;;  %2082 = vmatpush1.msra.mxu1 %v5410_v4  ;;  %v2213_v55 = vld [vmem:[%s5141_s5 + $0x90] sm:$0xff]  ;;  %v2212_v4 = vld [vmem:[%s5141_s5 + $0x88] sm:$0xff] }
 0x6ab   :  { %2012 = vmatprep.subr.mxu0 %v5411_v7  ;;  %2083 = vmatprep.subr.mxu1 %v5412_v43  ;;  %v2211_v7 = vld [vmem:[%s5141_s5 + $0x80] sm:$0xff]  ;;  %v5424_v43 = vld [vmem:[#allocation38_spill] sm:$0xff] }
 0x6ac   :  { %2013 = vmatpush1.msra.mxu0 %v5413_v0  ;;  %2084 = vmatpush1.msra.mxu1 %v5414_v50  ;;  %v2228_v0 = vrot.slane %v5424_v43, 6  ;;  %v2210_v50 = vld [vmem:[%s5141_s5 + $0x78] sm:$0xff] }
 0x6ad   :  { %2014 = vmatprep.subr.mxu0 %v5415_v3  ;;  %2085 = vmatprep.subr.mxu1 %v5416_v9  ;;  %v2209_v3 = vld [vmem:[%s5141_s5 + $0x70] sm:$0xff]  ;;  %v2208_v9 = vld [vmem:[%s5141_s5 + $0x68] sm:$0xff] }
 0x6ae   :  { %2015 = vmatpush1.msra.mxu0 %v5417_v60  ;;  %2086 = vmatpush1.msra.mxu1 %v5418_v44  ;;  %v2207_v60 = vld [vmem:[%s5141_s5 + $0x60] sm:$0xff]  ;;  %v2206_v44 = vld [vmem:[%s5141_s5 + $0x58] sm:$0xff] }
 0x6af   :  { %2016 = vmatprep.subr.mxu0 %v5419_v6  ;;  %2087 = vmatprep.subr.mxu1 %v5420_v17  ;;  %v2205_v6 = vld [vmem:[%s5141_s5 + $0x50] sm:$0xff]  ;;  %v2204_v17 = vld [vmem:[%s5141_s5 + $0x48] sm:$0xff] }
 0x6b0   :  { %2017 = vmatpush1.msra.mxu0 %v5421_v18  ;;  %2050 = vmatprep.mubr.f32.mxu0 %v5422_v19  ;;  %v2203_v18 = vld [vmem:[%s5141_s5 + $0x40] sm:$0xff] }
 0x6b1   :  { %2088 = vmatpush1.msra.mxu1 %v5423_v20  ;;  %2121 = vmatprep.mubr.f32.mxu1 %v5422_v19  ;;  %v2202_v20 = vld [vmem:[%s5141_s5 + $0x38] sm:$0xff] }
 0x6b2   :  { %2551 = vmatprep.subr.mxu0 %v5422_v19  ;;  %2586 = vmatprep.subr.mxu1 %v5422_v19 }
 0x751   :  { %v1864_v21 = vpop.f32.mrf.mxu0  ;;  %v1935_v25 = vpop.f32.mrf.mxu1 }
 0x752   :  { %v1944_v22 = vrot.slane %v1864_v21, 4  ;;  %v1946_v35 = vrot.slane %v1935_v25, 4  ;;  %v2201_v21 = vld [vmem:[%s5141_s5 + $0x30] sm:$0xff] }
 0x753   :  { %v1866_v23 = vpop.f32.mrf.mxu0  ;;  %v1937_v32 = vpop.f32.mrf.mxu1  ;;  %v2197_v25 = vld [vmem:[%s5141_s5 + $0x10] sm:$0xff] }
 0x754   :  { %v1952_v24 = vadd.f32 %v1944_v22, %v5401_v62  ;;  %v1945_v26 = vrot.slane %v1866_v23, 4  ;;  %v1947_v33 = vrot.slane %v1937_v32, 4  ;;  %v1954_v38 = vadd.f32 %v1946_v35, %v5380_v57  ;;  %v2200_v22 = vld [vmem:[%s5141_s5 + $0x28] sm:$0xff]  ;;  %v2199_v23 = vld [vmem:[%s5141_s5 + $0x20] sm:$0xff] }
 0x756   :  { %v2500_v54 = vmul.f32 -1.442695, %v1952_v24  ;;  %v1953_v28 = vadd.f32 %v1945_v26, %v5402_v14  ;;  %v1955_v34 = vadd.f32 %v1947_v33, %v5379_v47  ;;  %v2198_v24 = vld [vmem:[%s5141_s5 + $0x18] sm:$0xff]  ;;  %v2196_v26 = vld [vmem:[%s5141_s5 + $0x8] sm:$0xff] }
 0x758   :  { %2747 = vpow2.f32 %v2500_v54  ;;  %v2501_v31 = vmul.f32 -1.442695, %v1953_v28  ;;  %v2502_v36 = vmul.f32 -1.442695, %v1955_v34  ;;  %v2195_v54 = vld [vmem:[%s5141_s5] sm:$0xff]  ;;  %v2384_v28 = vld [vmem:[%s5143_s7 + $0x18] sm:$0xff] }
 0x75a   :  { %2749 = vpow2.f32 %v2501_v31 }
 0x75b   :  { %2751 = vpow2.f32 %v2502_v36 }
 0x765   :  { %v2748_v37 = vpop.eup %2747 }
 0x766   :  { %v1959_v39 = vadd.f32 1.0, %v2748_v37 }
 0x767   :  { %v2750_v40 = vpop.eup %2749 }
 0x768   :  { %2753 = vrcp.f32 %v1959_v39  ;;  %v1965_v41 = vadd.f32 1.0, %v2750_v40  ;;  %v2752_v42 = vpop.eup %2751 }
 0x769   :  { %2755 = vtanh.f32 %v1954_v38  ;;  %v1972_v12 = vadd.f32 1.0, %v2752_v42 }
 0x76a   :  { %2757 = vrcp.f32 %v1965_v41 }
 0x76b   :  { %2759 = vrcp.f32 %v1972_v12 }
 0x775   :  { %v2754_v46 = vpop.eup %2753 }
 0x776   :  { %v2756_v1 = vpop.eup %2755 }
 0x777   :  { %v2758_v52 = vpop.eup %2757  ;;  %v1979_v63 = vmul.f32 %v2756_v1, %v2754_v46 }
 0x778   :  { %v1978_v11 = vmul.f32 %v2758_v52, %v1976_v58  ;;  %v2760_v10 = vpop.eup %2759 }
 0x77a   :  { %v4970_v13 = vadd.f32 %v1979_v63, %v1978_v11 }
 0x77c   :  { %2761 = vtanh.f32 %v4970_v13 }
 0x789   :  { %v2762_v30 = vpop.eup %2761 }
 0x78a   :  { %v1982_v29 = vmul.f32 %v2762_v30, %v2760_v10 }
 0x78c   :  { %v1984_v49 = vrot.slane %v1982_v29, 4 }
 0x78e   :  { %2051 = vmatmul.mubr.f32.vlgmr.msra.gmra.mxu0 %v1984_v49  ;;  %2122 = vmatmul.mubr.f32.vlgmr.msra.gmra.mxu1 %v1984_v49  ;;  %v2164_v49 = vrot.slane %v4970_v13, 6  ;;  %v2382_v13 = vld [vmem:[%s5143_s7 + $0x8] sm:$0xff] }
 0x78f   :  { %2552 = vmatpush3.msra.mxu0 %v2226_v16  ;;  %2583 = vmatprep.mubr.msk.f32.mxu0 %vm2866_vm0, %v5422_v19 }
 0x790   :  { %2553 = vmatprep.subr.mxu0 %v5422_v19  ;;  %2618 = vmatprep.mubr.msk.f32.mxu1 %vm2866_vm0, %v5422_v19 }
 0x791   :  { %2554 = vmatpush3.msra.mxu0 %v2225_v27  ;;  %2587 = vmatpush3.msra.mxu1 %v2210_v50 }
 0x792   :  { %2555 = vmatprep.subr.mxu0 %v5422_v19  ;;  %2588 = vmatprep.subr.mxu1 %v5422_v19 }
 0x793   :  { %2556 = vmatpush3.msra.mxu0 %v2224_v15  ;;  %2589 = vmatpush3.msra.mxu1 %v2209_v3 }
 0x794   :  { %2557 = vmatprep.subr.mxu0 %v5422_v19  ;;  %2590 = vmatprep.subr.mxu1 %v5422_v19 }
 0x795   :  { %2558 = vmatpush3.msra.mxu0 %v2223_v45  ;;  %2591 = vmatpush3.msra.mxu1 %v2208_v9 }
 0x796   :  { %2559 = vmatprep.subr.mxu0 %v5422_v19  ;;  %2592 = vmatprep.subr.mxu1 %v5422_v19 }
 0x797   :  { %2560 = vmatpush3.msra.mxu0 %v2222_v56  ;;  %2593 = vmatpush3.msra.mxu1 %v2207_v60 }
 0x798   :  { %2561 = vmatprep.subr.mxu0 %v5422_v19  ;;  %2594 = vmatprep.subr.mxu1 %v5422_v19 }
 0x799   :  { %2562 = vmatpush3.msra.mxu0 %v2221_v53  ;;  %2595 = vmatpush3.msra.mxu1 %v2206_v44 }
 0x79a   :  { %2563 = vmatprep.subr.mxu0 %v5422_v19  ;;  %2596 = vmatprep.subr.mxu1 %v5422_v19 }
 0x79b   :  { %2564 = vmatpush3.msra.mxu0 %v2220_v8  ;;  %2597 = vmatpush3.msra.mxu1 %v2205_v6 }
 0x79c   :  { %2565 = vmatprep.subr.mxu0 %v5422_v19  ;;  %2598 = vmatprep.subr.mxu1 %v5422_v19 }
 0x79d   :  { %2566 = vmatpush3.msra.mxu0 %v2219_v51  ;;  %2599 = vmatpush3.msra.mxu1 %v2204_v17  ;;  %v2383_v51 = vld [vmem:[%s5143_s7 + $0x10] sm:$0xff] }
 0x79e   :  { %2567 = vmatprep.subr.mxu0 %v5422_v19  ;;  %2600 = vmatprep.subr.mxu1 %v5422_v19 }
 0x79f   :  { %2568 = vmatpush3.msra.mxu0 %v2218_v2  ;;  %2601 = vmatpush3.msra.mxu1 %v2203_v18  ;;  %v2381_v2 = vld [vmem:[%s5143_s7] sm:$0xff]  ;;  %s2843_s7 = scalar_lea.vmem %s2475_s0, 32 }
 0x7a0   :  { %2569 = vmatprep.subr.mxu0 %v5422_v19  ;;  %2602 = vmatprep.subr.mxu1 %v5422_v19  ;;  %p2844_p0 = scmp.ne.s32.totalorder %s2475_s0, %s2843_s7  ;;  %p2849_p2 = scmp.lt.s32.totalorder %s2843_s7, %s2843_s7 }
 0x7a1   :  { %2570 = vmatpush3.msra.mxu0 %v2217_v5  ;;  %2603 = vmatpush3.msra.mxu1 %v2202_v20 }
 0x7a2   :  { %2571 = vmatprep.subr.mxu0 %v5422_v19  ;;  %2604 = vmatprep.subr.mxu1 %v5422_v19  ;;  %p2850_p3 = por %p2849_p2, %p2848_p1 }
 0x7a3   :  { %2572 = vmatpush3.msra.mxu0 %v2216_v48  ;;  %2605 = vmatpush3.msra.mxu1 %v2201_v21  ;;  %v2509_v48 = vld [vmem:[%s5142_s6] ss:$0 sm:$0xff] }
 0x7a4   :  { %2573 = vmatprep.subr.mxu0 %v5422_v19  ;;  %2606 = vmatprep.subr.mxu1 %v5422_v19  ;;  %p2851_p4 = pnand %p2850_p3, %p2844_p0 }
 0x7a5   :  { %2574 = vmatpush3.msra.mxu0 %v2215_v59  ;;  %2607 = vmatpush3.msra.mxu1 %v2200_v22 }
 0x7a6   :  { %2575 = vmatprep.subr.mxu0 %v5422_v19  ;;  %2608 = vmatprep.subr.mxu1 %v5422_v19 }
 0x7a7   :  { %2576 = vmatpush3.msra.mxu0 %v2214_v61  ;;  %2609 = vmatpush3.msra.mxu1 %v2199_v23 }
 0x7a8   :  { %2577 = vmatprep.subr.mxu0 %v5422_v19  ;;  %2610 = vmatprep.subr.mxu1 %v5422_v19 }
 0x7a9   :  { %2578 = vmatpush3.msra.mxu0 %v2213_v55  ;;  %2611 = vmatpush3.msra.mxu1 %v2198_v24 }
 0x7aa   :  { %2579 = vmatprep.subr.mxu0 %v5422_v19  ;;  %2612 = vmatprep.subr.mxu1 %v5422_v19 }
 0x7ab   :  { %2580 = vmatpush3.msra.mxu0 %v2212_v4  ;;  %2613 = vmatpush3.msra.mxu1 %v2197_v25  ;;  %v2510_v4 = vld [vmem:[%s5144_s8] ss:$0 sm:$0xff] }
 0x7ac   :  { %2581 = vmatprep.subr.mxu0 %v5422_v19  ;;  %2614 = vmatprep.subr.mxu1 %v5422_v19 }
 0x7ad   :  { %2582 = vmatpush3.msra.mxu0 %v2211_v7  ;;  %2615 = vmatpush3.msra.mxu1 %v2196_v26 }
 0x7ae   :  { %2584 = vmatmul.mubr.f32.vlgmr.msra.gmra.mxu0 %v2228_v0  ;;  %2621 = vmatprep.subr.mxu0 %v5422_v19 }
 0x7af   :  { %2629 = vmatprep.mubr.msk.f32.mxu0 %vm2866_vm0, %v5422_v19  ;;  %2616 = vmatprep.subr.mxu1 %v5422_v19 }
 0x7b0   :  { %2617 = vmatpush3.msra.mxu1 %v2195_v54  ;;  %2622 = vmatpush3.msra.mxu0 %v2384_v28 }
 0x7b1   :  { %2623 = vmatprep.subr.mxu0 %v5422_v19 }
 0x7b2   :  { %2624 = vmatpush3.msra.mxu0 %v2383_v51 }
 0x7b3   :  { %2625 = vmatprep.subr.mxu0 %v5422_v19 }
 0x7b4   :  { %2626 = vmatpush3.msra.mxu0 %v2382_v13 }
 0x7b5   :  { %2627 = vmatprep.subr.mxu0 %v5422_v19 }
 0x7b6   :  { %2628 = vmatpush3.msra.mxu0 %v2381_v2 }
 0x84e   :  { %v2052_v31 = vpop.f32.mrf.mxu0  ;;  %v2123_v35 = vpop.f32.mrf.mxu1 }
 0x84f   :  { %v2132_v32 = vrot.slane %v2052_v31, 2  ;;  %v2134_v46 = vrot.slane %v2123_v35, 2 }
 0x850   :  { %v2054_v33 = vpop.f32.mrf.mxu0  ;;  %v2125_v40 = vpop.f32.mrf.mxu1 }
 0x851   :  { %v2140_v34 = vadd.f32 %v2132_v32, %v5401_v62  ;;  %v2133_v36 = vrot.slane %v2054_v33, 2  ;;  %v2135_v41 = vrot.slane %v2125_v40, 2  ;;  %v2142_v52 = vadd.f32 %v2134_v46, %v5380_v57 }
 0x853   :  { %v2503_v37 = vmul.f32 -1.442695, %v2140_v34  ;;  %v2141_v38 = vadd.f32 %v2133_v36, %v5402_v14  ;;  %v2143_v42 = vadd.f32 %v2135_v41, %v5379_v47 }
 0x855   :  { %2763 = vpow2.f32 %v2503_v37  ;;  %v2504_v39 = vmul.f32 -1.442695, %v2141_v38  ;;  %v2505_v1 = vmul.f32 -1.442695, %v2143_v42 }
 0x857   :  { %2765 = vpow2.f32 %v2504_v39 }
 0x858   :  { %2767 = vpow2.f32 %v2505_v1 }
 0x862   :  { %v2764_v58 = vpop.eup %2763 }
 0x863   :  { %v2147_v12 = vadd.f32 1.0, %v2764_v58 }
 0x864   :  { %v2766_v63 = vpop.eup %2765 }
 0x865   :  { %2769 = vrcp.f32 %v2147_v12  ;;  %v2153_v62 = vadd.f32 1.0, %v2766_v63  ;;  %v2768_v10 = vpop.eup %2767 }
 0x866   :  { %2771 = vtanh.f32 %v2142_v52  ;;  %v2160_v16 = vadd.f32 1.0, %v2768_v10 }
 0x867   :  { %2773 = vrcp.f32 %v2153_v62 }
 0x868   :  { %2775 = vrcp.f32 %v2160_v16 }
 0x86e   :  { %v2296_v14 = vpop.f32.mrf.mxu0 }
 0x870   :  { %v2585_v11 = vpop.f32.mrf.mxu0 }
 0x872   :  { %v2770_v30 = vpop.eup %2769 }
 0x873   :  { %v2772_v29 = vpop.eup %2771 }
 0x874   :  { %v2774_v47 = vpop.eup %2773  ;;  %v2167_v27 = vmul.f32 %v2772_v29, %v2770_v30 }
 0x875   :  { %v2166_v15 = vmul.f32 %v2774_v47, %v2164_v49  ;;  %v2776_v57 = vpop.eup %2775 }
 0x877   :  { %v2168_v45 = vadd.f32 %v2167_v27, %v2166_v15 }
 0x879   :  { %2777 = vtanh.f32 %v2168_v45 }
 0x886   :  { %v2778_v56 = vpop.eup %2777 }
 0x887   :  { %v2170_v53 = vmul.f32 %v2778_v56, %v2776_v57 }
 0x889   :  { %v2301_v8 = vrot.slane %v2170_v53, 6 }
 0x88b   :  { %2619 = vmatmul.mubr.f32.vlgmr.msra.gmra.mxu1 %v2301_v8 }
 0x94b   :  { %v2369_v5 = vpop.f32.mrf.mxu1 }
 0x94c   :  { %v2370_v59 = vadd.f32 %v2369_v5, %v2296_v14 }
 0x94d   :  { %v2620_v61 = vpop.f32.mrf.mxu1 }
 0x94e   :  { %v2380_v55 = vadd.f32 %v2509_v48, %v2370_v59 }
 0x950   :  { %2630 = vmatmul.mubr.msk.f32.vlgmr.msra.gmra.mxu0 %vm2392_vm1, %v2380_v55 }
 0xa10   :  { %v2462_v7 = vpop.f32.mrf.mxu0 }
 0xa11   :  { %v2463_v19 = vadd.f32 %v2510_v4, %v2462_v7 }
 0xa12   :  { %v2631_v43 = vpop.f32.mrf.mxu0 }
 0xa13   :  { %2467 = vst.msk [vmem:[#allocation2] sm:$0x3] %vm2466_vm2, %v2463_v19 }
 0xa14   :  { %2854 = shalt.err (!%p2851_p4)
}
 0xa15   :  { %2477 = dma.vmem_to_hbm [thread:$0]  %s2475_s0, 32, %s5145_s9, [#allocation3]  }
 0xa16   :  { %2863 = dma.done.wait [#allocation3], 32  }
 0xa17   :  { %2864 = vsyncadd [#allocation3], 4294967264 }
 0xa18   :  { %2481 = vsyncpa [#allocation3], 1 }

// kernel: lstm1_forward.2
= control target key start
LH: loop header
LB: loop body
LE: loop exit
PB: predicated region body
PF: predicated region fallthrough
CT: control target
= control target key end

     0   :  { %10 = vsyncpa [#allocation3], 0  ;;  %s7230_s0 = inlined_call_operand.vmem [shape: f32[16,384], index: 0, kind: input, shape index: {}]   ;;  %s7231_s1 = inlined_call_operand.hbm [shape: f32[384,1024], index: 1, kind: input, shape index: {}]   ;;  %s7232_s2 = inlined_call_operand.hbm [shape: f32[1,1024], index: 2, kind: input, shape index: {}]   ;;  %s7233_s3 = inlined_call_operand.hbm [shape: f32[128,512], index: 3, kind: input, shape index: {}]   ;;  %s7234_s4 = inlined_call_operand.hbm [shape: f32[128,512], index: 4, kind: input, shape index: {}]   ;;  %s7235_s5 = inlined_call_operand.vmem [shape: f32[8,2,256], index: 5, kind: output, shape index: {}]  }
   0x1   :  { %11 = vsyncpa [#allocation5], 0 }
   0x2   :  { %12 = vsyncpa [#allocation8], 0  ;;  %s5011_s18 = smov [#allocation4]   ;;  %s5012_s20 = smov [#allocation2]  }
   0x3   :  { %s33_s19 = sshll.u32 %s5011_s18, 4  ;;  %s20_s21 = sshll.u32 %s5012_s20, 4  ;;  %s34_s19 = int_to_ptr.vmem [resolvable:$true] %s33_s19  ;;  %s21_s21 = int_to_ptr.vmem [resolvable:$true] %s20_s21 }
   0x4   :  { %s4933_s22 = scalar_lea.vmem %s34_s19, 128  ;;  %p4938_p1 = scmp.lt.s32.totalorder %s34_s19, %s34_s19 }
   0x5   :  { %p4934_p0 = scmp.ne.s32.totalorder %s34_s19, %s4933_s22  ;;  %p4939_p2 = scmp.lt.s32.totalorder %s4933_s22, %s4933_s22 }
   0x7   :  { %p4940_p3 = por %p4939_p2, %p4938_p1 }
   0x9   :  { %p4941_p4 = pnand %p4940_p3, %p4934_p0 }
   0xb   :  { %4944 = shalt.err (!%p4941_p4)
}
   0xc   :  { %36 = dma.hbm_to_vmem [thread:$0]  %s7232_s2, 128, %s34_s19, [#allocation5]  }
   0xd   :  { %s4953_s25 = scalar_lea.vmem %s21_s21, 49152  ;;  %p4958_p6 = scmp.lt.s32.totalorder %s21_s21, %s21_s21 }
   0xe   :  { %p4954_p5 = scmp.ne.s32.totalorder %s21_s21, %s4953_s25  ;;  %p4959_p7 = scmp.lt.s32.totalorder %s4953_s25, %s4953_s25 }
  0x10   :  { %p4960_p8 = por %p4959_p7, %p4958_p6 }
  0x12   :  { %p4961_p9 = pnand %p4960_p8, %p4954_p5 }
  0x14   :  { %4964 = shalt.err (!%p4961_p9)
}
  0x15   :  { %s5013_s26 = smov 1024   ;;  %s5014_s27 = smov 64  }
  0x16   :  { %26 = dma.hbm_to_vmem [thread:$0]  %s7231_s1, 49152, %s21_s21, [#allocation3], %s5013_s26, %s5013_s26, %s5014_s27  }
  0x17   :  { %s5015_s30 = smov [#allocation6]  }
  0x18   :  { %s42_s6 = sshll.u32 %s5015_s30, 4  ;;  %s43_s6 = int_to_ptr.vmem [resolvable:$true] %s42_s6 }
  0x19   :  { %s4973_s7 = scalar_lea.vmem %s43_s6, 8192  ;;  %p4978_p11 = scmp.lt.s32.totalorder %s43_s6, %s43_s6 }
  0x1a   :  { %p4974_p10 = scmp.ne.s32.totalorder %s43_s6, %s4973_s7  ;;  %p4979_p12 = scmp.lt.s32.totalorder %s4973_s7, %s4973_s7 }
  0x1c   :  { %p4980_p13 = por %p4979_p12, %p4978_p11 }
  0x1e   :  { %p4981_p0 = pnand %p4980_p13, %p4974_p10 }
  0x20   :  { %4984 = shalt.err (!%p4981_p0)
}
  0x21   :  { %s5016_s2 = smov 512   ;;  %s5017_s8 = smov 32  }
  0x22   :  { %48 = dma.hbm_to_vmem [thread:$0]  %s7233_s3, 8192, %s43_s6, [#allocation5], %s5016_s2, %s5016_s2, %s5017_s8  }
  0x23   :  { %s5018_s11 = smov [#allocation7]  }
  0x24   :  { %s54_s12 = sshll.u32 %s5018_s11, 4  ;;  %s55_s12 = int_to_ptr.vmem [resolvable:$true] %s54_s12 }
  0x25   :  { %s4993_s1 = scalar_lea.vmem %s55_s12, 8192  ;;  %p4998_p2 = scmp.lt.s32.totalorder %s55_s12, %s55_s12 }
  0x26   :  { %p4994_p1 = scmp.ne.s32.totalorder %s55_s12, %s4993_s1  ;;  %p4999_p3 = scmp.lt.s32.totalorder %s4993_s1, %s4993_s1 }
  0x28   :  { %p5000_p4 = por %p4999_p3, %p4998_p2 }
  0x2a   :  { %p5001_p5 = pnand %p5000_p4, %p4994_p1 }
  0x2c   :  { %5004 = shalt.err (!%p5001_p5)
}
  0x2d   :  { %60 = dma.hbm_to_vmem [thread:$0]  %s7234_s4, 8192, %s55_s12, [#allocation8], %s5016_s2, %s5016_s2, %s5017_s8  }
  0x2e   :  { %5005 = dma.done.wait [#allocation3], 49152  }
  0x2f   :  { %5006 = vsyncadd [#allocation3], 4294918144 }
  0x30   :  { %5007 = dma.done.wait [#allocation5], 8320  }
  0x31   :  { %5008 = vsyncadd [#allocation5], 4294958976 }
  0x32   :  { %5009 = dma.done.wait [#allocation8], 8192  }
  0x33   :  { %5010 = vsyncadd [#allocation8], 4294959104  ;;  %v7236_v0 = vmov 0.0   ;;  %v200_v1 = vld [vmem:[#allocation2 + $0x3c8] sm:$0xff]  ;;  %v199_v3 = vld [vmem:[#allocation2 + $0x3c0] sm:$0xff] }
  0x34   :  { %646 = vmatprep.mubr.f32.mxu1 %v7236_v0  ;;  %v456_v2 = vld [vmem:[#allocation2 + $0xbc8] sm:$0xff]  ;;  %505 = vmatprep.subr.mxu0 %v200_v1  ;;  %v455_v4 = vld [vmem:[#allocation2 + $0xbc0] sm:$0xff] }
  0x35   :  { %582 = vmatprep.subr.mxu1 %v456_v2  ;;  %v192_v5 = vld [vmem:[#allocation2 + $0x388] sm:$0xff]  ;;  %506 = vmatpush1.msra.mxu0 %v199_v3  ;;  %v191_v7 = vld [vmem:[#allocation2 + $0x380] sm:$0xff]  ;;  %v202_v3 = vld [vmem:[#allocation2 + $0x3d8] sm:$0xff] }
  0x36   :  { %v448_v6 = vld [vmem:[#allocation2 + $0xb88] sm:$0xff]  ;;  %583 = vmatpush1.msra.mxu1 %v455_v4  ;;  %v447_v8 = vld [vmem:[#allocation2 + $0xb80] sm:$0xff]  ;;  %507 = vmatprep.subr.mxu0 %v192_v5  ;;  %v5067_v5 = vld [vmem:[%s7230_s0 + $0x10] sm:$0xff] }
  0x37   :  { %v184_v9 = vld [vmem:[#allocation2 + $0x348] sm:$0xff]  ;;  %584 = vmatprep.subr.mxu1 %v448_v6  ;;  %v183_v11 = vld [vmem:[#allocation2 + $0x340] sm:$0xff]  ;;  %508 = vmatpush1.msra.mxu0 %v191_v7  ;;  %v201_v6 = vld [vmem:[#allocation2 + $0x3d0] sm:$0xff] }
  0x38   :  { %v440_v10 = vld [vmem:[#allocation2 + $0xb48] sm:$0xff]  ;;  %v439_v12 = vld [vmem:[#allocation2 + $0xb40] sm:$0xff]  ;;  %585 = vmatpush1.msra.mxu1 %v447_v8  ;;  %509 = vmatprep.subr.mxu0 %v184_v9  ;;  %v194_v8 = vld [vmem:[#allocation2 + $0x398] sm:$0xff] }
  0x39   :  { %v176_v13 = vld [vmem:[#allocation2 + $0x308] sm:$0xff]  ;;  %586 = vmatprep.subr.mxu1 %v440_v10  ;;  %v175_v15 = vld [vmem:[#allocation2 + $0x300] sm:$0xff]  ;;  %510 = vmatpush1.msra.mxu0 %v183_v11  ;;  %v193_v10 = vld [vmem:[#allocation2 + $0x390] sm:$0xff] }
  0x3a   :  { %v432_v14 = vld [vmem:[#allocation2 + $0xb08] sm:$0xff]  ;;  %v431_v16 = vld [vmem:[#allocation2 + $0xb00] sm:$0xff]  ;;  %587 = vmatpush1.msra.mxu1 %v439_v12  ;;  %511 = vmatprep.subr.mxu0 %v176_v13  ;;  %v186_v12 = vld [vmem:[#allocation2 + $0x358] sm:$0xff] }
  0x3b   :  { %v168_v17 = vld [vmem:[#allocation2 + $0x2c8] sm:$0xff]  ;;  %588 = vmatprep.subr.mxu1 %v432_v14  ;;  %v167_v19 = vld [vmem:[#allocation2 + $0x2c0] sm:$0xff]  ;;  %512 = vmatpush1.msra.mxu0 %v175_v15  ;;  %v185_v14 = vld [vmem:[#allocation2 + $0x350] sm:$0xff] }
  0x3c   :  { %v424_v18 = vld [vmem:[#allocation2 + $0xac8] sm:$0xff]  ;;  %v423_v20 = vld [vmem:[#allocation2 + $0xac0] sm:$0xff]  ;;  %589 = vmatpush1.msra.mxu1 %v431_v16  ;;  %513 = vmatprep.subr.mxu0 %v168_v17  ;;  %v178_v16 = vld [vmem:[#allocation2 + $0x318] sm:$0xff] }
  0x3d   :  { %v160_v21 = vld [vmem:[#allocation2 + $0x288] sm:$0xff]  ;;  %590 = vmatprep.subr.mxu1 %v424_v18  ;;  %v159_v23 = vld [vmem:[#allocation2 + $0x280] sm:$0xff]  ;;  %514 = vmatpush1.msra.mxu0 %v167_v19  ;;  %v177_v18 = vld [vmem:[#allocation2 + $0x310] sm:$0xff] }
  0x3e   :  { %v416_v22 = vld [vmem:[#allocation2 + $0xa88] sm:$0xff]  ;;  %v415_v24 = vld [vmem:[#allocation2 + $0xa80] sm:$0xff]  ;;  %591 = vmatpush1.msra.mxu1 %v423_v20  ;;  %515 = vmatprep.subr.mxu0 %v160_v21  ;;  %v170_v20 = vld [vmem:[#allocation2 + $0x2d8] sm:$0xff] }
  0x3f   :  { %v152_v25 = vld [vmem:[#allocation2 + $0x248] sm:$0xff]  ;;  %592 = vmatprep.subr.mxu1 %v416_v22  ;;  %v151_v27 = vld [vmem:[#allocation2 + $0x240] sm:$0xff]  ;;  %516 = vmatpush1.msra.mxu0 %v159_v23  ;;  %v169_v22 = vld [vmem:[#allocation2 + $0x2d0] sm:$0xff] }
  0x40   :  { %v408_v26 = vld [vmem:[#allocation2 + $0xa48] sm:$0xff]  ;;  %v407_v28 = vld [vmem:[#allocation2 + $0xa40] sm:$0xff]  ;;  %593 = vmatpush1.msra.mxu1 %v415_v24  ;;  %517 = vmatprep.subr.mxu0 %v152_v25  ;;  %v162_v24 = vld [vmem:[#allocation2 + $0x298] sm:$0xff] }
  0x41   :  { %v144_v29 = vld [vmem:[#allocation2 + $0x208] sm:$0xff]  ;;  %594 = vmatprep.subr.mxu1 %v408_v26  ;;  %v143_v31 = vld [vmem:[#allocation2 + $0x200] sm:$0xff]  ;;  %518 = vmatpush1.msra.mxu0 %v151_v27  ;;  %v161_v26 = vld [vmem:[#allocation2 + $0x290] sm:$0xff] }
  0x42   :  { %v400_v30 = vld [vmem:[#allocation2 + $0xa08] sm:$0xff]  ;;  %v399_v32 = vld [vmem:[#allocation2 + $0xa00] sm:$0xff]  ;;  %595 = vmatpush1.msra.mxu1 %v407_v28  ;;  %519 = vmatprep.subr.mxu0 %v144_v29  ;;  %v154_v28 = vld [vmem:[#allocation2 + $0x258] sm:$0xff] }
  0x43   :  { %v136_v33 = vld [vmem:[#allocation2 + $0x1c8] sm:$0xff]  ;;  %596 = vmatprep.subr.mxu1 %v400_v30  ;;  %v135_v35 = vld [vmem:[#allocation2 + $0x1c0] sm:$0xff]  ;;  %520 = vmatpush1.msra.mxu0 %v143_v31  ;;  %v153_v30 = vld [vmem:[#allocation2 + $0x250] sm:$0xff] }
  0x44   :  { %v392_v34 = vld [vmem:[#allocation2 + $0x9c8] sm:$0xff]  ;;  %v391_v36 = vld [vmem:[#allocation2 + $0x9c0] sm:$0xff]  ;;  %597 = vmatpush1.msra.mxu1 %v399_v32  ;;  %521 = vmatprep.subr.mxu0 %v136_v33  ;;  %v146_v32 = vld [vmem:[#allocation2 + $0x218] sm:$0xff] }
  0x45   :  { %v128_v37 = vld [vmem:[#allocation2 + $0x188] sm:$0xff]  ;;  %598 = vmatprep.subr.mxu1 %v392_v34  ;;  %v127_v39 = vld [vmem:[#allocation2 + $0x180] sm:$0xff]  ;;  %522 = vmatpush1.msra.mxu0 %v135_v35  ;;  %v145_v34 = vld [vmem:[#allocation2 + $0x210] sm:$0xff] }
  0x46   :  { %v384_v38 = vld [vmem:[#allocation2 + $0x988] sm:$0xff]  ;;  %v383_v40 = vld [vmem:[#allocation2 + $0x980] sm:$0xff]  ;;  %599 = vmatpush1.msra.mxu1 %v391_v36  ;;  %523 = vmatprep.subr.mxu0 %v128_v37  ;;  %v138_v36 = vld [vmem:[#allocation2 + $0x1d8] sm:$0xff] }
  0x47   :  { %v120_v41 = vld [vmem:[#allocation2 + $0x148] sm:$0xff]  ;;  %600 = vmatprep.subr.mxu1 %v384_v38  ;;  %v119_v43 = vld [vmem:[#allocation2 + $0x140] sm:$0xff]  ;;  %524 = vmatpush1.msra.mxu0 %v127_v39  ;;  %v137_v38 = vld [vmem:[#allocation2 + $0x1d0] sm:$0xff] }
  0x48   :  { %v376_v42 = vld [vmem:[#allocation2 + $0x948] sm:$0xff]  ;;  %v375_v44 = vld [vmem:[#allocation2 + $0x940] sm:$0xff]  ;;  %601 = vmatpush1.msra.mxu1 %v383_v40  ;;  %525 = vmatprep.subr.mxu0 %v120_v41  ;;  %v130_v40 = vld [vmem:[#allocation2 + $0x198] sm:$0xff] }
  0x49   :  { %v112_v45 = vld [vmem:[#allocation2 + $0x108] sm:$0xff]  ;;  %602 = vmatprep.subr.mxu1 %v376_v42  ;;  %v111_v47 = vld [vmem:[#allocation2 + $0x100] sm:$0xff]  ;;  %526 = vmatpush1.msra.mxu0 %v119_v43  ;;  %v129_v42 = vld [vmem:[#allocation2 + $0x190] sm:$0xff] }
  0x4a   :  { %v368_v46 = vld [vmem:[#allocation2 + $0x908] sm:$0xff]  ;;  %v367_v48 = vld [vmem:[#allocation2 + $0x900] sm:$0xff]  ;;  %603 = vmatpush1.msra.mxu1 %v375_v44  ;;  %527 = vmatprep.subr.mxu0 %v112_v45  ;;  %v122_v44 = vld [vmem:[#allocation2 + $0x158] sm:$0xff] }
  0x4b   :  { %v104_v49 = vld [vmem:[#allocation2 + $0xc8] sm:$0xff]  ;;  %604 = vmatprep.subr.mxu1 %v368_v46  ;;  %v103_v51 = vld [vmem:[#allocation2 + $0xc0] sm:$0xff]  ;;  %528 = vmatpush1.msra.mxu0 %v111_v47  ;;  %v121_v46 = vld [vmem:[#allocation2 + $0x150] sm:$0xff] }
  0x4c   :  { %v360_v50 = vld [vmem:[#allocation2 + $0x8c8] sm:$0xff]  ;;  %v359_v52 = vld [vmem:[#allocation2 + $0x8c0] sm:$0xff]  ;;  %605 = vmatpush1.msra.mxu1 %v367_v48  ;;  %529 = vmatprep.subr.mxu0 %v104_v49  ;;  %v114_v48 = vld [vmem:[#allocation2 + $0x118] sm:$0xff] }
  0x4d   :  { %v96_v53 = vld [vmem:[#allocation2 + $0x88] sm:$0xff]  ;;  %606 = vmatprep.subr.mxu1 %v360_v50  ;;  %v95_v55 = vld [vmem:[#allocation2 + $0x80] sm:$0xff]  ;;  %530 = vmatpush1.msra.mxu0 %v103_v51  ;;  %v113_v50 = vld [vmem:[#allocation2 + $0x110] sm:$0xff] }
  0x4e   :  { %v352_v54 = vld [vmem:[#allocation2 + $0x888] sm:$0xff]  ;;  %v351_v56 = vld [vmem:[#allocation2 + $0x880] sm:$0xff]  ;;  %607 = vmatpush1.msra.mxu1 %v359_v52  ;;  %531 = vmatprep.subr.mxu0 %v96_v53  ;;  %v106_v52 = vld [vmem:[#allocation2 + $0xd8] sm:$0xff] }
  0x4f   :  { %v88_v57 = vld [vmem:[#allocation2 + $0x48] sm:$0xff]  ;;  %608 = vmatprep.subr.mxu1 %v352_v54  ;;  %v87_v59 = vld [vmem:[#allocation2 + $0x40] sm:$0xff]  ;;  %532 = vmatpush1.msra.mxu0 %v95_v55  ;;  %v105_v54 = vld [vmem:[#allocation2 + $0xd0] sm:$0xff] }
  0x50   :  { %v344_v58 = vld [vmem:[#allocation2 + $0x848] sm:$0xff]  ;;  %v343_v60 = vld [vmem:[#allocation2 + $0x840] sm:$0xff]  ;;  %609 = vmatpush1.msra.mxu1 %v351_v56  ;;  %533 = vmatprep.subr.mxu0 %v88_v57  ;;  %v98_v56 = vld [vmem:[#allocation2 + $0x98] sm:$0xff] }
  0x51   :  { %v80_v61 = vld [vmem:[#allocation2 + $0x8] sm:$0xff]  ;;  %610 = vmatprep.subr.mxu1 %v344_v58  ;;  %v79_v63 = vld [vmem:[#allocation2] sm:$0xff]  ;;  %534 = vmatpush1.msra.mxu0 %v87_v59  ;;  %v97_v58 = vld [vmem:[#allocation2 + $0x90] sm:$0xff] }
  0x52   :  { %v336_v62 = vld [vmem:[#allocation2 + $0x808] sm:$0xff]  ;;  %v335_v1 = vld [vmem:[#allocation2 + $0x800] sm:$0xff]  ;;  %611 = vmatpush1.msra.mxu1 %v343_v60  ;;  %535 = vmatprep.subr.mxu0 %v80_v61  ;;  %v90_v60 = vld [vmem:[#allocation2 + $0x58] sm:$0xff] }
  0x53   :  { %v328_v2 = vld [vmem:[#allocation2 + $0x7c8] sm:$0xff]  ;;  %612 = vmatprep.subr.mxu1 %v336_v62  ;;  %v327_v4 = vld [vmem:[#allocation2 + $0x7c0] sm:$0xff]  ;;  %536 = vmatpush1.msra.mxu0 %v79_v63  ;;  %v89_v62 = vld [vmem:[#allocation2 + $0x50] sm:$0xff] }
  0x54   :  { %613 = vmatpush1.msra.mxu1 %v335_v1  ;;  %v320_v7 = vld [vmem:[#allocation2 + $0x788] sm:$0xff]  ;;  %537 = vmatprep.subr.mxu0 %v328_v2  ;;  %v319_v9 = vld [vmem:[#allocation2 + $0x780] sm:$0xff]  ;;  %v82_v1 = vld [vmem:[#allocation2 + $0x18] sm:$0xff] }
  0x55   :  { %659 = vmatprep.subr.mxu1 %v202_v3  ;;  %538 = vmatpush2.msra.mxu0 %v327_v4  ;;  %v312_v11 = vld [vmem:[#allocation2 + $0x748] sm:$0xff]  ;;  %v311_v13 = vld [vmem:[#allocation2 + $0x740] sm:$0xff]  ;;  %v81_v4 = vld [vmem:[#allocation2 + $0x10] sm:$0xff] }
  0x56   :  { %647 = vmatmul.mubr.f32.vlgmr.msra.gmra.mxu1 %v5067_v5  ;;  %539 = vmatprep.subr.mxu0 %v320_v7  ;;  %v304_v15 = vld [vmem:[#allocation2 + $0x708] sm:$0xff]  ;;  %v303_v17 = vld [vmem:[#allocation2 + $0x700] sm:$0xff]  ;;  %v330_v7 = vld [vmem:[#allocation2 + $0x7d8] sm:$0xff] }
  0x57   :  { %660 = vmatpush1.msra.mxu1 %v201_v6  ;;  %540 = vmatpush2.msra.mxu0 %v319_v9  ;;  %v296_v19 = vld [vmem:[#allocation2 + $0x6c8] sm:$0xff]  ;;  %v295_v21 = vld [vmem:[#allocation2 + $0x6c0] sm:$0xff]  ;;  %v329_v9 = vld [vmem:[#allocation2 + $0x7d0] sm:$0xff] }
  0x58   :  { %661 = vmatprep.subr.mxu1 %v194_v8  ;;  %541 = vmatprep.subr.mxu0 %v312_v11  ;;  %v288_v23 = vld [vmem:[#allocation2 + $0x688] sm:$0xff]  ;;  %v287_v25 = vld [vmem:[#allocation2 + $0x680] sm:$0xff]  ;;  %v458_v8 = vld [vmem:[#allocation2 + $0xbd8] sm:$0xff] }
  0x59   :  { %662 = vmatpush1.msra.mxu1 %v193_v10  ;;  %542 = vmatpush2.msra.mxu0 %v311_v13  ;;  %v280_v27 = vld [vmem:[#allocation2 + $0x648] sm:$0xff]  ;;  %v279_v29 = vld [vmem:[#allocation2 + $0x640] sm:$0xff]  ;;  %v457_v10 = vld [vmem:[#allocation2 + $0xbd0] sm:$0xff] }
  0x5a   :  { %663 = vmatprep.subr.mxu1 %v186_v12  ;;  %543 = vmatprep.subr.mxu0 %v304_v15  ;;  %v272_v31 = vld [vmem:[#allocation2 + $0x608] sm:$0xff]  ;;  %v271_v33 = vld [vmem:[#allocation2 + $0x600] sm:$0xff]  ;;  %v322_v11 = vld [vmem:[#allocation2 + $0x798] sm:$0xff] }
  0x5b   :  { %664 = vmatpush1.msra.mxu1 %v185_v14  ;;  %544 = vmatpush2.msra.mxu0 %v303_v17  ;;  %v264_v35 = vld [vmem:[#allocation2 + $0x5c8] sm:$0xff]  ;;  %v263_v37 = vld [vmem:[#allocation2 + $0x5c0] sm:$0xff]  ;;  %v450_v12 = vld [vmem:[#allocation2 + $0xb98] sm:$0xff] }
  0x5c   :  { %665 = vmatprep.subr.mxu1 %v178_v16  ;;  %545 = vmatprep.subr.mxu0 %v296_v19  ;;  %v256_v39 = vld [vmem:[#allocation2 + $0x588] sm:$0xff]  ;;  %v255_v41 = vld [vmem:[#allocation2 + $0x580] sm:$0xff]  ;;  %v321_v13 = vld [vmem:[#allocation2 + $0x790] sm:$0xff] }
  0x5d   :  { %666 = vmatpush1.msra.mxu1 %v177_v18  ;;  %546 = vmatpush2.msra.mxu0 %v295_v21  ;;  %v248_v43 = vld [vmem:[#allocation2 + $0x548] sm:$0xff]  ;;  %v247_v45 = vld [vmem:[#allocation2 + $0x540] sm:$0xff]  ;;  %v449_v14 = vld [vmem:[#allocation2 + $0xb90] sm:$0xff] }
  0x5e   :  { %667 = vmatprep.subr.mxu1 %v170_v20  ;;  %547 = vmatprep.subr.mxu0 %v288_v23  ;;  %v240_v47 = vld [vmem:[#allocation2 + $0x508] sm:$0xff]  ;;  %v239_v49 = vld [vmem:[#allocation2 + $0x500] sm:$0xff]  ;;  %v314_v15 = vld [vmem:[#allocation2 + $0x758] sm:$0xff] }
  0x5f   :  { %668 = vmatpush1.msra.mxu1 %v169_v22  ;;  %548 = vmatpush2.msra.mxu0 %v287_v25  ;;  %v232_v51 = vld [vmem:[#allocation2 + $0x4c8] sm:$0xff]  ;;  %v231_v53 = vld [vmem:[#allocation2 + $0x4c0] sm:$0xff]  ;;  %v442_v16 = vld [vmem:[#allocation2 + $0xb58] sm:$0xff] }
  0x60   :  { %669 = vmatprep.subr.mxu1 %v162_v24  ;;  %549 = vmatprep.subr.mxu0 %v280_v27  ;;  %v224_v55 = vld [vmem:[#allocation2 + $0x488] sm:$0xff]  ;;  %v223_v57 = vld [vmem:[#allocation2 + $0x480] sm:$0xff]  ;;  %v313_v17 = vld [vmem:[#allocation2 + $0x750] sm:$0xff] }
  0x61   :  { %670 = vmatpush1.msra.mxu1 %v161_v26  ;;  %550 = vmatpush2.msra.mxu0 %v279_v29  ;;  %v216_v59 = vld [vmem:[#allocation2 + $0x448] sm:$0xff]  ;;  %v215_v61 = vld [vmem:[#allocation2 + $0x440] sm:$0xff]  ;;  %v441_v18 = vld [vmem:[#allocation2 + $0xb50] sm:$0xff] }
  0x62   :  { %671 = vmatprep.subr.mxu1 %v154_v28  ;;  %551 = vmatprep.subr.mxu0 %v272_v31  ;;  %v208_v63 = vld [vmem:[#allocation2 + $0x408] sm:$0xff]  ;;  %v207_v2 = vld [vmem:[#allocation2 + $0x400] sm:$0xff]  ;;  %v306_v19 = vld [vmem:[#allocation2 + $0x718] sm:$0xff] }
  0x63   :  { %672 = vmatpush1.msra.mxu1 %v153_v30  ;;  %552 = vmatpush2.msra.mxu0 %v271_v33  ;;  %v5073_v3 = vld [vmem:[%s7230_s0 + $0x8] sm:$0xff]  ;;  %v5078_v6 = vld [vmem:[%s7230_s0] sm:$0xff]  ;;  %v434_v20 = vld [vmem:[#allocation2 + $0xb18] sm:$0xff] }
  0x64   :  { %673 = vmatprep.subr.mxu1 %v146_v32  ;;  %553 = vmatprep.subr.mxu0 %v264_v35  ;;  %v305_v21 = vld [vmem:[#allocation2 + $0x710] sm:$0xff]  ;;  %v298_v23 = vld [vmem:[#allocation2 + $0x6d8] sm:$0xff] }
  0x65   :  { %674 = vmatpush1.msra.mxu1 %v145_v34  ;;  %554 = vmatpush2.msra.mxu0 %v263_v37  ;;  %v433_v22 = vld [vmem:[#allocation2 + $0xb10] sm:$0xff]  ;;  %v426_v24 = vld [vmem:[#allocation2 + $0xad8] sm:$0xff] }
  0x66   :  { %675 = vmatprep.subr.mxu1 %v138_v36  ;;  %555 = vmatprep.subr.mxu0 %v256_v39  ;;  %v297_v25 = vld [vmem:[#allocation2 + $0x6d0] sm:$0xff]  ;;  %v290_v27 = vld [vmem:[#allocation2 + $0x698] sm:$0xff] }
  0x67   :  { %676 = vmatpush1.msra.mxu1 %v137_v38  ;;  %556 = vmatpush2.msra.mxu0 %v255_v41  ;;  %v425_v26 = vld [vmem:[#allocation2 + $0xad0] sm:$0xff]  ;;  %v418_v28 = vld [vmem:[#allocation2 + $0xa98] sm:$0xff] }
  0x68   :  { %677 = vmatprep.subr.mxu1 %v130_v40  ;;  %557 = vmatprep.subr.mxu0 %v248_v43  ;;  %v289_v29 = vld [vmem:[#allocation2 + $0x690] sm:$0xff]  ;;  %v282_v31 = vld [vmem:[#allocation2 + $0x658] sm:$0xff] }
  0x69   :  { %678 = vmatpush1.msra.mxu1 %v129_v42  ;;  %558 = vmatpush2.msra.mxu0 %v247_v45  ;;  %v417_v30 = vld [vmem:[#allocation2 + $0xa90] sm:$0xff]  ;;  %v410_v32 = vld [vmem:[#allocation2 + $0xa58] sm:$0xff] }
  0x6a   :  { %679 = vmatprep.subr.mxu1 %v122_v44  ;;  %559 = vmatprep.subr.mxu0 %v240_v47  ;;  %v281_v33 = vld [vmem:[#allocation2 + $0x650] sm:$0xff]  ;;  %v274_v35 = vld [vmem:[#allocation2 + $0x618] sm:$0xff] }
  0x6b   :  { %680 = vmatpush1.msra.mxu1 %v121_v46  ;;  %560 = vmatpush2.msra.mxu0 %v239_v49  ;;  %v409_v34 = vld [vmem:[#allocation2 + $0xa50] sm:$0xff]  ;;  %v402_v36 = vld [vmem:[#allocation2 + $0xa18] sm:$0xff] }
  0x6c   :  { %681 = vmatprep.subr.mxu1 %v114_v48  ;;  %561 = vmatprep.subr.mxu0 %v232_v51  ;;  %v273_v37 = vld [vmem:[#allocation2 + $0x610] sm:$0xff]  ;;  %v266_v39 = vld [vmem:[#allocation2 + $0x5d8] sm:$0xff] }
  0x6d   :  { %682 = vmatpush1.msra.mxu1 %v113_v50  ;;  %562 = vmatpush2.msra.mxu0 %v231_v53  ;;  %v401_v38 = vld [vmem:[#allocation2 + $0xa10] sm:$0xff]  ;;  %v394_v40 = vld [vmem:[#allocation2 + $0x9d8] sm:$0xff] }
  0x6e   :  { %683 = vmatprep.subr.mxu1 %v106_v52  ;;  %563 = vmatprep.subr.mxu0 %v224_v55  ;;  %v265_v41 = vld [vmem:[#allocation2 + $0x5d0] sm:$0xff]  ;;  %v258_v43 = vld [vmem:[#allocation2 + $0x598] sm:$0xff] }
  0x6f   :  { %684 = vmatpush1.msra.mxu1 %v105_v54  ;;  %564 = vmatpush2.msra.mxu0 %v223_v57  ;;  %v393_v42 = vld [vmem:[#allocation2 + $0x9d0] sm:$0xff]  ;;  %v386_v44 = vld [vmem:[#allocation2 + $0x998] sm:$0xff] }
  0x70   :  { %685 = vmatprep.subr.mxu1 %v98_v56  ;;  %565 = vmatprep.subr.mxu0 %v216_v59  ;;  %v257_v45 = vld [vmem:[#allocation2 + $0x590] sm:$0xff]  ;;  %v250_v47 = vld [vmem:[#allocation2 + $0x558] sm:$0xff]  ;;  %v5085_v59 = vld [vmem:[%s7230_s0 + $0x20] sm:$0xff] }
  0x71   :  { %686 = vmatpush1.msra.mxu1 %v97_v58  ;;  %566 = vmatpush2.msra.mxu0 %v215_v61  ;;  %v385_v46 = vld [vmem:[#allocation2 + $0x990] sm:$0xff]  ;;  %v378_v48 = vld [vmem:[#allocation2 + $0x958] sm:$0xff] }
  0x72   :  { %687 = vmatprep.subr.mxu1 %v90_v60  ;;  %567 = vmatprep.subr.mxu0 %v208_v63  ;;  %v249_v49 = vld [vmem:[#allocation2 + $0x550] sm:$0xff]  ;;  %v242_v51 = vld [vmem:[#allocation2 + $0x518] sm:$0xff] }
  0x73   :  { %688 = vmatpush1.msra.mxu1 %v89_v62  ;;  %568 = vmatpush2.msra.mxu0 %v207_v2  ;;  %v377_v50 = vld [vmem:[#allocation2 + $0x950] sm:$0xff]  ;;  %v370_v52 = vld [vmem:[#allocation2 + $0x918] sm:$0xff]  ;;  %v5096_v2 = vld [vmem:[%s7230_s0 + $0x28] sm:$0xff] }
  0x74   :  { %689 = vmatprep.subr.mxu1 %v82_v1  ;;  %569 = vmatprep.mubr.f32.mxu0 %v5073_v3  ;;  %v241_v53 = vld [vmem:[#allocation2 + $0x510] sm:$0xff]  ;;  %v234_v55 = vld [vmem:[#allocation2 + $0x4d8] sm:$0xff] }
  0x75   :  { %690 = vmatpush1.msra.mxu1 %v81_v4  ;;  %570 = vmatmul.mubr.f32.vlgmr.msra.gmra.mxu0 %v5078_v6  ;;  %v369_v54 = vld [vmem:[#allocation2 + $0x910] sm:$0xff]  ;;  %v362_v56 = vld [vmem:[#allocation2 + $0x8d8] sm:$0xff] }
  0x76   :  { %691 = vmatprep.subr.mxu1 %v330_v7  ;;  %736 = vmatprep.subr.mxu0 %v458_v8  ;;  %v233_v57 = vld [vmem:[#allocation2 + $0x4d0] sm:$0xff]  ;;  %v226_v60 = vld [vmem:[#allocation2 + $0x498] sm:$0xff] }
  0x77   :  { %692 = vmatpush2.msra.mxu1 %v329_v9  ;;  %737 = vmatpush1.msra.mxu0 %v457_v10  ;;  %v361_v58 = vld [vmem:[#allocation2 + $0x8d0] sm:$0xff]  ;;  %v354_v61 = vld [vmem:[#allocation2 + $0x898] sm:$0xff] }
  0x78   :  { %693 = vmatprep.subr.mxu1 %v322_v11  ;;  %738 = vmatprep.subr.mxu0 %v450_v12  ;;  %v5090_v62 = vld [vmem:[%s7230_s0 + $0x18] sm:$0xff]  ;;  %v225_v63 = vld [vmem:[#allocation2 + $0x490] sm:$0xff] }
  0x79   :  { %694 = vmatpush2.msra.mxu1 %v321_v13  ;;  %739 = vmatpush1.msra.mxu0 %v449_v14  ;;  %v353_v1 = vld [vmem:[#allocation2 + $0x890] sm:$0xff]  ;;  %v218_v4 = vld [vmem:[#allocation2 + $0x458] sm:$0xff]  ;;  %v204_v14 = vld [vmem:[#allocation2 + $0x3e8] sm:$0xff] }
  0x7a   :  { %695 = vmatprep.subr.mxu1 %v314_v15  ;;  %740 = vmatprep.subr.mxu0 %v442_v16  ;;  %v346_v7 = vld [vmem:[#allocation2 + $0x858] sm:$0xff]  ;;  %v217_v8 = vld [vmem:[#allocation2 + $0x450] sm:$0xff]  ;;  %v460_v15 = vld [vmem:[#allocation2 + $0xbe8] sm:$0xff] }
  0x7b   :  { %696 = vmatpush2.msra.mxu1 %v313_v17  ;;  %741 = vmatpush1.msra.mxu0 %v441_v18  ;;  %v345_v9 = vld [vmem:[#allocation2 + $0x850] sm:$0xff]  ;;  %v210_v10 = vld [vmem:[#allocation2 + $0x418] sm:$0xff]  ;;  %v203_v16 = vld [vmem:[#allocation2 + $0x3e0] sm:$0xff] }
  0x7c   :  { %697 = vmatprep.subr.mxu1 %v306_v19  ;;  %742 = vmatprep.subr.mxu0 %v434_v20  ;;  %v338_v11 = vld [vmem:[#allocation2 + $0x818] sm:$0xff]  ;;  %v209_v12 = vld [vmem:[#allocation2 + $0x410] sm:$0xff]  ;;  %v459_v17 = vld [vmem:[#allocation2 + $0xbe0] sm:$0xff] }
  0x7d   :  { %698 = vmatpush2.msra.mxu1 %v305_v21  ;;  %743 = vmatpush1.msra.mxu0 %v433_v22  ;;  %v337_v13 = vld [vmem:[#allocation2 + $0x810] sm:$0xff]  ;;  %v196_v18 = vld [vmem:[#allocation2 + $0x3a8] sm:$0xff]  ;;  %v195_v20 = vld [vmem:[#allocation2 + $0x3a0] sm:$0xff] }
  0x7e   :  { %699 = vmatprep.subr.mxu1 %v298_v23  ;;  %744 = vmatprep.subr.mxu0 %v426_v24  ;;  %v452_v19 = vld [vmem:[#allocation2 + $0xba8] sm:$0xff]  ;;  %v451_v21 = vld [vmem:[#allocation2 + $0xba0] sm:$0xff] }
  0x7f   :  { %700 = vmatpush2.msra.mxu1 %v297_v25  ;;  %745 = vmatpush1.msra.mxu0 %v425_v26  ;;  %v188_v22 = vld [vmem:[#allocation2 + $0x368] sm:$0xff]  ;;  %v187_v24 = vld [vmem:[#allocation2 + $0x360] sm:$0xff] }
  0x80   :  { %701 = vmatprep.subr.mxu1 %v290_v27  ;;  %746 = vmatprep.subr.mxu0 %v418_v28  ;;  %v444_v23 = vld [vmem:[#allocation2 + $0xb68] sm:$0xff]  ;;  %v443_v25 = vld [vmem:[#allocation2 + $0xb60] sm:$0xff] }
  0x81   :  { %702 = vmatpush2.msra.mxu1 %v289_v29  ;;  %747 = vmatpush1.msra.mxu0 %v417_v30  ;;  %v180_v26 = vld [vmem:[#allocation2 + $0x328] sm:$0xff]  ;;  %v179_v28 = vld [vmem:[#allocation2 + $0x320] sm:$0xff] }
  0x82   :  { %703 = vmatprep.subr.mxu1 %v282_v31  ;;  %748 = vmatprep.subr.mxu0 %v410_v32  ;;  %v436_v27 = vld [vmem:[#allocation2 + $0xb28] sm:$0xff]  ;;  %v435_v29 = vld [vmem:[#allocation2 + $0xb20] sm:$0xff] }
  0x83   :  { %704 = vmatpush2.msra.mxu1 %v281_v33  ;;  %749 = vmatpush1.msra.mxu0 %v409_v34  ;;  %v172_v30 = vld [vmem:[#allocation2 + $0x2e8] sm:$0xff]  ;;  %v171_v32 = vld [vmem:[#allocation2 + $0x2e0] sm:$0xff] }
  0x84   :  { %705 = vmatprep.subr.mxu1 %v274_v35  ;;  %750 = vmatprep.subr.mxu0 %v402_v36  ;;  %v428_v31 = vld [vmem:[#allocation2 + $0xae8] sm:$0xff]  ;;  %v427_v33 = vld [vmem:[#allocation2 + $0xae0] sm:$0xff] }
  0x85   :  { %706 = vmatpush2.msra.mxu1 %v273_v37  ;;  %751 = vmatpush1.msra.mxu0 %v401_v38  ;;  %v164_v34 = vld [vmem:[#allocation2 + $0x2a8] sm:$0xff]  ;;  %v163_v36 = vld [vmem:[#allocation2 + $0x2a0] sm:$0xff] }
  0x86   :  { %707 = vmatprep.subr.mxu1 %v266_v39  ;;  %752 = vmatprep.subr.mxu0 %v394_v40  ;;  %v420_v35 = vld [vmem:[#allocation2 + $0xaa8] sm:$0xff]  ;;  %v419_v37 = vld [vmem:[#allocation2 + $0xaa0] sm:$0xff] }
  0x87   :  { %708 = vmatpush2.msra.mxu1 %v265_v41  ;;  %753 = vmatpush1.msra.mxu0 %v393_v42  ;;  %v156_v38 = vld [vmem:[#allocation2 + $0x268] sm:$0xff]  ;;  %v155_v40 = vld [vmem:[#allocation2 + $0x260] sm:$0xff] }
  0x88   :  { %709 = vmatprep.subr.mxu1 %v258_v43  ;;  %754 = vmatprep.subr.mxu0 %v386_v44  ;;  %v412_v39 = vld [vmem:[#allocation2 + $0xa68] sm:$0xff]  ;;  %v411_v41 = vld [vmem:[#allocation2 + $0xa60] sm:$0xff] }
  0x89   :  { %710 = vmatpush2.msra.mxu1 %v257_v45  ;;  %755 = vmatpush1.msra.mxu0 %v385_v46  ;;  %v148_v42 = vld [vmem:[#allocation2 + $0x228] sm:$0xff]  ;;  %v147_v44 = vld [vmem:[#allocation2 + $0x220] sm:$0xff] }
  0x8a   :  { %711 = vmatprep.subr.mxu1 %v250_v47  ;;  %756 = vmatprep.subr.mxu0 %v378_v48  ;;  %v404_v43 = vld [vmem:[#allocation2 + $0xa28] sm:$0xff]  ;;  %v403_v45 = vld [vmem:[#allocation2 + $0xa20] sm:$0xff] }
  0x8b   :  { %712 = vmatpush2.msra.mxu1 %v249_v49  ;;  %757 = vmatpush1.msra.mxu0 %v377_v50  ;;  %v140_v46 = vld [vmem:[#allocation2 + $0x1e8] sm:$0xff]  ;;  %v139_v48 = vld [vmem:[#allocation2 + $0x1e0] sm:$0xff] }
  0x8c   :  { %713 = vmatprep.subr.mxu1 %v242_v51  ;;  %758 = vmatprep.subr.mxu0 %v370_v52  ;;  %v396_v47 = vld [vmem:[#allocation2 + $0x9e8] sm:$0xff]  ;;  %v395_v49 = vld [vmem:[#allocation2 + $0x9e0] sm:$0xff] }
  0x8d   :  { %714 = vmatpush2.msra.mxu1 %v241_v53  ;;  %759 = vmatpush1.msra.mxu0 %v369_v54  ;;  %v132_v50 = vld [vmem:[#allocation2 + $0x1a8] sm:$0xff]  ;;  %v131_v52 = vld [vmem:[#allocation2 + $0x1a0] sm:$0xff] }
  0x8e   :  { %715 = vmatprep.subr.mxu1 %v234_v55  ;;  %760 = vmatprep.subr.mxu0 %v362_v56  ;;  %v388_v51 = vld [vmem:[#allocation2 + $0x9a8] sm:$0xff]  ;;  %v387_v53 = vld [vmem:[#allocation2 + $0x9a0] sm:$0xff] }
  0x8f   :  { %716 = vmatpush2.msra.mxu1 %v233_v57  ;;  %761 = vmatpush1.msra.mxu0 %v361_v58  ;;  %v124_v54 = vld [vmem:[#allocation2 + $0x168] sm:$0xff]  ;;  %v123_v56 = vld [vmem:[#allocation2 + $0x160] sm:$0xff] }
  0x90   :  { %575 = vmatprep.mubr.f32.mxu0 %v5085_v59  ;;  %717 = vmatprep.subr.mxu1 %v226_v60  ;;  %v380_v55 = vld [vmem:[#allocation2 + $0x968] sm:$0xff]  ;;  %v379_v57 = vld [vmem:[#allocation2 + $0x960] sm:$0xff] }
  0x91   :  { %762 = vmatprep.subr.mxu0 %v354_v61  ;;  %576 = vmatmul.mubr.f32.gmra.mxu0 %v5090_v62  ;;  %v116_v58 = vld [vmem:[#allocation2 + $0x128] sm:$0xff]  ;;  %v115_v61 = vld [vmem:[#allocation2 + $0x120] sm:$0xff] }
  0x92   :  { %652 = vmatprep.mubr.f32.mxu1 %v7236_v0  ;;  %718 = vmatpush2.msra.mxu1 %v225_v63  ;;  %v372_v60 = vld [vmem:[#allocation2 + $0x928] sm:$0xff]  ;;  %v371_v63 = vld [vmem:[#allocation2 + $0x920] sm:$0xff] }
  0x93   :  { %763 = vmatpush1.msra.mxu0 %v353_v1  ;;  %653 = vmatmul.mubr.f32.gmra.mxu1 %v5096_v2  ;;  %v108_v1 = vld [vmem:[#allocation2 + $0xe8] sm:$0xff] }
  0x94   :  { %719 = vmatprep.subr.mxu1 %v218_v4  ;;  %764 = vmatprep.subr.mxu0 %v346_v7  ;;  %v364_v4 = vld [vmem:[#allocation2 + $0x8e8] sm:$0xff]  ;;  %v107_v7 = vld [vmem:[#allocation2 + $0xe0] sm:$0xff] }
  0x95   :  { %720 = vmatpush2.msra.mxu1 %v217_v8  ;;  %765 = vmatpush1.msra.mxu0 %v345_v9  ;;  %v363_v8 = vld [vmem:[#allocation2 + $0x8e0] sm:$0xff]  ;;  %v100_v9 = vld [vmem:[#allocation2 + $0xa8] sm:$0xff] }
  0x96   :  { %721 = vmatprep.subr.mxu1 %v210_v10  ;;  %766 = vmatprep.subr.mxu0 %v338_v11  ;;  %v356_v10 = vld [vmem:[#allocation2 + $0x8a8] sm:$0xff]  ;;  %v99_v11 = vld [vmem:[#allocation2 + $0xa0] sm:$0xff] }
  0x97   :  { %722 = vmatpush2.msra.mxu1 %v209_v12  ;;  %723 = vmatprep.mubr.f32.mxu1 %v5073_v3  ;;  %v355_v12 = vld [vmem:[#allocation2 + $0x8a0] sm:$0xff] }
  0x98   :  { %767 = vmatpush1.msra.mxu0 %v337_v13  ;;  %800 = vmatprep.mubr.f32.mxu0 %v7236_v0  ;;  %v92_v13 = vld [vmem:[#allocation2 + $0x68] sm:$0xff] }
  0x99   :  { %724 = vmatmul.mubr.f32.vlgmr.msra.gmra.mxu1 %v5078_v6  ;;  %801 = vmatmul.mubr.f32.vlgmr.msra.gmra.mxu0 %v5067_v5 }
  0x9a   :  { %813 = vmatprep.subr.mxu0 %v204_v14  ;;  %890 = vmatprep.subr.mxu1 %v460_v15  ;;  %v348_v14 = vld [vmem:[#allocation2 + $0x868] sm:$0xff]  ;;  %v91_v15 = vld [vmem:[#allocation2 + $0x60] sm:$0xff] }
  0x9b   :  { %814 = vmatpush1.msra.mxu0 %v203_v16  ;;  %891 = vmatpush1.msra.mxu1 %v459_v17  ;;  %v347_v16 = vld [vmem:[#allocation2 + $0x860] sm:$0xff]  ;;  %v84_v17 = vld [vmem:[#allocation2 + $0x28] sm:$0xff] }
  0x9c   :  { %815 = vmatprep.subr.mxu0 %v196_v18  ;;  %892 = vmatprep.subr.mxu1 %v452_v19  ;;  %v340_v18 = vld [vmem:[#allocation2 + $0x828] sm:$0xff]  ;;  %v83_v19 = vld [vmem:[#allocation2 + $0x20] sm:$0xff] }
  0x9d   :  { %816 = vmatpush1.msra.mxu0 %v195_v20  ;;  %893 = vmatpush1.msra.mxu1 %v451_v21  ;;  %v339_v20 = vld [vmem:[#allocation2 + $0x820] sm:$0xff]  ;;  %v332_v21 = vld [vmem:[#allocation2 + $0x7e8] sm:$0xff] }
  0x9e   :  { %817 = vmatprep.subr.mxu0 %v188_v22  ;;  %894 = vmatprep.subr.mxu1 %v444_v23  ;;  %v206_v22 = vld [vmem:[#allocation2 + $0x3f8] sm:$0xff]  ;;  %v331_v23 = vld [vmem:[#allocation2 + $0x7e0] sm:$0xff] }
  0x9f   :  { %818 = vmatpush1.msra.mxu0 %v187_v24  ;;  %895 = vmatpush1.msra.mxu1 %v443_v25  ;;  %v205_v24 = vld [vmem:[#allocation2 + $0x3f0] sm:$0xff]  ;;  %v324_v25 = vld [vmem:[#allocation2 + $0x7a8] sm:$0xff] }
  0xa0   :  { %819 = vmatprep.subr.mxu0 %v180_v26  ;;  %896 = vmatprep.subr.mxu1 %v436_v27  ;;  %v198_v26 = vld [vmem:[#allocation2 + $0x3b8] sm:$0xff]  ;;  %v323_v27 = vld [vmem:[#allocation2 + $0x7a0] sm:$0xff] }
  0xa1   :  { %820 = vmatpush1.msra.mxu0 %v179_v28  ;;  %897 = vmatpush1.msra.mxu1 %v435_v29  ;;  %v197_v28 = vld [vmem:[#allocation2 + $0x3b0] sm:$0xff]  ;;  %v316_v29 = vld [vmem:[#allocation2 + $0x768] sm:$0xff] }
  0xa2   :  { %821 = vmatprep.subr.mxu0 %v172_v30  ;;  %898 = vmatprep.subr.mxu1 %v428_v31  ;;  %v190_v30 = vld [vmem:[#allocation2 + $0x378] sm:$0xff]  ;;  %v315_v31 = vld [vmem:[#allocation2 + $0x760] sm:$0xff] }
  0xa3   :  { %822 = vmatpush1.msra.mxu0 %v171_v32  ;;  %899 = vmatpush1.msra.mxu1 %v427_v33  ;;  %v189_v32 = vld [vmem:[#allocation2 + $0x370] sm:$0xff]  ;;  %v308_v33 = vld [vmem:[#allocation2 + $0x728] sm:$0xff] }
  0xa4   :  { %823 = vmatprep.subr.mxu0 %v164_v34  ;;  %900 = vmatprep.subr.mxu1 %v420_v35  ;;  %v182_v34 = vld [vmem:[#allocation2 + $0x338] sm:$0xff]  ;;  %v307_v35 = vld [vmem:[#allocation2 + $0x720] sm:$0xff] }
  0xa5   :  { %824 = vmatpush1.msra.mxu0 %v163_v36  ;;  %901 = vmatpush1.msra.mxu1 %v419_v37  ;;  %v181_v36 = vld [vmem:[#allocation2 + $0x330] sm:$0xff]  ;;  %v300_v37 = vld [vmem:[#allocation2 + $0x6e8] sm:$0xff] }
  0xa6   :  { %825 = vmatprep.subr.mxu0 %v156_v38  ;;  %902 = vmatprep.subr.mxu1 %v412_v39  ;;  %v299_v38 = vld [vmem:[#allocation2 + $0x6e0] sm:$0xff]  ;;  %v173_v39 = vld [vmem:[#allocation2 + $0x2f0] sm:$0xff] }
  0xa7   :  { %826 = vmatpush1.msra.mxu0 %v155_v40  ;;  %903 = vmatpush1.msra.mxu1 %v411_v41  ;;  %v292_v40 = vld [vmem:[#allocation2 + $0x6a8] sm:$0xff]  ;;  %v166_v41 = vld [vmem:[#allocation2 + $0x2b8] sm:$0xff] }
  0xa8   :  { %827 = vmatprep.subr.mxu0 %v148_v42  ;;  %904 = vmatprep.subr.mxu1 %v404_v43  ;;  %v291_v42 = vld [vmem:[#allocation2 + $0x6a0] sm:$0xff]  ;;  %v165_v43 = vld [vmem:[#allocation2 + $0x2b0] sm:$0xff] }
  0xa9   :  { %828 = vmatpush1.msra.mxu0 %v147_v44  ;;  %905 = vmatpush1.msra.mxu1 %v403_v45  ;;  %v284_v44 = vld [vmem:[#allocation2 + $0x668] sm:$0xff]  ;;  %v158_v45 = vld [vmem:[#allocation2 + $0x278] sm:$0xff] }
  0xaa   :  { %829 = vmatprep.subr.mxu0 %v140_v46  ;;  %906 = vmatprep.subr.mxu1 %v396_v47  ;;  %v283_v46 = vld [vmem:[#allocation2 + $0x660] sm:$0xff]  ;;  %v157_v47 = vld [vmem:[#allocation2 + $0x270] sm:$0xff] }
  0xab   :  { %830 = vmatpush1.msra.mxu0 %v139_v48  ;;  %907 = vmatpush1.msra.mxu1 %v395_v49  ;;  %v276_v48 = vld [vmem:[#allocation2 + $0x628] sm:$0xff]  ;;  %v150_v49 = vld [vmem:[#allocation2 + $0x238] sm:$0xff] }
  0xac   :  { %831 = vmatprep.subr.mxu0 %v132_v50  ;;  %908 = vmatprep.subr.mxu1 %v388_v51  ;;  %v149_v50 = vld [vmem:[#allocation2 + $0x230] sm:$0xff]  ;;  %v275_v51 = vld [vmem:[#allocation2 + $0x620] sm:$0xff] }
  0xad   :  { %832 = vmatpush1.msra.mxu0 %v131_v52  ;;  %909 = vmatpush1.msra.mxu1 %v387_v53  ;;  %v142_v52 = vld [vmem:[#allocation2 + $0x1f8] sm:$0xff]  ;;  %v268_v53 = vld [vmem:[#allocation2 + $0x5e8] sm:$0xff] }
  0xae   :  { %833 = vmatprep.subr.mxu0 %v124_v54  ;;  %910 = vmatprep.subr.mxu1 %v380_v55  ;;  %v141_v54 = vld [vmem:[#allocation2 + $0x1f0] sm:$0xff]  ;;  %v267_v55 = vld [vmem:[#allocation2 + $0x5e0] sm:$0xff] }
  0xaf   :  { %834 = vmatpush1.msra.mxu0 %v123_v56  ;;  %911 = vmatpush1.msra.mxu1 %v379_v57  ;;  %v134_v56 = vld [vmem:[#allocation2 + $0x1b8] sm:$0xff]  ;;  %v260_v57 = vld [vmem:[#allocation2 + $0x5a8] sm:$0xff] }
  0xb0   :  { %835 = vmatprep.subr.mxu0 %v116_v58  ;;  %912 = vmatprep.subr.mxu1 %v372_v60  ;;  %v133_v58 = vld [vmem:[#allocation2 + $0x1b0] sm:$0xff]  ;;  %v259_v60 = vld [vmem:[#allocation2 + $0x5a0] sm:$0xff] }
  0xb1   :  { %836 = vmatpush1.msra.mxu0 %v115_v61  ;;  %913 = vmatpush1.msra.mxu1 %v371_v63  ;;  %v126_v61 = vld [vmem:[#allocation2 + $0x178] sm:$0xff]  ;;  %v252_v63 = vld [vmem:[#allocation2 + $0x568] sm:$0xff] }
  0xb2   :  { %837 = vmatprep.subr.mxu0 %v108_v1  ;;  %914 = vmatprep.subr.mxu1 %v364_v4  ;;  %v125_v1 = vld [vmem:[#allocation2 + $0x170] sm:$0xff]  ;;  %v251_v4 = vld [vmem:[#allocation2 + $0x560] sm:$0xff] }
  0xb3   :  { %838 = vmatpush1.msra.mxu0 %v107_v7  ;;  %915 = vmatpush1.msra.mxu1 %v363_v8  ;;  %v118_v7 = vld [vmem:[#allocation2 + $0x138] sm:$0xff]  ;;  %v244_v8 = vld [vmem:[#allocation2 + $0x528] sm:$0xff] }
  0xb4   :  { %839 = vmatprep.subr.mxu0 %v100_v9  ;;  %916 = vmatprep.subr.mxu1 %v356_v10  ;;  %v117_v9 = vld [vmem:[#allocation2 + $0x130] sm:$0xff]  ;;  %v243_v10 = vld [vmem:[#allocation2 + $0x520] sm:$0xff] }
  0xb5   :  { %840 = vmatpush1.msra.mxu0 %v99_v11  ;;  %917 = vmatpush1.msra.mxu1 %v355_v12  ;;  %v110_v11 = vld [vmem:[#allocation2 + $0xf8] sm:$0xff]  ;;  %v236_v12 = vld [vmem:[#allocation2 + $0x4e8] sm:$0xff] }
  0xb6   :  { %729 = vmatprep.mubr.f32.mxu1 %v5085_v59  ;;  %841 = vmatprep.subr.mxu0 %v92_v13  ;;  %v109_v13 = vld [vmem:[#allocation2 + $0xf0] sm:$0xff] }
  0xb7   :  { %918 = vmatprep.subr.mxu1 %v348_v14  ;;  %730 = vmatmul.mubr.f32.gmra.mxu1 %v5090_v62  ;;  %v235_v14 = vld [vmem:[#allocation2 + $0x4e0] sm:$0xff] }
  0xb8   :  { %842 = vmatpush1.msra.mxu0 %v91_v15  ;;  %919 = vmatpush1.msra.mxu1 %v347_v16  ;;  %v102_v15 = vld [vmem:[#allocation2 + $0xb8] sm:$0xff]  ;;  %v228_v16 = vld [vmem:[#allocation2 + $0x4a8] sm:$0xff] }
  0xb9   :  { %843 = vmatprep.subr.mxu0 %v84_v17  ;;  %920 = vmatprep.subr.mxu1 %v340_v18  ;;  %v101_v17 = vld [vmem:[#allocation2 + $0xb0] sm:$0xff]  ;;  %v227_v18 = vld [vmem:[#allocation2 + $0x4a0] sm:$0xff] }
  0xba   :  { %844 = vmatpush1.msra.mxu0 %v83_v19  ;;  %921 = vmatpush1.msra.mxu1 %v339_v20  ;;  %v94_v19 = vld [vmem:[#allocation2 + $0x78] sm:$0xff]  ;;  %v220_v20 = vld [vmem:[#allocation2 + $0x468] sm:$0xff] }
  0xbb   :  { %845 = vmatprep.subr.mxu0 %v332_v21  ;;  %954 = vmatprep.mubr.f32.mxu1 %v7236_v0  ;;  %v93_v21 = vld [vmem:[#allocation2 + $0x70] sm:$0xff] }
  0xbc   :  { %967 = vmatprep.subr.mxu1 %v206_v22  ;;  %846 = vmatpush2.msra.mxu0 %v331_v23  ;;  %v219_v22 = vld [vmem:[#allocation2 + $0x460] sm:$0xff]  ;;  %v86_v23 = vld [vmem:[#allocation2 + $0x38] sm:$0xff] }
  0xbd   :  { %955 = vmatmul.mubr.f32.vlgmr.msra.gmra.mxu1 %v5067_v5  ;;  %847 = vmatprep.subr.mxu0 %v324_v25  ;;  %v174_v5 = vld [vmem:[#allocation2 + $0x2f8] sm:$0xff]  ;;  %v211_v25 = vld [vmem:[#allocation2 + $0x420] sm:$0xff] }
  0xbe   :  { %968 = vmatpush1.msra.mxu1 %v205_v24  ;;  %848 = vmatpush2.msra.mxu0 %v323_v27  ;;  %v212_v24 = vld [vmem:[#allocation2 + $0x428] sm:$0xff]  ;;  %v334_v27 = vld [vmem:[#allocation2 + $0x7f8] sm:$0xff] }
  0xbf   :  { %969 = vmatprep.subr.mxu1 %v198_v26  ;;  %849 = vmatprep.subr.mxu0 %v316_v29  ;;  %v85_v26 = vld [vmem:[#allocation2 + $0x30] sm:$0xff] }
  0xc0   :  { %970 = vmatpush1.msra.mxu1 %v197_v28  ;;  %850 = vmatpush2.msra.mxu0 %v315_v31  ;;  %v462_v28 = vld [vmem:[#allocation2 + $0xbf8] sm:$0xff]  ;;  %v333_v29 = vld [vmem:[#allocation2 + $0x7f0] sm:$0xff] }
  0xc1   :  { %971 = vmatprep.subr.mxu1 %v190_v30  ;;  %851 = vmatprep.subr.mxu0 %v308_v33  ;;  %v461_v30 = vld [vmem:[#allocation2 + $0xbf0] sm:$0xff]  ;;  %v326_v31 = vld [vmem:[#allocation2 + $0x7b8] sm:$0xff] }
  0xc2   :  { %972 = vmatpush1.msra.mxu1 %v189_v32  ;;  %852 = vmatpush2.msra.mxu0 %v307_v35  ;;  %v454_v32 = vld [vmem:[#allocation2 + $0xbb8] sm:$0xff]  ;;  %v325_v33 = vld [vmem:[#allocation2 + $0x7b0] sm:$0xff] }
  0xc3   :  { %973 = vmatprep.subr.mxu1 %v182_v34  ;;  %853 = vmatprep.subr.mxu0 %v300_v37  ;;  %v453_v34 = vld [vmem:[#allocation2 + $0xbb0] sm:$0xff]  ;;  %v318_v35 = vld [vmem:[#allocation2 + $0x778] sm:$0xff] }
  0xc4   :  { %974 = vmatpush1.msra.mxu1 %v181_v36  ;;  %854 = vmatpush2.msra.mxu0 %v299_v38  ;;  %v446_v36 = vld [vmem:[#allocation2 + $0xb78] sm:$0xff]  ;;  %v317_v37 = vld [vmem:[#allocation2 + $0x770] sm:$0xff] }
  0xc5   :  { %975 = vmatprep.subr.mxu1 %v174_v5  ;;  %855 = vmatprep.subr.mxu0 %v292_v40  ;;  %v310_v5 = vld [vmem:[#allocation2 + $0x738] sm:$0xff] }
  0xc6   :  { %976 = vmatpush1.msra.mxu1 %v173_v39  ;;  %856 = vmatpush2.msra.mxu0 %v291_v42  ;;  %v438_v38 = vld [vmem:[#allocation2 + $0xb38] sm:$0xff]  ;;  %v309_v39 = vld [vmem:[#allocation2 + $0x730] sm:$0xff] }
  0xc7   :  { %977 = vmatprep.subr.mxu1 %v166_v41  ;;  %857 = vmatprep.subr.mxu0 %v284_v44  ;;  %v302_v40 = vld [vmem:[#allocation2 + $0x6f8] sm:$0xff]  ;;  %v301_v42 = vld [vmem:[#allocation2 + $0x6f0] sm:$0xff] }
  0xc8   :  { %978 = vmatpush1.msra.mxu1 %v165_v43  ;;  %858 = vmatpush2.msra.mxu0 %v283_v46  ;;  %v430_v41 = vld [vmem:[#allocation2 + $0xaf8] sm:$0xff]  ;;  %v429_v43 = vld [vmem:[#allocation2 + $0xaf0] sm:$0xff] }
  0xc9   :  { %979 = vmatprep.subr.mxu1 %v158_v45  ;;  %806 = vmatprep.mubr.f32.mxu0 %v7236_v0  ;;  %v294_v44 = vld [vmem:[#allocation2 + $0x6b8] sm:$0xff]  ;;  %v293_v46 = vld [vmem:[#allocation2 + $0x6b0] sm:$0xff] }
  0xca   :  { %980 = vmatpush1.msra.mxu1 %v157_v47  ;;  %859 = vmatprep.subr.mxu0 %v276_v48  ;;  %v422_v45 = vld [vmem:[#allocation2 + $0xab8] sm:$0xff]  ;;  %v421_v47 = vld [vmem:[#allocation2 + $0xab0] sm:$0xff] }
  0xcb   :  { %981 = vmatprep.subr.mxu1 %v150_v49  ;;  %807 = vmatmul.mubr.f32.gmra.mxu0 %v5096_v2  ;;  %v286_v48 = vld [vmem:[#allocation2 + $0x678] sm:$0xff] }
  0xcc   :  { %982 = vmatpush1.msra.mxu1 %v149_v50  ;;  %860 = vmatpush2.msra.mxu0 %v275_v51  ;;  %v414_v49 = vld [vmem:[#allocation2 + $0xa78] sm:$0xff]  ;;  %v285_v50 = vld [vmem:[#allocation2 + $0x670] sm:$0xff] }
  0xcd   :  { %983 = vmatprep.subr.mxu1 %v142_v52  ;;  %861 = vmatprep.subr.mxu0 %v268_v53  ;;  %v413_v51 = vld [vmem:[#allocation2 + $0xa70] sm:$0xff]  ;;  %v278_v52 = vld [vmem:[#allocation2 + $0x638] sm:$0xff] }
  0xce   :  { %984 = vmatpush1.msra.mxu1 %v141_v54  ;;  %862 = vmatpush2.msra.mxu0 %v267_v55  ;;  %v406_v53 = vld [vmem:[#allocation2 + $0xa38] sm:$0xff]  ;;  %v277_v54 = vld [vmem:[#allocation2 + $0x630] sm:$0xff] }
  0xcf   :  { %985 = vmatprep.subr.mxu1 %v134_v56  ;;  %863 = vmatprep.subr.mxu0 %v260_v57  ;;  %v405_v55 = vld [vmem:[#allocation2 + $0xa30] sm:$0xff]  ;;  %v270_v56 = vld [vmem:[#allocation2 + $0x5f8] sm:$0xff] }
  0xd0   :  { %986 = vmatpush1.msra.mxu1 %v133_v58  ;;  %864 = vmatpush2.msra.mxu0 %v259_v60  ;;  %v398_v57 = vld [vmem:[#allocation2 + $0x9f8] sm:$0xff]  ;;  %v269_v58 = vld [vmem:[#allocation2 + $0x5f0] sm:$0xff] }
  0xd1   :  { %987 = vmatprep.subr.mxu1 %v126_v61  ;;  %865 = vmatprep.subr.mxu0 %v252_v63  ;;  %v397_v60 = vld [vmem:[#allocation2 + $0x9f0] sm:$0xff]  ;;  %v262_v61 = vld [vmem:[#allocation2 + $0x5b8] sm:$0xff] }
  0xd2   :  { %988 = vmatpush1.msra.mxu1 %v125_v1  ;;  %866 = vmatpush2.msra.mxu0 %v251_v4  ;;  %v390_v63 = vld [vmem:[#allocation2 + $0x9b8] sm:$0xff]  ;;  %v261_v1 = vld [vmem:[#allocation2 + $0x5b0] sm:$0xff] }
  0xd3   :  { %989 = vmatprep.subr.mxu1 %v118_v7  ;;  %867 = vmatprep.subr.mxu0 %v244_v8  ;;  %v389_v4 = vld [vmem:[#allocation2 + $0x9b0] sm:$0xff]  ;;  %v254_v7 = vld [vmem:[#allocation2 + $0x578] sm:$0xff] }
  0xd4   :  { %990 = vmatpush1.msra.mxu1 %v117_v9  ;;  %868 = vmatpush2.msra.mxu0 %v243_v10  ;;  %v382_v8 = vld [vmem:[#allocation2 + $0x978] sm:$0xff]  ;;  %v253_v9 = vld [vmem:[#allocation2 + $0x570] sm:$0xff] }
  0xd5   :  { %991 = vmatprep.subr.mxu1 %v110_v11  ;;  %869 = vmatprep.subr.mxu0 %v236_v12  ;;  %v381_v10 = vld [vmem:[#allocation2 + $0x970] sm:$0xff]  ;;  %v246_v11 = vld [vmem:[#allocation2 + $0x538] sm:$0xff] }
  0xd6   :  { %992 = vmatpush1.msra.mxu1 %v109_v13  ;;  %870 = vmatpush2.msra.mxu0 %v235_v14  ;;  %v374_v12 = vld [vmem:[#allocation2 + $0x938] sm:$0xff]  ;;  %v245_v13 = vld [vmem:[#allocation2 + $0x530] sm:$0xff] }
  0xd7   :  { %993 = vmatprep.subr.mxu1 %v102_v15  ;;  %871 = vmatprep.subr.mxu0 %v228_v16  ;;  %v373_v14 = vld [vmem:[#allocation2 + $0x930] sm:$0xff]  ;;  %v238_v15 = vld [vmem:[#allocation2 + $0x4f8] sm:$0xff] }
  0xd8   :  { %994 = vmatpush1.msra.mxu1 %v101_v17  ;;  %872 = vmatpush2.msra.mxu0 %v227_v18  ;;  %v366_v16 = vld [vmem:[#allocation2 + $0x8f8] sm:$0xff]  ;;  %v237_v17 = vld [vmem:[#allocation2 + $0x4f0] sm:$0xff] }
  0xd9   :  { %995 = vmatprep.subr.mxu1 %v94_v19  ;;  %873 = vmatprep.subr.mxu0 %v220_v20  ;;  %v365_v18 = vld [vmem:[#allocation2 + $0x8f0] sm:$0xff]  ;;  %v230_v19 = vld [vmem:[#allocation2 + $0x4b8] sm:$0xff] }
  0xda   :  { %996 = vmatpush1.msra.mxu1 %v93_v21  ;;  %874 = vmatpush2.msra.mxu0 %v219_v22  ;;  %v358_v20 = vld [vmem:[#allocation2 + $0x8b8] sm:$0xff]  ;;  %v229_v21 = vld [vmem:[#allocation2 + $0x4b0] sm:$0xff] }
  0xdb   :  { %997 = vmatprep.subr.mxu1 %v86_v23  ;;  %875 = vmatprep.subr.mxu0 %v212_v24  ;;  %v357_v22 = vld [vmem:[#allocation2 + $0x8b0] sm:$0xff]  ;;  %v222_v23 = vld [vmem:[#allocation2 + $0x478] sm:$0xff] }
  0xdc   :  { %877 = vmatprep.mubr.f32.mxu0 %v5073_v3  ;;  %876 = vmatpush2.msra.mxu0 %v211_v25  ;;  %v445_v3 = vld [vmem:[#allocation2 + $0xb70] sm:$0xff]  ;;  %v350_v24 = vld [vmem:[#allocation2 + $0x878] sm:$0xff] }
  0xdd   :  { %998 = vmatpush1.msra.mxu1 %v85_v26  ;;  %878 = vmatmul.mubr.f32.vlgmr.msra.gmra.mxu0 %v5078_v6  ;;  %v437_v6 = vld [vmem:[#allocation2 + $0xb30] sm:$0xff] }
  0xde   :  { %999 = vmatprep.subr.mxu1 %v334_v27  ;;  %1044 = vmatprep.subr.mxu0 %v462_v28  ;;  %v221_v25 = vld [vmem:[#allocation2 + $0x470] sm:$0xff]  ;;  %v214_v27 = vld [vmem:[#allocation2 + $0x438] sm:$0xff] }
  0xdf   :  { %1000 = vmatpush2.msra.mxu1 %v333_v29  ;;  %1045 = vmatpush1.msra.mxu0 %v461_v30  ;;  %v349_v26 = vld [vmem:[#allocation2 + $0x870] sm:$0xff]  ;;  %v342_v28 = vld [vmem:[#allocation2 + $0x838] sm:$0xff]  ;;  %v4663_v30 = vld [vmem:[%s7230_s0 + $0x8] sm:$0xff] }
  0xe0   :  { %1001 = vmatprep.subr.mxu1 %v326_v31  ;;  %1046 = vmatprep.subr.mxu0 %v454_v32  ;;  %v341_v29 = vld [vmem:[#allocation2 + $0x830] sm:$0xff]  ;;  %v5122_v31 = vld [vmem:[#allocation6 + $0x1f8] sm:$0xff] }
  0xe1   :  { %1002 = vmatpush2.msra.mxu1 %v325_v33  ;;  %1047 = vmatpush1.msra.mxu0 %v453_v34  ;;  %v4664_v32 = vld [vmem:[%s7230_s0] sm:$0xff]  ;;  %v5130_v33 = vld [vmem:[#allocation6 + $0x1f0] sm:$0xff]  ;;  %v5132_v34 = vld [vmem:[#allocation6 + $0x1c8] sm:$0xff] }
  0xe2   :  { %1003 = vmatprep.subr.mxu1 %v318_v35  ;;  %1048 = vmatprep.subr.mxu0 %v446_v36  ;;  %v4665_v35 = vld [vmem:[%s7230_s0 + $0x10] sm:$0xff]  ;;  %v5138_v36 = vld [vmem:[#allocation6 + $0x1d8] sm:$0xff] }
  0xe3   :  { %1004 = vmatpush2.msra.mxu1 %v317_v37  ;;  %1049 = vmatpush1.msra.mxu0 %v445_v3  ;;  %v5140_v37 = vld [vmem:[#allocation6 + $0x1c0] sm:$0xff]  ;;  %v5144_v3 = vld [vmem:[#allocation6 + $0x1d0] sm:$0xff] }
  0xe4   :  { %1005 = vmatprep.subr.mxu1 %v310_v5  ;;  %1050 = vmatprep.subr.mxu0 %v438_v38  ;;  %v5146_v5 = vld [vmem:[#allocation6 + $0x1a8] sm:$0xff]  ;;  %v5150_v38 = vld [vmem:[#allocation6 + $0x1b8] sm:$0xff] }
  0xe5   :  { %1006 = vmatpush2.msra.mxu1 %v309_v39  ;;  %1051 = vmatpush1.msra.mxu0 %v437_v6  ;;  %v5152_v39 = vld [vmem:[#allocation6 + $0x1a0] sm:$0xff]  ;;  %v5156_v6 = vld [vmem:[#allocation6 + $0x1b0] sm:$0xff] }
  0xe6   :  { %1007 = vmatprep.subr.mxu1 %v302_v40  ;;  %1052 = vmatprep.subr.mxu0 %v430_v41  ;;  %v5158_v40 = vld [vmem:[#allocation6 + $0x188] sm:$0xff]  ;;  %v5162_v41 = vld [vmem:[#allocation6 + $0x198] sm:$0xff] }
  0xe7   :  { %1008 = vmatpush2.msra.mxu1 %v301_v42  ;;  %1053 = vmatpush1.msra.mxu0 %v429_v43  ;;  %v5164_v42 = vld [vmem:[#allocation6 + $0x180] sm:$0xff]  ;;  %v5168_v43 = vld [vmem:[#allocation6 + $0x190] sm:$0xff] }
  0xe8   :  { %1009 = vmatprep.subr.mxu1 %v294_v44  ;;  %1054 = vmatprep.subr.mxu0 %v422_v45  ;;  %v5170_v44 = vld [vmem:[#allocation6 + $0x168] sm:$0xff]  ;;  %v5174_v45 = vld [vmem:[#allocation6 + $0x178] sm:$0xff] }
  0xe9   :  { %1010 = vmatpush2.msra.mxu1 %v293_v46  ;;  %1055 = vmatpush1.msra.mxu0 %v421_v47  ;;  %v5176_v46 = vld [vmem:[#allocation6 + $0x160] sm:$0xff]  ;;  %v5180_v47 = vld [vmem:[#allocation6 + $0x170] sm:$0xff] }
  0xea   :  { %1011 = vmatprep.subr.mxu1 %v286_v48  ;;  %1056 = vmatprep.subr.mxu0 %v414_v49  ;;  %v5182_v48 = vld [vmem:[#allocation6 + $0x148] sm:$0xff]  ;;  %v5186_v49 = vld [vmem:[#allocation6 + $0x158] sm:$0xff] }
  0xeb   :  { %1012 = vmatpush2.msra.mxu1 %v285_v50  ;;  %1057 = vmatpush1.msra.mxu0 %v413_v51  ;;  %v5188_v50 = vld [vmem:[#allocation6 + $0x140] sm:$0xff]  ;;  %v5192_v51 = vld [vmem:[#allocation6 + $0x150] sm:$0xff] }
  0xec   :  { %1013 = vmatprep.subr.mxu1 %v278_v52  ;;  %1058 = vmatprep.subr.mxu0 %v406_v53  ;;  %v5194_v52 = vld [vmem:[#allocation6 + $0x128] sm:$0xff]  ;;  %v5198_v53 = vld [vmem:[#allocation6 + $0x138] sm:$0xff] }
  0xed   :  { %1014 = vmatpush2.msra.mxu1 %v277_v54  ;;  %1059 = vmatpush1.msra.mxu0 %v405_v55  ;;  %v5200_v54 = vld [vmem:[#allocation6 + $0x120] sm:$0xff]  ;;  %v5204_v55 = vld [vmem:[#allocation6 + $0x130] sm:$0xff] }
  0xee   :  { %1015 = vmatprep.subr.mxu1 %v270_v56  ;;  %1060 = vmatprep.subr.mxu0 %v398_v57  ;;  %v5206_v56 = vld [vmem:[#allocation6 + $0x108] sm:$0xff]  ;;  %v5210_v57 = vld [vmem:[#allocation6 + $0x118] sm:$0xff] }
  0xef   :  { %1016 = vmatpush2.msra.mxu1 %v269_v58  ;;  %1061 = vmatpush1.msra.mxu0 %v397_v60  ;;  %v5212_v58 = vld [vmem:[#allocation6 + $0x100] sm:$0xff]  ;;  %v5216_v60 = vld [vmem:[#allocation6 + $0x110] sm:$0xff] }
  0xf0   :  { %1017 = vmatprep.subr.mxu1 %v262_v61  ;;  %1062 = vmatprep.subr.mxu0 %v390_v63  ;;  %v5218_v61 = vld [vmem:[#allocation6 + $0xe8] sm:$0xff]  ;;  %v5222_v63 = vld [vmem:[#allocation6 + $0xf8] sm:$0xff] }
  0xf1   :  { %1018 = vmatpush2.msra.mxu1 %v261_v1  ;;  %1063 = vmatpush1.msra.mxu0 %v389_v4  ;;  %v5224_v1 = vld [vmem:[#allocation6 + $0xe0] sm:$0xff]  ;;  %v5228_v4 = vld [vmem:[#allocation6 + $0xf0] sm:$0xff] }
  0xf2   :  { %1019 = vmatprep.subr.mxu1 %v254_v7  ;;  %1064 = vmatprep.subr.mxu0 %v382_v8  ;;  %v5230_v7 = vld [vmem:[#allocation6 + $0xc8] sm:$0xff]  ;;  %v5234_v8 = vld [vmem:[#allocation6 + $0xd8] sm:$0xff] }
  0xf3   :  { %1020 = vmatpush2.msra.mxu1 %v253_v9  ;;  %1065 = vmatpush1.msra.mxu0 %v381_v10  ;;  %v5236_v9 = vld [vmem:[#allocation6 + $0xc0] sm:$0xff]  ;;  %v5240_v10 = vld [vmem:[#allocation6 + $0xd0] sm:$0xff] }
  0xf4   :  { %1021 = vmatprep.subr.mxu1 %v246_v11  ;;  %1066 = vmatprep.subr.mxu0 %v374_v12  ;;  %v5242_v11 = vld [vmem:[#allocation6 + $0xa8] sm:$0xff]  ;;  %v5246_v12 = vld [vmem:[#allocation6 + $0xb8] sm:$0xff] }
  0xf5   :  { %1022 = vmatpush2.msra.mxu1 %v245_v13  ;;  %1067 = vmatpush1.msra.mxu0 %v373_v14  ;;  %v5248_v13 = vld [vmem:[#allocation6 + $0xa0] sm:$0xff]  ;;  %v5252_v14 = vld [vmem:[#allocation6 + $0xb0] sm:$0xff] }
  0xf6   :  { %1023 = vmatprep.subr.mxu1 %v238_v15  ;;  %1068 = vmatprep.subr.mxu0 %v366_v16  ;;  %v5254_v15 = vld [vmem:[#allocation6 + $0x88] sm:$0xff]  ;;  %v5258_v16 = vld [vmem:[#allocation6 + $0x98] sm:$0xff] }
  0xf7   :  { %1024 = vmatpush2.msra.mxu1 %v237_v17  ;;  %1069 = vmatpush1.msra.mxu0 %v365_v18  ;;  %v5260_v17 = vld [vmem:[#allocation6 + $0x80] sm:$0xff]  ;;  %v5264_v18 = vld [vmem:[#allocation6 + $0x90] sm:$0xff] }
  0xf8   :  { %883 = vmatprep.mubr.f32.mxu0 %v5085_v59  ;;  %1025 = vmatprep.subr.mxu1 %v230_v19  ;;  %v213_v59 = vld [vmem:[#allocation2 + $0x430] sm:$0xff] }
  0xf9   :  { %1070 = vmatprep.subr.mxu0 %v358_v20  ;;  %884 = vmatmul.mubr.f32.gmra.mxu0 %v5090_v62  ;;  %v5117_v62 = vld [vmem:[#allocation6 + $0x1e8] sm:$0xff]  ;;  %v5270_v20 = vld [vmem:[#allocation6 + $0x78] sm:$0xff] }
  0xfa   :  { %960 = vmatprep.mubr.f32.mxu1 %v7236_v0  ;;  %1026 = vmatpush2.msra.mxu1 %v229_v21  ;;  %v5268_v19 = vld [vmem:[#allocation6 + $0x68] sm:$0xff]  ;;  %v5274_v21 = vld [vmem:[#allocation6 + $0x60] sm:$0xff] }
  0xfb   :  { %1071 = vmatpush1.msra.mxu0 %v357_v22  ;;  %961 = vmatmul.mubr.f32.gmra.mxu1 %v5096_v2  ;;  %v5124_v2 = vld [vmem:[#allocation6 + $0x1e0] sm:$0xff]  ;;  %v4666_v22 = vld [vmem:[%s7230_s0 + $0x20] sm:$0xff] }
  0xfc   :  { %1027 = vmatprep.subr.mxu1 %v222_v23  ;;  %1072 = vmatprep.subr.mxu0 %v350_v24  ;;  %v5280_v23 = vld [vmem:[#allocation6 + $0x70] sm:$0xff]  ;;  %v5284_v24 = vld [vmem:[#allocation6 + $0x48] sm:$0xff] }
  0xfd   :  { %1028 = vmatpush2.msra.mxu1 %v221_v25  ;;  %1073 = vmatpush1.msra.mxu0 %v349_v26  ;;  %7663 = vst [vmem:[#allocation12_spill] sm:$0xff] %v5284_v24  ;;  %v5286_v25 = vld [vmem:[#allocation6 + $0x58] sm:$0xff]  ;;  %v4667_v26 = vld [vmem:[%s7230_s0 + $0x18] sm:$0xff] }
  0xfe   :  { %1029 = vmatprep.subr.mxu1 %v214_v27  ;;  %1074 = vmatprep.subr.mxu0 %v342_v28  ;;  %7664 = vst [vmem:[#allocation13_spill] sm:$0xff] %v5286_v25  ;;  %v5292_v27 = vld [vmem:[#allocation6 + $0x50] sm:$0xff]  ;;  %v5296_v28 = vld [vmem:[#allocation6 + $0x40] sm:$0xff] }
  0xff   :  { %1030 = vmatpush2.msra.mxu1 %v213_v59  ;;  %1031 = vmatprep.mubr.f32.mxu1 %v4663_v30  ;;  %7665 = vst [vmem:[#allocation14_spill] sm:$0xff] %v5292_v27  ;;  %7666 = vst [vmem:[#allocation15_spill] sm:$0xff] %v5296_v28  ;;  %v5298_v59 = vld [vmem:[#allocation6 + $0x38] sm:$0xff]  ;;  %v5304_v30 = vld [vmem:[#allocation6 + $0x30] sm:$0xff] }
 0x100   :  { %1075 = vmatpush1.msra.mxu0 %v341_v29  ;;  %1108 = vmatprep.mubr.f32.mxu0 %v7236_v0  ;;  %7667 = vst [vmem:[#allocation16_spill] sm:$0xff] %v5298_v59  ;;  %v5302_v29 = vld [vmem:[#allocation6 + $0x28] sm:$0xff]  ;;  %7669 = vst [vmem:[#allocation18_spill] sm:$0xff] %v5304_v30 }
 0x101   :  { %1032 = vmatmul.mubr.f32.vlgmr.msra.gmra.mxu1 %v4664_v32  ;;  %1109 = vmatmul.mubr.f32.vlgmr.msra.gmra.mxu0 %v4665_v35  ;;  %7668 = vst [vmem:[#allocation17_spill] sm:$0xff] %v5302_v29  ;;  %v4668_v32 = vld [vmem:[%s7230_s0 + $0x28] sm:$0xff] }
 0x102   :  { %1249 = vmatprep.subr.mxu0 %v5117_v62  ;;  %1320 = vmatprep.subr.mxu1 %v5122_v31  ;;  %v5310_v35 = vld [vmem:[#allocation6 + $0x20] sm:$0xff] }
 0x103   :  { %1250 = vmatpush1.msra.mxu0 %v5124_v2  ;;  %1321 = vmatpush1.msra.mxu1 %v5130_v33  ;;  %7670 = vst [vmem:[#allocation19_spill] sm:$0xff] %v5310_v35 }
 0x104   :  { %1251 = vmatprep.subr.mxu0 %v5132_v34  ;;  %1322 = vmatprep.subr.mxu1 %v5138_v36 }
 0x105   :  { %1252 = vmatpush1.msra.mxu0 %v5140_v37  ;;  %1323 = vmatpush1.msra.mxu1 %v5144_v3 }
 0x106   :  { %1253 = vmatprep.subr.mxu0 %v5146_v5  ;;  %1324 = vmatprep.subr.mxu1 %v5150_v38 }
 0x107   :  { %1254 = vmatpush1.msra.mxu0 %v5152_v39  ;;  %1325 = vmatpush1.msra.mxu1 %v5156_v6 }
 0x108   :  { %1255 = vmatprep.subr.mxu0 %v5158_v40  ;;  %1326 = vmatprep.subr.mxu1 %v5162_v41 }
 0x109   :  { %1256 = vmatpush1.msra.mxu0 %v5164_v42  ;;  %1327 = vmatpush1.msra.mxu1 %v5168_v43 }
 0x10a   :  { %1257 = vmatprep.subr.mxu0 %v5170_v44  ;;  %1328 = vmatprep.subr.mxu1 %v5174_v45 }
 0x10b   :  { %1258 = vmatpush1.msra.mxu0 %v5176_v46  ;;  %1329 = vmatpush1.msra.mxu1 %v5180_v47 }
 0x10c   :  { %1259 = vmatprep.subr.mxu0 %v5182_v48  ;;  %1330 = vmatprep.subr.mxu1 %v5186_v49 }
 0x10d   :  { %1260 = vmatpush1.msra.mxu0 %v5188_v50  ;;  %1331 = vmatpush1.msra.mxu1 %v5192_v51 }
 0x10e   :  { %1261 = vmatprep.subr.mxu0 %v5194_v52  ;;  %1332 = vmatprep.subr.mxu1 %v5198_v53 }
 0x10f   :  { %1262 = vmatpush1.msra.mxu0 %v5200_v54  ;;  %1333 = vmatpush1.msra.mxu1 %v5204_v55 }
 0x110   :  { %1263 = vmatprep.subr.mxu0 %v5206_v56  ;;  %1334 = vmatprep.subr.mxu1 %v5210_v57 }
 0x111   :  { %1264 = vmatpush1.msra.mxu0 %v5212_v58  ;;  %1335 = vmatpush1.msra.mxu1 %v5216_v60 }
 0x112   :  { %1265 = vmatprep.subr.mxu0 %v5218_v61  ;;  %1336 = vmatprep.subr.mxu1 %v5222_v63 }
 0x113   :  { %1266 = vmatpush1.msra.mxu0 %v5224_v1  ;;  %1337 = vmatpush1.msra.mxu1 %v5228_v4 }
 0x114   :  { %1267 = vmatprep.subr.mxu0 %v5230_v7  ;;  %1338 = vmatprep.subr.mxu1 %v5234_v8 }
 0x115   :  { %1268 = vmatpush1.msra.mxu0 %v5236_v9  ;;  %1339 = vmatpush1.msra.mxu1 %v5240_v10 }
 0x116   :  { %1269 = vmatprep.subr.mxu0 %v5242_v11  ;;  %1340 = vmatprep.subr.mxu1 %v5246_v12 }
 0x117   :  { %1270 = vmatpush1.msra.mxu0 %v5248_v13  ;;  %1341 = vmatpush1.msra.mxu1 %v5252_v14 }
 0x118   :  { %1271 = vmatprep.subr.mxu0 %v5254_v15  ;;  %1342 = vmatprep.subr.mxu1 %v5258_v16 }
 0x119   :  { %1272 = vmatpush1.msra.mxu0 %v5260_v17  ;;  %1343 = vmatpush1.msra.mxu1 %v5264_v18 }
 0x11a   :  { %1037 = vmatprep.mubr.f32.mxu1 %v4666_v22  ;;  %1273 = vmatprep.subr.mxu0 %v5268_v19  ;;  %v5312_v22 = vld [vmem:[#allocation6 + $0x18] sm:$0xff] }
 0x11b   :  { %1344 = vmatprep.subr.mxu1 %v5270_v20  ;;  %1038 = vmatmul.mubr.f32.gmra.mxu1 %v4667_v26  ;;  %7671 = vst [vmem:[#allocation20_spill] sm:$0xff] %v5312_v22  ;;  %v5316_v26 = vld [vmem:[#allocation6 + $0x8] sm:$0xff] }
 0x11c   :  { %1274 = vmatpush1.msra.mxu0 %v5274_v21  ;;  %1345 = vmatpush1.msra.mxu1 %v5280_v23  ;;  %7672 = vst [vmem:[#allocation21_spill] sm:$0xff] %v5316_v26 }
 0x11d   :  { %1114 = vmatprep.mubr.f32.mxu0 %v7236_v0  ;;  %1275 = vmatprep.subr.mxu0 %v5284_v24  ;;  %v5320_v0 = vld [vmem:[#allocation6] sm:$0xff] }
 0x11e   :  { %1346 = vmatprep.subr.mxu1 %v5286_v25  ;;  %1115 = vmatmul.mubr.f32.gmra.mxu0 %v4668_v32  ;;  %7673 = vst [vmem:[#allocation22_spill] sm:$0xff] %v5320_v0  ;;  %v5322_v25 = vld [vmem:[#allocation6 + $0x10] sm:$0xff]  ;;  %v7675_v32 = vmov 0.0   ;;  %v5358_v24 = vld [vmem:[#allocation7 + $0x1a0] sm:$0xff] }
 0x11f   :  { %1347 = vmatpush1.msra.mxu1 %v5292_v27  ;;  %1276 = vmatpush1.msra.mxu0 %v5296_v28  ;;  %7674 = vst [vmem:[#allocation23_spill] sm:$0xff] %v5322_v25  ;;  %v5328_v27 = vld [vmem:[#allocation7 + $0x1e8] sm:$0xff]  ;;  %v5356_v28 = vld [vmem:[#allocation7 + $0x1b8] sm:$0xff]  ;;  %7686 = vst [vmem:[#allocation34_spill] sm:$0xff] %v5358_v24 }
 0x120   :  { %1348 = vmatprep.subr.mxu1 %v5298_v59  ;;  %1277 = vmatprep.subr.mxu0 %v5302_v29  ;;  %7676 = vst [vmem:[#allocation24_spill] sm:$0xff] %v5328_v27  ;;  %v5332_v59 = vld [vmem:[#allocation7 + $0x1f8] sm:$0xff]  ;;  %v5352_v29 = vld [vmem:[#allocation7 + $0x1a8] sm:$0xff]  ;;  %7685 = vst [vmem:[#allocation33_spill] sm:$0xff] %v5356_v28 }
 0x121   :  { %1349 = vmatpush1.msra.mxu1 %v5304_v30  ;;  %1278 = vmatpush1.msra.mxu0 %v5310_v35  ;;  %7677 = vst [vmem:[#allocation25_spill] sm:$0xff] %v5332_v59  ;;  %v5334_v30 = vld [vmem:[#allocation7 + $0x1e0] sm:$0xff]  ;;  %v5338_v35 = vld [vmem:[#allocation7 + $0x1f0] sm:$0xff]  ;;  %7684 = vst [vmem:[#allocation32_spill] sm:$0xff] %v5352_v29 }
 0x122   :  { %1350 = vmatprep.subr.mxu1 %v5312_v22  ;;  %1279 = vmatprep.subr.mxu0 %v5316_v26  ;;  %7678 = vst [vmem:[#allocation26_spill] sm:$0xff] %v5334_v30  ;;  %7679 = vst [vmem:[#allocation27_spill] sm:$0xff] %v5338_v35  ;;  %v5340_v22 = vld [vmem:[#allocation7 + $0x1c8] sm:$0xff]  ;;  %v5344_v26 = vld [vmem:[#allocation7 + $0x1d8] sm:$0xff] }
 0x123   :  { %1313 = vmatprep.mubr.f32.mxu0 %v7675_v32  ;;  %1280 = vmatpush1.msra.mxu0 %v5320_v0  ;;  %7680 = vst [vmem:[#allocation28_spill] sm:$0xff] %v5340_v22  ;;  %7681 = vst [vmem:[#allocation29_spill] sm:$0xff] %v5344_v26  ;;  %v5346_v0 = vld [vmem:[#allocation7 + $0x1c0] sm:$0xff] }
 0x124   :  { %1351 = vmatpush1.msra.mxu1 %v5322_v25  ;;  %1384 = vmatprep.mubr.f32.mxu1 %v7675_v32  ;;  %7682 = vst [vmem:[#allocation30_spill] sm:$0xff] %v5346_v0  ;;  %v5350_v25 = vld [vmem:[#allocation7 + $0x1d0] sm:$0xff] }
 0x125   :  { %1314 = vmatmul.mubr.f32.vlgmr.msra.gmra.mxu0 %v7675_v32  ;;  %1385 = vmatmul.mubr.f32.vlgmr.msra.gmra.mxu1 %v7675_v32  ;;  %7683 = vst [vmem:[#allocation31_spill] sm:$0xff] %v5350_v25 }
 0x126   :  { %1391 = vmatprep.subr.mxu0 %v5328_v27  ;;  %1462 = vmatprep.subr.mxu1 %v5332_v59  ;;  %v5362_v27 = vld [vmem:[#allocation7 + $0x1b0] sm:$0xff]  ;;  %v5364_v59 = vld [vmem:[#allocation7 + $0x188] sm:$0xff] }
 0x127   :  { %1392 = vmatpush1.msra.mxu0 %v5334_v30  ;;  %1463 = vmatpush1.msra.mxu1 %v5338_v35  ;;  %7687 = vst [vmem:[#allocation35_spill] sm:$0xff] %v5362_v27  ;;  %7688 = vst [vmem:[#allocation36_spill] sm:$0xff] %v5364_v59  ;;  %v5368_v30 = vld [vmem:[#allocation7 + $0x198] sm:$0xff]  ;;  %v5370_v35 = vld [vmem:[#allocation7 + $0x180] sm:$0xff] }
 0x128   :  { %1393 = vmatprep.subr.mxu0 %v5340_v22  ;;  %1464 = vmatprep.subr.mxu1 %v5344_v26  ;;  %7689 = vst [vmem:[#allocation37_spill] sm:$0xff] %v5368_v30  ;;  %7690 = vst [vmem:[#allocation38_spill] sm:$0xff] %v5370_v35  ;;  %v5374_v22 = vld [vmem:[#allocation7 + $0x190] sm:$0xff]  ;;  %v5376_v26 = vld [vmem:[#allocation7 + $0x168] sm:$0xff] }
 0x129   :  { %1394 = vmatpush1.msra.mxu0 %v5346_v0  ;;  %1465 = vmatpush1.msra.mxu1 %v5350_v25  ;;  %7691 = vst [vmem:[#allocation39_spill] sm:$0xff] %v5374_v22  ;;  %7692 = vst [vmem:[#allocation40_spill] sm:$0xff] %v5376_v26  ;;  %v5380_v0 = vld [vmem:[#allocation7 + $0x178] sm:$0xff]  ;;  %v5382_v25 = vld [vmem:[#allocation7 + $0x160] sm:$0xff] }
 0x12a   :  { %1395 = vmatprep.subr.mxu0 %v5352_v29  ;;  %1466 = vmatprep.subr.mxu1 %v5356_v28  ;;  %7693 = vst [vmem:[#allocation41_spill] sm:$0xff] %v5380_v0  ;;  %7694 = vst [vmem:[#allocation42_spill] sm:$0xff] %v5382_v25  ;;  %v5386_v29 = vld [vmem:[#allocation7 + $0x170] sm:$0xff]  ;;  %v5388_v28 = vld [vmem:[#allocation7 + $0x148] sm:$0xff] }
 0x12b   :  { %1396 = vmatpush1.msra.mxu0 %v5358_v24  ;;  %1467 = vmatpush1.msra.mxu1 %v5362_v27  ;;  %7695 = vst [vmem:[#allocation43_spill] sm:$0xff] %v5386_v29  ;;  %7696 = vst [vmem:[#allocation44_spill] sm:$0xff] %v5388_v28  ;;  %v5392_v24 = vld [vmem:[#allocation7 + $0x158] sm:$0xff]  ;;  %v5394_v27 = vld [vmem:[#allocation7 + $0x140] sm:$0xff] }
 0x12c   :  { %1397 = vmatprep.subr.mxu0 %v5364_v59  ;;  %1468 = vmatprep.subr.mxu1 %v5368_v30  ;;  %7697 = vst [vmem:[#allocation45_spill] sm:$0xff] %v5392_v24  ;;  %7698 = vst [vmem:[#allocation46_spill] sm:$0xff] %v5394_v27  ;;  %v5398_v59 = vld [vmem:[#allocation7 + $0x150] sm:$0xff]  ;;  %v5400_v30 = vld [vmem:[#allocation7 + $0x128] sm:$0xff] }
 0x12d   :  { %1398 = vmatpush1.msra.mxu0 %v5370_v35  ;;  %1469 = vmatpush1.msra.mxu1 %v5374_v22  ;;  %7699 = vst [vmem:[#allocation47_spill] sm:$0xff] %v5398_v59  ;;  %7700 = vst [vmem:[#allocation48_spill] sm:$0xff] %v5400_v30  ;;  %v5404_v35 = vld [vmem:[#allocation7 + $0x138] sm:$0xff]  ;;  %v5406_v22 = vld [vmem:[#allocation7 + $0x120] sm:$0xff] }
 0x12e   :  { %1399 = vmatprep.subr.mxu0 %v5376_v26  ;;  %1470 = vmatprep.subr.mxu1 %v5380_v0  ;;  %7701 = vst [vmem:[#allocation49_spill] sm:$0xff] %v5404_v35  ;;  %7702 = vst [vmem:[#allocation50_spill] sm:$0xff] %v5406_v22  ;;  %v5410_v26 = vld [vmem:[#allocation7 + $0x130] sm:$0xff]  ;;  %v5412_v0 = vld [vmem:[#allocation7 + $0x108] sm:$0xff] }
 0x12f   :  { %1400 = vmatpush1.msra.mxu0 %v5382_v25  ;;  %1471 = vmatpush1.msra.mxu1 %v5386_v29  ;;  %7703 = vst [vmem:[#allocation51_spill] sm:$0xff] %v5410_v26  ;;  %7704 = vst [vmem:[#allocation52_spill] sm:$0xff] %v5412_v0  ;;  %v5416_v25 = vld [vmem:[#allocation7 + $0x118] sm:$0xff]  ;;  %v5418_v29 = vld [vmem:[#allocation7 + $0x100] sm:$0xff] }
 0x130   :  { %1401 = vmatprep.subr.mxu0 %v5388_v28  ;;  %1472 = vmatprep.subr.mxu1 %v5392_v24  ;;  %7705 = vst [vmem:[#allocation53_spill] sm:$0xff] %v5416_v25  ;;  %7706 = vst [vmem:[#allocation54_spill] sm:$0xff] %v5418_v29  ;;  %v5422_v28 = vld [vmem:[#allocation7 + $0x110] sm:$0xff]  ;;  %v5424_v24 = vld [vmem:[#allocation7 + $0xe8] sm:$0xff] }
 0x131   :  { %1402 = vmatpush1.msra.mxu0 %v5394_v27  ;;  %1473 = vmatpush1.msra.mxu1 %v5398_v59  ;;  %7707 = vst [vmem:[#allocation55_spill] sm:$0xff] %v5422_v28  ;;  %7708 = vst [vmem:[#allocation56_spill] sm:$0xff] %v5424_v24  ;;  %v5428_v27 = vld [vmem:[#allocation7 + $0xf8] sm:$0xff]  ;;  %v5430_v59 = vld [vmem:[#allocation7 + $0xe0] sm:$0xff] }
 0x132   :  { %1403 = vmatprep.subr.mxu0 %v5400_v30  ;;  %1474 = vmatprep.subr.mxu1 %v5404_v35  ;;  %7709 = vst [vmem:[#allocation57_spill] sm:$0xff] %v5428_v27  ;;  %7710 = vst [vmem:[#allocation58_spill] sm:$0xff] %v5430_v59  ;;  %v5434_v30 = vld [vmem:[#allocation7 + $0xf0] sm:$0xff]  ;;  %v5436_v35 = vld [vmem:[#allocation7 + $0xc8] sm:$0xff] }
 0x133   :  { %1404 = vmatpush1.msra.mxu0 %v5406_v22  ;;  %1475 = vmatpush1.msra.mxu1 %v5410_v26  ;;  %7711 = vst [vmem:[#allocation59_spill] sm:$0xff] %v5434_v30  ;;  %7712 = vst [vmem:[#allocation60_spill] sm:$0xff] %v5436_v35  ;;  %v5440_v22 = vld [vmem:[#allocation7 + $0xd8] sm:$0xff]  ;;  %v5442_v26 = vld [vmem:[#allocation7 + $0xc0] sm:$0xff] }
 0x134   :  { %1405 = vmatprep.subr.mxu0 %v5412_v0  ;;  %1476 = vmatprep.subr.mxu1 %v5416_v25  ;;  %7713 = vst [vmem:[#allocation61_spill] sm:$0xff] %v5440_v22  ;;  %7714 = vst [vmem:[#allocation62_spill] sm:$0xff] %v5442_v26  ;;  %v5446_v0 = vld [vmem:[#allocation7 + $0xd0] sm:$0xff]  ;;  %v5448_v25 = vld [vmem:[#allocation7 + $0xa8] sm:$0xff] }
 0x135   :  { %1406 = vmatpush1.msra.mxu0 %v5418_v29  ;;  %1477 = vmatpush1.msra.mxu1 %v5422_v28  ;;  %7715 = vst [vmem:[#allocation63_spill] sm:$0xff] %v5446_v0  ;;  %7716 = vst [vmem:[#allocation64_spill] sm:$0xff] %v5448_v25  ;;  %v5452_v29 = vld [vmem:[#allocation7 + $0xb8] sm:$0xff]  ;;  %v5454_v28 = vld [vmem:[#allocation7 + $0xa0] sm:$0xff] }
 0x136   :  { %1407 = vmatprep.subr.mxu0 %v5424_v24  ;;  %1478 = vmatprep.subr.mxu1 %v5428_v27  ;;  %7717 = vst [vmem:[#allocation65_spill] sm:$0xff] %v5452_v29  ;;  %7718 = vst [vmem:[#allocation66_spill] sm:$0xff] %v5454_v28  ;;  %v5458_v24 = vld [vmem:[#allocation7 + $0xb0] sm:$0xff]  ;;  %v5460_v27 = vld [vmem:[#allocation7 + $0x88] sm:$0xff] }
 0x137   :  { %1408 = vmatpush1.msra.mxu0 %v5430_v59  ;;  %1479 = vmatpush1.msra.mxu1 %v5434_v30  ;;  %7719 = vst [vmem:[#allocation67_spill] sm:$0xff] %v5458_v24  ;;  %7720 = vst [vmem:[#allocation68_spill] sm:$0xff] %v5460_v27  ;;  %v5464_v59 = vld [vmem:[#allocation7 + $0x98] sm:$0xff]  ;;  %v5466_v30 = vld [vmem:[#allocation7 + $0x80] sm:$0xff] }
 0x138   :  { %1409 = vmatprep.subr.mxu0 %v5436_v35  ;;  %1480 = vmatprep.subr.mxu1 %v5440_v22  ;;  %7721 = vst [vmem:[#allocation69_spill] sm:$0xff] %v5464_v59  ;;  %7722 = vst [vmem:[#allocation70_spill] sm:$0xff] %v5466_v30  ;;  %v5470_v35 = vld [vmem:[#allocation7 + $0x90] sm:$0xff]  ;;  %v5472_v22 = vld [vmem:[#allocation7 + $0x68] sm:$0xff] }
 0x139   :  { %1410 = vmatpush1.msra.mxu0 %v5442_v26  ;;  %1481 = vmatpush1.msra.mxu1 %v5446_v0  ;;  %7723 = vst [vmem:[#allocation71_spill] sm:$0xff] %v5470_v35  ;;  %7724 = vst [vmem:[#allocation72_spill] sm:$0xff] %v5472_v22  ;;  %v5476_v26 = vld [vmem:[#allocation7 + $0x78] sm:$0xff]  ;;  %v5478_v0 = vld [vmem:[#allocation7 + $0x60] sm:$0xff] }
 0x13a   :  { %1411 = vmatprep.subr.mxu0 %v5448_v25  ;;  %1482 = vmatprep.subr.mxu1 %v5452_v29  ;;  %7725 = vst [vmem:[#allocation73_spill] sm:$0xff] %v5476_v26  ;;  %7726 = vst [vmem:[#allocation74_spill] sm:$0xff] %v5478_v0  ;;  %v5482_v25 = vld [vmem:[#allocation7 + $0x70] sm:$0xff]  ;;  %v5484_v29 = vld [vmem:[#allocation7 + $0x48] sm:$0xff] }
 0x13b   :  { %1412 = vmatpush1.msra.mxu0 %v5454_v28  ;;  %1483 = vmatpush1.msra.mxu1 %v5458_v24  ;;  %7727 = vst [vmem:[#allocation75_spill] sm:$0xff] %v5482_v25  ;;  %7728 = vst [vmem:[#allocation76_spill] sm:$0xff] %v5484_v29  ;;  %v5488_v28 = vld [vmem:[#allocation7 + $0x58] sm:$0xff]  ;;  %v5490_v24 = vld [vmem:[#allocation7 + $0x40] sm:$0xff] }
 0x13c   :  { %1413 = vmatprep.subr.mxu0 %v5460_v27  ;;  %1484 = vmatprep.subr.mxu1 %v5464_v59  ;;  %v5494_v27 = vld [vmem:[#allocation7 + $0x50] sm:$0xff]  ;;  %v5496_v59 = vld [vmem:[#allocation7 + $0x28] sm:$0xff] }
 0x13d   :  { %1414 = vmatpush1.msra.mxu0 %v5466_v30  ;;  %1485 = vmatpush1.msra.mxu1 %v5470_v35  ;;  %7729 = vst [vmem:[#allocation77_spill] sm:$0xff] %v5494_v27  ;;  %v5500_v30 = vld [vmem:[#allocation7 + $0x38] sm:$0xff]  ;;  %v5502_v35 = vld [vmem:[#allocation7 + $0x20] sm:$0xff] }
 0x13e   :  { %1415 = vmatprep.subr.mxu0 %v5472_v22  ;;  %1486 = vmatprep.subr.mxu1 %v5476_v26  ;;  %v5506_v22 = vld [vmem:[#allocation7 + $0x30] sm:$0xff]  ;;  %v5508_v26 = vld [vmem:[#allocation7 + $0x8] sm:$0xff] }
 0x13f   :  { %1416 = vmatpush1.msra.mxu0 %v5478_v0  ;;  %1487 = vmatpush1.msra.mxu1 %v5482_v25  ;;  %7730 = vst [vmem:[#allocation78_spill] sm:$0xff] %v5506_v22  ;;  %v5512_v0 = vld [vmem:[#allocation7 + $0x18] sm:$0xff]  ;;  %v5514_v25 = vld [vmem:[#allocation7] sm:$0xff] }
 0x140   :  { %1417 = vmatprep.subr.mxu0 %v5484_v29  ;;  %1488 = vmatprep.subr.mxu1 %v5488_v28  ;;  %v5518_v29 = vld [vmem:[#allocation7 + $0x10] sm:$0xff] }
 0x141   :  { %1418 = vmatpush1.msra.mxu0 %v5490_v24  ;;  %1489 = vmatpush1.msra.mxu1 %v5494_v27  ;;  %7731 = vst [vmem:[#allocation79_spill] sm:$0xff] %v5518_v29  ;;  %v465_v27 = vlaneseq }
 0x142   :  { %1419 = vmatprep.subr.mxu0 %v5496_v59  ;;  %1490 = vmatprep.subr.mxu1 %v5500_v30 }
 0x143   :  { %1420 = vmatpush1.msra.mxu0 %v5502_v35  ;;  %1491 = vmatpush1.msra.mxu1 %v5506_v22  ;;  %v5530_v22 = vshrl.u32 %v465_v27, 7 }
 0x144   :  { %1421 = vmatprep.subr.mxu0 %v5508_v26  ;;  %1492 = vmatprep.subr.mxu1 %v5512_v0 }
 0x145   :  { %1422 = vmatpush1.msra.mxu0 %v5514_v25  ;;  %1455 = vmatprep.mubr.f32.mxu0 %v7675_v32 }
 0x146   :  { %1493 = vmatpush1.msra.mxu1 %v5518_v29  ;;  %1526 = vmatprep.mubr.f32.mxu1 %v7675_v32  ;;  %v5538_v29 = vpop.f32.mrf.mxu0 }
 0x147   :  { %1456 = vmatmul.mubr.f32.vlgmr.msra.gmra.mxu0 %v7675_v32  ;;  %1527 = vmatmul.mubr.f32.vlgmr.msra.gmra.mxu1 %v7675_v32 }
 0x148   :  { %1615 = vmatprep.subr.mxu0 %v5117_v62  ;;  %1686 = vmatprep.subr.mxu1 %v5122_v31  ;;  %v467_v62 = vsub.s32 0, %v5530_v22  ;;  %v5545_v31 = vpop.f32.mrf.mxu1 }
 0x149   :  { %1616 = vmatpush1.msra.mxu0 %v5124_v2  ;;  %1687 = vmatpush1.msra.mxu1 %v5130_v33  ;;  %v5547_v2 = vld [vmem:[#allocation4] sm:$0xff]  ;;  %v471_v33 = vsub.s32 1, %v5530_v22 }
 0x14a   :  { %1617 = vmatprep.subr.mxu0 %v5132_v34  ;;  %1688 = vmatprep.subr.mxu1 %v5138_v36  ;;  %v5554_v34 = vpop.f32.mrf.mxu0  ;;  %v5559_v36 = vrot.slane %v5547_v2, %v467_v62 }
 0x14b   :  { %1618 = vmatpush1.msra.mxu0 %v5140_v37  ;;  %1689 = vmatpush1.msra.mxu1 %v5144_v3  ;;  %v5563_v37 = vpop.f32.mrf.mxu1 }
 0x14c   :  { %1619 = vmatprep.subr.mxu0 %v5146_v5  ;;  %1690 = vmatprep.subr.mxu1 %v5150_v38  ;;  %v5568_v5 = vrot.slane %v5547_v2, %v471_v33 }
 0x14d   :  { %1620 = vmatpush1.msra.mxu0 %v5152_v39  ;;  %1691 = vmatpush1.msra.mxu1 %v5156_v6 }
 0x14e   :  { %1621 = vmatprep.subr.mxu0 %v5158_v40  ;;  %1692 = vmatprep.subr.mxu1 %v5162_v41 }
 0x14f   :  { %1622 = vmatpush1.msra.mxu0 %v5164_v42  ;;  %1693 = vmatpush1.msra.mxu1 %v5168_v43 }
 0x150   :  { %1623 = vmatprep.subr.mxu0 %v5170_v44  ;;  %1694 = vmatprep.subr.mxu1 %v5174_v45  ;;  %v7734_v44 = vld [vmem:[#allocation12_spill] sm:$0xff]  ;;  %v7735_v45 = vld [vmem:[#allocation13_spill] sm:$0xff] }
 0x151   :  { %1624 = vmatpush1.msra.mxu0 %v5176_v46  ;;  %v577_v3 = vpop.f32.mrf.mxu0  ;;  %1695 = vmatpush1.msra.mxu1 %v5180_v47  ;;  %v7736_v46 = vld [vmem:[#allocation15_spill] sm:$0xff]  ;;  %v7737_v47 = vld [vmem:[#allocation14_spill] sm:$0xff] }
 0x152   :  { %1625 = vmatprep.subr.mxu0 %v5182_v48  ;;  %v578_v38 = vadd.f32 %v577_v3, %v5559_v36  ;;  %1696 = vmatprep.subr.mxu1 %v5186_v49  ;;  %v7738_v48 = vld [vmem:[#allocation17_spill] sm:$0xff]  ;;  %v7739_v49 = vld [vmem:[#allocation16_spill] sm:$0xff] }
 0x153   :  { %1626 = vmatpush1.msra.mxu0 %v5188_v50  ;;  %v654_v39 = vpop.f32.mrf.mxu1  ;;  %v579_v6 = vpop.f32.mrf.mxu0  ;;  %1697 = vmatpush1.msra.mxu1 %v5192_v51  ;;  %v7740_v50 = vld [vmem:[#allocation19_spill] sm:$0xff]  ;;  %v7741_v51 = vld [vmem:[#allocation18_spill] sm:$0xff] }
 0x154   :  { %1627 = vmatprep.subr.mxu0 %v5194_v52  ;;  %v5575_v40 = vadd.f32 %v654_v39, %v578_v38  ;;  %v580_v41 = vadd.f32 %v579_v6, %v5568_v5  ;;  %1698 = vmatprep.subr.mxu1 %v5198_v53  ;;  %v7742_v52 = vld [vmem:[#allocation21_spill] sm:$0xff]  ;;  %v7743_v53 = vld [vmem:[#allocation20_spill] sm:$0xff] }
 0x155   :  { %1628 = vmatpush1.msra.mxu0 %v5200_v54  ;;  %v656_v42 = vpop.f32.mrf.mxu1  ;;  %1699 = vmatpush1.msra.mxu1 %v5204_v55  ;;  %v7744_v54 = vld [vmem:[#allocation22_spill] sm:$0xff]  ;;  %v7745_v55 = vld [vmem:[#allocation23_spill] sm:$0xff] }
 0x156   :  { %7732 = vst [vmem:[#allocation80_spill] sm:$0xff] %v5575_v40  ;;  %1629 = vmatprep.subr.mxu0 %v5206_v56  ;;  %v5582_v43 = vadd.f32 %v656_v42, %v580_v41  ;;  %1700 = vmatprep.subr.mxu1 %v5210_v57  ;;  %v7746_v56 = vld [vmem:[#allocation24_spill] sm:$0xff]  ;;  %v7747_v57 = vld [vmem:[#allocation25_spill] sm:$0xff]  ;;  %v491_v41 = vsub.s32 6, %v5530_v22  ;;  %v5900_v40 = vld [vmem:[#allocation6 + $0xb0] sm:$0xff] }
 0x157   :  { %1630 = vmatpush1.msra.mxu0 %v5212_v58  ;;  %1701 = vmatpush1.msra.mxu1 %v5216_v60  ;;  %v475_v60 = vsub.s32 2, %v5530_v22 }
 0x158   :  { %7733 = vst [vmem:[#allocation81_spill] sm:$0xff] %v5582_v43  ;;  %1631 = vmatprep.subr.mxu0 %v5218_v61  ;;  %1702 = vmatprep.subr.mxu1 %v5222_v63  ;;  %v479_v61 = vsub.s32 3, %v5530_v22  ;;  %v5897_v43 = vld [vmem:[#allocation6 + $0xa0] sm:$0xff] }
 0x159   :  { %1632 = vmatpush1.msra.mxu0 %v5224_v1  ;;  %1703 = vmatpush1.msra.mxu1 %v5228_v4  ;;  %v5623_v58 = vpop.f32.mrf.mxu1  ;;  %v476_v1 = vrot.slane %v5547_v2, %v475_v60 }
 0x15a   :  { %1633 = vmatprep.subr.mxu0 %v5230_v7  ;;  %1704 = vmatprep.subr.mxu1 %v5234_v8  ;;  %v480_v7 = vrot.slane %v5547_v2, %v479_v61 }
 0x15b   :  { %1634 = vmatpush1.msra.mxu0 %v5236_v9  ;;  %1705 = vmatpush1.msra.mxu1 %v5240_v10  ;;  %v727_v63 = vpop.f32.mrf.mxu1 }
 0x15c   :  { %1635 = vmatprep.subr.mxu0 %v5242_v11  ;;  %1706 = vmatprep.subr.mxu1 %v5246_v12  ;;  %v802_v11 = vpop.f32.mrf.mxu0 }
 0x15d   :  { %1636 = vmatpush1.msra.mxu0 %v5248_v13  ;;  %1707 = vmatpush1.msra.mxu1 %v5252_v14 }
 0x15e   :  { %1637 = vmatprep.subr.mxu0 %v5254_v15  ;;  %1708 = vmatprep.subr.mxu1 %v5258_v16  ;;  %v804_v12 = vpop.f32.mrf.mxu0 }
 0x15f   :  { %1638 = vmatpush1.msra.mxu0 %v5260_v17  ;;  %1709 = vmatpush1.msra.mxu1 %v5264_v18  ;;  %v483_v17 = vsub.s32 4, %v5530_v22  ;;  %v487_v18 = vsub.s32 5, %v5530_v22 }
 0x160   :  { %1639 = vmatprep.subr.mxu0 %v5268_v19  ;;  %1710 = vmatprep.subr.mxu1 %v5270_v20 }
 0x161   :  { %1640 = vmatpush1.msra.mxu0 %v5274_v21  ;;  %1711 = vmatpush1.msra.mxu1 %v5280_v23  ;;  %v484_v19 = vrot.slane %v5547_v2, %v483_v17  ;;  %v488_v20 = vrot.slane %v5547_v2, %v487_v18  ;;  %v572_v17 = vadd.f32 %v5538_v29, %v5559_v36 }
 0x162   :  { %1641 = vmatprep.subr.mxu0 %v7734_v44  ;;  %1712 = vmatprep.subr.mxu1 %v7735_v45  ;;  %v495_v44 = vsub.s32 7, %v5530_v22 }
 0x163   :  { %1642 = vmatpush1.msra.mxu0 %v7736_v46  ;;  %1713 = vmatpush1.msra.mxu1 %v7737_v47  ;;  %v5644_v47 = vrot.slane %v5547_v2, %v491_v41 }
 0x164   :  { %1643 = vmatprep.subr.mxu0 %v7738_v48  ;;  %1714 = vmatprep.subr.mxu1 %v7739_v49  ;;  %v5647_v49 = vrot.slane %v5547_v2, %v495_v44  ;;  %v574_v2 = vadd.f32 %v5554_v34, %v5568_v5  ;;  %v726_v5 = vadd.f32 %v5623_v58, %v476_v1 }
 0x165   :  { %1644 = vmatpush1.msra.mxu0 %v7740_v50  ;;  %1715 = vmatpush1.msra.mxu1 %v7741_v51 }
 0x166   :  { %1645 = vmatprep.subr.mxu0 %v7742_v52  ;;  %1716 = vmatprep.subr.mxu1 %v7743_v53 }
 0x167   :  { %1646 = vmatpush1.msra.mxu0 %v7744_v54  ;;  %1679 = vmatprep.mubr.f32.mxu0 %v7675_v32 }
 0x168   :  { %1717 = vmatpush1.msra.mxu1 %v7745_v55  ;;  %1750 = vmatprep.mubr.f32.mxu1 %v7675_v32 }
 0x169   :  { %1759 = vmatprep.subr.mxu0 %v7746_v56  ;;  %1830 = vmatprep.subr.mxu1 %v7747_v57 }
 0x177   :  { %v731_v4 = vpop.f32.mrf.mxu1 }
 0x178   :  { %v732_v8 = vadd.f32 %v731_v4, %v476_v1 }
 0x179   :  { %v733_v9 = vpop.f32.mrf.mxu1 }
 0x17a   :  { %v734_v10 = vadd.f32 %v733_v9, %v480_v7 }
 0x17d   :  { %v956_v21 = vpop.f32.mrf.mxu1 }
 0x17f   :  { %v958_v38 = vpop.f32.mrf.mxu1 }
 0x18b   :  { %v808_v13 = vpop.f32.mrf.mxu0 }
 0x18c   :  { %v5629_v14 = vadd.f32 %v808_v13, %v732_v8 }
 0x18d   :  { %v810_v15 = vpop.f32.mrf.mxu0 }
 0x18e   :  { %7748 = vst [vmem:[#allocation12_spill] sm:$0xff] %v5629_v14  ;;  %v5631_v16 = vadd.f32 %v810_v15, %v734_v10  ;;  %v5891_v14 = vld [vmem:[#allocation6 + $0xa8] sm:$0xff] }
 0x190   :  { %7749 = vst [vmem:[#allocation13_spill] sm:$0xff] %v5631_v16  ;;  %v5894_v16 = vld [vmem:[#allocation6 + $0xb8] sm:$0xff] }
 0x19d   :  { %v879_v23 = vpop.f32.mrf.mxu0 }
 0x19e   :  { %v880_v27 = vadd.f32 %v879_v23, %v484_v19 }
 0x19f   :  { %v881_v62 = vpop.f32.mrf.mxu0 }
 0x1a0   :  { %v5637_v33 = vadd.f32 %v956_v21, %v880_v27  ;;  %v882_v3 = vadd.f32 %v881_v62, %v488_v20  ;;  %v5662_v21 = vadd.f32 %v5545_v31, %v572_v17  ;;  %v5665_v62 = vadd.f32 %v5563_v37, %v574_v2 }
 0x1a2   :  { %7750 = vst [vmem:[#allocation15_spill] sm:$0xff] %v5637_v33  ;;  %v5639_v39 = vadd.f32 %v958_v38, %v882_v3  ;;  %v5888_v33 = vld [vmem:[#allocation6 + $0xd0] sm:$0xff] }
 0x1a4   :  { %7751 = vst [vmem:[#allocation14_spill] sm:$0xff] %v5639_v39  ;;  %v5885_v39 = vld [vmem:[#allocation6 + $0xc0] sm:$0xff] }
 0x1b9   :  { %v885_v6 = vpop.f32.mrf.mxu0 }
 0x1bb   :  { %v962_v42 = vpop.f32.mrf.mxu1  ;;  %v887_v45 = vpop.f32.mrf.mxu0 }
 0x1bd   :  { %v964_v46 = vpop.f32.mrf.mxu1 }
 0x1c1   :  { %v1033_v51 = vpop.f32.mrf.mxu1  ;;  %v1110_v61 = vpop.f32.mrf.mxu0 }
 0x1c2   :  { %v1034_v60 = vadd.f32 %v1033_v51, %v5644_v47 }
 0x1c3   :  { %v1035_v4 = vpop.f32.mrf.mxu1  ;;  %v1112_v10 = vpop.f32.mrf.mxu0 }
 0x1c4   :  { %v5650_v8 = vadd.f32 %v1110_v61, %v1034_v60  ;;  %v1036_v9 = vadd.f32 %v1035_v4, %v5647_v49  ;;  %v728_v60 = vadd.f32 %v727_v63, %v480_v7  ;;  %v5673_v61 = vadd.f32 %v802_v11, %v726_v5 }
 0x1c5   :  { %v886_v63 = vadd.f32 %v885_v6, %v484_v19  ;;  %v888_v7 = vadd.f32 %v887_v45, %v488_v20 }
 0x1c6   :  { %7752 = vst [vmem:[#allocation17_spill] sm:$0xff] %v5650_v8  ;;  %v5653_v13 = vadd.f32 %v1112_v10, %v1036_v9  ;;  %v5669_v31 = vadd.f32 %v804_v12, %v728_v60  ;;  %v5879_v8 = vld [vmem:[#allocation6 + $0xc8] sm:$0xff] }
 0x1c8   :  { %7753 = vst [vmem:[#allocation16_spill] sm:$0xff] %v5653_v13  ;;  %7754 = vst [vmem:[#allocation19_spill] sm:$0xff] %v5669_v31  ;;  %v5882_v13 = vld [vmem:[#allocation6 + $0xd8] sm:$0xff] }
 0x1db   :  { %v1039_v23 = vpop.f32.mrf.mxu1 }
 0x1dd   :  { %v1041_v41 = vpop.f32.mrf.mxu1 }
 0x1de   :  { %v5655_v15 = vpop.f32.mrf.mxu0 }
 0x1e0   :  { %v1118_v18 = vpop.f32.mrf.mxu0 }
 0x1e5   :  { %v1315_v27 = vpop.f32.mrf.mxu0  ;;  %v1386_v29 = vpop.f32.mrf.mxu1 }
 0x1e6   :  { %v1533_v3 = vadd.f32 %v1315_v27, %v5662_v21  ;;  %v1535_v10 = vadd.f32 %v1386_v29, %v5673_v61 }
 0x1e7   :  { %v1317_v38 = vpop.f32.mrf.mxu0  ;;  %v1388_v34 = vpop.f32.mrf.mxu1 }
 0x1e8   :  { %v4331_v44 = vmul.f32 -1.442695, %v1533_v3  ;;  %v1534_v51 = vadd.f32 %v1317_v38, %v5665_v62  ;;  %v1536_v37 = vadd.f32 %v1388_v34, %v5669_v31  ;;  %v5676_v38 = vadd.f32 %v962_v42, %v886_v63 }
 0x1ea   :  { %4407 = vpow2.f32 %v4331_v44  ;;  %v4332_v36 = vmul.f32 -1.442695, %v1534_v51  ;;  %v4333_v4 = vmul.f32 -1.442695, %v1536_v37  ;;  %v5678_v51 = vadd.f32 %v964_v46, %v888_v7 }
 0x1eb   :  { %v1042_v46 = vadd.f32 %v1041_v41, %v5647_v49 }
 0x1ec   :  { %4409 = vpow2.f32 %v4332_v36 }
 0x1ed   :  { %4411 = vpow2.f32 %v4333_v4 }
 0x1f7   :  { %v4408_v9 = vpop.eup %4407 }
 0x1f8   :  { %v1556_v17 = vadd.f32 1.0, %v4408_v9 }
 0x1f9   :  { %v4410_v2 = vpop.eup %4409 }
 0x1fa   :  { %4413 = vrcp.f32 %v1556_v17  ;;  %v1562_v27 = vadd.f32 1.0, %v4410_v2  ;;  %v4412_v12 = vpop.eup %4411  ;;  %v1040_v17 = vadd.f32 %v1039_v23, %v5644_v47  ;;  %v7755_v47 = vld [vmem:[#allocation26_spill] sm:$0xff]  ;;  %v7757_v23 = vld [vmem:[#allocation28_spill] sm:$0xff] }
 0x1fb   :  { %4415 = vtanh.f32 %v1535_v10  ;;  %v1569_v29 = vadd.f32 1.0, %v4412_v12  ;;  %v5686_v10 = vadd.f32 %v1118_v18, %v1042_v46  ;;  %v7770_v46 = vld [vmem:[#allocation41_spill] sm:$0xff] }
 0x1fc   :  { %4417 = vrcp.f32 %v1562_v27  ;;  %v5691_v63 = vadd.f32 %v5655_v15, %v1040_v17  ;;  %v7756_v15 = vld [vmem:[#allocation27_spill] sm:$0xff]  ;;  %7831 = vst [vmem:[#allocation41_spill] sm:$0xff] %v5900_v40 }
 0x1fd   :  { %4419 = vrcp.f32 %v1569_v29  ;;  %v7759_v29 = vld [vmem:[#allocation30_spill] sm:$0xff]  ;;  %v7772_v17 = vld [vmem:[#allocation43_spill] sm:$0xff] }
 0x207   :  { %v4414_v3 = vpop.eup %4413  ;;  %v1457_v58 = vpop.f32.mrf.mxu0 }
 0x208   :  { %v4416_v1 = vpop.eup %4415  ;;  %v1541_v11 = vrot.slane %v1457_v58, 2  ;;  %v1528_v37 = vpop.f32.mrf.mxu1 }
 0x209   :  { %v4418_v44 = vpop.eup %4417  ;;  %v1459_v36 = vpop.f32.mrf.mxu0  ;;  %v1573_v34 = vmul.f32 %v4416_v1, %v4414_v3  ;;  %v1543_v27 = vrot.slane %v1528_v37, 2  ;;  %v7764_v37 = vld [vmem:[#allocation35_spill] sm:$0xff] }
 0x20a   :  { %v1572_v60 = vmul.f32 0.0, %v4418_v44  ;;  %v1549_v5 = vadd.f32 %v1541_v11, %v5676_v38  ;;  %v1542_v4 = vrot.slane %v1459_v36, 2  ;;  %v1530_v45 = vpop.f32.mrf.mxu1  ;;  %v4420_v12 = vpop.eup %4419  ;;  %v7758_v44 = vld [vmem:[#allocation29_spill] sm:$0xff]  ;;  %v7760_v36 = vld [vmem:[#allocation31_spill] sm:$0xff]  ;;  %7825 = vst [vmem:[#allocation35_spill] sm:$0xff] %v5882_v13 }
 0x20b   :  { %v1544_v9 = vrot.slane %v1530_v45, 2  ;;  %v1551_v3 = vadd.f32 %v1543_v27, %v5691_v63  ;;  %v7769_v45 = vld [vmem:[#allocation40_spill] sm:$0xff]  ;;  %v7774_v27 = vld [vmem:[#allocation45_spill] sm:$0xff] }
 0x20c   :  { %v5681_v19 = vadd.f32 %v1573_v34, %v1572_v60  ;;  %v4334_v20 = vmul.f32 -1.442695, %v1549_v5  ;;  %v1550_v6 = vadd.f32 %v1542_v4, %v5678_v51  ;;  %v7761_v60 = vld [vmem:[#allocation32_spill] sm:$0xff]  ;;  %v7762_v34 = vld [vmem:[#allocation33_spill] sm:$0xff]  ;;  %v7763_v5 = vld [vmem:[#allocation34_spill] sm:$0xff]  ;;  %7830 = vst [vmem:[#allocation40_spill] sm:$0xff] %v5897_v43 }
 0x20d   :  { %v1552_v2 = vadd.f32 %v1544_v9, %v5686_v10  ;;  %v7765_v4 = vld [vmem:[#allocation36_spill] sm:$0xff]  ;;  %v7771_v9 = vld [vmem:[#allocation42_spill] sm:$0xff]  ;;  %7824 = vst [vmem:[#allocation34_spill] sm:$0xff] %v5879_v8 }
 0x20e   :  { %4421 = vtanh.f32 %v5681_v19  ;;  %v4335_v42 = vmul.f32 -1.442695, %v1550_v6  ;;  %v7767_v6 = vld [vmem:[#allocation38_spill] sm:$0xff]  ;;  %7826 = vst [vmem:[#allocation36_spill] sm:$0xff] %v5885_v39 }
 0x20f   :  { %4423 = vpow2.f32 %v4334_v20  ;;  %v4336_v7 = vmul.f32 -1.442695, %v1552_v2  ;;  %v7766_v20 = vld [vmem:[#allocation37_spill] sm:$0xff]  ;;  %v7773_v2 = vld [vmem:[#allocation44_spill] sm:$0xff]  ;;  %7828 = vst [vmem:[#allocation38_spill] sm:$0xff] %v5891_v14 }
 0x210   :  { %4425 = vpow2.f32 %v4335_v42  ;;  %v7768_v42 = vld [vmem:[#allocation39_spill] sm:$0xff]  ;;  %7827 = vst [vmem:[#allocation37_spill] sm:$0xff] %v5888_v33 }
 0x211   :  { %4427 = vpow2.f32 %v4336_v7  ;;  %v7775_v7 = vld [vmem:[#allocation46_spill] sm:$0xff]  ;;  %7829 = vst [vmem:[#allocation39_spill] sm:$0xff] %v5894_v16 }
 0x212   :  { %4429 = vtanh.f32 %v1551_v3 }
 0x21b   :  { %v4422_v58 = vpop.eup %4421 }
 0x21c   :  { %v4424_v1 = vpop.eup %4423  ;;  %v1576_v49 = vmul.f32 %v4422_v58, %v4420_v12  ;;  %v7776_v12 = vld [vmem:[#allocation47_spill] sm:$0xff]  ;;  %v7777_v58 = vld [vmem:[#allocation48_spill] sm:$0xff] }
 0x21d   :  { %v4426_v41 = vpop.eup %4425  ;;  %v1580_v11 = vadd.f32 1.0, %v4424_v1  ;;  %v7778_v1 = vld [vmem:[#allocation49_spill] sm:$0xff] }
 0x21e   :  { %v1586_v18 = vadd.f32 1.0, %v4426_v41  ;;  %1601 = vst [vmem:[%s7235_s5] sm:$0x3] %v1576_v49  ;;  %1680 = vmatmul.mubr.f32.vlgmr.msra.gmra.mxu0 %v1576_v49  ;;  %1751 = vmatmul.mubr.f32.vlgmr.msra.gmra.mxu1 %v1576_v49  ;;  %v4428_v3 = vpop.eup %4427  ;;  %v7779_v41 = vld [vmem:[#allocation50_spill] sm:$0xff] }
 0x21f   :  { %4431 = vrcp.f32 %v1580_v11  ;;  %1760 = vmatpush1.msra.mxu0 %v7755_v47  ;;  %1831 = vmatpush1.msra.mxu1 %v7756_v15  ;;  %v4430_v49 = vpop.eup %4429  ;;  %v7780_v11 = vld [vmem:[#allocation51_spill] sm:$0xff]  ;;  %v7781_v47 = vld [vmem:[#allocation52_spill] sm:$0xff]  ;;  %v7782_v15 = vld [vmem:[#allocation53_spill] sm:$0xff] }
 0x220   :  { %4433 = vrcp.f32 %v1586_v18  ;;  %1761 = vmatprep.subr.mxu0 %v7757_v23  ;;  %1832 = vmatprep.subr.mxu1 %v7758_v44  ;;  %v1593_v44 = vadd.f32 1.0, %v4428_v3  ;;  %v7798_v3 = vld [vmem:[#allocation69_spill] sm:$0xff] }
 0x221   :  { %1762 = vmatpush1.msra.mxu0 %v7759_v29  ;;  %1833 = vmatpush1.msra.mxu1 %v7760_v36  ;;  %v7783_v29 = vld [vmem:[#allocation54_spill] sm:$0xff]  ;;  %v7784_v36 = vld [vmem:[#allocation55_spill] sm:$0xff] }
 0x222   :  { %1763 = vmatprep.subr.mxu0 %v7761_v60  ;;  %1834 = vmatprep.subr.mxu1 %v7762_v34  ;;  %4435 = vrcp.f32 %v1593_v44  ;;  %v7806_v44 = vld [vmem:[#allocation77_spill] sm:$0xff] }
 0x223   :  { %1764 = vmatpush1.msra.mxu0 %v7763_v5  ;;  %1835 = vmatpush1.msra.mxu1 %v7764_v37  ;;  %v7785_v5 = vld [vmem:[#allocation56_spill] sm:$0xff]  ;;  %v7786_v37 = vld [vmem:[#allocation57_spill] sm:$0xff] }
 0x224   :  { %1765 = vmatprep.subr.mxu0 %v7765_v4  ;;  %1836 = vmatprep.subr.mxu1 %v7766_v20  ;;  %v7787_v4 = vld [vmem:[#allocation58_spill] sm:$0xff]  ;;  %v7788_v20 = vld [vmem:[#allocation59_spill] sm:$0xff] }
 0x225   :  { %1766 = vmatpush1.msra.mxu0 %v7767_v6  ;;  %1837 = vmatpush1.msra.mxu1 %v7768_v42  ;;  %v7789_v42 = vld [vmem:[#allocation60_spill] sm:$0xff] }
 0x226   :  { %1767 = vmatprep.subr.mxu0 %v7769_v45  ;;  %1838 = vmatprep.subr.mxu1 %v7770_v46  ;;  %v7790_v45 = vld [vmem:[#allocation61_spill] sm:$0xff]  ;;  %v7791_v46 = vld [vmem:[#allocation62_spill] sm:$0xff] }
 0x227   :  { %1768 = vmatpush1.msra.mxu0 %v7771_v9  ;;  %1839 = vmatpush1.msra.mxu1 %v7772_v17  ;;  %v7792_v9 = vld [vmem:[#allocation63_spill] sm:$0xff]  ;;  %v7793_v17 = vld [vmem:[#allocation64_spill] sm:$0xff] }
 0x228   :  { %1769 = vmatprep.subr.mxu0 %v7773_v2  ;;  %1840 = vmatprep.subr.mxu1 %v7774_v27  ;;  %v7794_v2 = vld [vmem:[#allocation65_spill] sm:$0xff]  ;;  %v7795_v27 = vld [vmem:[#allocation66_spill] sm:$0xff] }
 0x229   :  { %1770 = vmatpush1.msra.mxu0 %v7775_v7  ;;  %1841 = vmatpush1.msra.mxu1 %v7776_v12  ;;  %v7796_v7 = vld [vmem:[#allocation67_spill] sm:$0xff]  ;;  %v7797_v12 = vld [vmem:[#allocation68_spill] sm:$0xff] }
 0x22a   :  { %1771 = vmatprep.subr.mxu0 %v7777_v58  ;;  %1842 = vmatprep.subr.mxu1 %v7778_v1  ;;  %v7799_v58 = vld [vmem:[#allocation70_spill] sm:$0xff]  ;;  %v7800_v1 = vld [vmem:[#allocation71_spill] sm:$0xff] }
 0x22b   :  { %1772 = vmatpush1.msra.mxu0 %v7779_v41  ;;  %1843 = vmatpush1.msra.mxu1 %v7780_v11  ;;  %v7802_v41 = vld [vmem:[#allocation73_spill] sm:$0xff]  ;;  %v7803_v11 = vld [vmem:[#allocation74_spill] sm:$0xff] }
 0x22c   :  { %v4432_v18 = vpop.eup %4431  ;;  %1773 = vmatprep.subr.mxu0 %v7781_v47  ;;  %1844 = vmatprep.subr.mxu1 %v7782_v15  ;;  %v7805_v47 = vld [vmem:[#allocation76_spill] sm:$0xff]  ;;  %v5020_v15 = vmov 1983009808  }
 0x22d   :  { %v4434_v23 = vpop.eup %4433  ;;  %1774 = vmatpush1.msra.mxu0 %v7783_v29  ;;  %1845 = vmatpush1.msra.mxu1 %v7784_v36  ;;  %v1597_v34 = vmul.f32 %v4432_v18, %v4430_v49  ;;  %v7801_v49 = vld [vmem:[#allocation72_spill] sm:$0xff]  ;;  %v7804_v18 = vld [vmem:[#allocation75_spill] sm:$0xff]  ;;  %v7807_v29 = vld [vmem:[#allocation78_spill] sm:$0xff] }
 0x22e   :  { %v1596_v60 = vmul.f32 0.0, %v4434_v23  ;;  %1775 = vmatprep.subr.mxu0 %v7785_v5  ;;  %1846 = vmatprep.subr.mxu1 %v7786_v37  ;;  %v1605_v23 = vunpack.c.l.s4 %v5020_v15  ;;  %v5774_v5 = vld [vmem:[#allocation6 + $0x1e0] sm:$0xff]  ;;  %v5777_v37 = vld [vmem:[#allocation6 + $0x1f0] sm:$0xff] }
 0x22f   :  { %1776 = vmatpush1.msra.mxu0 %v7787_v4  ;;  %1847 = vmatpush1.msra.mxu1 %v7788_v20  ;;  %v5780_v20 = vld [vmem:[#allocation6 + $0x1c8] sm:$0xff]  ;;  %v5840_v15 = vld [vmem:[#allocation6 + $0x150] sm:$0xff] }
 0x230   :  { %v5731_v6 = vadd.f32 %v1597_v34, %v1596_v60  ;;  %1777 = vmatprep.subr.mxu0 %v7789_v42  ;;  %1848 = vmatprep.subr.mxu1 %v7790_v45  ;;  %v1606_v36 = vunpack.c.0.s8 %v1605_v23  ;;  %v5786_v42 = vld [vmem:[#allocation6 + $0x1c0] sm:$0xff]  ;;  %v5789_v45 = vld [vmem:[#allocation6 + $0x1d0] sm:$0xff]  ;;  %7811 = vst [vmem:[#allocation20_spill] sm:$0xff] %v5840_v15  ;;  %v5843_v23 = vld [vmem:[#allocation6 + $0x128] sm:$0xff] }
 0x231   :  { %1778 = vmatpush1.msra.mxu0 %v7791_v46  ;;  %1849 = vmatpush1.msra.mxu1 %v7792_v9  ;;  %v5795_v46 = vld [vmem:[#allocation6 + $0x1a8] sm:$0xff]  ;;  %v5798_v9 = vld [vmem:[#allocation6 + $0x1b8] sm:$0xff]  ;;  %7812 = vst [vmem:[#allocation22_spill] sm:$0xff] %v5843_v23 }
 0x232   :  { %4437 = vtanh.f32 %v5731_v6  ;;  %1779 = vmatprep.subr.mxu0 %v7793_v17  ;;  %1850 = vmatprep.subr.mxu1 %v7794_v2  ;;  %v5801_v17 = vld [vmem:[#allocation6 + $0x1a0] sm:$0xff]  ;;  %v5804_v2 = vld [vmem:[#allocation6 + $0x1b0] sm:$0xff] }
 0x233   :  { %1780 = vmatpush1.msra.mxu0 %v7795_v27  ;;  %1851 = vmatpush1.msra.mxu1 %v7796_v7  ;;  %v5807_v27 = vld [vmem:[#allocation6 + $0x188] sm:$0xff]  ;;  %v5810_v7 = vld [vmem:[#allocation6 + $0x198] sm:$0xff] }
 0x234   :  { %1781 = vmatprep.subr.mxu0 %v7797_v12  ;;  %1852 = vmatprep.subr.mxu1 %v7798_v3  ;;  %v5813_v12 = vld [vmem:[#allocation6 + $0x180] sm:$0xff]  ;;  %v5816_v3 = vld [vmem:[#allocation6 + $0x190] sm:$0xff] }
 0x235   :  { %1782 = vmatpush1.msra.mxu0 %v7799_v58  ;;  %1853 = vmatpush1.msra.mxu1 %v7800_v1  ;;  %v5819_v58 = vld [vmem:[#allocation6 + $0x168] sm:$0xff]  ;;  %v5822_v1 = vld [vmem:[#allocation6 + $0x178] sm:$0xff] }
 0x236   :  { %1783 = vmatprep.subr.mxu0 %v7801_v49  ;;  %1854 = vmatprep.subr.mxu1 %v7802_v41  ;;  %v5825_v49 = vld [vmem:[#allocation6 + $0x160] sm:$0xff]  ;;  %v5828_v41 = vld [vmem:[#allocation6 + $0x170] sm:$0xff] }
 0x237   :  { %1784 = vmatpush1.msra.mxu0 %v7803_v11  ;;  %1855 = vmatpush1.msra.mxu1 %v7804_v18  ;;  %v5831_v11 = vld [vmem:[#allocation6 + $0x148] sm:$0xff]  ;;  %v5834_v18 = vld [vmem:[#allocation6 + $0x158] sm:$0xff] }
 0x238   :  { %1785 = vmatprep.subr.mxu0 %v7805_v47  ;;  %1856 = vmatprep.subr.mxu1 %v5488_v28  ;;  %v7808_v28 = vld [vmem:[#allocation79_spill] sm:$0xff]  ;;  %v5837_v47 = vld [vmem:[#allocation6 + $0x140] sm:$0xff] }
 0x239   :  { %1786 = vmatpush1.msra.mxu0 %v5490_v24  ;;  %1857 = vmatpush1.msra.mxu1 %v7806_v44  ;;  %v4436_v24 = vpop.eup %4435  ;;  %7810 = vst [vmem:[#allocation21_spill] sm:$0xff] %v5837_v47  ;;  %v5846_v44 = vld [vmem:[#allocation6 + $0x138] sm:$0xff] }
 0x23a   :  { %1787 = vmatprep.subr.mxu0 %v5496_v59  ;;  %1858 = vmatprep.subr.mxu1 %v5500_v30  ;;  %v5764_v30 = vld [vmem:[#allocation6 + $0x1e8] sm:$0xff]  ;;  %7813 = vst [vmem:[#allocation23_spill] sm:$0xff] %v5846_v44 }
 0x23b   :  { %1788 = vmatpush1.msra.mxu0 %v5502_v35  ;;  %1859 = vmatpush1.msra.mxu1 %v7807_v29  ;;  %v5767_v35 = vld [vmem:[#allocation6 + $0x1f8] sm:$0xff]  ;;  %v5849_v29 = vld [vmem:[#allocation6 + $0x120] sm:$0xff] }
 0x23c   :  { %1789 = vmatprep.subr.mxu0 %v5508_v26  ;;  %1860 = vmatprep.subr.mxu1 %v5512_v0  ;;  %v5771_v26 = vsub.s32 %v1606_v36, %v5530_v22  ;;  %v5783_v22 = vld [vmem:[#allocation6 + $0x1d8] sm:$0xff]  ;;  %7814 = vst [vmem:[#allocation24_spill] sm:$0xff] %v5849_v29  ;;  %v5852_v36 = vld [vmem:[#allocation6 + $0x130] sm:$0xff] }
 0x23d   :  { %1790 = vmatpush1.msra.mxu0 %v5514_v25  ;;  %1823 = vmatprep.mubr.f32.mxu0 %v7675_v32  ;;  %7815 = vst [vmem:[#allocation25_spill] sm:$0xff] %v5852_v36 }
 0x23e   :  { %1861 = vmatpush1.msra.mxu1 %v7808_v28  ;;  %1894 = vmatprep.mubr.f32.mxu1 %v7675_v32  ;;  %7809 = vst [vmem:[#allocation18_spill] sm:$0xff] %v5771_v26  ;;  %v5858_v28 = vld [vmem:[#allocation6 + $0x118] sm:$0xff] }
 0x23f   :  { %v4438_v59 = vpop.eup %4437  ;;  %2013 = vmatprep.subr.mxu0 %v5764_v30  ;;  %2084 = vmatprep.subr.mxu1 %v5767_v35  ;;  %7817 = vst [vmem:[#allocation27_spill] sm:$0xff] %v5858_v28 }
 0x240   :  { %v1600_v0 = vmul.f32 %v4438_v59, %v4436_v24  ;;  %v5855_v24 = vld [vmem:[#allocation6 + $0x108] sm:$0xff]  ;;  %v5861_v59 = vld [vmem:[#allocation6 + $0x100] sm:$0xff] }
 0x241   :  { %7816 = vst [vmem:[#allocation26_spill] sm:$0xff] %v5855_v24  ;;  %7818 = vst [vmem:[#allocation28_spill] sm:$0xff] %v5861_v59 }
 0x242   :  { %v1603_v25 = vcombine.high %v1600_v0, %v1600_v0  ;;  %v1757_v60 = vrot.slane %v1600_v0, 6  ;;  %v5864_v0 = vld [vmem:[#allocation6 + $0x110] sm:$0xff] }
 0x243   :  { %7819 = vst [vmem:[#allocation29_spill] sm:$0xff] %v5864_v0 }
 0x244   :  { %v1610_v34 = vrot.slane %v1603_v25, %v5771_v26  ;;  %1824 = vmatmul.mubr.f32.vlgmr.msra.gmra.mxu0 %v1757_v60  ;;  %1895 = vmatmul.mubr.f32.vlgmr.msra.gmra.mxu1 %v1757_v60  ;;  %v5867_v25 = vld [vmem:[#allocation6 + $0xe8] sm:$0xff]  ;;  %v5870_v60 = vld [vmem:[#allocation6 + $0xf8] sm:$0xff] }
 0x245   :  { %2014 = vmatpush1.msra.mxu0 %v5774_v5  ;;  %2085 = vmatpush1.msra.mxu1 %v5777_v37  ;;  %7820 = vst [vmem:[#allocation30_spill] sm:$0xff] %v5867_v25  ;;  %7821 = vst [vmem:[#allocation31_spill] sm:$0xff] %v5870_v60 }
 0x246   :  { %v1611_v4 = vcombine.high %v1610_v34, %v1610_v34  ;;  %2015 = vmatprep.subr.mxu0 %v5780_v20  ;;  %2086 = vmatprep.subr.mxu1 %v5783_v22  ;;  %v5873_v34 = vld [vmem:[#allocation6 + $0xe0] sm:$0xff] }
 0x247   :  { %2016 = vmatpush1.msra.mxu0 %v5786_v42  ;;  %2087 = vmatpush1.msra.mxu1 %v5789_v45  ;;  %7822 = vst [vmem:[#allocation32_spill] sm:$0xff] %v5873_v34 }
 0x248   :  { %4337 = vst [vmem:[%s7235_s5 + $0x1e] sm:$0x3] %v1611_v4  ;;  %2017 = vmatprep.subr.mxu0 %v5795_v46  ;;  %2088 = vmatprep.subr.mxu1 %v5798_v9  ;;  %v5876_v4 = vld [vmem:[#allocation6 + $0xf0] sm:$0xff] }
 0x249   :  { %2018 = vmatpush1.msra.mxu0 %v5801_v17  ;;  %2089 = vmatpush1.msra.mxu1 %v5804_v2  ;;  %7823 = vst [vmem:[#allocation33_spill] sm:$0xff] %v5876_v4 }
 0x24a   :  { %2019 = vmatprep.subr.mxu0 %v5807_v27  ;;  %2090 = vmatprep.subr.mxu1 %v5810_v7 }
 0x24b   :  { %2020 = vmatpush1.msra.mxu0 %v5813_v12  ;;  %2091 = vmatpush1.msra.mxu1 %v5816_v3 }
 0x24c   :  { %2021 = vmatprep.subr.mxu0 %v5819_v58  ;;  %2092 = vmatprep.subr.mxu1 %v5822_v1 }
 0x24d   :  { %2022 = vmatpush1.msra.mxu0 %v5825_v49  ;;  %2093 = vmatpush1.msra.mxu1 %v5828_v41 }
 0x24e   :  { %2023 = vmatprep.subr.mxu0 %v5831_v11  ;;  %2094 = vmatprep.subr.mxu1 %v5834_v18 }
 0x24f   :  { %2024 = vmatpush1.msra.mxu0 %v5837_v47  ;;  %2095 = vmatpush1.msra.mxu1 %v5840_v15 }
 0x250   :  { %2025 = vmatprep.subr.mxu0 %v5843_v23  ;;  %2096 = vmatprep.subr.mxu1 %v5846_v44 }
 0x251   :  { %2026 = vmatpush1.msra.mxu0 %v5849_v29  ;;  %2097 = vmatpush1.msra.mxu1 %v5852_v36 }
 0x252   :  { %2027 = vmatprep.subr.mxu0 %v5855_v24  ;;  %2098 = vmatprep.subr.mxu1 %v5858_v28 }
 0x253   :  { %2028 = vmatpush1.msra.mxu0 %v5861_v59  ;;  %2099 = vmatpush1.msra.mxu1 %v5864_v0 }
 0x254   :  { %2029 = vmatprep.subr.mxu0 %v5867_v25  ;;  %2100 = vmatprep.subr.mxu1 %v5870_v60 }
 0x255   :  { %2030 = vmatpush1.msra.mxu0 %v5873_v34  ;;  %2101 = vmatpush1.msra.mxu1 %v5876_v4 }
 0x256   :  { %2031 = vmatprep.subr.mxu0 %v5879_v8  ;;  %2102 = vmatprep.subr.mxu1 %v5882_v13 }
 0x257   :  { %2032 = vmatpush1.msra.mxu0 %v5885_v39  ;;  %2103 = vmatpush1.msra.mxu1 %v5888_v33  ;;  %v5903_v39 = vld [vmem:[#allocation6 + $0x88] sm:$0xff]  ;;  %v5906_v33 = vld [vmem:[#allocation6 + $0x98] sm:$0xff] }
 0x258   :  { %2033 = vmatprep.subr.mxu0 %v5891_v14  ;;  %2104 = vmatprep.subr.mxu1 %v5894_v16  ;;  %7832 = vst [vmem:[#allocation42_spill] sm:$0xff] %v5903_v39  ;;  %7833 = vst [vmem:[#allocation43_spill] sm:$0xff] %v5906_v33  ;;  %v5909_v14 = vld [vmem:[#allocation6 + $0x80] sm:$0xff]  ;;  %v5912_v16 = vld [vmem:[#allocation6 + $0x90] sm:$0xff] }
 0x259   :  { %2034 = vmatpush1.msra.mxu0 %v5897_v43  ;;  %2105 = vmatpush1.msra.mxu1 %v5900_v40  ;;  %7834 = vst [vmem:[#allocation44_spill] sm:$0xff] %v5909_v14  ;;  %7835 = vst [vmem:[#allocation45_spill] sm:$0xff] %v5912_v16  ;;  %v5915_v43 = vld [vmem:[#allocation6 + $0x68] sm:$0xff]  ;;  %v5918_v40 = vld [vmem:[#allocation6 + $0x78] sm:$0xff] }
 0x25a   :  { %2035 = vmatprep.subr.mxu0 %v5903_v39  ;;  %2106 = vmatprep.subr.mxu1 %v5906_v33  ;;  %7836 = vst [vmem:[#allocation46_spill] sm:$0xff] %v5915_v43  ;;  %7837 = vst [vmem:[#allocation47_spill] sm:$0xff] %v5918_v40  ;;  %v5921_v39 = vld [vmem:[#allocation6 + $0x60] sm:$0xff]  ;;  %v5924_v33 = vld [vmem:[#allocation6 + $0x70] sm:$0xff] }
 0x25b   :  { %2036 = vmatpush1.msra.mxu0 %v5909_v14  ;;  %2107 = vmatpush1.msra.mxu1 %v5912_v16  ;;  %7838 = vst [vmem:[#allocation48_spill] sm:$0xff] %v5921_v39  ;;  %7839 = vst [vmem:[#allocation49_spill] sm:$0xff] %v5924_v33  ;;  %v5927_v14 = vld [vmem:[#allocation6 + $0x48] sm:$0xff]  ;;  %v5930_v16 = vld [vmem:[#allocation6 + $0x58] sm:$0xff] }
 0x25c   :  { %2037 = vmatprep.subr.mxu0 %v5915_v43  ;;  %2108 = vmatprep.subr.mxu1 %v5918_v40  ;;  %7840 = vst [vmem:[#allocation50_spill] sm:$0xff] %v5927_v14  ;;  %7841 = vst [vmem:[#allocation51_spill] sm:$0xff] %v5930_v16  ;;  %v5933_v43 = vld [vmem:[#allocation6 + $0x40] sm:$0xff]  ;;  %v5936_v40 = vld [vmem:[#allocation6 + $0x50] sm:$0xff] }
 0x25d   :  { %2038 = vmatpush1.msra.mxu0 %v5921_v39  ;;  %2109 = vmatpush1.msra.mxu1 %v5924_v33  ;;  %7842 = vst [vmem:[#allocation52_spill] sm:$0xff] %v5933_v43  ;;  %7843 = vst [vmem:[#allocation53_spill] sm:$0xff] %v5936_v40  ;;  %v5940_v39 = vld [vmem:[#allocation6 + $0x38] sm:$0xff] }
 0x25e   :  { %2039 = vmatprep.subr.mxu0 %v5927_v14  ;;  %2110 = vmatprep.subr.mxu1 %v5930_v16  ;;  %7844 = vst [vmem:[#allocation54_spill] sm:$0xff] %v5940_v39  ;;  %v5944_v14 = vld [vmem:[#allocation6 + $0x30] sm:$0xff] }
 0x25f   :  { %2040 = vmatpush1.msra.mxu0 %v5933_v43  ;;  %2111 = vmatpush1.msra.mxu1 %v5936_v40  ;;  %7845 = vst [vmem:[#allocation55_spill] sm:$0xff] %v5944_v14 }
 0x260   :  { %2041 = vmatprep.subr.mxu0 %v7738_v48  ;;  %2112 = vmatprep.subr.mxu1 %v5940_v39 }
 0x261   :  { %2042 = vmatpush1.msra.mxu0 %v7740_v50  ;;  %2113 = vmatpush1.msra.mxu1 %v5944_v14 }
 0x262   :  { %2043 = vmatprep.subr.mxu0 %v7742_v52  ;;  %2114 = vmatprep.subr.mxu1 %v7743_v53 }
 0x263   :  { %2044 = vmatpush1.msra.mxu0 %v7744_v54  ;;  %2077 = vmatprep.mubr.f32.mxu0 %v7675_v32 }
 0x264   :  { %2115 = vmatpush1.msra.mxu1 %v7745_v55  ;;  %2148 = vmatprep.mubr.f32.mxu1 %v7675_v32 }
 0x265   :  { %2157 = vmatprep.subr.mxu0 %v7746_v56  ;;  %2228 = vmatprep.subr.mxu1 %v7747_v57 }
 0x2de   :  { %v1681_v48 = vpop.f32.mrf.mxu0  ;;  %v1752_v52 = vpop.f32.mrf.mxu1 }
 0x2df   :  { %v1905_v50 = vrot.slane %v1681_v48, 6  ;;  %v1907_v56 = vrot.slane %v1752_v52, 6 }
 0x2e0   :  { %v1683_v39 = vpop.f32.mrf.mxu0  ;;  %v1754_v16 = vpop.f32.mrf.mxu1 }
 0x2e1   :  { %v1913_v14 = vadd.f32 %v1905_v50, %v5662_v21  ;;  %v1906_v40 = vrot.slane %v1683_v39, 6  ;;  %v1908_v55 = vrot.slane %v1754_v16, 6  ;;  %v1915_v48 = vadd.f32 %v1907_v56, %v5673_v61 }
 0x2e3   :  { %v4338_v53 = vmul.f32 -1.442695, %v1913_v14  ;;  %v1914_v54 = vadd.f32 %v1906_v40, %v5665_v62  ;;  %v1916_v33 = vadd.f32 %v1908_v55, %v5669_v31 }
 0x2e5   :  { %4439 = vpow2.f32 %v4338_v53  ;;  %v4339_v43 = vmul.f32 -1.442695, %v1914_v54  ;;  %v4340_v13 = vmul.f32 -1.442695, %v1916_v33 }
 0x2e7   :  { %4441 = vpow2.f32 %v4339_v43  ;;  %v1953_v43 = vrot.slane %v5681_v19, 6 }
 0x2e8   :  { %4443 = vpow2.f32 %v4340_v13 }
 0x2f2   :  { %v4440_v57 = vpop.eup %4439 }
 0x2f3   :  { %v1936_v8 = vadd.f32 1.0, %v4440_v57 }
 0x2f4   :  { %v4442_v4 = vpop.eup %4441 }
 0x2f5   :  { %4445 = vrcp.f32 %v1936_v8  ;;  %v1942_v39 = vadd.f32 1.0, %v4442_v4  ;;  %v4444_v40 = vpop.eup %4443 }
 0x2f6   :  { %4447 = vtanh.f32 %v1915_v48  ;;  %v1949_v33 = vadd.f32 1.0, %v4444_v40 }
 0x2f7   :  { %4449 = vrcp.f32 %v1942_v39 }
 0x2f8   :  { %4451 = vrcp.f32 %v1949_v33 }
 0x302   :  { %v4446_v14 = vpop.eup %4445 }
 0x303   :  { %v4448_v50 = vpop.eup %4447 }
 0x304   :  { %v4450_v16 = vpop.eup %4449  ;;  %v1825_v53 = vpop.f32.mrf.mxu0  ;;  %v1956_v54 = vmul.f32 %v4448_v50, %v4446_v14 }
 0x305   :  { %v1955_v52 = vmul.f32 %v4450_v16, %v1953_v43  ;;  %v1921_v55 = vrot.slane %v1825_v53, 4  ;;  %v1896_v8 = vpop.f32.mrf.mxu1  ;;  %v4452_v43 = vpop.eup %4451 }
 0x306   :  { %v1827_v31 = vpop.f32.mrf.mxu0  ;;  %v1923_v50 = vrot.slane %v1896_v8, 4  ;;  %v5968_v8 = vld [vmem:[#allocation7 + $0x1e0] sm:$0xff] }
 0x307   :  { %v5960_v56 = vadd.f32 %v1956_v54, %v1955_v52  ;;  %v1929_v13 = vadd.f32 %v1921_v55, %v5676_v38  ;;  %v1922_v4 = vrot.slane %v1827_v31, 4  ;;  %v1898_v39 = vpop.f32.mrf.mxu1 }
 0x308   :  { %v1924_v14 = vrot.slane %v1898_v39, 4  ;;  %v1931_v31 = vadd.f32 %v1923_v50, %v5691_v63  ;;  %v5977_v39 = vld [vmem:[#allocation7 + $0x1c8] sm:$0xff]  ;;  %v5986_v50 = vld [vmem:[#allocation7 + $0x1d0] sm:$0xff] }
 0x309   :  { %v4341_v57 = vmul.f32 -1.442695, %v1929_v13  ;;  %v1930_v48 = vadd.f32 %v1922_v4, %v5678_v51  ;;  %4453 = vtanh.f32 %v5960_v56 }
 0x30a   :  { %v1932_v40 = vadd.f32 %v1924_v14, %v5686_v10  ;;  %v5980_v14 = vld [vmem:[#allocation7 + $0x1d8] sm:$0xff] }
 0x30b   :  { %4455 = vpow2.f32 %v4341_v57  ;;  %v4342_v19 = vmul.f32 -1.442695, %v1930_v48 }
 0x30c   :  { %v4343_v16 = vmul.f32 -1.442695, %v1932_v40  ;;  %v5983_v40 = vld [vmem:[#allocation7 + $0x1c0] sm:$0xff] }
 0x30d   :  { %4457 = vpow2.f32 %v4342_v19  ;;  %v5971_v19 = vld [vmem:[#allocation7 + $0x1f0] sm:$0xff] }
 0x30e   :  { %4459 = vpow2.f32 %v4343_v16  ;;  %v5992_v16 = vld [vmem:[#allocation7 + $0x1b8] sm:$0xff] }
 0x30f   :  { %7846 = vst [vmem:[#allocation56_spill] sm:$0xff] %v5992_v16 }
 0x316   :  { %v4454_v53 = vpop.eup %4453 }
 0x317   :  { %v1959_v52 = vmul.f32 %v4454_v53, %v4452_v43  ;;  %v5989_v43 = vld [vmem:[#allocation7 + $0x1a8] sm:$0xff]  ;;  %v5995_v53 = vld [vmem:[#allocation7 + $0x1a0] sm:$0xff] }
 0x318   :  { %v4456_v54 = vpop.eup %4455  ;;  %7847 = vst [vmem:[#allocation57_spill] sm:$0xff] %v5995_v53 }
 0x319   :  { %v1963_v33 = vadd.f32 1.0, %v4456_v54  ;;  %v1994_v13 = vrot.slane %v1959_v52, %v5771_v26  ;;  %v2011_v4 = vrot.slane %v1959_v52, 2  ;;  %v5998_v54 = vld [vmem:[#allocation7 + $0x1b0] sm:$0xff]  ;;  %v6004_v52 = vld [vmem:[#allocation7 + $0x198] sm:$0xff]  ;;  %v6025_v26 = vld [vmem:[#allocation7 + $0x148] sm:$0xff] }
 0x31a   :  { %v4458_v55 = vpop.eup %4457  ;;  %7848 = vst [vmem:[#allocation58_spill] sm:$0xff] %v5998_v54  ;;  %7850 = vst [vmem:[#allocation60_spill] sm:$0xff] %v6004_v52 }
 0x31b   :  { %4461 = vrcp.f32 %v1963_v33  ;;  %v1969_v57 = vadd.f32 1.0, %v4458_v55  ;;  %v1995_v48 = vcombine.high %v1994_v13, %v1994_v13  ;;  %2078 = vmatmul.mubr.f32.vlgmr.msra.gmra.mxu0 %v2011_v4  ;;  %2149 = vmatmul.mubr.f32.vlgmr.msra.gmra.mxu1 %v2011_v4  ;;  %v6007_v33 = vld [vmem:[#allocation7 + $0x180] sm:$0xff]  ;;  %v6010_v55 = vld [vmem:[#allocation7 + $0x190] sm:$0xff]  ;;  %v6013_v13 = vld [vmem:[#allocation7 + $0x168] sm:$0xff]  ;;  %7857 = vst [vmem:[#allocation67_spill] sm:$0xff] %v6025_v26 }
 0x31c   :  { %4463 = vtanh.f32 %v1931_v31  ;;  %2158 = vmatpush1.msra.mxu0 %v5968_v8  ;;  %2229 = vmatpush1.msra.mxu1 %v5971_v19  ;;  %v6001_v31 = vld [vmem:[#allocation7 + $0x188] sm:$0xff]  ;;  %7851 = vst [vmem:[#allocation61_spill] sm:$0xff] %v6007_v33  ;;  %7852 = vst [vmem:[#allocation62_spill] sm:$0xff] %v6010_v55  ;;  %v6016_v4 = vld [vmem:[#allocation7 + $0x178] sm:$0xff] }
 0x31d   :  { %4465 = vrcp.f32 %v1969_v57  ;;  %4344 = vst [vmem:[%s7235_s5 + $0x4] sm:$0x3] %v1995_v48  ;;  %2159 = vmatprep.subr.mxu0 %v5977_v39  ;;  %2230 = vmatprep.subr.mxu1 %v5980_v14  ;;  %7849 = vst [vmem:[#allocation59_spill] sm:$0xff] %v6001_v31  ;;  %v6019_v57 = vld [vmem:[#allocation7 + $0x160] sm:$0xff]  ;;  %v6022_v48 = vld [vmem:[#allocation7 + $0x170] sm:$0xff] }
 0x31e   :  { %2160 = vmatpush1.msra.mxu0 %v5983_v40  ;;  %2231 = vmatpush1.msra.mxu1 %v5986_v50  ;;  %7853 = vst [vmem:[#allocation63_spill] sm:$0xff] %v6013_v13  ;;  %7854 = vst [vmem:[#allocation64_spill] sm:$0xff] %v6016_v4 }
 0x31f   :  { %2161 = vmatprep.subr.mxu0 %v5989_v43  ;;  %2232 = vmatprep.subr.mxu1 %v5992_v16  ;;  %7855 = vst [vmem:[#allocation65_spill] sm:$0xff] %v6019_v57  ;;  %7856 = vst [vmem:[#allocation66_spill] sm:$0xff] %v6022_v48  ;;  %v6056_v16 = vld [vmem:[#allocation7 + $0x100] sm:$0xff] }
 0x320   :  { %2162 = vmatpush1.msra.mxu0 %v5995_v53  ;;  %2233 = vmatpush1.msra.mxu1 %v5998_v54  ;;  %v6050_v53 = vld [vmem:[#allocation7 + $0x108] sm:$0xff] }
 0x321   :  { %2163 = vmatprep.subr.mxu0 %v6001_v31  ;;  %2234 = vmatprep.subr.mxu1 %v6004_v52  ;;  %v6037_v52 = vld [vmem:[#allocation7 + $0x128] sm:$0xff]  ;;  %v6044_v31 = vld [vmem:[#allocation7 + $0x120] sm:$0xff]  ;;  %7865 = vst [vmem:[#allocation75_spill] sm:$0xff] %v6050_v53 }
 0x322   :  { %2164 = vmatpush1.msra.mxu0 %v6007_v33  ;;  %2235 = vmatpush1.msra.mxu1 %v6010_v55  ;;  %v6028_v55 = vld [vmem:[#allocation7 + $0x158] sm:$0xff]  ;;  %v6031_v33 = vld [vmem:[#allocation7 + $0x140] sm:$0xff]  ;;  %7861 = vst [vmem:[#allocation71_spill] sm:$0xff] %v6037_v52  ;;  %7863 = vst [vmem:[#allocation73_spill] sm:$0xff] %v6044_v31 }
 0x323   :  { %2165 = vmatprep.subr.mxu0 %v6013_v13  ;;  %2236 = vmatprep.subr.mxu1 %v6016_v4  ;;  %7858 = vst [vmem:[#allocation68_spill] sm:$0xff] %v6028_v55  ;;  %v4460_v13 = vpop.eup %4459  ;;  %7859 = vst [vmem:[#allocation69_spill] sm:$0xff] %v6031_v33  ;;  %v6034_v4 = vld [vmem:[#allocation7 + $0x150] sm:$0xff] }
 0x324   :  { %2166 = vmatpush1.msra.mxu0 %v6019_v57  ;;  %2237 = vmatpush1.msra.mxu1 %v6022_v48  ;;  %7860 = vst [vmem:[#allocation70_spill] sm:$0xff] %v6034_v4  ;;  %v6040_v48 = vld [vmem:[#allocation7 + $0x138] sm:$0xff]  ;;  %v1976_v54 = vadd.f32 1.0, %v4460_v13 }
 0x325   :  { %2167 = vmatprep.subr.mxu0 %v6025_v26  ;;  %2238 = vmatprep.subr.mxu1 %v6028_v55  ;;  %7862 = vst [vmem:[#allocation72_spill] sm:$0xff] %v6040_v48  ;;  %v1980_v55 = vrot.slane %v5731_v6, 2  ;;  %v6065_v13 = vld [vmem:[#allocation7 + $0xf8] sm:$0xff] }
 0x326   :  { %2168 = vmatpush1.msra.mxu0 %v6031_v33  ;;  %2239 = vmatpush1.msra.mxu1 %v6034_v4  ;;  %v6047_v33 = vld [vmem:[#allocation7 + $0x130] sm:$0xff]  ;;  %7867 = vst [vmem:[#allocation77_spill] sm:$0xff] %v6065_v13  ;;  %4467 = vrcp.f32 %v1976_v54  ;;  %v6092_v54 = vld [vmem:[#allocation7 + $0xb8] sm:$0xff] }
 0x327   :  { %2169 = vmatprep.subr.mxu0 %v6037_v52  ;;  %2240 = vmatprep.subr.mxu1 %v6040_v48  ;;  %7864 = vst [vmem:[#allocation74_spill] sm:$0xff] %v6047_v33  ;;  %v6053_v52 = vld [vmem:[#allocation7 + $0x118] sm:$0xff]  ;;  %7875 = vst [vmem:[#allocation87_spill] sm:$0xff] %v6092_v54 }
 0x328   :  { %v4462_v57 = vpop.eup %4461  ;;  %2170 = vmatpush1.msra.mxu0 %v6044_v31  ;;  %2241 = vmatpush1.msra.mxu1 %v6047_v33  ;;  %7866 = vst [vmem:[#allocation76_spill] sm:$0xff] %v6053_v52  ;;  %v6059_v31 = vld [vmem:[#allocation7 + $0x110] sm:$0xff]  ;;  %v6062_v33 = vld [vmem:[#allocation7 + $0xe8] sm:$0xff] }
 0x329   :  { %v4464_v26 = vpop.eup %4463  ;;  %2171 = vmatprep.subr.mxu0 %v6050_v53  ;;  %2242 = vmatprep.subr.mxu1 %v6053_v52 }
 0x32a   :  { %v4466_v4 = vpop.eup %4465  ;;  %v1983_v48 = vmul.f32 %v4464_v26, %v4462_v57  ;;  %2172 = vmatpush1.msra.mxu0 %v6056_v16  ;;  %2243 = vmatpush1.msra.mxu1 %v6059_v31  ;;  %v6070_v26 = vld [vmem:[#allocation7 + $0xe0] sm:$0xff]  ;;  %v6079_v57 = vld [vmem:[#allocation7 + $0xd8] sm:$0xff] }
 0x32b   :  { %v1982_v6 = vmul.f32 %v4466_v4, %v1980_v55  ;;  %2173 = vmatprep.subr.mxu0 %v6062_v33  ;;  %2244 = vmatprep.subr.mxu1 %v6065_v13  ;;  %7868 = vst [vmem:[#allocation78_spill] sm:$0xff] %v6070_v26  ;;  %v6073_v55 = vld [vmem:[#allocation7 + $0xf0] sm:$0xff]  ;;  %v6076_v4 = vld [vmem:[#allocation7 + $0xc8] sm:$0xff]  ;;  %7871 = vst [vmem:[#allocation83_spill] sm:$0xff] %v6079_v57 }
 0x32c   :  { %2174 = vmatpush1.msra.mxu0 %v6070_v26  ;;  %7869 = vst [vmem:[#allocation79_spill] sm:$0xff] %v6073_v55  ;;  %2245 = vmatpush1.msra.mxu1 %v6073_v55  ;;  %7870 = vst [vmem:[#allocation82_spill] sm:$0xff] %v6076_v4  ;;  %v6082_v13 = vld [vmem:[#allocation7 + $0xc0] sm:$0xff] }
 0x32d   :  { %v6068_v53 = vadd.f32 %v1983_v48, %v1982_v6  ;;  %2175 = vmatprep.subr.mxu0 %v6076_v4  ;;  %2246 = vmatprep.subr.mxu1 %v6079_v57  ;;  %7872 = vst [vmem:[#allocation84_spill] sm:$0xff] %v6082_v13  ;;  %v6085_v48 = vld [vmem:[#allocation7 + $0xd0] sm:$0xff]  ;;  %v6089_v6 = vld [vmem:[#allocation7 + $0xa8] sm:$0xff]  ;;  %v6095_v4 = vld [vmem:[#allocation7 + $0xa0] sm:$0xff] }
 0x32e   :  { %2176 = vmatpush1.msra.mxu0 %v6082_v13  ;;  %7873 = vst [vmem:[#allocation85_spill] sm:$0xff] %v6085_v48  ;;  %2247 = vmatpush1.msra.mxu1 %v6085_v48  ;;  %7874 = vst [vmem:[#allocation86_spill] sm:$0xff] %v6089_v6  ;;  %v6098_v57 = vld [vmem:[#allocation7 + $0xb0] sm:$0xff]  ;;  %v6101_v13 = vld [vmem:[#allocation7 + $0x88] sm:$0xff] }
 0x32f   :  { %4469 = vtanh.f32 %v6068_v53  ;;  %2177 = vmatprep.subr.mxu0 %v6089_v6  ;;  %2248 = vmatprep.subr.mxu1 %v6092_v54  ;;  %7876 = vst [vmem:[#allocation88_spill] sm:$0xff] %v6095_v4  ;;  %7877 = vst [vmem:[#allocation89_spill] sm:$0xff] %v6098_v57  ;;  %v6104_v48 = vld [vmem:[#allocation7 + $0x98] sm:$0xff]  ;;  %v6107_v6 = vld [vmem:[#allocation7 + $0x80] sm:$0xff] }
 0x330   :  { %2178 = vmatpush1.msra.mxu0 %v6095_v4  ;;  %2249 = vmatpush1.msra.mxu1 %v6098_v57  ;;  %7878 = vst [vmem:[#allocation90_spill] sm:$0xff] %v6101_v13  ;;  %7879 = vst [vmem:[#allocation91_spill] sm:$0xff] %v6104_v48  ;;  %v6110_v54 = vld [vmem:[#allocation7 + $0x90] sm:$0xff]  ;;  %v6113_v4 = vld [vmem:[#allocation7 + $0x68] sm:$0xff] }
 0x331   :  { %2179 = vmatprep.subr.mxu0 %v6101_v13  ;;  %2250 = vmatprep.subr.mxu1 %v6104_v48  ;;  %7880 = vst [vmem:[#allocation92_spill] sm:$0xff] %v6107_v6  ;;  %7881 = vst [vmem:[#allocation93_spill] sm:$0xff] %v6110_v54  ;;  %v6116_v57 = vld [vmem:[#allocation7 + $0x78] sm:$0xff]  ;;  %v6119_v13 = vld [vmem:[#allocation7 + $0x60] sm:$0xff] }
 0x332   :  { %2180 = vmatpush1.msra.mxu0 %v6107_v6  ;;  %2251 = vmatpush1.msra.mxu1 %v6110_v54  ;;  %7882 = vst [vmem:[#allocation94_spill] sm:$0xff] %v6113_v4  ;;  %7883 = vst [vmem:[#allocation95_spill] sm:$0xff] %v6116_v57  ;;  %v6122_v48 = vld [vmem:[#allocation7 + $0x70] sm:$0xff]  ;;  %v6125_v6 = vld [vmem:[#allocation7 + $0x48] sm:$0xff] }
 0x333   :  { %2181 = vmatprep.subr.mxu0 %v6113_v4  ;;  %2252 = vmatprep.subr.mxu1 %v6116_v57  ;;  %7884 = vst [vmem:[#allocation96_spill] sm:$0xff] %v6119_v13  ;;  %7885 = vst [vmem:[#allocation97_spill] sm:$0xff] %v6122_v48  ;;  %v6128_v54 = vld [vmem:[#allocation7 + $0x58] sm:$0xff]  ;;  %v6131_v4 = vld [vmem:[#allocation7 + $0x40] sm:$0xff] }
 0x334   :  { %2182 = vmatpush1.msra.mxu0 %v6119_v13  ;;  %2253 = vmatpush1.msra.mxu1 %v6122_v48  ;;  %7886 = vst [vmem:[#allocation98_spill] sm:$0xff] %v6125_v6  ;;  %7887 = vst [vmem:[#allocation99_spill] sm:$0xff] %v6128_v54  ;;  %v6134_v57 = vld [vmem:[#allocation7 + $0x50] sm:$0xff]  ;;  %v6137_v13 = vld [vmem:[#allocation7 + $0x28] sm:$0xff] }
 0x335   :  { %2183 = vmatprep.subr.mxu0 %v6125_v6  ;;  %2254 = vmatprep.subr.mxu1 %v6128_v54  ;;  %7888 = vst [vmem:[#allocation100_spill] sm:$0xff] %v6131_v4  ;;  %7889 = vst [vmem:[#allocation101_spill] sm:$0xff] %v6134_v57  ;;  %v6140_v48 = vld [vmem:[#allocation7 + $0x38] sm:$0xff]  ;;  %v6143_v6 = vld [vmem:[#allocation7 + $0x20] sm:$0xff] }
 0x336   :  { %2184 = vmatpush1.msra.mxu0 %v6131_v4  ;;  %2255 = vmatpush1.msra.mxu1 %v6134_v57  ;;  %7890 = vst [vmem:[#allocation102_spill] sm:$0xff] %v6137_v13  ;;  %7891 = vst [vmem:[#allocation103_spill] sm:$0xff] %v6140_v48  ;;  %v6146_v54 = vld [vmem:[#allocation7 + $0x30] sm:$0xff]  ;;  %v6149_v4 = vld [vmem:[#allocation7 + $0x8] sm:$0xff] }
 0x337   :  { %2185 = vmatprep.subr.mxu0 %v6137_v13  ;;  %2256 = vmatprep.subr.mxu1 %v6140_v48  ;;  %7892 = vst [vmem:[#allocation104_spill] sm:$0xff] %v6143_v6  ;;  %7893 = vst [vmem:[#allocation105_spill] sm:$0xff] %v6146_v54  ;;  %v6152_v57 = vld [vmem:[#allocation7 + $0x18] sm:$0xff]  ;;  %v4468_v13 = vpop.eup %4467  ;;  %v6155_v55 = vld [vmem:[#allocation7] sm:$0xff] }
 0x338   :  { %2186 = vmatpush1.msra.mxu0 %v6143_v6  ;;  %2257 = vmatpush1.msra.mxu1 %v6146_v54  ;;  %7894 = vst [vmem:[#allocation106_spill] sm:$0xff] %v6149_v4  ;;  %7895 = vst [vmem:[#allocation107_spill] sm:$0xff] %v6152_v57  ;;  %v6159_v48 = vld [vmem:[#allocation7 + $0x10] sm:$0xff] }
 0x339   :  { %2187 = vmatprep.subr.mxu0 %v6149_v4  ;;  %2258 = vmatprep.subr.mxu1 %v6152_v57 }
 0x33a   :  { %2188 = vmatpush1.msra.mxu0 %v6155_v55  ;;  %2221 = vmatprep.mubr.f32.mxu0 %v7675_v32 }
 0x33b   :  { %2259 = vmatpush1.msra.mxu1 %v6159_v48  ;;  %2292 = vmatprep.mubr.f32.mxu1 %v7675_v32 }
 0x33c   :  { %v4470_v6 = vpop.eup %4469  ;;  %2411 = vmatprep.subr.mxu0 %v5764_v30  ;;  %2482 = vmatprep.subr.mxu1 %v5767_v35 }
 0x33d   :  { %v1986_v54 = vmul.f32 %v4470_v6, %v4468_v13  ;;  %v7896_v13 = vld [vmem:[#allocation33_spill] sm:$0xff]  ;;  %v7899_v6 = vld [vmem:[#allocation36_spill] sm:$0xff] }
 0x33f   :  { %v2000_v57 = vcombine.high %v1986_v54, %v1986_v54  ;;  %v2155_v4 = vrot.slane %v1986_v54, 4  ;;  %v7900_v54 = vld [vmem:[#allocation37_spill] sm:$0xff] }
 0x341   :  { %4393 = vst.sshfl [vmem:[%s7235_s5 + $0x1a] sm:$0x3 pattern:$0x76325410] %v2000_v57  ;;  %2222 = vmatmul.mubr.f32.vlgmr.msra.gmra.mxu0 %v2155_v4  ;;  %2293 = vmatmul.mubr.f32.vlgmr.msra.gmra.mxu1 %v2155_v4  ;;  %v7897_v4 = vld [vmem:[#allocation34_spill] sm:$0xff]  ;;  %v7898_v57 = vld [vmem:[#allocation35_spill] sm:$0xff] }
 0x342   :  { %2412 = vmatpush1.msra.mxu0 %v5774_v5  ;;  %2483 = vmatpush1.msra.mxu1 %v5777_v37 }
 0x343   :  { %2413 = vmatprep.subr.mxu0 %v5780_v20  ;;  %2484 = vmatprep.subr.mxu1 %v5783_v22 }
 0x344   :  { %2414 = vmatpush1.msra.mxu0 %v5786_v42  ;;  %2485 = vmatpush1.msra.mxu1 %v5789_v45 }
 0x345   :  { %2415 = vmatprep.subr.mxu0 %v5795_v46  ;;  %2486 = vmatprep.subr.mxu1 %v5798_v9 }
 0x346   :  { %2416 = vmatpush1.msra.mxu0 %v5801_v17  ;;  %2487 = vmatpush1.msra.mxu1 %v5804_v2 }
 0x347   :  { %2417 = vmatprep.subr.mxu0 %v5807_v27  ;;  %2488 = vmatprep.subr.mxu1 %v5810_v7 }
 0x348   :  { %2418 = vmatpush1.msra.mxu0 %v5813_v12  ;;  %2489 = vmatpush1.msra.mxu1 %v5816_v3 }
 0x349   :  { %2419 = vmatprep.subr.mxu0 %v5819_v58  ;;  %2490 = vmatprep.subr.mxu1 %v5822_v1 }
 0x34a   :  { %2420 = vmatpush1.msra.mxu0 %v5825_v49  ;;  %2491 = vmatpush1.msra.mxu1 %v5828_v41 }
 0x34b   :  { %2421 = vmatprep.subr.mxu0 %v5831_v11  ;;  %2492 = vmatprep.subr.mxu1 %v5834_v18 }
 0x34c   :  { %2422 = vmatpush1.msra.mxu0 %v5837_v47  ;;  %2493 = vmatpush1.msra.mxu1 %v5840_v15 }
 0x34d   :  { %2423 = vmatprep.subr.mxu0 %v5843_v23  ;;  %2494 = vmatprep.subr.mxu1 %v5846_v44 }
 0x34e   :  { %2424 = vmatpush1.msra.mxu0 %v5849_v29  ;;  %2495 = vmatpush1.msra.mxu1 %v5852_v36 }
 0x34f   :  { %2425 = vmatprep.subr.mxu0 %v5855_v24  ;;  %2496 = vmatprep.subr.mxu1 %v5858_v28  ;;  %v7901_v28 = vld [vmem:[#allocation38_spill] sm:$0xff] }
 0x350   :  { %2426 = vmatpush1.msra.mxu0 %v5861_v59  ;;  %2497 = vmatpush1.msra.mxu1 %v5864_v0  ;;  %v7902_v59 = vld [vmem:[#allocation39_spill] sm:$0xff]  ;;  %v7903_v0 = vld [vmem:[#allocation40_spill] sm:$0xff] }
 0x351   :  { %2427 = vmatprep.subr.mxu0 %v5867_v25  ;;  %2498 = vmatprep.subr.mxu1 %v5870_v60  ;;  %v7904_v25 = vld [vmem:[#allocation41_spill] sm:$0xff]  ;;  %v7905_v60 = vld [vmem:[#allocation42_spill] sm:$0xff] }
 0x352   :  { %2428 = vmatpush1.msra.mxu0 %v5873_v34  ;;  %2499 = vmatpush1.msra.mxu1 %v7896_v13  ;;  %v7906_v34 = vld [vmem:[#allocation43_spill] sm:$0xff]  ;;  %v7907_v13 = vld [vmem:[#allocation44_spill] sm:$0xff] }
 0x353   :  { %2429 = vmatprep.subr.mxu0 %v7897_v4  ;;  %2500 = vmatprep.subr.mxu1 %v7898_v57  ;;  %v7908_v4 = vld [vmem:[#allocation45_spill] sm:$0xff]  ;;  %v7909_v57 = vld [vmem:[#allocation46_spill] sm:$0xff] }
 0x354   :  { %2430 = vmatpush1.msra.mxu0 %v7899_v6  ;;  %2501 = vmatpush1.msra.mxu1 %v7900_v54  ;;  %v7910_v6 = vld [vmem:[#allocation47_spill] sm:$0xff]  ;;  %v7911_v54 = vld [vmem:[#allocation48_spill] sm:$0xff] }
 0x355   :  { %2431 = vmatprep.subr.mxu0 %v7901_v28  ;;  %2502 = vmatprep.subr.mxu1 %v7902_v59  ;;  %v7912_v28 = vld [vmem:[#allocation49_spill] sm:$0xff]  ;;  %v7913_v59 = vld [vmem:[#allocation50_spill] sm:$0xff] }
 0x356   :  { %2432 = vmatpush1.msra.mxu0 %v7903_v0  ;;  %2503 = vmatpush1.msra.mxu1 %v7904_v25  ;;  %v7914_v0 = vld [vmem:[#allocation51_spill] sm:$0xff]  ;;  %v7915_v25 = vld [vmem:[#allocation52_spill] sm:$0xff] }
 0x357   :  { %2433 = vmatprep.subr.mxu0 %v7905_v60  ;;  %2504 = vmatprep.subr.mxu1 %v7906_v34  ;;  %v7916_v60 = vld [vmem:[#allocation53_spill] sm:$0xff] }
 0x358   :  { %2434 = vmatpush1.msra.mxu0 %v7907_v13  ;;  %2505 = vmatpush1.msra.mxu1 %v7908_v4  ;;  %v6222_v34 = vld [vmem:[#allocation6 + $0x28] sm:$0xff]  ;;  %v7918_v4 = vld [vmem:[#allocation54_spill] sm:$0xff] }
 0x359   :  { %2435 = vmatprep.subr.mxu0 %v7909_v57  ;;  %2506 = vmatprep.subr.mxu1 %v7910_v6  ;;  %7917 = vst [vmem:[#allocation108_spill] sm:$0xff] %v6222_v34  ;;  %v6226_v57 = vld [vmem:[#allocation6 + $0x20] sm:$0xff] }
 0x35a   :  { %2436 = vmatpush1.msra.mxu0 %v7911_v54  ;;  %2507 = vmatpush1.msra.mxu1 %v7912_v28  ;;  %7919 = vst [vmem:[#allocation109_spill] sm:$0xff] %v6226_v57  ;;  %v7920_v54 = vld [vmem:[#allocation55_spill] sm:$0xff]  ;;  %v6230_v28 = vld [vmem:[#allocation6 + $0x8] sm:$0xff] }
 0x35b   :  { %2437 = vmatprep.subr.mxu0 %v7913_v59  ;;  %2508 = vmatprep.subr.mxu1 %v7914_v0  ;;  %7921 = vst [vmem:[#allocation110_spill] sm:$0xff] %v6230_v28  ;;  %v6233_v0 = vld [vmem:[#allocation6 + $0x18] sm:$0xff] }
 0x35c   :  { %2438 = vmatpush1.msra.mxu0 %v7915_v25  ;;  %2509 = vmatpush1.msra.mxu1 %v7916_v60  ;;  %7922 = vst [vmem:[#allocation111_spill] sm:$0xff] %v6233_v0  ;;  %v6236_v60 = vld [vmem:[#allocation6] sm:$0xff] }
 0x35d   :  { %2439 = vmatprep.subr.mxu0 %v6222_v34  ;;  %2510 = vmatprep.subr.mxu1 %v7918_v4  ;;  %7923 = vst [vmem:[#allocation112_spill] sm:$0xff] %v6236_v60  ;;  %v6240_v4 = vld [vmem:[#allocation6 + $0x10] sm:$0xff] }
 0x35e   :  { %2440 = vmatpush1.msra.mxu0 %v6226_v57  ;;  %2511 = vmatpush1.msra.mxu1 %v7920_v54  ;;  %7924 = vst [vmem:[#allocation113_spill] sm:$0xff] %v6240_v4  ;;  %v6244_v54 = vld [vmem:[#allocation7 + $0x1e8] sm:$0xff] }
 0x35f   :  { %2441 = vmatprep.subr.mxu0 %v6230_v28  ;;  %2512 = vmatprep.subr.mxu1 %v6233_v0  ;;  %7925 = vst [vmem:[#allocation114_spill] sm:$0xff] %v6244_v54  ;;  %v6247_v28 = vld [vmem:[#allocation7 + $0x1f8] sm:$0xff] }
 0x360   :  { %2442 = vmatpush1.msra.mxu0 %v6236_v60  ;;  %2475 = vmatprep.mubr.f32.mxu0 %v7675_v32  ;;  %7926 = vst [vmem:[#allocation115_spill] sm:$0xff] %v6247_v28 }
 0x361   :  { %2513 = vmatpush1.msra.mxu1 %v6240_v4  ;;  %2546 = vmatprep.mubr.f32.mxu1 %v7675_v32 }
 0x362   :  { %2555 = vmatprep.subr.mxu0 %v6244_v54  ;;  %2626 = vmatprep.subr.mxu1 %v6247_v28  ;;  %v7927_v54 = vld [vmem:[#allocation19_spill] sm:$0xff] }
 0x3db   :  { %v2079_v0 = vpop.f32.mrf.mxu0  ;;  %v2150_v25 = vpop.f32.mrf.mxu1 }
 0x3dc   :  { %v2303_v57 = vrot.slane %v2079_v0, 4  ;;  %v2305_v44 = vrot.slane %v2150_v25, 4 }
 0x3dd   :  { %v2081_v34 = vpop.f32.mrf.mxu0  ;;  %v2152_v24 = vpop.f32.mrf.mxu1 }
 0x3de   :  { %v2311_v60 = vadd.f32 %v2303_v57, %v5662_v21  ;;  %v2304_v59 = vrot.slane %v2081_v34, 4  ;;  %v2306_v36 = vrot.slane %v2152_v24, 4  ;;  %v2313_v0 = vadd.f32 %v2305_v44, %v5673_v61 }
 0x3e0   :  { %v4346_v6 = vmul.f32 -1.442695, %v2311_v60  ;;  %v2312_v4 = vadd.f32 %v2304_v59, %v5665_v62  ;;  %v2314_v29 = vadd.f32 %v2306_v36, %v7927_v54 }
 0x3e2   :  { %4471 = vpow2.f32 %v4346_v6  ;;  %v4347_v13 = vmul.f32 -1.442695, %v2312_v4  ;;  %v4348_v23 = vmul.f32 -1.442695, %v2314_v29 }
 0x3e4   :  { %4473 = vpow2.f32 %v4347_v13  ;;  %v2351_v13 = vrot.slane %v5960_v56, 6 }
 0x3e5   :  { %4475 = vpow2.f32 %v4348_v23 }
 0x3ef   :  { %v4472_v28 = vpop.eup %4471 }
 0x3f0   :  { %v2334_v15 = vadd.f32 1.0, %v4472_v28 }
 0x3f1   :  { %v4474_v47 = vpop.eup %4473 }
 0x3f2   :  { %4477 = vrcp.f32 %v2334_v15  ;;  %v2340_v34 = vadd.f32 1.0, %v4474_v47  ;;  %v4476_v59 = vpop.eup %4475 }
 0x3f3   :  { %4479 = vtanh.f32 %v2313_v0  ;;  %v2347_v36 = vadd.f32 1.0, %v4476_v59 }
 0x3f4   :  { %4481 = vrcp.f32 %v2340_v34 }
 0x3f5   :  { %4483 = vrcp.f32 %v2347_v36 }
 0x3ff   :  { %v4478_v60 = vpop.eup %4477 }
 0x400   :  { %v4480_v4 = vpop.eup %4479 }
 0x401   :  { %v2223_v24 = vpop.f32.mrf.mxu0  ;;  %v4482_v57 = vpop.eup %4481  ;;  %v2354_v29 = vmul.f32 %v4480_v4, %v4478_v60 }
 0x402   :  { %v2319_v25 = vrot.slane %v2223_v24, 6  ;;  %v2353_v6 = vmul.f32 %v4482_v57, %v2351_v13  ;;  %v2294_v28 = vpop.f32.mrf.mxu1  ;;  %v4484_v13 = vpop.eup %4483 }
 0x403   :  { %v2225_v54 = vpop.f32.mrf.mxu0  ;;  %v2321_v4 = vrot.slane %v2294_v28, 6  ;;  %v7928_v28 = vld [vmem:[#allocation56_spill] sm:$0xff] }
 0x404   :  { %v2327_v44 = vadd.f32 %v2319_v25, %v5676_v38  ;;  %v2320_v23 = vrot.slane %v2225_v54, 6  ;;  %v6256_v15 = vadd.f32 %v2354_v29, %v2353_v6  ;;  %v2296_v34 = vpop.f32.mrf.mxu1 }
 0x405   :  { %v2322_v59 = vrot.slane %v2296_v34, 6  ;;  %v2329_v25 = vadd.f32 %v2321_v4, %v5691_v63  ;;  %v7931_v34 = vld [vmem:[#allocation59_spill] sm:$0xff]  ;;  %v7934_v4 = vld [vmem:[#allocation62_spill] sm:$0xff] }
 0x406   :  { %v4349_v47 = vmul.f32 -1.442695, %v2327_v44  ;;  %v2328_v0 = vadd.f32 %v2320_v23, %v5678_v51  ;;  %4485 = vtanh.f32 %v6256_v15 }
 0x407   :  { %v2330_v60 = vadd.f32 %v2322_v59, %v5686_v10  ;;  %v7932_v59 = vld [vmem:[#allocation60_spill] sm:$0xff] }
 0x408   :  { %4487 = vpow2.f32 %v4349_v47  ;;  %v4350_v56 = vmul.f32 -1.442695, %v2328_v0  ;;  %v7929_v0 = vld [vmem:[#allocation57_spill] sm:$0xff] }
 0x409   :  { %v4351_v24 = vmul.f32 -1.442695, %v2330_v60  ;;  %v7933_v60 = vld [vmem:[#allocation61_spill] sm:$0xff] }
 0x40a   :  { %4489 = vpow2.f32 %v4350_v56  ;;  %v7930_v56 = vld [vmem:[#allocation58_spill] sm:$0xff] }
 0x40b   :  { %4491 = vpow2.f32 %v4351_v24  ;;  %v7936_v24 = vld [vmem:[#allocation64_spill] sm:$0xff] }
 0x413   :  { %v4486_v57 = vpop.eup %4485 }
 0x414   :  { %v2357_v36 = vmul.f32 %v4486_v57, %v4484_v13  ;;  %v7935_v13 = vld [vmem:[#allocation63_spill] sm:$0xff]  ;;  %v7937_v57 = vld [vmem:[#allocation65_spill] sm:$0xff] }
 0x415   :  { %v4488_v54 = vpop.eup %4487 }
 0x416   :  { %v2361_v29 = vadd.f32 1.0, %v4488_v54  ;;  %v2386_v44 = vcombine.high %v2357_v36, %v2357_v36  ;;  %v2409_v23 = vrot.slane %v2357_v36, 4  ;;  %v7938_v54 = vld [vmem:[#allocation66_spill] sm:$0xff]  ;;  %v7940_v36 = vld [vmem:[#allocation68_spill] sm:$0xff] }
 0x417   :  { %v4490_v6 = vpop.eup %4489 }
 0x418   :  { %4493 = vrcp.f32 %v2361_v29  ;;  %v2367_v47 = vadd.f32 1.0, %v4490_v6  ;;  %4394 = vst.sshfl [vmem:[%s7235_s5 + $0x8] sm:$0x3 pattern:$0x76325410] %v2386_v44  ;;  %2476 = vmatmul.mubr.f32.vlgmr.msra.gmra.mxu0 %v2409_v23  ;;  %2547 = vmatmul.mubr.f32.vlgmr.msra.gmra.mxu1 %v2409_v23  ;;  %v4492_v29 = vpop.eup %4491  ;;  %v7941_v6 = vld [vmem:[#allocation69_spill] sm:$0xff] }
 0x419   :  { %4495 = vtanh.f32 %v2329_v25  ;;  %2556 = vmatpush1.msra.mxu0 %v5968_v8  ;;  %2627 = vmatpush1.msra.mxu1 %v5971_v19  ;;  %v7939_v25 = vld [vmem:[#allocation67_spill] sm:$0xff]  ;;  %v7942_v44 = vld [vmem:[#allocation70_spill] sm:$0xff] }
 0x41a   :  { %4497 = vrcp.f32 %v2367_v47  ;;  %2557 = vmatprep.subr.mxu0 %v5977_v39  ;;  %2628 = vmatprep.subr.mxu1 %v5980_v14  ;;  %v7943_v47 = vld [vmem:[#allocation71_spill] sm:$0xff] }
 0x41b   :  { %2558 = vmatpush1.msra.mxu0 %v5983_v40  ;;  %2629 = vmatpush1.msra.mxu1 %v5986_v50 }
 0x41c   :  { %2559 = vmatprep.subr.mxu0 %v5989_v43  ;;  %2630 = vmatprep.subr.mxu1 %v7928_v28 }
 0x41d   :  { %2560 = vmatpush1.msra.mxu0 %v7929_v0  ;;  %2631 = vmatpush1.msra.mxu1 %v7930_v56 }
 0x41e   :  { %2561 = vmatprep.subr.mxu0 %v7931_v34  ;;  %2632 = vmatprep.subr.mxu1 %v7932_v59 }
 0x41f   :  { %2562 = vmatpush1.msra.mxu0 %v7933_v60  ;;  %2633 = vmatpush1.msra.mxu1 %v7934_v4  ;;  %v7944_v4 = vld [vmem:[#allocation72_spill] sm:$0xff]  ;;  %v2374_v60 = vadd.f32 1.0, %v4492_v29  ;;  %v7950_v29 = vld [vmem:[#allocation82_spill] sm:$0xff] }
 0x420   :  { %2563 = vmatprep.subr.mxu0 %v7935_v13  ;;  %2634 = vmatprep.subr.mxu1 %v7936_v24  ;;  %v2378_v24 = vrot.slane %v6068_v53, 2 }
 0x421   :  { %2564 = vmatpush1.msra.mxu0 %v7937_v57  ;;  %2635 = vmatpush1.msra.mxu1 %v7938_v54  ;;  %v7945_v57 = vld [vmem:[#allocation73_spill] sm:$0xff]  ;;  %v7946_v54 = vld [vmem:[#allocation74_spill] sm:$0xff]  ;;  %4499 = vrcp.f32 %v2374_v60  ;;  %v7959_v60 = vld [vmem:[#allocation91_spill] sm:$0xff] }
 0x422   :  { %2565 = vmatprep.subr.mxu0 %v7939_v25  ;;  %2636 = vmatprep.subr.mxu1 %v7940_v36  ;;  %v7947_v36 = vld [vmem:[#allocation75_spill] sm:$0xff] }
 0x423   :  { %2566 = vmatpush1.msra.mxu0 %v7941_v6  ;;  %2637 = vmatpush1.msra.mxu1 %v7942_v44 }
 0x424   :  { %2567 = vmatprep.subr.mxu0 %v7943_v47  ;;  %2638 = vmatprep.subr.mxu1 %v7944_v4  ;;  %v7948_v4 = vld [vmem:[#allocation77_spill] sm:$0xff] }
 0x425   :  { %v4494_v23 = vpop.eup %4493  ;;  %2568 = vmatpush1.msra.mxu0 %v7945_v57  ;;  %2639 = vmatpush1.msra.mxu1 %v7946_v54  ;;  %v7949_v54 = vld [vmem:[#allocation79_spill] sm:$0xff] }
 0x426   :  { %v4496_v13 = vpop.eup %4495  ;;  %2569 = vmatprep.subr.mxu0 %v7947_v36  ;;  %2640 = vmatprep.subr.mxu1 %v6053_v52  ;;  %v7951_v52 = vld [vmem:[#allocation83_spill] sm:$0xff] }
 0x427   :  { %v4498_v25 = vpop.eup %4497  ;;  %v2381_v6 = vmul.f32 %v4496_v13, %v4494_v23  ;;  %2570 = vmatpush1.msra.mxu0 %v6056_v16  ;;  %2641 = vmatpush1.msra.mxu1 %v6059_v31  ;;  %v7952_v13 = vld [vmem:[#allocation84_spill] sm:$0xff]  ;;  %v7955_v23 = vld [vmem:[#allocation87_spill] sm:$0xff] }
 0x428   :  { %v2380_v44 = vmul.f32 %v4498_v25, %v2378_v24  ;;  %2571 = vmatprep.subr.mxu0 %v6062_v33  ;;  %2642 = vmatprep.subr.mxu1 %v7948_v4  ;;  %v7953_v24 = vld [vmem:[#allocation85_spill] sm:$0xff]  ;;  %v7954_v25 = vld [vmem:[#allocation86_spill] sm:$0xff] }
 0x429   :  { %2572 = vmatpush1.msra.mxu0 %v6070_v26  ;;  %2643 = vmatpush1.msra.mxu1 %v7949_v54  ;;  %v7958_v54 = vld [vmem:[#allocation90_spill] sm:$0xff]  ;;  %v7964_v26 = vld [vmem:[#allocation96_spill] sm:$0xff] }
 0x42a   :  { %v6298_v53 = vadd.f32 %v2381_v6, %v2380_v44  ;;  %2573 = vmatprep.subr.mxu0 %v7950_v29  ;;  %2644 = vmatprep.subr.mxu1 %v7951_v52  ;;  %v7956_v6 = vld [vmem:[#allocation88_spill] sm:$0xff]  ;;  %v7957_v44 = vld [vmem:[#allocation89_spill] sm:$0xff] }
 0x42b   :  { %2574 = vmatpush1.msra.mxu0 %v7952_v13  ;;  %2645 = vmatpush1.msra.mxu1 %v7953_v24  ;;  %v7960_v29 = vld [vmem:[#allocation92_spill] sm:$0xff]  ;;  %v7961_v52 = vld [vmem:[#allocation93_spill] sm:$0xff]  ;;  %v7962_v13 = vld [vmem:[#allocation94_spill] sm:$0xff] }
 0x42c   :  { %4501 = vtanh.f32 %v6298_v53  ;;  %2575 = vmatprep.subr.mxu0 %v7954_v25  ;;  %2646 = vmatprep.subr.mxu1 %v7955_v23  ;;  %v7963_v24 = vld [vmem:[#allocation95_spill] sm:$0xff]  ;;  %v7965_v25 = vld [vmem:[#allocation97_spill] sm:$0xff]  ;;  %v7966_v23 = vld [vmem:[#allocation98_spill] sm:$0xff] }
 0x42d   :  { %2576 = vmatpush1.msra.mxu0 %v7956_v6  ;;  %2647 = vmatpush1.msra.mxu1 %v7957_v44  ;;  %v7967_v6 = vld [vmem:[#allocation99_spill] sm:$0xff]  ;;  %v7968_v44 = vld [vmem:[#allocation100_spill] sm:$0xff] }
 0x42e   :  { %2577 = vmatprep.subr.mxu0 %v7958_v54  ;;  %2648 = vmatprep.subr.mxu1 %v7959_v60  ;;  %v7969_v54 = vld [vmem:[#allocation101_spill] sm:$0xff]  ;;  %v7970_v60 = vld [vmem:[#allocation102_spill] sm:$0xff] }
 0x42f   :  { %2578 = vmatpush1.msra.mxu0 %v7960_v29  ;;  %2649 = vmatpush1.msra.mxu1 %v7961_v52  ;;  %v7971_v29 = vld [vmem:[#allocation103_spill] sm:$0xff]  ;;  %v7972_v52 = vld [vmem:[#allocation104_spill] sm:$0xff] }
 0x430   :  { %2579 = vmatprep.subr.mxu0 %v7962_v13  ;;  %2650 = vmatprep.subr.mxu1 %v7963_v24  ;;  %v7973_v13 = vld [vmem:[#allocation105_spill] sm:$0xff]  ;;  %v7974_v24 = vld [vmem:[#allocation106_spill] sm:$0xff] }
 0x431   :  { %2580 = vmatpush1.msra.mxu0 %v7964_v26  ;;  %2651 = vmatpush1.msra.mxu1 %v7965_v25  ;;  %v7975_v26 = vld [vmem:[#allocation107_spill] sm:$0xff]  ;;  %v4500_v25 = vpop.eup %4499 }
 0x432   :  { %2581 = vmatprep.subr.mxu0 %v7966_v23  ;;  %2652 = vmatprep.subr.mxu1 %v7967_v6 }
 0x433   :  { %2582 = vmatpush1.msra.mxu0 %v7968_v44  ;;  %2653 = vmatpush1.msra.mxu1 %v7969_v54 }
 0x434   :  { %2583 = vmatprep.subr.mxu0 %v7970_v60  ;;  %2654 = vmatprep.subr.mxu1 %v7971_v29 }
 0x435   :  { %2584 = vmatpush1.msra.mxu0 %v7972_v52  ;;  %2655 = vmatpush1.msra.mxu1 %v7973_v13  ;;  %v7976_v13 = vld [vmem:[#allocation18_spill] sm:$0xff] }
 0x436   :  { %2585 = vmatprep.subr.mxu0 %v7974_v24  ;;  %2656 = vmatprep.subr.mxu1 %v7975_v26 }
 0x437   :  { %2586 = vmatpush1.msra.mxu0 %v6155_v55  ;;  %2619 = vmatprep.mubr.f32.mxu0 %v7675_v32 }
 0x438   :  { %2657 = vmatpush1.msra.mxu1 %v6159_v48  ;;  %2690 = vmatprep.mubr.f32.mxu1 %v7675_v32 }
 0x439   :  { %v4502_v44 = vpop.eup %4501  ;;  %2788 = vmatprep.subr.mxu0 %v5764_v30  ;;  %2859 = vmatprep.subr.mxu1 %v5767_v35  ;;  %v7977_v30 = vld [vmem:[#allocation21_spill] sm:$0xff]  ;;  %v7978_v35 = vld [vmem:[#allocation20_spill] sm:$0xff] }
 0x43a   :  { %v2384_v60 = vmul.f32 %v4502_v44, %v4500_v25  ;;  %v8002_v25 = vld [vmem:[#allocation45_spill] sm:$0xff]  ;;  %v8003_v44 = vld [vmem:[#allocation46_spill] sm:$0xff] }
 0x43c   :  { %v2404_v52 = vrot.slane %v2384_v60, %v7976_v13  ;;  %v2553_v24 = vrot.slane %v2384_v60, 2  ;;  %v8004_v60 = vld [vmem:[#allocation47_spill] sm:$0xff] }
 0x43e   :  { %v2405_v29 = vcombine.high %v2404_v52, %v2404_v52  ;;  %2620 = vmatmul.mubr.f32.vlgmr.msra.gmra.mxu0 %v2553_v24  ;;  %2691 = vmatmul.mubr.f32.vlgmr.msra.gmra.mxu1 %v2553_v24  ;;  %v7999_v52 = vld [vmem:[#allocation42_spill] sm:$0xff]  ;;  %v8001_v24 = vld [vmem:[#allocation44_spill] sm:$0xff] }
 0x43f   :  { %2789 = vmatpush1.msra.mxu0 %v5774_v5  ;;  %2860 = vmatpush1.msra.mxu1 %v5777_v37  ;;  %v7979_v5 = vld [vmem:[#allocation22_spill] sm:$0xff]  ;;  %v7980_v37 = vld [vmem:[#allocation23_spill] sm:$0xff] }
 0x440   :  { %4353 = vst [vmem:[%s7235_s5 + $0x16] sm:$0x3] %v2405_v29  ;;  %2790 = vmatprep.subr.mxu0 %v5780_v20  ;;  %2861 = vmatprep.subr.mxu1 %v5783_v22  ;;  %v7981_v20 = vld [vmem:[#allocation24_spill] sm:$0xff]  ;;  %v7982_v22 = vld [vmem:[#allocation25_spill] sm:$0xff]  ;;  %v8000_v29 = vld [vmem:[#allocation43_spill] sm:$0xff] }
 0x441   :  { %2791 = vmatpush1.msra.mxu0 %v5786_v42  ;;  %2862 = vmatpush1.msra.mxu1 %v5789_v45  ;;  %v7983_v42 = vld [vmem:[#allocation26_spill] sm:$0xff]  ;;  %v7984_v45 = vld [vmem:[#allocation27_spill] sm:$0xff] }
 0x442   :  { %2792 = vmatprep.subr.mxu0 %v5795_v46  ;;  %2863 = vmatprep.subr.mxu1 %v5798_v9  ;;  %v7985_v46 = vld [vmem:[#allocation28_spill] sm:$0xff]  ;;  %v7986_v9 = vld [vmem:[#allocation29_spill] sm:$0xff] }
 0x443   :  { %2793 = vmatpush1.msra.mxu0 %v5801_v17  ;;  %2864 = vmatpush1.msra.mxu1 %v5804_v2  ;;  %v7987_v17 = vld [vmem:[#allocation30_spill] sm:$0xff]  ;;  %v7988_v2 = vld [vmem:[#allocation31_spill] sm:$0xff] }
 0x444   :  { %2794 = vmatprep.subr.mxu0 %v5807_v27  ;;  %2865 = vmatprep.subr.mxu1 %v5810_v7  ;;  %v7989_v27 = vld [vmem:[#allocation32_spill] sm:$0xff]  ;;  %v7990_v7 = vld [vmem:[#allocation33_spill] sm:$0xff] }
 0x445   :  { %2795 = vmatpush1.msra.mxu0 %v5813_v12  ;;  %2866 = vmatpush1.msra.mxu1 %v5816_v3  ;;  %v7991_v12 = vld [vmem:[#allocation34_spill] sm:$0xff]  ;;  %v7992_v3 = vld [vmem:[#allocation35_spill] sm:$0xff] }
 0x446   :  { %2796 = vmatprep.subr.mxu0 %v5819_v58  ;;  %2867 = vmatprep.subr.mxu1 %v5822_v1  ;;  %v7993_v58 = vld [vmem:[#allocation36_spill] sm:$0xff]  ;;  %v7994_v1 = vld [vmem:[#allocation37_spill] sm:$0xff] }
 0x447   :  { %2797 = vmatpush1.msra.mxu0 %v5825_v49  ;;  %2868 = vmatpush1.msra.mxu1 %v5828_v41  ;;  %v7995_v49 = vld [vmem:[#allocation38_spill] sm:$0xff]  ;;  %v7996_v41 = vld [vmem:[#allocation39_spill] sm:$0xff] }
 0x448   :  { %2798 = vmatprep.subr.mxu0 %v5831_v11  ;;  %2869 = vmatprep.subr.mxu1 %v5834_v18  ;;  %v7997_v11 = vld [vmem:[#allocation40_spill] sm:$0xff]  ;;  %v7998_v18 = vld [vmem:[#allocation41_spill] sm:$0xff] }
 0x449   :  { %2799 = vmatpush1.msra.mxu0 %v7977_v30  ;;  %2870 = vmatpush1.msra.mxu1 %v7978_v35  ;;  %v8005_v30 = vld [vmem:[#allocation48_spill] sm:$0xff]  ;;  %v8006_v35 = vld [vmem:[#allocation49_spill] sm:$0xff] }
 0x44a   :  { %2800 = vmatprep.subr.mxu0 %v7979_v5  ;;  %2871 = vmatprep.subr.mxu1 %v7980_v37  ;;  %v8007_v5 = vld [vmem:[#allocation50_spill] sm:$0xff]  ;;  %v8008_v37 = vld [vmem:[#allocation51_spill] sm:$0xff] }
 0x44b   :  { %2801 = vmatpush1.msra.mxu0 %v7981_v20  ;;  %2872 = vmatpush1.msra.mxu1 %v7982_v22  ;;  %v8009_v20 = vld [vmem:[#allocation52_spill] sm:$0xff]  ;;  %v8010_v22 = vld [vmem:[#allocation53_spill] sm:$0xff] }
 0x44c   :  { %2802 = vmatprep.subr.mxu0 %v7983_v42  ;;  %2873 = vmatprep.subr.mxu1 %v7984_v45  ;;  %v8011_v42 = vld [vmem:[#allocation108_spill] sm:$0xff]  ;;  %v8012_v45 = vld [vmem:[#allocation54_spill] sm:$0xff] }
 0x44d   :  { %2803 = vmatpush1.msra.mxu0 %v7985_v46  ;;  %2874 = vmatpush1.msra.mxu1 %v7986_v9  ;;  %v8013_v46 = vld [vmem:[#allocation109_spill] sm:$0xff]  ;;  %v8014_v9 = vld [vmem:[#allocation55_spill] sm:$0xff] }
 0x44e   :  { %2804 = vmatprep.subr.mxu0 %v7987_v17  ;;  %2875 = vmatprep.subr.mxu1 %v7988_v2  ;;  %v8015_v17 = vld [vmem:[#allocation110_spill] sm:$0xff]  ;;  %v8016_v2 = vld [vmem:[#allocation111_spill] sm:$0xff] }
 0x44f   :  { %2805 = vmatpush1.msra.mxu0 %v7989_v27  ;;  %2876 = vmatpush1.msra.mxu1 %v7990_v7  ;;  %v8017_v27 = vld [vmem:[#allocation112_spill] sm:$0xff]  ;;  %v8018_v7 = vld [vmem:[#allocation113_spill] sm:$0xff] }
 0x450   :  { %2806 = vmatprep.subr.mxu0 %v7991_v12  ;;  %2877 = vmatprep.subr.mxu1 %v7992_v3  ;;  %v8019_v12 = vld [vmem:[#allocation114_spill] sm:$0xff]  ;;  %v8020_v3 = vld [vmem:[#allocation115_spill] sm:$0xff] }
 0x451   :  { %2807 = vmatpush1.msra.mxu0 %v7993_v58  ;;  %2878 = vmatpush1.msra.mxu1 %v7994_v1 }
 0x452   :  { %2808 = vmatprep.subr.mxu0 %v7995_v49  ;;  %2879 = vmatprep.subr.mxu1 %v7996_v41 }
 0x453   :  { %2809 = vmatpush1.msra.mxu0 %v7997_v11  ;;  %2880 = vmatpush1.msra.mxu1 %v7998_v18 }
 0x454   :  { %2810 = vmatprep.subr.mxu0 %v7999_v52  ;;  %2881 = vmatprep.subr.mxu1 %v8000_v29 }
 0x455   :  { %2811 = vmatpush1.msra.mxu0 %v8001_v24  ;;  %2882 = vmatpush1.msra.mxu1 %v8002_v25 }
 0x456   :  { %2812 = vmatprep.subr.mxu0 %v8003_v44  ;;  %2883 = vmatprep.subr.mxu1 %v8004_v60  ;;  %v8021_v60 = vld [vmem:[#allocation19_spill] sm:$0xff] }
 0x457   :  { %2813 = vmatpush1.msra.mxu0 %v8005_v30  ;;  %2884 = vmatpush1.msra.mxu1 %v8006_v35 }
 0x458   :  { %2814 = vmatprep.subr.mxu0 %v8007_v5  ;;  %2885 = vmatprep.subr.mxu1 %v8008_v37 }
 0x459   :  { %2815 = vmatpush1.msra.mxu0 %v8009_v20  ;;  %2886 = vmatpush1.msra.mxu1 %v8010_v22 }
 0x45a   :  { %2816 = vmatprep.subr.mxu0 %v8011_v42  ;;  %2887 = vmatprep.subr.mxu1 %v8012_v45 }
 0x45b   :  { %2817 = vmatpush1.msra.mxu0 %v8013_v46  ;;  %2888 = vmatpush1.msra.mxu1 %v8014_v9 }
 0x45c   :  { %2818 = vmatprep.subr.mxu0 %v8015_v17  ;;  %2889 = vmatprep.subr.mxu1 %v8016_v2 }
 0x45d   :  { %2819 = vmatpush1.msra.mxu0 %v8017_v27  ;;  %2852 = vmatprep.mubr.f32.mxu0 %v7675_v32 }
 0x45e   :  { %2890 = vmatpush1.msra.mxu1 %v8018_v7  ;;  %2923 = vmatprep.mubr.f32.mxu1 %v7675_v32 }
 0x45f   :  { %2930 = vmatprep.subr.mxu0 %v8019_v12  ;;  %3001 = vmatprep.subr.mxu1 %v8020_v3 }
 0x4d8   :  { %v2477_v58 = vpop.f32.mrf.mxu0  ;;  %v2548_v49 = vpop.f32.mrf.mxu1 }
 0x4d9   :  { %v2701_v1 = vrot.slane %v2477_v58, 2  ;;  %v2703_v35 = vrot.slane %v2548_v49, 2 }
 0x4da   :  { %v2479_v41 = vpop.f32.mrf.mxu0  ;;  %v2550_v24 = vpop.f32.mrf.mxu1 }
 0x4db   :  { %v2709_v11 = vadd.f32 %v2701_v1, %v5662_v21  ;;  %v2702_v18 = vrot.slane %v2479_v41, 2  ;;  %v2704_v44 = vrot.slane %v2550_v24, 2  ;;  %v2711_v20 = vadd.f32 %v2703_v35, %v5673_v61 }
 0x4dc   :  { %v2737_v1 = vrot.slane %v6256_v15, 6 }
 0x4dd   :  { %v4354_v52 = vmul.f32 -1.442695, %v2709_v11  ;;  %v2710_v29 = vadd.f32 %v2702_v18, %v5665_v62  ;;  %v2712_v30 = vadd.f32 %v2704_v44, %v8021_v60 }
 0x4df   :  { %4503 = vpow2.f32 %v4354_v52  ;;  %v4355_v25 = vmul.f32 -1.442695, %v2710_v29  ;;  %v4356_v5 = vmul.f32 -1.442695, %v2712_v30 }
 0x4e1   :  { %4505 = vpow2.f32 %v4355_v25 }
 0x4e2   :  { %4507 = vpow2.f32 %v4356_v5 }
 0x4ec   :  { %v4504_v37 = vpop.eup %4503 }
 0x4ed   :  { %v2720_v22 = vadd.f32 1.0, %v4504_v37 }
 0x4ee   :  { %v4506_v45 = vpop.eup %4505 }
 0x4ef   :  { %4509 = vrcp.f32 %v2720_v22  ;;  %v2726_v21 = vadd.f32 1.0, %v4506_v45  ;;  %v4508_v62 = vpop.eup %4507 }
 0x4f0   :  { %4511 = vtanh.f32 %v2711_v20  ;;  %v2733_v41 = vadd.f32 1.0, %v4508_v62 }
 0x4f1   :  { %4513 = vrcp.f32 %v2726_v21 }
 0x4f2   :  { %4515 = vrcp.f32 %v2733_v41  ;;  %v8031_v41 = vld [vmem:[#allocation70_spill] sm:$0xff] }
 0x4fc   :  { %v4510_v9 = vpop.eup %4509 }
 0x4fd   :  { %v4512_v58 = vpop.eup %4511 }
 0x4fe   :  { %v2621_v11 = vpop.f32.mrf.mxu0  ;;  %v4514_v18 = vpop.eup %4513  ;;  %v2740_v52 = vmul.f32 %v4512_v58, %v4510_v9 }
 0x4ff   :  { %v2713_v49 = vadd.f32 %v2621_v11, %v5676_v38  ;;  %v2739_v29 = vmul.f32 %v4514_v18, %v2737_v1  ;;  %v2692_v60 = vpop.f32.mrf.mxu1  ;;  %v4516_v38 = vpop.eup %4515 }
 0x500   :  { %v2623_v61 = vpop.f32.mrf.mxu0  ;;  %v2715_v20 = vadd.f32 %v2692_v60, %v5691_v63  ;;  %v8022_v63 = vld [vmem:[#allocation61_spill] sm:$0xff]  ;;  %v8039_v60 = vld [vmem:[#allocation84_spill] sm:$0xff] }
 0x501   :  { %v4357_v24 = vmul.f32 -1.442695, %v2713_v49  ;;  %v2714_v25 = vadd.f32 %v2623_v61, %v5678_v51  ;;  %v6412_v44 = vadd.f32 %v2740_v52, %v2739_v29  ;;  %v2694_v15 = vpop.f32.mrf.mxu1  ;;  %v8032_v49 = vld [vmem:[#allocation72_spill] sm:$0xff]  ;;  %v8033_v61 = vld [vmem:[#allocation74_spill] sm:$0xff] }
 0x502   :  { %v2716_v35 = vadd.f32 %v2694_v15, %v5686_v10  ;;  %v8045_v15 = vld [vmem:[#allocation90_spill] sm:$0xff] }
 0x503   :  { %4517 = vpow2.f32 %v4357_v24  ;;  %v4358_v30 = vmul.f32 -1.442695, %v2714_v25  ;;  %v8034_v24 = vld [vmem:[#allocation76_spill] sm:$0xff]  ;;  %v8038_v25 = vld [vmem:[#allocation83_spill] sm:$0xff] }
 0x504   :  { %4519 = vtanh.f32 %v6412_v44  ;;  %v4359_v5 = vmul.f32 -1.442695, %v2716_v35  ;;  %v8046_v35 = vld [vmem:[#allocation91_spill] sm:$0xff] }
 0x505   :  { %4521 = vpow2.f32 %v4358_v30  ;;  %v8042_v30 = vld [vmem:[#allocation87_spill] sm:$0xff] }
 0x506   :  { %4523 = vpow2.f32 %v4359_v5  ;;  %v8047_v5 = vld [vmem:[#allocation92_spill] sm:$0xff] }
 0x510   :  { %v4518_v37 = vpop.eup %4517 }
 0x511   :  { %v4520_v22 = vpop.eup %4519  ;;  %v2747_v45 = vadd.f32 1.0, %v4518_v37  ;;  %v8049_v37 = vld [vmem:[#allocation94_spill] sm:$0xff] }
 0x512   :  { %v4522_v51 = vpop.eup %4521  ;;  %v2743_v21 = vmul.f32 %v4520_v22, %v4516_v38  ;;  %v8048_v38 = vld [vmem:[#allocation93_spill] sm:$0xff]  ;;  %v8051_v22 = vld [vmem:[#allocation96_spill] sm:$0xff] }
 0x513   :  { %4525 = vrcp.f32 %v2747_v45  ;;  %v2753_v62 = vadd.f32 1.0, %v4522_v51  ;;  %v8052_v45 = vld [vmem:[#allocation97_spill] sm:$0xff]  ;;  %v8053_v51 = vld [vmem:[#allocation100_spill] sm:$0xff] }
 0x514   :  { %4527 = vtanh.f32 %v2715_v20  ;;  %v2772_v9 = vcombine.high %v2743_v21, %v2743_v21  ;;  %v2786_v58 = vrot.slane %v2743_v21, 6  ;;  %v8050_v20 = vld [vmem:[#allocation95_spill] sm:$0xff]  ;;  %v8054_v21 = vld [vmem:[#allocation102_spill] sm:$0xff] }
 0x515   :  { %4529 = vrcp.f32 %v2753_v62  ;;  %v8055_v62 = vld [vmem:[#allocation103_spill] sm:$0xff] }
 0x516   :  { %v2779_v1 = vrot.slane %v2772_v9, %v7976_v13  ;;  %2853 = vmatmul.mubr.f32.vlgmr.msra.gmra.mxu0 %v2786_v58  ;;  %2924 = vmatmul.mubr.f32.vlgmr.msra.gmra.mxu1 %v2786_v58  ;;  %v8056_v58 = vld [vmem:[#allocation104_spill] sm:$0xff] }
 0x517   :  { %2931 = vmatpush1.msra.mxu0 %v5968_v8  ;;  %3002 = vmatpush1.msra.mxu1 %v5971_v19  ;;  %v8023_v8 = vld [vmem:[#allocation62_spill] sm:$0xff]  ;;  %v8024_v19 = vld [vmem:[#allocation63_spill] sm:$0xff] }
 0x518   :  { %v2780_v10 = vcombine.high %v2779_v1, %v2779_v1  ;;  %2932 = vmatprep.subr.mxu0 %v5977_v39  ;;  %3003 = vmatprep.subr.mxu1 %v5980_v14  ;;  %v8025_v39 = vld [vmem:[#allocation64_spill] sm:$0xff]  ;;  %v4524_v14 = vpop.eup %4523  ;;  %v8057_v1 = vld [vmem:[#allocation105_spill] sm:$0xff] }
 0x519   :  { %2933 = vmatpush1.msra.mxu0 %v5983_v40  ;;  %3004 = vmatpush1.msra.mxu1 %v5986_v50  ;;  %v8026_v40 = vld [vmem:[#allocation65_spill] sm:$0xff]  ;;  %v8027_v50 = vld [vmem:[#allocation66_spill] sm:$0xff]  ;;  %v2760_v18 = vadd.f32 1.0, %v4524_v14 }
 0x51a   :  { %4360 = vst [vmem:[%s7235_s5 + $0xc] sm:$0x3] %v2780_v10  ;;  %2934 = vmatprep.subr.mxu0 %v5989_v43  ;;  %3005 = vmatprep.subr.mxu1 %v7928_v28  ;;  %v8028_v28 = vld [vmem:[#allocation67_spill] sm:$0xff]  ;;  %v6516_v14 = vld [vmem:[#allocation6 + $0x1a8] sm:$0xff] }
 0x51b   :  { %2935 = vmatpush1.msra.mxu0 %v7929_v0  ;;  %3006 = vmatpush1.msra.mxu1 %v7930_v56  ;;  %v8029_v0 = vld [vmem:[#allocation68_spill] sm:$0xff]  ;;  %4531 = vrcp.f32 %v2760_v18  ;;  %v6549_v18 = vld [vmem:[#allocation6 + $0x170] sm:$0xff] }
 0x51c   :  { %2936 = vmatprep.subr.mxu0 %v7931_v34  ;;  %3007 = vmatprep.subr.mxu1 %v7932_v59  ;;  %v2764_v34 = vrot.slane %v6298_v53, 2  ;;  %v8030_v59 = vld [vmem:[#allocation69_spill] sm:$0xff] }
 0x51d   :  { %2937 = vmatpush1.msra.mxu0 %v8022_v63  ;;  %3008 = vmatpush1.msra.mxu1 %v8023_v8  ;;  %v8058_v63 = vld [vmem:[#allocation106_spill] sm:$0xff]  ;;  %v6507_v8 = vld [vmem:[#allocation6 + $0x1d8] sm:$0xff] }
 0x51e   :  { %2938 = vmatprep.subr.mxu0 %v8024_v19  ;;  %3009 = vmatprep.subr.mxu1 %v8025_v39  ;;  %v6510_v19 = vld [vmem:[#allocation6 + $0x1c0] sm:$0xff]  ;;  %v6513_v39 = vld [vmem:[#allocation6 + $0x1d0] sm:$0xff] }
 0x51f   :  { %2939 = vmatpush1.msra.mxu0 %v8026_v40  ;;  %3010 = vmatpush1.msra.mxu1 %v8027_v50  ;;  %v6519_v40 = vld [vmem:[#allocation6 + $0x1b8] sm:$0xff]  ;;  %v6522_v50 = vld [vmem:[#allocation6 + $0x1a0] sm:$0xff] }
 0x520   :  { %v4526_v43 = vpop.eup %4525  ;;  %2940 = vmatprep.subr.mxu0 %v8028_v28  ;;  %3011 = vmatprep.subr.mxu1 %v8029_v0  ;;  %v6528_v28 = vld [vmem:[#allocation6 + $0x188] sm:$0xff]  ;;  %v6531_v0 = vld [vmem:[#allocation6 + $0x198] sm:$0xff] }
 0x521   :  { %v4528_v56 = vpop.eup %4527  ;;  %2941 = vmatpush1.msra.mxu0 %v8030_v59  ;;  %3012 = vmatpush1.msra.mxu1 %v8031_v41  ;;  %v6540_v59 = vld [vmem:[#allocation6 + $0x168] sm:$0xff]  ;;  %v6543_v41 = vld [vmem:[#allocation6 + $0x178] sm:$0xff] }
 0x522   :  { %v4530_v11 = vpop.eup %4529  ;;  %2942 = vmatprep.subr.mxu0 %v7943_v47  ;;  %3013 = vmatprep.subr.mxu1 %v8032_v49  ;;  %v2767_v52 = vmul.f32 %v4528_v56, %v4526_v43  ;;  %v8035_v47 = vld [vmem:[#allocation78_spill] sm:$0xff]  ;;  %v6534_v56 = vld [vmem:[#allocation6 + $0x180] sm:$0xff]  ;;  %v6552_v49 = vld [vmem:[#allocation6 + $0x148] sm:$0xff] }
 0x523   :  { %v2766_v29 = vmul.f32 %v4530_v11, %v2764_v34  ;;  %2943 = vmatpush1.msra.mxu0 %v7945_v57  ;;  %3014 = vmatpush1.msra.mxu1 %v8033_v61  ;;  %v8036_v57 = vld [vmem:[#allocation79_spill] sm:$0xff]  ;;  %v6525_v43 = vld [vmem:[#allocation6 + $0x1b0] sm:$0xff]  ;;  %v6546_v11 = vld [vmem:[#allocation6 + $0x160] sm:$0xff] }
 0x524   :  { %2944 = vmatprep.subr.mxu0 %v7947_v36  ;;  %3015 = vmatprep.subr.mxu1 %v8034_v24  ;;  %v8037_v36 = vld [vmem:[#allocation82_spill] sm:$0xff]  ;;  %v6564_v24 = vld [vmem:[#allocation6 + $0x128] sm:$0xff] }
 0x525   :  { %v6450_v53 = vadd.f32 %v2767_v52, %v2766_v29  ;;  %2945 = vmatpush1.msra.mxu0 %v6056_v16  ;;  %3016 = vmatpush1.msra.mxu1 %v6059_v31  ;;  %v8040_v16 = vld [vmem:[#allocation85_spill] sm:$0xff]  ;;  %v8041_v31 = vld [vmem:[#allocation86_spill] sm:$0xff]  ;;  %v6555_v52 = vld [vmem:[#allocation6 + $0x158] sm:$0xff] }
 0x526   :  { %2946 = vmatprep.subr.mxu0 %v6062_v33  ;;  %3017 = vmatprep.subr.mxu1 %v7948_v4  ;;  %v8043_v33 = vld [vmem:[#allocation88_spill] sm:$0xff]  ;;  %v8044_v4 = vld [vmem:[#allocation89_spill] sm:$0xff]  ;;  %v6537_v34 = vld [vmem:[#allocation6 + $0x190] sm:$0xff] }
 0x527   :  { %2947 = vmatpush1.msra.mxu0 %v8035_v47  ;;  %3018 = vmatpush1.msra.mxu1 %v8036_v57  ;;  %4533 = vtanh.f32 %v6450_v53  ;;  %v6558_v29 = vld [vmem:[#allocation6 + $0x140] sm:$0xff]  ;;  %v6561_v61 = vld [vmem:[#allocation6 + $0x150] sm:$0xff]  ;;  %v6567_v47 = vld [vmem:[#allocation6 + $0x138] sm:$0xff] }
 0x528   :  { %2948 = vmatprep.subr.mxu0 %v8037_v36  ;;  %3019 = vmatprep.subr.mxu1 %v8038_v25  ;;  %v4532_v9 = vpop.eup %4531  ;;  %8059 = vst [vmem:[#allocation56_spill] sm:$0xff] %v6567_v47  ;;  %v6570_v57 = vld [vmem:[#allocation6 + $0x120] sm:$0xff]  ;;  %v6573_v36 = vld [vmem:[#allocation6 + $0x130] sm:$0xff]  ;;  %v6576_v25 = vld [vmem:[#allocation6 + $0x108] sm:$0xff] }
 0x529   :  { %2949 = vmatpush1.msra.mxu0 %v8039_v60  ;;  %3020 = vmatpush1.msra.mxu1 %v8040_v16  ;;  %8060 = vst [vmem:[#allocation57_spill] sm:$0xff] %v6570_v57  ;;  %8061 = vst [vmem:[#allocation58_spill] sm:$0xff] %v6573_v36  ;;  %v6579_v60 = vld [vmem:[#allocation6 + $0x118] sm:$0xff]  ;;  %v6582_v16 = vld [vmem:[#allocation6 + $0x100] sm:$0xff] }
 0x52a   :  { %2950 = vmatprep.subr.mxu0 %v8041_v31  ;;  %3021 = vmatprep.subr.mxu1 %v8042_v30  ;;  %8062 = vst [vmem:[#allocation59_spill] sm:$0xff] %v6576_v25  ;;  %8063 = vst [vmem:[#allocation60_spill] sm:$0xff] %v6579_v60  ;;  %v6585_v31 = vld [vmem:[#allocation6 + $0x110] sm:$0xff]  ;;  %v6588_v30 = vld [vmem:[#allocation6 + $0xe8] sm:$0xff] }
 0x52b   :  { %2951 = vmatpush1.msra.mxu0 %v8043_v33  ;;  %3022 = vmatpush1.msra.mxu1 %v8044_v4  ;;  %8064 = vst [vmem:[#allocation71_spill] sm:$0xff] %v6582_v16  ;;  %8065 = vst [vmem:[#allocation73_spill] sm:$0xff] %v6585_v31  ;;  %v6591_v33 = vld [vmem:[#allocation6 + $0xf8] sm:$0xff]  ;;  %v6594_v4 = vld [vmem:[#allocation6 + $0xe0] sm:$0xff] }
 0x52c   :  { %2952 = vmatprep.subr.mxu0 %v8045_v15  ;;  %3023 = vmatprep.subr.mxu1 %v8046_v35  ;;  %8066 = vst [vmem:[#allocation75_spill] sm:$0xff] %v6588_v30  ;;  %8067 = vst [vmem:[#allocation77_spill] sm:$0xff] %v6591_v33  ;;  %v6597_v15 = vld [vmem:[#allocation6 + $0xf0] sm:$0xff]  ;;  %v6600_v35 = vld [vmem:[#allocation6 + $0xc8] sm:$0xff] }
 0x52d   :  { %2953 = vmatpush1.msra.mxu0 %v8047_v5  ;;  %3024 = vmatpush1.msra.mxu1 %v8048_v38  ;;  %8068 = vst [vmem:[#allocation98_spill] sm:$0xff] %v6594_v4  ;;  %8069 = vst [vmem:[#allocation99_spill] sm:$0xff] %v6597_v15  ;;  %v6603_v5 = vld [vmem:[#allocation6 + $0xd8] sm:$0xff]  ;;  %v6606_v38 = vld [vmem:[#allocation6 + $0xc0] sm:$0xff] }
 0x52e   :  { %2954 = vmatprep.subr.mxu0 %v8049_v37  ;;  %3025 = vmatprep.subr.mxu1 %v8050_v20  ;;  %8070 = vst [vmem:[#allocation101_spill] sm:$0xff] %v6600_v35  ;;  %8071 = vst [vmem:[#allocation107_spill] sm:$0xff] %v6603_v5  ;;  %v6609_v37 = vld [vmem:[#allocation6 + $0xd0] sm:$0xff]  ;;  %v6612_v20 = vld [vmem:[#allocation6 + $0xa8] sm:$0xff] }
 0x52f   :  { %2955 = vmatpush1.msra.mxu0 %v8051_v22  ;;  %3026 = vmatpush1.msra.mxu1 %v8052_v45  ;;  %8072 = vst [vmem:[#allocation21_spill] sm:$0xff] %v6606_v38  ;;  %8073 = vst [vmem:[#allocation20_spill] sm:$0xff] %v6609_v37  ;;  %v6615_v22 = vld [vmem:[#allocation6 + $0xb8] sm:$0xff]  ;;  %v6618_v45 = vld [vmem:[#allocation6 + $0xa0] sm:$0xff] }
 0x530   :  { %2956 = vmatprep.subr.mxu0 %v7966_v23  ;;  %3027 = vmatprep.subr.mxu1 %v7967_v6  ;;  %v6504_v6 = vld [vmem:[#allocation6 + $0x1c8] sm:$0xff]  ;;  %8074 = vst [vmem:[#allocation22_spill] sm:$0xff] %v6612_v20  ;;  %8075 = vst [vmem:[#allocation23_spill] sm:$0xff] %v6615_v22 }
 0x531   :  { %2957 = vmatpush1.msra.mxu0 %v8053_v51  ;;  %3028 = vmatpush1.msra.mxu1 %v7969_v54  ;;  %v6492_v54 = vld [vmem:[#allocation6 + $0x1e8] sm:$0xff]  ;;  %8076 = vst [vmem:[#allocation24_spill] sm:$0xff] %v6618_v45  ;;  %v6621_v51 = vld [vmem:[#allocation6 + $0xb0] sm:$0xff] }
 0x532   :  { %2958 = vmatprep.subr.mxu0 %v8054_v21  ;;  %3029 = vmatprep.subr.mxu1 %v8055_v62  ;;  %8077 = vst [vmem:[#allocation25_spill] sm:$0xff] %v6621_v51  ;;  %v6624_v21 = vld [vmem:[#allocation6 + $0x88] sm:$0xff]  ;;  %v6627_v62 = vld [vmem:[#allocation6 + $0x98] sm:$0xff] }
 0x533   :  { %2959 = vmatpush1.msra.mxu0 %v8056_v58  ;;  %3030 = vmatpush1.msra.mxu1 %v8057_v1  ;;  %8078 = vst [vmem:[#allocation26_spill] sm:$0xff] %v6624_v21  ;;  %8079 = vst [vmem:[#allocation27_spill] sm:$0xff] %v6627_v62  ;;  %v6633_v58 = vld [vmem:[#allocation6 + $0x90] sm:$0xff]  ;;  %v6636_v1 = vld [vmem:[#allocation6 + $0x68] sm:$0xff] }
 0x534   :  { %v4534_v10 = vpop.eup %4533  ;;  %2960 = vmatprep.subr.mxu0 %v8058_v63  ;;  %3031 = vmatprep.subr.mxu1 %v7975_v26  ;;  %v6495_v26 = vld [vmem:[#allocation6 + $0x1f8] sm:$0xff]  ;;  %8081 = vst [vmem:[#allocation29_spill] sm:$0xff] %v6633_v58  ;;  %8082 = vst [vmem:[#allocation30_spill] sm:$0xff] %v6636_v1  ;;  %v6642_v63 = vld [vmem:[#allocation6 + $0x60] sm:$0xff] }
 0x535   :  { %2961 = vmatpush1.msra.mxu0 %v6155_v55  ;;  %2994 = vmatprep.mubr.f32.mxu0 %v7675_v32  ;;  %v2770_v23 = vmul.f32 %v4534_v10, %v4532_v9  ;;  %v6498_v55 = vld [vmem:[#allocation6 + $0x1e0] sm:$0xff]  ;;  %v6639_v10 = vld [vmem:[#allocation6 + $0x78] sm:$0xff]  ;;  %8084 = vst [vmem:[#allocation32_spill] sm:$0xff] %v6642_v63 }
 0x536   :  { %3032 = vmatpush1.msra.mxu1 %v6159_v48  ;;  %3065 = vmatprep.mubr.f32.mxu1 %v7675_v32  ;;  %v6501_v48 = vld [vmem:[#allocation6 + $0x1f0] sm:$0xff]  ;;  %v6630_v9 = vld [vmem:[#allocation6 + $0x80] sm:$0xff]  ;;  %8083 = vst [vmem:[#allocation31_spill] sm:$0xff] %v6639_v10 }
 0x537   :  { %4361 = vst [vmem:[%s7235_s5 + $0x12] sm:$0x3] %v2770_v23  ;;  %2995 = vmatmul.mubr.f32.vlgmr.msra.gmra.mxu0 %v2770_v23  ;;  %3066 = vmatmul.mubr.f32.vlgmr.msra.gmra.mxu1 %v2770_v23  ;;  %8080 = vst [vmem:[#allocation28_spill] sm:$0xff] %v6630_v9  ;;  %v6645_v23 = vld [vmem:[#allocation6 + $0x70] sm:$0xff] }
 0x538   :  { %3159 = vmatprep.subr.mxu0 %v6492_v54  ;;  %3230 = vmatprep.subr.mxu1 %v6495_v26  ;;  %8085 = vst [vmem:[#allocation33_spill] sm:$0xff] %v6645_v23 }
 0x539   :  { %3160 = vmatpush1.msra.mxu0 %v6498_v55  ;;  %3231 = vmatpush1.msra.mxu1 %v6501_v48 }
 0x53a   :  { %3161 = vmatprep.subr.mxu0 %v6504_v6  ;;  %3232 = vmatprep.subr.mxu1 %v6507_v8 }
 0x53b   :  { %3162 = vmatpush1.msra.mxu0 %v6510_v19  ;;  %3233 = vmatpush1.msra.mxu1 %v6513_v39 }
 0x53c   :  { %3163 = vmatprep.subr.mxu0 %v6516_v14  ;;  %3234 = vmatprep.subr.mxu1 %v6519_v40 }
 0x53d   :  { %3164 = vmatpush1.msra.mxu0 %v6522_v50  ;;  %3235 = vmatpush1.msra.mxu1 %v6525_v43 }
 0x53e   :  { %3165 = vmatprep.subr.mxu0 %v6528_v28  ;;  %3236 = vmatprep.subr.mxu1 %v6531_v0 }
 0x53f   :  { %3166 = vmatpush1.msra.mxu0 %v6534_v56  ;;  %3237 = vmatpush1.msra.mxu1 %v6537_v34 }
 0x540   :  { %3167 = vmatprep.subr.mxu0 %v6540_v59  ;;  %3238 = vmatprep.subr.mxu1 %v6543_v41 }
 0x541   :  { %3168 = vmatpush1.msra.mxu0 %v6546_v11  ;;  %3239 = vmatpush1.msra.mxu1 %v6549_v18 }
 0x542   :  { %3169 = vmatprep.subr.mxu0 %v6552_v49  ;;  %3240 = vmatprep.subr.mxu1 %v6555_v52 }
 0x543   :  { %3170 = vmatpush1.msra.mxu0 %v6558_v29  ;;  %3241 = vmatpush1.msra.mxu1 %v6561_v61 }
 0x544   :  { %3171 = vmatprep.subr.mxu0 %v6564_v24  ;;  %3242 = vmatprep.subr.mxu1 %v6567_v47 }
 0x545   :  { %3172 = vmatpush1.msra.mxu0 %v6570_v57  ;;  %3243 = vmatpush1.msra.mxu1 %v6573_v36 }
 0x546   :  { %3173 = vmatprep.subr.mxu0 %v6576_v25  ;;  %3244 = vmatprep.subr.mxu1 %v6579_v60 }
 0x547   :  { %3174 = vmatpush1.msra.mxu0 %v6582_v16  ;;  %3245 = vmatpush1.msra.mxu1 %v6585_v31 }
 0x548   :  { %3175 = vmatprep.subr.mxu0 %v6588_v30  ;;  %3246 = vmatprep.subr.mxu1 %v6591_v33 }
 0x549   :  { %3176 = vmatpush1.msra.mxu0 %v6594_v4  ;;  %3247 = vmatpush1.msra.mxu1 %v6597_v15 }
 0x54a   :  { %3177 = vmatprep.subr.mxu0 %v6600_v35  ;;  %3248 = vmatprep.subr.mxu1 %v6603_v5 }
 0x54b   :  { %3178 = vmatpush1.msra.mxu0 %v6606_v38  ;;  %3249 = vmatpush1.msra.mxu1 %v6609_v37 }
 0x54c   :  { %3179 = vmatprep.subr.mxu0 %v6612_v20  ;;  %3250 = vmatprep.subr.mxu1 %v6615_v22 }
 0x54d   :  { %3180 = vmatpush1.msra.mxu0 %v6618_v45  ;;  %3251 = vmatpush1.msra.mxu1 %v6621_v51  ;;  %v8095_v51 = vld [vmem:[#allocation12_spill] sm:$0xff] }
 0x54e   :  { %3181 = vmatprep.subr.mxu0 %v6624_v21  ;;  %3252 = vmatprep.subr.mxu1 %v6627_v62 }
 0x54f   :  { %3182 = vmatpush1.msra.mxu0 %v6630_v9  ;;  %3253 = vmatpush1.msra.mxu1 %v6633_v58  ;;  %v6648_v9 = vld [vmem:[#allocation6 + $0x48] sm:$0xff]  ;;  %v6651_v58 = vld [vmem:[#allocation6 + $0x58] sm:$0xff] }
 0x550   :  { %3183 = vmatprep.subr.mxu0 %v6636_v1  ;;  %3254 = vmatprep.subr.mxu1 %v6639_v10  ;;  %8086 = vst [vmem:[#allocation34_spill] sm:$0xff] %v6648_v9  ;;  %8087 = vst [vmem:[#allocation35_spill] sm:$0xff] %v6651_v58  ;;  %v6654_v1 = vld [vmem:[#allocation6 + $0x40] sm:$0xff]  ;;  %v6657_v10 = vld [vmem:[#allocation6 + $0x50] sm:$0xff] }
 0x551   :  { %3184 = vmatpush1.msra.mxu0 %v6642_v63  ;;  %3255 = vmatpush1.msra.mxu1 %v6645_v23  ;;  %8088 = vst [vmem:[#allocation36_spill] sm:$0xff] %v6654_v1  ;;  %8089 = vst [vmem:[#allocation37_spill] sm:$0xff] %v6657_v10  ;;  %v6661_v63 = vld [vmem:[#allocation6 + $0x38] sm:$0xff]  ;;  %v8094_v23 = vld [vmem:[#allocation13_spill] sm:$0xff] }
 0x552   :  { %3185 = vmatprep.subr.mxu0 %v6648_v9  ;;  %3256 = vmatprep.subr.mxu1 %v6651_v58  ;;  %8090 = vst [vmem:[#allocation38_spill] sm:$0xff] %v6661_v63  ;;  %v6665_v9 = vld [vmem:[#allocation6 + $0x30] sm:$0xff] }
 0x553   :  { %3186 = vmatpush1.msra.mxu0 %v6654_v1  ;;  %3257 = vmatpush1.msra.mxu1 %v6657_v10  ;;  %8091 = vst [vmem:[#allocation39_spill] sm:$0xff] %v6665_v9 }
 0x554   :  { %3187 = vmatprep.subr.mxu0 %v8011_v42  ;;  %3258 = vmatprep.subr.mxu1 %v6661_v63 }
 0x555   :  { %3188 = vmatpush1.msra.mxu0 %v8013_v46  ;;  %3259 = vmatpush1.msra.mxu1 %v6665_v9  ;;  %v8092_v46 = vld [vmem:[#allocation80_spill] sm:$0xff] }
 0x556   :  { %3189 = vmatprep.subr.mxu0 %v8015_v17  ;;  %3260 = vmatprep.subr.mxu1 %v8016_v2  ;;  %v8093_v17 = vld [vmem:[#allocation81_spill] sm:$0xff] }
 0x557   :  { %3190 = vmatpush1.msra.mxu0 %v8017_v27  ;;  %3223 = vmatprep.mubr.f32.mxu0 %v7675_v32 }
 0x558   :  { %3261 = vmatpush1.msra.mxu1 %v8018_v7  ;;  %3294 = vmatprep.mubr.f32.mxu1 %v7675_v32 }
 0x559   :  { %3303 = vmatprep.subr.mxu0 %v8019_v12  ;;  %3374 = vmatprep.subr.mxu1 %v8020_v3 }
 0x5d6   :  { %v2854_v42 = vpop.f32.mrf.mxu0  ;;  %v2925_v2 = vpop.f32.mrf.mxu1 }
 0x5d7   :  { %v3072_v63 = vadd.f32 %v2854_v42, %v8092_v46  ;;  %v3074_v12 = vadd.f32 %v2925_v2, %v8095_v51 }
 0x5d8   :  { %v2856_v9 = vpop.f32.mrf.mxu0  ;;  %v2927_v58 = vpop.f32.mrf.mxu1 }
 0x5d9   :  { %v4362_v10 = vmul.f32 -1.442695, %v3072_v63  ;;  %v3073_v1 = vadd.f32 %v2856_v9, %v8093_v17  ;;  %v3075_v7 = vadd.f32 %v2927_v58, %v8094_v23  ;;  %v8096_v23 = vld [vmem:[#allocation15_spill] sm:$0xff] }
 0x5db   :  { %4535 = vpow2.f32 %v4362_v10  ;;  %v4363_v27 = vmul.f32 -1.442695, %v3073_v1  ;;  %v4364_v62 = vmul.f32 -1.442695, %v3075_v7 }
 0x5dd   :  { %4537 = vpow2.f32 %v4363_v27  ;;  %v3112_v27 = vrot.slane %v6412_v44, 6 }
 0x5de   :  { %4539 = vpow2.f32 %v4364_v62 }
 0x5e8   :  { %v4536_v21 = vpop.eup %4535 }
 0x5e9   :  { %v3095_v45 = vadd.f32 1.0, %v4536_v21 }
 0x5ea   :  { %v4538_v3 = vpop.eup %4537 }
 0x5eb   :  { %4541 = vrcp.f32 %v3095_v45  ;;  %v3101_v42 = vadd.f32 1.0, %v4538_v3  ;;  %v4540_v63 = vpop.eup %4539  ;;  %v8097_v3 = vld [vmem:[#allocation14_spill] sm:$0xff] }
 0x5ec   :  { %4543 = vtanh.f32 %v3074_v12  ;;  %v3108_v46 = vadd.f32 1.0, %v4540_v63  ;;  %v8098_v63 = vld [vmem:[#allocation16_spill] sm:$0xff] }
 0x5ed   :  { %4545 = vrcp.f32 %v3101_v42 }
 0x5ee   :  { %4547 = vrcp.f32 %v3108_v46 }
 0x5f7   :  { %v2996_v9 = vpop.f32.mrf.mxu0  ;;  %v3067_v2 = vpop.f32.mrf.mxu1 }
 0x5f8   :  { %v4542_v17 = vpop.eup %4541  ;;  %v3080_v10 = vrot.slane %v2996_v9, 2 }
 0x5f9   :  { %v4544_v1 = vpop.eup %4543  ;;  %v2998_v58 = vpop.f32.mrf.mxu0 }
 0x5fa   :  { %v4546_v7 = vpop.eup %4545  ;;  %v3088_v22 = vadd.f32 %v3080_v10, %v8096_v23  ;;  %v3081_v21 = vrot.slane %v2998_v58, 2  ;;  %v3115_v62 = vmul.f32 %v4544_v1, %v4542_v17  ;;  %v3069_v20 = vpop.f32.mrf.mxu1  ;;  %v3082_v10 = vrot.slane %v3067_v2, 2  ;;  %v8099_v1 = vld [vmem:[#allocation17_spill] sm:$0xff]  ;;  %v6700_v2 = vld [vmem:[#allocation7 + $0x1d8] sm:$0xff] }
 0x5fb   :  { %v3114_v51 = vmul.f32 %v4546_v7, %v3112_v27  ;;  %v3083_v44 = vrot.slane %v3069_v20, 2  ;;  %v4548_v58 = vpop.eup %4547  ;;  %v6694_v20 = vld [vmem:[#allocation7 + $0x1f0] sm:$0xff] }
 0x5fc   :  { %v4365_v45 = vmul.f32 -1.442695, %v3088_v22  ;;  %v3089_v12 = vadd.f32 %v3081_v21, %v8097_v3  ;;  %v3090_v22 = vadd.f32 %v3082_v10, %v8099_v1  ;;  %v6718_v10 = vld [vmem:[#allocation7 + $0x1b0] sm:$0xff] }
 0x5fd   :  { %v6683_v42 = vadd.f32 %v3115_v62, %v3114_v51  ;;  %v3091_v37 = vadd.f32 %v3083_v44, %v8098_v63  ;;  %v6703_v62 = vld [vmem:[#allocation7 + $0x1c0] sm:$0xff]  ;;  %8103 = vst [vmem:[#allocation43_spill] sm:$0xff] %v6718_v10 }
 0x5fe   :  { %4549 = vpow2.f32 %v4365_v45  ;;  %v4366_v9 = vmul.f32 -1.442695, %v3089_v12  ;;  %v6706_v45 = vld [vmem:[#allocation7 + $0x1d0] sm:$0xff]  ;;  %v6709_v12 = vld [vmem:[#allocation7 + $0x1a8] sm:$0xff]  ;;  %v6715_v44 = vld [vmem:[#allocation7 + $0x1a0] sm:$0xff] }
 0x5ff   :  { %4551 = vtanh.f32 %v6683_v42  ;;  %v4367_v23 = vmul.f32 -1.442695, %v3091_v37  ;;  %v6691_v37 = vld [vmem:[#allocation7 + $0x1e0] sm:$0xff]  ;;  %8100 = vst [vmem:[#allocation40_spill] sm:$0xff] %v6709_v12  ;;  %8102 = vst [vmem:[#allocation42_spill] sm:$0xff] %v6715_v44 }
 0x600   :  { %4553 = vpow2.f32 %v4366_v9  ;;  %v6712_v9 = vld [vmem:[#allocation7 + $0x1b8] sm:$0xff] }
 0x601   :  { %4555 = vpow2.f32 %v4367_v23  ;;  %v6697_v23 = vld [vmem:[#allocation7 + $0x1c8] sm:$0xff]  ;;  %8101 = vst [vmem:[#allocation41_spill] sm:$0xff] %v6712_v9 }
 0x60b   :  { %v4550_v17 = vpop.eup %4549 }
 0x60c   :  { %v4552_v27 = vpop.eup %4551  ;;  %v3122_v7 = vadd.f32 1.0, %v4550_v17  ;;  %v6724_v17 = vld [vmem:[#allocation7 + $0x198] sm:$0xff] }
 0x60d   :  { %v4554_v51 = vpop.eup %4553  ;;  %v3118_v46 = vmul.f32 %v4552_v27, %v4548_v58  ;;  %v6721_v58 = vld [vmem:[#allocation7 + $0x188] sm:$0xff]  ;;  %8105 = vst [vmem:[#allocation45_spill] sm:$0xff] %v6724_v17  ;;  %v6730_v27 = vld [vmem:[#allocation7 + $0x190] sm:$0xff] }
 0x60e   :  { %4557 = vrcp.f32 %v3122_v7  ;;  %v3128_v21 = vadd.f32 1.0, %v4554_v51  ;;  %8104 = vst [vmem:[#allocation44_spill] sm:$0xff] %v6721_v58  ;;  %8107 = vst [vmem:[#allocation47_spill] sm:$0xff] %v6730_v27  ;;  %v6733_v7 = vld [vmem:[#allocation7 + $0x168] sm:$0xff]  ;;  %v6736_v51 = vld [vmem:[#allocation7 + $0x178] sm:$0xff] }
 0x60f   :  { %4559 = vtanh.f32 %v3090_v22  ;;  %4368 = vst [vmem:[%s7235_s5 + $0x10] sm:$0x3] %v3118_v46  ;;  %3224 = vmatmul.mubr.f32.vlgmr.msra.gmra.mxu0 %v3118_v46  ;;  %3295 = vmatmul.mubr.f32.vlgmr.msra.gmra.mxu1 %v3118_v46  ;;  %v6727_v22 = vld [vmem:[#allocation7 + $0x180] sm:$0xff]  ;;  %8108 = vst [vmem:[#allocation48_spill] sm:$0xff] %v6733_v7 }
 0x610   :  { %4561 = vrcp.f32 %v3128_v21  ;;  %3304 = vmatpush1.msra.mxu0 %v6691_v37  ;;  %3375 = vmatpush1.msra.mxu1 %v6694_v20  ;;  %8106 = vst [vmem:[#allocation46_spill] sm:$0xff] %v6727_v22  ;;  %8109 = vst [vmem:[#allocation49_spill] sm:$0xff] %v6736_v51  ;;  %v6739_v46 = vld [vmem:[#allocation7 + $0x160] sm:$0xff]  ;;  %v6742_v21 = vld [vmem:[#allocation7 + $0x170] sm:$0xff] }
 0x611   :  { %3305 = vmatprep.subr.mxu0 %v6697_v23  ;;  %3376 = vmatprep.subr.mxu1 %v6700_v2  ;;  %8110 = vst [vmem:[#allocation50_spill] sm:$0xff] %v6739_v46  ;;  %8111 = vst [vmem:[#allocation51_spill] sm:$0xff] %v6742_v21 }
 0x612   :  { %3306 = vmatpush1.msra.mxu0 %v6703_v62  ;;  %3377 = vmatpush1.msra.mxu1 %v6706_v45 }
 0x613   :  { %3307 = vmatprep.subr.mxu0 %v6709_v12  ;;  %3378 = vmatprep.subr.mxu1 %v6712_v9  ;;  %v6770_v9 = vld [vmem:[#allocation7 + $0x108] sm:$0xff]  ;;  %v6776_v12 = vld [vmem:[#allocation7 + $0x100] sm:$0xff] }
 0x614   :  { %3308 = vmatpush1.msra.mxu0 %v6715_v44  ;;  %3379 = vmatpush1.msra.mxu1 %v6718_v10  ;;  %v6764_v10 = vld [vmem:[#allocation7 + $0x120] sm:$0xff]  ;;  %8120 = vst [vmem:[#allocation112_spill] sm:$0xff] %v6770_v9 }
 0x615   :  { %3309 = vmatprep.subr.mxu0 %v6721_v58  ;;  %3380 = vmatprep.subr.mxu1 %v6724_v17  ;;  %v6751_v17 = vld [vmem:[#allocation7 + $0x140] sm:$0xff]  ;;  %v6757_v58 = vld [vmem:[#allocation7 + $0x128] sm:$0xff]  ;;  %8118 = vst [vmem:[#allocation110_spill] sm:$0xff] %v6764_v10 }
 0x616   :  { %3310 = vmatpush1.msra.mxu0 %v6727_v22  ;;  %3381 = vmatpush1.msra.mxu1 %v6730_v27  ;;  %v6745_v22 = vld [vmem:[#allocation7 + $0x148] sm:$0xff]  ;;  %v6748_v27 = vld [vmem:[#allocation7 + $0x158] sm:$0xff]  ;;  %8114 = vst [vmem:[#allocation108_spill] sm:$0xff] %v6751_v17  ;;  %8116 = vst [vmem:[#allocation109_spill] sm:$0xff] %v6757_v58 }
 0x617   :  { %3311 = vmatprep.subr.mxu0 %v6733_v7  ;;  %3382 = vmatprep.subr.mxu1 %v6736_v51  ;;  %8112 = vst [vmem:[#allocation52_spill] sm:$0xff] %v6745_v22  ;;  %8113 = vst [vmem:[#allocation53_spill] sm:$0xff] %v6748_v27  ;;  %v4556_v7 = vpop.eup %4555  ;;  %v6754_v51 = vld [vmem:[#allocation7 + $0x150] sm:$0xff] }
 0x618   :  { %3312 = vmatpush1.msra.mxu0 %v6739_v46  ;;  %3383 = vmatpush1.msra.mxu1 %v6742_v21  ;;  %8115 = vst [vmem:[#allocation54_spill] sm:$0xff] %v6754_v51  ;;  %v6760_v21 = vld [vmem:[#allocation7 + $0x138] sm:$0xff]  ;;  %v3135_v44 = vadd.f32 1.0, %v4556_v7 }
 0x619   :  { %3313 = vmatprep.subr.mxu0 %v6745_v22  ;;  %3384 = vmatprep.subr.mxu1 %v6748_v27  ;;  %8117 = vst [vmem:[#allocation55_spill] sm:$0xff] %v6760_v21  ;;  %v3139_v27 = vrot.slane %v6450_v53, 2  ;;  %v6785_v7 = vld [vmem:[#allocation7 + $0xf8] sm:$0xff] }
 0x61a   :  { %3314 = vmatpush1.msra.mxu0 %v6751_v17  ;;  %3385 = vmatpush1.msra.mxu1 %v6754_v51  ;;  %v6767_v17 = vld [vmem:[#allocation7 + $0x130] sm:$0xff]  ;;  %8122 = vst [vmem:[#allocation114_spill] sm:$0xff] %v6785_v7  ;;  %4563 = vrcp.f32 %v3135_v44  ;;  %v6812_v44 = vld [vmem:[#allocation7 + $0xb8] sm:$0xff] }
 0x61b   :  { %v4558_v46 = vpop.eup %4557  ;;  %3315 = vmatprep.subr.mxu0 %v6757_v58  ;;  %3386 = vmatprep.subr.mxu1 %v6760_v21  ;;  %8119 = vst [vmem:[#allocation111_spill] sm:$0xff] %v6767_v17  ;;  %v6773_v58 = vld [vmem:[#allocation7 + $0x118] sm:$0xff]  ;;  %8130 = vst [vmem:[#allocation66_spill] sm:$0xff] %v6812_v44 }
 0x61c   :  { %v4560_v22 = vpop.eup %4559  ;;  %3316 = vmatpush1.msra.mxu0 %v6764_v10  ;;  %3387 = vmatpush1.msra.mxu1 %v6767_v17  ;;  %8121 = vst [vmem:[#allocation113_spill] sm:$0xff] %v6773_v58  ;;  %v6779_v10 = vld [vmem:[#allocation7 + $0x110] sm:$0xff]  ;;  %v6782_v17 = vld [vmem:[#allocation7 + $0xe8] sm:$0xff] }
 0x61d   :  { %v4562_v51 = vpop.eup %4561  ;;  %3317 = vmatprep.subr.mxu0 %v6770_v9  ;;  %3388 = vmatprep.subr.mxu1 %v6773_v58  ;;  %v3142_v21 = vmul.f32 %v4560_v22, %v4558_v46  ;;  %v6790_v22 = vld [vmem:[#allocation7 + $0xe0] sm:$0xff]  ;;  %v6799_v46 = vld [vmem:[#allocation7 + $0xd8] sm:$0xff] }
 0x61e   :  { %v3141_v53 = vmul.f32 %v4562_v51, %v3139_v27  ;;  %3318 = vmatpush1.msra.mxu0 %v6776_v12  ;;  %3389 = vmatpush1.msra.mxu1 %v6779_v10  ;;  %8123 = vst [vmem:[#allocation115_spill] sm:$0xff] %v6790_v22  ;;  %v6793_v27 = vld [vmem:[#allocation7 + $0xf0] sm:$0xff]  ;;  %v6796_v51 = vld [vmem:[#allocation7 + $0xc8] sm:$0xff]  ;;  %8126 = vst [vmem:[#allocation62_spill] sm:$0xff] %v6799_v46 }
 0x61f   :  { %3319 = vmatprep.subr.mxu0 %v6782_v17  ;;  %3390 = vmatprep.subr.mxu1 %v6785_v7  ;;  %8124 = vst [vmem:[#allocation19_spill] sm:$0xff] %v6793_v27  ;;  %8125 = vst [vmem:[#allocation61_spill] sm:$0xff] %v6796_v51  ;;  %v6802_v7 = vld [vmem:[#allocation7 + $0xc0] sm:$0xff] }
 0x620   :  { %v6788_v9 = vadd.f32 %v3142_v21, %v3141_v53  ;;  %3320 = vmatpush1.msra.mxu0 %v6790_v22  ;;  %3391 = vmatpush1.msra.mxu1 %v6793_v27  ;;  %8127 = vst [vmem:[#allocation63_spill] sm:$0xff] %v6802_v7  ;;  %v6805_v21 = vld [vmem:[#allocation7 + $0xd0] sm:$0xff]  ;;  %v6809_v53 = vld [vmem:[#allocation7 + $0xa8] sm:$0xff]  ;;  %v6875_v27 = vld [vmem:[#allocation7] sm:$0xff] }
 0x621   :  { %3321 = vmatprep.subr.mxu0 %v6796_v51  ;;  %3392 = vmatprep.subr.mxu1 %v6799_v46  ;;  %8128 = vst [vmem:[#allocation64_spill] sm:$0xff] %v6805_v21  ;;  %8129 = vst [vmem:[#allocation65_spill] sm:$0xff] %v6809_v53  ;;  %v6815_v51 = vld [vmem:[#allocation7 + $0xa0] sm:$0xff]  ;;  %v6818_v46 = vld [vmem:[#allocation7 + $0xb0] sm:$0xff] }
 0x622   :  { %3322 = vmatpush1.msra.mxu0 %v6802_v7  ;;  %3393 = vmatpush1.msra.mxu1 %v6805_v21  ;;  %4565 = vtanh.f32 %v6788_v9  ;;  %8131 = vst [vmem:[#allocation67_spill] sm:$0xff] %v6815_v51  ;;  %8132 = vst [vmem:[#allocation68_spill] sm:$0xff] %v6818_v46  ;;  %v6821_v7 = vld [vmem:[#allocation7 + $0x88] sm:$0xff]  ;;  %v6824_v21 = vld [vmem:[#allocation7 + $0x98] sm:$0xff] }
 0x623   :  { %3323 = vmatprep.subr.mxu0 %v6809_v53  ;;  %3394 = vmatprep.subr.mxu1 %v6812_v44  ;;  %8133 = vst [vmem:[#allocation69_spill] sm:$0xff] %v6821_v7  ;;  %8134 = vst [vmem:[#allocation70_spill] sm:$0xff] %v6824_v21  ;;  %v6827_v53 = vld [vmem:[#allocation7 + $0x80] sm:$0xff]  ;;  %v6830_v44 = vld [vmem:[#allocation7 + $0x90] sm:$0xff] }
 0x624   :  { %3324 = vmatpush1.msra.mxu0 %v6815_v51  ;;  %3395 = vmatpush1.msra.mxu1 %v6818_v46  ;;  %8135 = vst [vmem:[#allocation72_spill] sm:$0xff] %v6827_v53  ;;  %8136 = vst [vmem:[#allocation74_spill] sm:$0xff] %v6830_v44  ;;  %v6833_v51 = vld [vmem:[#allocation7 + $0x68] sm:$0xff]  ;;  %v6836_v46 = vld [vmem:[#allocation7 + $0x78] sm:$0xff] }
 0x625   :  { %3325 = vmatprep.subr.mxu0 %v6821_v7  ;;  %3396 = vmatprep.subr.mxu1 %v6824_v21  ;;  %8137 = vst [vmem:[#allocation76_spill] sm:$0xff] %v6833_v51  ;;  %8138 = vst [vmem:[#allocation78_spill] sm:$0xff] %v6836_v46  ;;  %v6839_v7 = vld [vmem:[#allocation7 + $0x60] sm:$0xff]  ;;  %v6842_v21 = vld [vmem:[#allocation7 + $0x70] sm:$0xff] }
 0x626   :  { %3326 = vmatpush1.msra.mxu0 %v6827_v53  ;;  %3397 = vmatpush1.msra.mxu1 %v6830_v44  ;;  %8139 = vst [vmem:[#allocation79_spill] sm:$0xff] %v6839_v7  ;;  %8140 = vst [vmem:[#allocation82_spill] sm:$0xff] %v6842_v21  ;;  %v6845_v53 = vld [vmem:[#allocation7 + $0x48] sm:$0xff]  ;;  %v6848_v44 = vld [vmem:[#allocation7 + $0x58] sm:$0xff] }
 0x627   :  { %3327 = vmatprep.subr.mxu0 %v6833_v51  ;;  %3398 = vmatprep.subr.mxu1 %v6836_v46  ;;  %8141 = vst [vmem:[#allocation83_spill] sm:$0xff] %v6845_v53  ;;  %8142 = vst [vmem:[#allocation84_spill] sm:$0xff] %v6848_v44  ;;  %v6851_v51 = vld [vmem:[#allocation7 + $0x40] sm:$0xff]  ;;  %v6854_v46 = vld [vmem:[#allocation7 + $0x50] sm:$0xff] }
 0x628   :  { %3328 = vmatpush1.msra.mxu0 %v6839_v7  ;;  %3399 = vmatpush1.msra.mxu1 %v6842_v21  ;;  %8143 = vst [vmem:[#allocation85_spill] sm:$0xff] %v6851_v51  ;;  %8144 = vst [vmem:[#allocation86_spill] sm:$0xff] %v6854_v46  ;;  %v6857_v7 = vld [vmem:[#allocation7 + $0x28] sm:$0xff]  ;;  %v6860_v21 = vld [vmem:[#allocation7 + $0x38] sm:$0xff] }
 0x629   :  { %3329 = vmatprep.subr.mxu0 %v6845_v53  ;;  %3400 = vmatprep.subr.mxu1 %v6848_v44  ;;  %8145 = vst [vmem:[#allocation87_spill] sm:$0xff] %v6857_v7  ;;  %8146 = vst [vmem:[#allocation88_spill] sm:$0xff] %v6860_v21  ;;  %v6863_v53 = vld [vmem:[#allocation7 + $0x20] sm:$0xff]  ;;  %v6866_v44 = vld [vmem:[#allocation7 + $0x30] sm:$0xff] }
 0x62a   :  { %3330 = vmatpush1.msra.mxu0 %v6851_v51  ;;  %3401 = vmatpush1.msra.mxu1 %v6854_v46  ;;  %8147 = vst [vmem:[#allocation89_spill] sm:$0xff] %v6863_v53  ;;  %8148 = vst [vmem:[#allocation90_spill] sm:$0xff] %v6866_v44  ;;  %v6869_v51 = vld [vmem:[#allocation7 + $0x8] sm:$0xff]  ;;  %v6872_v46 = vld [vmem:[#allocation7 + $0x18] sm:$0xff] }
 0x62b   :  { %3331 = vmatprep.subr.mxu0 %v6857_v7  ;;  %3402 = vmatprep.subr.mxu1 %v6860_v21  ;;  %8149 = vst [vmem:[#allocation91_spill] sm:$0xff] %v6869_v51  ;;  %8150 = vst [vmem:[#allocation92_spill] sm:$0xff] %v6872_v46  ;;  %v4564_v7 = vpop.eup %4563  ;;  %v6879_v21 = vld [vmem:[#allocation7 + $0x10] sm:$0xff] }
 0x62c   :  { %3332 = vmatpush1.msra.mxu0 %v6863_v53  ;;  %3403 = vmatpush1.msra.mxu1 %v6866_v44  ;;  %8151 = vst [vmem:[#allocation93_spill] sm:$0xff] %v6875_v27 }
 0x62d   :  { %3333 = vmatprep.subr.mxu0 %v6869_v51  ;;  %3404 = vmatprep.subr.mxu1 %v6872_v46 }
 0x62e   :  { %3334 = vmatpush1.msra.mxu0 %v6875_v27  ;;  %3367 = vmatprep.mubr.f32.mxu0 %v7675_v32 }
 0x62f   :  { %v4566_v53 = vpop.eup %4565  ;;  %3405 = vmatpush1.msra.mxu1 %v6879_v21  ;;  %3438 = vmatprep.mubr.f32.mxu1 %v7675_v32 }
 0x630   :  { %v3145_v44 = vmul.f32 %v4566_v53, %v4564_v7  ;;  %3555 = vmatprep.subr.mxu0 %v6492_v54  ;;  %3626 = vmatprep.subr.mxu1 %v6495_v26  ;;  %v8152_v7 = vld [vmem:[#allocation20_spill] sm:$0xff]  ;;  %v8157_v53 = vld [vmem:[#allocation26_spill] sm:$0xff] }
 0x632   :  { %v3148_v46 = vcombine.high %v3145_v44, %v3145_v44  ;;  %v3301_v51 = vrot.slane %v3145_v44, 6  ;;  %v8158_v44 = vld [vmem:[#allocation27_spill] sm:$0xff] }
 0x634   :  { %v3155_v22 = vrot.slane %v3148_v46, %v7976_v13  ;;  %3368 = vmatmul.mubr.f32.vlgmr.msra.gmra.mxu0 %v3301_v51  ;;  %3439 = vmatmul.mubr.f32.vlgmr.msra.gmra.mxu1 %v3301_v51  ;;  %v8155_v51 = vld [vmem:[#allocation24_spill] sm:$0xff]  ;;  %v8156_v46 = vld [vmem:[#allocation25_spill] sm:$0xff] }
 0x635   :  { %3556 = vmatpush1.msra.mxu0 %v6498_v55  ;;  %3627 = vmatpush1.msra.mxu1 %v6501_v48 }
 0x636   :  { %v3156_v27 = vcombine.high %v3155_v22, %v3155_v22  ;;  %3557 = vmatprep.subr.mxu0 %v6504_v6  ;;  %3628 = vmatprep.subr.mxu1 %v6507_v8  ;;  %v8153_v22 = vld [vmem:[#allocation22_spill] sm:$0xff] }
 0x637   :  { %3558 = vmatpush1.msra.mxu0 %v6510_v19  ;;  %3629 = vmatpush1.msra.mxu1 %v6513_v39 }
 0x638   :  { %4369 = vst [vmem:[%s7235_s5 + $0xe] sm:$0x3] %v3156_v27  ;;  %3559 = vmatprep.subr.mxu0 %v6516_v14  ;;  %3630 = vmatprep.subr.mxu1 %v6519_v40  ;;  %v8154_v27 = vld [vmem:[#allocation23_spill] sm:$0xff] }
 0x639   :  { %3560 = vmatpush1.msra.mxu0 %v6522_v50  ;;  %3631 = vmatpush1.msra.mxu1 %v6525_v43 }
 0x63a   :  { %3561 = vmatprep.subr.mxu0 %v6528_v28  ;;  %3632 = vmatprep.subr.mxu1 %v6531_v0 }
 0x63b   :  { %3562 = vmatpush1.msra.mxu0 %v6534_v56  ;;  %3633 = vmatpush1.msra.mxu1 %v6537_v34 }
 0x63c   :  { %3563 = vmatprep.subr.mxu0 %v6540_v59  ;;  %3634 = vmatprep.subr.mxu1 %v6543_v41 }
 0x63d   :  { %3564 = vmatpush1.msra.mxu0 %v6546_v11  ;;  %3635 = vmatpush1.msra.mxu1 %v6549_v18 }
 0x63e   :  { %3565 = vmatprep.subr.mxu0 %v6552_v49  ;;  %3636 = vmatprep.subr.mxu1 %v6555_v52 }
 0x63f   :  { %3566 = vmatpush1.msra.mxu0 %v6558_v29  ;;  %3637 = vmatpush1.msra.mxu1 %v6561_v61 }
 0x640   :  { %3567 = vmatprep.subr.mxu0 %v6564_v24  ;;  %3638 = vmatprep.subr.mxu1 %v6567_v47 }
 0x641   :  { %3568 = vmatpush1.msra.mxu0 %v6570_v57  ;;  %3639 = vmatpush1.msra.mxu1 %v6573_v36  ;;  %v8182_v36 = vld [vmem:[#allocation12_spill] sm:$0xff] }
 0x642   :  { %3569 = vmatprep.subr.mxu0 %v6576_v25  ;;  %3640 = vmatprep.subr.mxu1 %v6579_v60 }
 0x643   :  { %3570 = vmatpush1.msra.mxu0 %v6582_v16  ;;  %3641 = vmatpush1.msra.mxu1 %v6585_v31 }
 0x644   :  { %3571 = vmatprep.subr.mxu0 %v6588_v30  ;;  %3642 = vmatprep.subr.mxu1 %v6591_v33 }
 0x645   :  { %3572 = vmatpush1.msra.mxu0 %v6594_v4  ;;  %3643 = vmatpush1.msra.mxu1 %v6597_v15  ;;  %v8159_v15 = vld [vmem:[#allocation28_spill] sm:$0xff]  ;;  %v8180_v4 = vld [vmem:[#allocation81_spill] sm:$0xff] }
 0x646   :  { %3573 = vmatprep.subr.mxu0 %v6600_v35  ;;  %3644 = vmatprep.subr.mxu1 %v6603_v5  ;;  %v8160_v35 = vld [vmem:[#allocation29_spill] sm:$0xff]  ;;  %v8161_v5 = vld [vmem:[#allocation30_spill] sm:$0xff] }
 0x647   :  { %3574 = vmatpush1.msra.mxu0 %v6606_v38  ;;  %3645 = vmatpush1.msra.mxu1 %v8152_v7  ;;  %v8162_v38 = vld [vmem:[#allocation31_spill] sm:$0xff]  ;;  %v8163_v7 = vld [vmem:[#allocation32_spill] sm:$0xff] }
 0x648   :  { %3575 = vmatprep.subr.mxu0 %v8153_v22  ;;  %3646 = vmatprep.subr.mxu1 %v8154_v27  ;;  %v8164_v22 = vld [vmem:[#allocation33_spill] sm:$0xff]  ;;  %v8165_v27 = vld [vmem:[#allocation34_spill] sm:$0xff] }
 0x649   :  { %3576 = vmatpush1.msra.mxu0 %v8155_v51  ;;  %3647 = vmatpush1.msra.mxu1 %v8156_v46  ;;  %v8166_v51 = vld [vmem:[#allocation35_spill] sm:$0xff]  ;;  %v8167_v46 = vld [vmem:[#allocation36_spill] sm:$0xff] }
 0x64a   :  { %3577 = vmatprep.subr.mxu0 %v8157_v53  ;;  %3648 = vmatprep.subr.mxu1 %v8158_v44  ;;  %v8168_v53 = vld [vmem:[#allocation37_spill] sm:$0xff] }
 0x64b   :  { %3578 = vmatpush1.msra.mxu0 %v8159_v15  ;;  %3649 = vmatpush1.msra.mxu1 %v8160_v35  ;;  %v6943_v44 = vld [vmem:[#allocation6 + $0x28] sm:$0xff]  ;;  %v8170_v35 = vld [vmem:[#allocation38_spill] sm:$0xff] }
 0x64c   :  { %3579 = vmatprep.subr.mxu0 %v8161_v5  ;;  %3650 = vmatprep.subr.mxu1 %v8162_v38  ;;  %8169 = vst [vmem:[#allocation94_spill] sm:$0xff] %v6943_v44  ;;  %v6947_v5 = vld [vmem:[#allocation6 + $0x20] sm:$0xff] }
 0x64d   :  { %3580 = vmatpush1.msra.mxu0 %v8163_v7  ;;  %3651 = vmatpush1.msra.mxu1 %v8164_v22  ;;  %8171 = vst [vmem:[#allocation95_spill] sm:$0xff] %v6947_v5  ;;  %v8172_v7 = vld [vmem:[#allocation39_spill] sm:$0xff]  ;;  %v6951_v22 = vld [vmem:[#allocation6 + $0x8] sm:$0xff] }
 0x64e   :  { %3581 = vmatprep.subr.mxu0 %v8165_v27  ;;  %3652 = vmatprep.subr.mxu1 %v8166_v51  ;;  %8173 = vst [vmem:[#allocation96_spill] sm:$0xff] %v6951_v22  ;;  %v6954_v51 = vld [vmem:[#allocation6 + $0x18] sm:$0xff] }
 0x64f   :  { %3582 = vmatpush1.msra.mxu0 %v8167_v46  ;;  %3653 = vmatpush1.msra.mxu1 %v8168_v53  ;;  %8174 = vst [vmem:[#allocation97_spill] sm:$0xff] %v6954_v51  ;;  %v6957_v53 = vld [vmem:[#allocation6] sm:$0xff] }
 0x650   :  { %3583 = vmatprep.subr.mxu0 %v6943_v44  ;;  %3654 = vmatprep.subr.mxu1 %v8170_v35  ;;  %8175 = vst [vmem:[#allocation100_spill] sm:$0xff] %v6957_v53  ;;  %v6961_v35 = vld [vmem:[#allocation6 + $0x10] sm:$0xff] }
 0x651   :  { %3584 = vmatpush1.msra.mxu0 %v6947_v5  ;;  %3655 = vmatpush1.msra.mxu1 %v8172_v7  ;;  %8176 = vst [vmem:[#allocation102_spill] sm:$0xff] %v6961_v35  ;;  %v6965_v7 = vld [vmem:[#allocation7 + $0x1e8] sm:$0xff] }
 0x652   :  { %3585 = vmatprep.subr.mxu0 %v6951_v22  ;;  %3656 = vmatprep.subr.mxu1 %v6954_v51  ;;  %8177 = vst [vmem:[#allocation103_spill] sm:$0xff] %v6965_v7  ;;  %v6968_v22 = vld [vmem:[#allocation7 + $0x1f8] sm:$0xff] }
 0x653   :  { %3586 = vmatpush1.msra.mxu0 %v6957_v53  ;;  %3619 = vmatprep.mubr.f32.mxu0 %v7675_v32  ;;  %8178 = vst [vmem:[#allocation104_spill] sm:$0xff] %v6968_v22  ;;  %v8179_v53 = vld [vmem:[#allocation80_spill] sm:$0xff] }
 0x654   :  { %3657 = vmatpush1.msra.mxu1 %v6961_v35  ;;  %3690 = vmatprep.mubr.f32.mxu1 %v7675_v32 }
 0x655   :  { %3699 = vmatprep.subr.mxu0 %v6965_v7  ;;  %3770 = vmatprep.subr.mxu1 %v6968_v22  ;;  %v8181_v7 = vld [vmem:[#allocation13_spill] sm:$0xff] }
 0x6cf   :  { %v3225_v51 = vpop.f32.mrf.mxu0  ;;  %v3296_v27 = vpop.f32.mrf.mxu1 }
 0x6d0   :  { %v3449_v5 = vrot.slane %v3225_v51, 6  ;;  %v3451_v60 = vrot.slane %v3296_v27, 6 }
 0x6d1   :  { %v3227_v44 = vpop.f32.mrf.mxu0  ;;  %v3298_v30 = vpop.f32.mrf.mxu1 }
 0x6d2   :  { %v3457_v46 = vadd.f32 %v3449_v5, %v8179_v53  ;;  %v3450_v38 = vrot.slane %v3227_v44, 6  ;;  %v3452_v31 = vrot.slane %v3298_v30, 6  ;;  %v3459_v51 = vadd.f32 %v3451_v60, %v8182_v36  ;;  %v8183_v60 = vld [vmem:[#allocation15_spill] sm:$0xff] }
 0x6d4   :  { %v4370_v15 = vmul.f32 -1.442695, %v3457_v46  ;;  %v3458_v35 = vadd.f32 %v3450_v38, %v8180_v4  ;;  %v3460_v16 = vadd.f32 %v3452_v31, %v8181_v7 }
 0x6d6   :  { %4567 = vpow2.f32 %v4370_v15  ;;  %v4371_v33 = vmul.f32 -1.442695, %v3458_v35  ;;  %v4372_v25 = vmul.f32 -1.442695, %v3460_v16 }
 0x6d8   :  { %4569 = vpow2.f32 %v4371_v33  ;;  %v3497_v33 = vrot.slane %v6683_v42, 6 }
 0x6d9   :  { %4571 = vpow2.f32 %v4372_v25 }
 0x6e3   :  { %v4568_v22 = vpop.eup %4567 }
 0x6e4   :  { %v3480_v57 = vadd.f32 1.0, %v4568_v22 }
 0x6e5   :  { %v4570_v47 = vpop.eup %4569 }
 0x6e6   :  { %4573 = vrcp.f32 %v3480_v57  ;;  %v3486_v5 = vadd.f32 1.0, %v4570_v47  ;;  %v4572_v38 = vpop.eup %4571 }
 0x6e7   :  { %4575 = vtanh.f32 %v3459_v51  ;;  %v3493_v31 = vadd.f32 1.0, %v4572_v38 }
 0x6e8   :  { %4577 = vrcp.f32 %v3486_v5 }
 0x6e9   :  { %4579 = vrcp.f32 %v3493_v31 }
 0x6f3   :  { %v4574_v15 = vpop.eup %4573 }
 0x6f4   :  { %v4576_v35 = vpop.eup %4575  ;;  %v3369_v30 = vpop.f32.mrf.mxu0 }
 0x6f5   :  { %v4578_v46 = vpop.eup %4577  ;;  %v3465_v27 = vrot.slane %v3369_v30, 4  ;;  %v3500_v16 = vmul.f32 %v4576_v35, %v4574_v15  ;;  %v3440_v36 = vpop.f32.mrf.mxu1 }
 0x6f6   :  { %v3499_v44 = vmul.f32 %v4578_v46, %v3497_v33  ;;  %v3371_v7 = vpop.f32.mrf.mxu0  ;;  %v3467_v35 = vrot.slane %v3440_v36, 4  ;;  %v4580_v33 = vpop.eup %4579  ;;  %v8184_v36 = vld [vmem:[#allocation40_spill] sm:$0xff] }
 0x6f7   :  { %v3473_v22 = vadd.f32 %v3465_v27, %v8183_v60  ;;  %v3466_v25 = vrot.slane %v3371_v7, 4  ;;  %v3442_v5 = vpop.f32.mrf.mxu1 }
 0x6f8   :  { %v6977_v57 = vadd.f32 %v3500_v16, %v3499_v44  ;;  %v3468_v38 = vrot.slane %v3442_v5, 4  ;;  %v3475_v27 = vadd.f32 %v3467_v35, %v8099_v1  ;;  %v8186_v5 = vld [vmem:[#allocation42_spill] sm:$0xff]  ;;  %v8189_v35 = vld [vmem:[#allocation45_spill] sm:$0xff] }
 0x6f9   :  { %v4373_v47 = vmul.f32 -1.442695, %v3473_v22  ;;  %v3474_v51 = vadd.f32 %v3466_v25, %v8097_v3 }
 0x6fa   :  { %4581 = vtanh.f32 %v6977_v57  ;;  %v3476_v15 = vadd.f32 %v3468_v38, %v8098_v63  ;;  %v8187_v38 = vld [vmem:[#allocation43_spill] sm:$0xff] }
 0x6fb   :  { %4583 = vpow2.f32 %v4373_v47  ;;  %v4374_v42 = vmul.f32 -1.442695, %v3474_v51 }
 0x6fc   :  { %v4375_v30 = vmul.f32 -1.442695, %v3476_v15  ;;  %v8188_v15 = vld [vmem:[#allocation44_spill] sm:$0xff] }
 0x6fd   :  { %4585 = vpow2.f32 %v4374_v42  ;;  %v8185_v42 = vld [vmem:[#allocation41_spill] sm:$0xff] }
 0x6fe   :  { %4587 = vpow2.f32 %v4375_v30  ;;  %v8191_v30 = vld [vmem:[#allocation47_spill] sm:$0xff] }
 0x707   :  { %v4582_v46 = vpop.eup %4581 }
 0x708   :  { %v4584_v7 = vpop.eup %4583  ;;  %v3503_v31 = vmul.f32 %v4582_v46, %v4580_v33  ;;  %v8190_v33 = vld [vmem:[#allocation46_spill] sm:$0xff]  ;;  %v8192_v46 = vld [vmem:[#allocation48_spill] sm:$0xff] }
 0x709   :  { %v3507_v16 = vadd.f32 1.0, %v4584_v7  ;;  %v8193_v7 = vld [vmem:[#allocation49_spill] sm:$0xff] }
 0x70a   :  { %v4586_v44 = vpop.eup %4585  ;;  %v3538_v22 = vrot.slane %v3503_v31, %v7976_v13  ;;  %v3553_v25 = vrot.slane %v3503_v31, 2  ;;  %v8195_v31 = vld [vmem:[#allocation51_spill] sm:$0xff]  ;;  %v8200_v13 = vld [vmem:[#allocation109_spill] sm:$0xff] }
 0x70b   :  { %4589 = vrcp.f32 %v3507_v16  ;;  %v3513_v47 = vadd.f32 1.0, %v4586_v44  ;;  %v8196_v16 = vld [vmem:[#allocation52_spill] sm:$0xff]  ;;  %v8197_v44 = vld [vmem:[#allocation53_spill] sm:$0xff] }
 0x70c   :  { %4591 = vtanh.f32 %v3475_v27  ;;  %v3539_v51 = vcombine.high %v3538_v22, %v3538_v22  ;;  %3620 = vmatmul.mubr.f32.vlgmr.msra.gmra.mxu0 %v3553_v25  ;;  %3691 = vmatmul.mubr.f32.vlgmr.msra.gmra.mxu1 %v3553_v25  ;;  %v8194_v27 = vld [vmem:[#allocation50_spill] sm:$0xff]  ;;  %v4588_v22 = vpop.eup %4587  ;;  %v8198_v25 = vld [vmem:[#allocation108_spill] sm:$0xff] }
 0x70d   :  { %4593 = vrcp.f32 %v3513_v47  ;;  %3700 = vmatpush1.msra.mxu0 %v6691_v37  ;;  %3771 = vmatpush1.msra.mxu1 %v6694_v20  ;;  %v8199_v47 = vld [vmem:[#allocation54_spill] sm:$0xff] }
 0x70e   :  { %4376 = vst [vmem:[%s7235_s5 + $0x14] sm:$0x3] %v3539_v51  ;;  %3701 = vmatprep.subr.mxu0 %v6697_v23  ;;  %3772 = vmatprep.subr.mxu1 %v6700_v2 }
 0x70f   :  { %3702 = vmatpush1.msra.mxu0 %v6703_v62  ;;  %3773 = vmatpush1.msra.mxu1 %v6706_v45 }
 0x710   :  { %3703 = vmatprep.subr.mxu0 %v8184_v36  ;;  %3774 = vmatprep.subr.mxu1 %v8185_v42 }
 0x711   :  { %3704 = vmatpush1.msra.mxu0 %v8186_v5  ;;  %3775 = vmatpush1.msra.mxu1 %v8187_v38 }
 0x712   :  { %3705 = vmatprep.subr.mxu0 %v8188_v15  ;;  %3776 = vmatprep.subr.mxu1 %v8189_v35 }
 0x713   :  { %3706 = vmatpush1.msra.mxu0 %v8190_v33  ;;  %3777 = vmatpush1.msra.mxu1 %v8191_v30  ;;  %v8201_v30 = vld [vmem:[#allocation55_spill] sm:$0xff]  ;;  %v3520_v33 = vadd.f32 1.0, %v4588_v22  ;;  %v8208_v22 = vld [vmem:[#allocation61_spill] sm:$0xff] }
 0x714   :  { %3707 = vmatprep.subr.mxu0 %v8192_v46  ;;  %3778 = vmatprep.subr.mxu1 %v8193_v7  ;;  %v3524_v7 = vrot.slane %v6788_v9, 2 }
 0x715   :  { %3708 = vmatpush1.msra.mxu0 %v8194_v27  ;;  %3779 = vmatpush1.msra.mxu1 %v8195_v31  ;;  %v8202_v27 = vld [vmem:[#allocation110_spill] sm:$0xff]  ;;  %v8203_v31 = vld [vmem:[#allocation111_spill] sm:$0xff]  ;;  %4595 = vrcp.f32 %v3520_v33 }
 0x716   :  { %3709 = vmatprep.subr.mxu0 %v8196_v16  ;;  %3780 = vmatprep.subr.mxu1 %v8197_v44  ;;  %v8204_v44 = vld [vmem:[#allocation112_spill] sm:$0xff]  ;;  %v8217_v33 = vld [vmem:[#allocation70_spill] sm:$0xff] }
 0x717   :  { %3710 = vmatpush1.msra.mxu0 %v8198_v25  ;;  %3781 = vmatpush1.msra.mxu1 %v8199_v47 }
 0x718   :  { %v4590_v51 = vpop.eup %4589  ;;  %3711 = vmatprep.subr.mxu0 %v8200_v13  ;;  %3782 = vmatprep.subr.mxu1 %v8201_v30  ;;  %v8205_v30 = vld [vmem:[#allocation114_spill] sm:$0xff] }
 0x719   :  { %v4592_v46 = vpop.eup %4591  ;;  %3712 = vmatpush1.msra.mxu0 %v8202_v27  ;;  %3783 = vmatpush1.msra.mxu1 %v8203_v31  ;;  %v8206_v27 = vld [vmem:[#allocation115_spill] sm:$0xff] }
 0x71a   :  { %v4594_v16 = vpop.eup %4593  ;;  %3713 = vmatprep.subr.mxu0 %v8204_v44  ;;  %3784 = vmatprep.subr.mxu1 %v6773_v58  ;;  %v3527_v25 = vmul.f32 %v4592_v46, %v4590_v51  ;;  %v8207_v31 = vld [vmem:[#allocation19_spill] sm:$0xff]  ;;  %v8209_v58 = vld [vmem:[#allocation62_spill] sm:$0xff] }
 0x71b   :  { %v3526_v47 = vmul.f32 %v4594_v16, %v3524_v7  ;;  %3714 = vmatpush1.msra.mxu0 %v6776_v12  ;;  %3785 = vmatpush1.msra.mxu1 %v6779_v10  ;;  %v8210_v46 = vld [vmem:[#allocation63_spill] sm:$0xff]  ;;  %v8211_v7 = vld [vmem:[#allocation64_spill] sm:$0xff]  ;;  %v8212_v16 = vld [vmem:[#allocation65_spill] sm:$0xff] }
 0x71c   :  { %3715 = vmatprep.subr.mxu0 %v6782_v17  ;;  %3786 = vmatprep.subr.mxu1 %v8205_v30  ;;  %v8213_v51 = vld [vmem:[#allocation66_spill] sm:$0xff] }
 0x71d   :  { %v7020_v9 = vadd.f32 %v3527_v25, %v3526_v47  ;;  %3716 = vmatpush1.msra.mxu0 %v8206_v27  ;;  %3787 = vmatpush1.msra.mxu1 %v8207_v31  ;;  %v8214_v25 = vld [vmem:[#allocation67_spill] sm:$0xff]  ;;  %v8215_v47 = vld [vmem:[#allocation68_spill] sm:$0xff]  ;;  %v8216_v31 = vld [vmem:[#allocation69_spill] sm:$0xff] }
 0x71e   :  { %3717 = vmatprep.subr.mxu0 %v8208_v22  ;;  %3788 = vmatprep.subr.mxu1 %v8209_v58  ;;  %v8218_v22 = vld [vmem:[#allocation72_spill] sm:$0xff]  ;;  %v8219_v58 = vld [vmem:[#allocation74_spill] sm:$0xff]  ;;  %v8222_v27 = vld [vmem:[#allocation79_spill] sm:$0xff] }
 0x71f   :  { %3718 = vmatpush1.msra.mxu0 %v8210_v46  ;;  %3789 = vmatpush1.msra.mxu1 %v8211_v7  ;;  %4597 = vtanh.f32 %v7020_v9  ;;  %v8220_v46 = vld [vmem:[#allocation76_spill] sm:$0xff]  ;;  %v8221_v7 = vld [vmem:[#allocation78_spill] sm:$0xff] }
 0x720   :  { %3719 = vmatprep.subr.mxu0 %v8212_v16  ;;  %3790 = vmatprep.subr.mxu1 %v8213_v51  ;;  %v8223_v16 = vld [vmem:[#allocation82_spill] sm:$0xff]  ;;  %v8224_v51 = vld [vmem:[#allocation83_spill] sm:$0xff] }
 0x721   :  { %3720 = vmatpush1.msra.mxu0 %v8214_v25  ;;  %3791 = vmatpush1.msra.mxu1 %v8215_v47  ;;  %v8225_v25 = vld [vmem:[#allocation84_spill] sm:$0xff]  ;;  %v8226_v47 = vld [vmem:[#allocation85_spill] sm:$0xff] }
 0x722   :  { %3721 = vmatprep.subr.mxu0 %v8216_v31  ;;  %3792 = vmatprep.subr.mxu1 %v8217_v33  ;;  %v8227_v31 = vld [vmem:[#allocation86_spill] sm:$0xff]  ;;  %v8228_v33 = vld [vmem:[#allocation87_spill] sm:$0xff] }
 0x723   :  { %3722 = vmatpush1.msra.mxu0 %v8218_v22  ;;  %3793 = vmatpush1.msra.mxu1 %v8219_v58  ;;  %v8229_v22 = vld [vmem:[#allocation88_spill] sm:$0xff]  ;;  %v8230_v58 = vld [vmem:[#allocation89_spill] sm:$0xff] }
 0x724   :  { %3723 = vmatprep.subr.mxu0 %v8220_v46  ;;  %3794 = vmatprep.subr.mxu1 %v8221_v7  ;;  %v8231_v46 = vld [vmem:[#allocation90_spill] sm:$0xff]  ;;  %v8232_v7 = vld [vmem:[#allocation91_spill] sm:$0xff] }
 0x725   :  { %3724 = vmatpush1.msra.mxu0 %v8222_v27  ;;  %3795 = vmatpush1.msra.mxu1 %v8223_v16  ;;  %v8233_v27 = vld [vmem:[#allocation92_spill] sm:$0xff]  ;;  %v4596_v16 = vpop.eup %4595 }
 0x726   :  { %3725 = vmatprep.subr.mxu0 %v8224_v51  ;;  %3796 = vmatprep.subr.mxu1 %v8225_v25  ;;  %v8234_v51 = vld [vmem:[#allocation93_spill] sm:$0xff] }
 0x727   :  { %3726 = vmatpush1.msra.mxu0 %v8226_v47  ;;  %3797 = vmatpush1.msra.mxu1 %v8227_v31 }
 0x728   :  { %3727 = vmatprep.subr.mxu0 %v8228_v33  ;;  %3798 = vmatprep.subr.mxu1 %v8229_v22 }
 0x729   :  { %3728 = vmatpush1.msra.mxu0 %v8230_v58  ;;  %3799 = vmatpush1.msra.mxu1 %v8231_v46 }
 0x72a   :  { %3729 = vmatprep.subr.mxu0 %v8232_v7  ;;  %3800 = vmatprep.subr.mxu1 %v8233_v27 }
 0x72b   :  { %3730 = vmatpush1.msra.mxu0 %v8234_v51  ;;  %3763 = vmatprep.mubr.f32.mxu0 %v7675_v32 }
 0x72c   :  { %v4598_v47 = vpop.eup %4597  ;;  %3801 = vmatpush1.msra.mxu1 %v6879_v21  ;;  %3834 = vmatprep.mubr.f32.mxu1 %v7675_v32 }
 0x72d   :  { %v3530_v33 = vmul.f32 %v4598_v47, %v4596_v16  ;;  %3951 = vmatprep.subr.mxu0 %v6492_v54  ;;  %4022 = vmatprep.subr.mxu1 %v6495_v26  ;;  %v8235_v54 = vld [vmem:[#allocation56_spill] sm:$0xff]  ;;  %v8236_v26 = vld [vmem:[#allocation57_spill] sm:$0xff]  ;;  %v8262_v16 = vld [vmem:[#allocation34_spill] sm:$0xff] }
 0x72e   :  { %v8263_v47 = vld [vmem:[#allocation35_spill] sm:$0xff] }
 0x72f   :  { %v3543_v46 = vcombine.high %v3530_v33, %v3530_v33  ;;  %v3697_v58 = vrot.slane %v3530_v33, 4  ;;  %v8264_v33 = vld [vmem:[#allocation36_spill] sm:$0xff] }
 0x731   :  { %4395 = vst.sshfl [vmem:[%s7235_s5 + $0xa] sm:$0x3 pattern:$0x76325410] %v3543_v46  ;;  %3764 = vmatmul.mubr.f32.vlgmr.msra.gmra.mxu0 %v3697_v58  ;;  %3835 = vmatmul.mubr.f32.vlgmr.msra.gmra.mxu1 %v3697_v58  ;;  %v8260_v58 = vld [vmem:[#allocation32_spill] sm:$0xff]  ;;  %v8261_v46 = vld [vmem:[#allocation33_spill] sm:$0xff] }
 0x732   :  { %3952 = vmatpush1.msra.mxu0 %v6498_v55  ;;  %4023 = vmatpush1.msra.mxu1 %v6501_v48  ;;  %v8237_v55 = vld [vmem:[#allocation58_spill] sm:$0xff]  ;;  %v8238_v48 = vld [vmem:[#allocation59_spill] sm:$0xff] }
 0x733   :  { %3953 = vmatprep.subr.mxu0 %v6504_v6  ;;  %4024 = vmatprep.subr.mxu1 %v6507_v8  ;;  %v8239_v6 = vld [vmem:[#allocation60_spill] sm:$0xff]  ;;  %v8240_v8 = vld [vmem:[#allocation71_spill] sm:$0xff] }
 0x734   :  { %3954 = vmatpush1.msra.mxu0 %v6510_v19  ;;  %4025 = vmatpush1.msra.mxu1 %v6513_v39  ;;  %v8241_v19 = vld [vmem:[#allocation73_spill] sm:$0xff]  ;;  %v8242_v39 = vld [vmem:[#allocation75_spill] sm:$0xff] }
 0x735   :  { %3955 = vmatprep.subr.mxu0 %v6516_v14  ;;  %4026 = vmatprep.subr.mxu1 %v6519_v40  ;;  %v8243_v14 = vld [vmem:[#allocation77_spill] sm:$0xff]  ;;  %v8244_v40 = vld [vmem:[#allocation98_spill] sm:$0xff] }
 0x736   :  { %3956 = vmatpush1.msra.mxu0 %v6522_v50  ;;  %4027 = vmatpush1.msra.mxu1 %v6525_v43  ;;  %v8245_v50 = vld [vmem:[#allocation99_spill] sm:$0xff]  ;;  %v8246_v43 = vld [vmem:[#allocation101_spill] sm:$0xff] }
 0x737   :  { %3957 = vmatprep.subr.mxu0 %v6528_v28  ;;  %4028 = vmatprep.subr.mxu1 %v6531_v0  ;;  %v8247_v28 = vld [vmem:[#allocation107_spill] sm:$0xff]  ;;  %v8248_v0 = vld [vmem:[#allocation21_spill] sm:$0xff] }
 0x738   :  { %3958 = vmatpush1.msra.mxu0 %v6534_v56  ;;  %4029 = vmatpush1.msra.mxu1 %v6537_v34  ;;  %v8249_v56 = vld [vmem:[#allocation20_spill] sm:$0xff]  ;;  %v8250_v34 = vld [vmem:[#allocation22_spill] sm:$0xff] }
 0x739   :  { %3959 = vmatprep.subr.mxu0 %v6540_v59  ;;  %4030 = vmatprep.subr.mxu1 %v6543_v41  ;;  %v8251_v59 = vld [vmem:[#allocation23_spill] sm:$0xff]  ;;  %v8252_v41 = vld [vmem:[#allocation24_spill] sm:$0xff] }
 0x73a   :  { %3960 = vmatpush1.msra.mxu0 %v6546_v11  ;;  %4031 = vmatpush1.msra.mxu1 %v6549_v18  ;;  %v8253_v11 = vld [vmem:[#allocation25_spill] sm:$0xff]  ;;  %v8254_v18 = vld [vmem:[#allocation26_spill] sm:$0xff] }
 0x73b   :  { %3961 = vmatprep.subr.mxu0 %v6552_v49  ;;  %4032 = vmatprep.subr.mxu1 %v6555_v52  ;;  %v8255_v49 = vld [vmem:[#allocation27_spill] sm:$0xff]  ;;  %v8256_v52 = vld [vmem:[#allocation28_spill] sm:$0xff] }
 0x73c   :  { %3962 = vmatpush1.msra.mxu0 %v6558_v29  ;;  %4033 = vmatpush1.msra.mxu1 %v6561_v61  ;;  %v8257_v29 = vld [vmem:[#allocation29_spill] sm:$0xff]  ;;  %v8258_v61 = vld [vmem:[#allocation30_spill] sm:$0xff] }
 0x73d   :  { %3963 = vmatprep.subr.mxu0 %v6564_v24  ;;  %4034 = vmatprep.subr.mxu1 %v8235_v54  ;;  %v8259_v24 = vld [vmem:[#allocation31_spill] sm:$0xff]  ;;  %v8265_v54 = vld [vmem:[#allocation37_spill] sm:$0xff] }
 0x73e   :  { %3964 = vmatpush1.msra.mxu0 %v8236_v26  ;;  %4035 = vmatpush1.msra.mxu1 %v8237_v55  ;;  %v8266_v26 = vld [vmem:[#allocation94_spill] sm:$0xff] }
 0x73f   :  { %3965 = vmatprep.subr.mxu0 %v8238_v48  ;;  %4036 = vmatprep.subr.mxu1 %v8239_v6  ;;  %v8267_v55 = vld [vmem:[#allocation38_spill] sm:$0xff]  ;;  %v8268_v48 = vld [vmem:[#allocation95_spill] sm:$0xff] }
 0x740   :  { %3966 = vmatpush1.msra.mxu0 %v8240_v8  ;;  %4037 = vmatpush1.msra.mxu1 %v8241_v19  ;;  %v8269_v6 = vld [vmem:[#allocation39_spill] sm:$0xff]  ;;  %v8270_v8 = vld [vmem:[#allocation96_spill] sm:$0xff]  ;;  %v8271_v19 = vld [vmem:[#allocation97_spill] sm:$0xff] }
 0x741   :  { %3967 = vmatprep.subr.mxu0 %v8242_v39  ;;  %4038 = vmatprep.subr.mxu1 %v8243_v14  ;;  %v8272_v39 = vld [vmem:[#allocation100_spill] sm:$0xff]  ;;  %v8273_v14 = vld [vmem:[#allocation102_spill] sm:$0xff] }
 0x742   :  { %3968 = vmatpush1.msra.mxu0 %v8244_v40  ;;  %4039 = vmatpush1.msra.mxu1 %v8245_v50  ;;  %v8274_v40 = vld [vmem:[#allocation103_spill] sm:$0xff]  ;;  %v8275_v50 = vld [vmem:[#allocation104_spill] sm:$0xff] }
 0x743   :  { %3969 = vmatprep.subr.mxu0 %v8246_v43  ;;  %4040 = vmatprep.subr.mxu1 %v8247_v28 }
 0x744   :  { %3970 = vmatpush1.msra.mxu0 %v8248_v0  ;;  %4041 = vmatpush1.msra.mxu1 %v8249_v56 }
 0x745   :  { %3971 = vmatprep.subr.mxu0 %v8250_v34  ;;  %4042 = vmatprep.subr.mxu1 %v8251_v59 }
 0x746   :  { %3972 = vmatpush1.msra.mxu0 %v8252_v41  ;;  %4043 = vmatpush1.msra.mxu1 %v8253_v11 }
 0x747   :  { %3973 = vmatprep.subr.mxu0 %v8254_v18  ;;  %4044 = vmatprep.subr.mxu1 %v8255_v49 }
 0x748   :  { %3974 = vmatpush1.msra.mxu0 %v8256_v52  ;;  %4045 = vmatpush1.msra.mxu1 %v8257_v29  ;;  %v8276_v29 = vld [vmem:[#allocation13_spill] sm:$0xff] }
 0x749   :  { %3975 = vmatprep.subr.mxu0 %v8258_v61  ;;  %4046 = vmatprep.subr.mxu1 %v8259_v24 }
 0x74a   :  { %3976 = vmatpush1.msra.mxu0 %v8260_v58  ;;  %4047 = vmatpush1.msra.mxu1 %v8261_v46 }
 0x74b   :  { %3977 = vmatprep.subr.mxu0 %v8262_v16  ;;  %4048 = vmatprep.subr.mxu1 %v8263_v47  ;;  %v8277_v16 = vld [vmem:[#allocation12_spill] sm:$0xff] }
 0x74c   :  { %3978 = vmatpush1.msra.mxu0 %v8264_v33  ;;  %4049 = vmatpush1.msra.mxu1 %v8265_v54 }
 0x74d   :  { %3979 = vmatprep.subr.mxu0 %v8266_v26  ;;  %4050 = vmatprep.subr.mxu1 %v8267_v55 }
 0x74e   :  { %3980 = vmatpush1.msra.mxu0 %v8268_v48  ;;  %4051 = vmatpush1.msra.mxu1 %v8269_v6 }
 0x74f   :  { %3981 = vmatprep.subr.mxu0 %v8270_v8  ;;  %4052 = vmatprep.subr.mxu1 %v8271_v19  ;;  %v3893_v8 = vrot.slane %v6977_v57, 6 }
 0x750   :  { %3982 = vmatpush1.msra.mxu0 %v8272_v39  ;;  %4015 = vmatprep.mubr.f32.mxu0 %v7675_v32 }
 0x751   :  { %4053 = vmatpush1.msra.mxu1 %v8273_v14  ;;  %4086 = vmatprep.mubr.f32.mxu1 %v7675_v32 }
 0x752   :  { %4095 = vmatprep.subr.mxu0 %v8274_v40  ;;  %4166 = vmatprep.subr.mxu1 %v8275_v50 }
 0x7cc   :  { %v3621_v43 = vpop.f32.mrf.mxu0  ;;  %v3692_v34 = vpop.f32.mrf.mxu1 }
 0x7cd   :  { %v3845_v28 = vrot.slane %v3621_v43, 4  ;;  %v3847_v24 = vrot.slane %v3692_v34, 4 }
 0x7ce   :  { %v3623_v0 = vpop.f32.mrf.mxu0  ;;  %v3694_v49 = vpop.f32.mrf.mxu1 }
 0x7cf   :  { %v3853_v56 = vadd.f32 %v3845_v28, %v8179_v53  ;;  %v3846_v59 = vrot.slane %v3623_v0, 4  ;;  %v3848_v52 = vrot.slane %v3694_v49, 4  ;;  %v3855_v47 = vadd.f32 %v3847_v24, %v8277_v16 }
 0x7d1   :  { %v4378_v41 = vmul.f32 -1.442695, %v3853_v56  ;;  %v3854_v11 = vadd.f32 %v3846_v59, %v8180_v4  ;;  %v3856_v61 = vadd.f32 %v3848_v52, %v8276_v29 }
 0x7d3   :  { %4599 = vpow2.f32 %v4378_v41  ;;  %v4379_v18 = vmul.f32 -1.442695, %v3854_v11  ;;  %v4380_v58 = vmul.f32 -1.442695, %v3856_v61 }
 0x7d5   :  { %4601 = vpow2.f32 %v4379_v18 }
 0x7d6   :  { %4603 = vpow2.f32 %v4380_v58 }
 0x7e0   :  { %v4600_v46 = vpop.eup %4599 }
 0x7e1   :  { %v3876_v33 = vadd.f32 1.0, %v4600_v46 }
 0x7e2   :  { %v4602_v54 = vpop.eup %4601 }
 0x7e3   :  { %4605 = vrcp.f32 %v3876_v33  ;;  %v3882_v26 = vadd.f32 1.0, %v4602_v54  ;;  %v4604_v55 = vpop.eup %4603 }
 0x7e4   :  { %4607 = vtanh.f32 %v3855_v47  ;;  %v3889_v14 = vadd.f32 1.0, %v4604_v55 }
 0x7e5   :  { %4609 = vrcp.f32 %v3882_v26 }
 0x7e6   :  { %4611 = vrcp.f32 %v3889_v14  ;;  %v3920_v14 = vrot.slane %v7020_v9, 2  ;;  %v8292_v9 = vld [vmem:[#allocation115_spill] sm:$0xff] }
 0x7f0   :  { %v4606_v48 = vpop.eup %4605 }
 0x7f1   :  { %v4608_v6 = vpop.eup %4607  ;;  %v3765_v19 = vpop.f32.mrf.mxu0 }
 0x7f2   :  { %v4610_v39 = vpop.eup %4609  ;;  %v3861_v40 = vrot.slane %v3765_v19, 6  ;;  %v3896_v50 = vmul.f32 %v4608_v6, %v4606_v48  ;;  %v3836_v56 = vpop.f32.mrf.mxu1  ;;  %v8288_v19 = vld [vmem:[#allocation55_spill] sm:$0xff] }
 0x7f3   :  { %v3895_v43 = vmul.f32 %v4610_v39, %v3893_v8  ;;  %v3767_v28 = vpop.f32.mrf.mxu0  ;;  %v3863_v61 = vrot.slane %v3836_v56, 6  ;;  %v4612_v24 = vpop.eup %4611 }
 0x7f4   :  { %v3869_v0 = vadd.f32 %v3861_v40, %v8183_v60  ;;  %v3862_v34 = vrot.slane %v3767_v28, 6  ;;  %v3838_v18 = vpop.f32.mrf.mxu1  ;;  %v8289_v40 = vld [vmem:[#allocation110_spill] sm:$0xff] }
 0x7f5   :  { %v7132_v59 = vadd.f32 %v3896_v50, %v3895_v43  ;;  %v3864_v49 = vrot.slane %v3838_v18, 6  ;;  %v3871_v33 = vadd.f32 %v3863_v61, %v8099_v1  ;;  %v8290_v50 = vld [vmem:[#allocation111_spill] sm:$0xff]  ;;  %v8301_v18 = vld [vmem:[#allocation68_spill] sm:$0xff] }
 0x7f6   :  { %v4381_v41 = vmul.f32 -1.442695, %v3869_v0  ;;  %v3870_v11 = vadd.f32 %v3862_v34, %v8097_v3  ;;  %v8291_v0 = vld [vmem:[#allocation113_spill] sm:$0xff]  ;;  %v8304_v61 = vld [vmem:[#allocation72_spill] sm:$0xff] }
 0x7f7   :  { %4613 = vtanh.f32 %v7132_v59  ;;  %v3872_v52 = vadd.f32 %v3864_v49, %v8098_v63  ;;  %v8302_v49 = vld [vmem:[#allocation69_spill] sm:$0xff] }
 0x7f8   :  { %4615 = vpow2.f32 %v4381_v41  ;;  %v4382_v57 = vmul.f32 -1.442695, %v3870_v11  ;;  %v8293_v41 = vld [vmem:[#allocation19_spill] sm:$0xff]  ;;  %v8295_v11 = vld [vmem:[#allocation62_spill] sm:$0xff] }
 0x7f9   :  { %v4383_v58 = vmul.f32 -1.442695, %v3872_v52  ;;  %v8303_v52 = vld [vmem:[#allocation70_spill] sm:$0xff] }
 0x7fa   :  { %4617 = vpow2.f32 %v4382_v57  ;;  %v8296_v57 = vld [vmem:[#allocation63_spill] sm:$0xff] }
 0x7fb   :  { %4619 = vpow2.f32 %v4383_v58  ;;  %v8306_v58 = vld [vmem:[#allocation76_spill] sm:$0xff] }
 0x804   :  { %v4614_v46 = vpop.eup %4613 }
 0x805   :  { %v4616_v47 = vpop.eup %4615  ;;  %v3899_v54 = vmul.f32 %v4614_v46, %v4612_v24  ;;  %v8305_v24 = vld [vmem:[#allocation74_spill] sm:$0xff] }
 0x806   :  { %v3903_v26 = vadd.f32 1.0, %v4616_v47  ;;  %v8307_v46 = vld [vmem:[#allocation78_spill] sm:$0xff]  ;;  %v8308_v47 = vld [vmem:[#allocation79_spill] sm:$0xff] }
 0x807   :  { %v4618_v55 = vpop.eup %4617  ;;  %v3928_v48 = vcombine.high %v3899_v54, %v3899_v54  ;;  %v3949_v6 = vrot.slane %v3899_v54, 4  ;;  %v8310_v54 = vld [vmem:[#allocation83_spill] sm:$0xff] }
 0x808   :  { %4621 = vrcp.f32 %v3903_v26  ;;  %v3909_v8 = vadd.f32 1.0, %v4618_v55  ;;  %v8311_v26 = vld [vmem:[#allocation85_spill] sm:$0xff]  ;;  %v8312_v55 = vld [vmem:[#allocation87_spill] sm:$0xff] }
 0x809   :  { %4623 = vtanh.f32 %v3871_v33  ;;  %4396 = vst.sshfl [vmem:[%s7235_s5 + $0x18] sm:$0x3 pattern:$0x76325410] %v3928_v48  ;;  %4016 = vmatmul.mubr.f32.vlgmr.msra.gmra.mxu0 %v3949_v6  ;;  %4087 = vmatmul.mubr.f32.vlgmr.msra.gmra.mxu1 %v3949_v6  ;;  %v8309_v33 = vld [vmem:[#allocation82_spill] sm:$0xff]  ;;  %v8313_v48 = vld [vmem:[#allocation89_spill] sm:$0xff] }
 0x80a   :  { %4625 = vrcp.f32 %v3909_v8  ;;  %4096 = vmatpush1.msra.mxu0 %v6691_v37  ;;  %4167 = vmatpush1.msra.mxu1 %v6694_v20  ;;  %v8278_v37 = vld [vmem:[#allocation46_spill] sm:$0xff]  ;;  %v8279_v20 = vld [vmem:[#allocation47_spill] sm:$0xff] }
 0x80b   :  { %4097 = vmatprep.subr.mxu0 %v6697_v23  ;;  %4168 = vmatprep.subr.mxu1 %v6700_v2  ;;  %v8280_v23 = vld [vmem:[#allocation48_spill] sm:$0xff]  ;;  %v8281_v2 = vld [vmem:[#allocation49_spill] sm:$0xff]  ;;  %v8314_v6 = vld [vmem:[#allocation90_spill] sm:$0xff] }
 0x80c   :  { %4098 = vmatpush1.msra.mxu0 %v6703_v62  ;;  %4169 = vmatpush1.msra.mxu1 %v6706_v45  ;;  %v8282_v62 = vld [vmem:[#allocation50_spill] sm:$0xff]  ;;  %v8283_v45 = vld [vmem:[#allocation51_spill] sm:$0xff] }
 0x80d   :  { %4099 = vmatprep.subr.mxu0 %v8184_v36  ;;  %4170 = vmatprep.subr.mxu1 %v8185_v42  ;;  %v8284_v36 = vld [vmem:[#allocation52_spill] sm:$0xff]  ;;  %v8285_v42 = vld [vmem:[#allocation53_spill] sm:$0xff] }
 0x80e   :  { %4100 = vmatpush1.msra.mxu0 %v8186_v5  ;;  %4171 = vmatpush1.msra.mxu1 %v8187_v38  ;;  %v4620_v5 = vpop.eup %4619  ;;  %v8286_v38 = vld [vmem:[#allocation108_spill] sm:$0xff] }
 0x80f   :  { %4101 = vmatprep.subr.mxu0 %v8188_v15  ;;  %4172 = vmatprep.subr.mxu1 %v8189_v35  ;;  %v8287_v15 = vld [vmem:[#allocation54_spill] sm:$0xff]  ;;  %v3916_v28 = vadd.f32 1.0, %v4620_v5 }
 0x810   :  { %4102 = vmatpush1.msra.mxu0 %v8278_v37  ;;  %4173 = vmatpush1.msra.mxu1 %v8279_v20 }
 0x811   :  { %4103 = vmatprep.subr.mxu0 %v8280_v23  ;;  %4174 = vmatprep.subr.mxu1 %v8281_v2  ;;  %4627 = vrcp.f32 %v3916_v28  ;;  %v4277_v28 = vrot.slane %v7132_v59, 6 }
 0x812   :  { %4104 = vmatpush1.msra.mxu0 %v8282_v62  ;;  %4175 = vmatpush1.msra.mxu1 %v8283_v45 }
 0x813   :  { %4105 = vmatprep.subr.mxu0 %v8284_v36  ;;  %4176 = vmatprep.subr.mxu1 %v8285_v42 }
 0x814   :  { %4106 = vmatpush1.msra.mxu0 %v8286_v38  ;;  %4177 = vmatpush1.msra.mxu1 %v8287_v15 }
 0x815   :  { %v4622_v35 = vpop.eup %4621  ;;  %4107 = vmatprep.subr.mxu0 %v8200_v13  ;;  %4178 = vmatprep.subr.mxu1 %v8288_v19 }
 0x816   :  { %v4624_v39 = vpop.eup %4623  ;;  %4108 = vmatpush1.msra.mxu0 %v8289_v40  ;;  %4179 = vmatpush1.msra.mxu1 %v8290_v50 }
 0x817   :  { %v4626_v43 = vpop.eup %4625  ;;  %4109 = vmatprep.subr.mxu0 %v8204_v44  ;;  %4180 = vmatprep.subr.mxu1 %v8291_v0  ;;  %v3923_v56 = vmul.f32 %v4624_v39, %v4622_v35  ;;  %v8294_v44 = vld [vmem:[#allocation61_spill] sm:$0xff] }
 0x818   :  { %v3922_v34 = vmul.f32 %v4626_v43, %v3920_v14  ;;  %4110 = vmatpush1.msra.mxu0 %v6776_v12  ;;  %4181 = vmatpush1.msra.mxu1 %v6779_v10  ;;  %v8297_v12 = vld [vmem:[#allocation64_spill] sm:$0xff]  ;;  %v8298_v10 = vld [vmem:[#allocation65_spill] sm:$0xff] }
 0x819   :  { %4111 = vmatprep.subr.mxu0 %v6782_v17  ;;  %4182 = vmatprep.subr.mxu1 %v8205_v30  ;;  %v8299_v17 = vld [vmem:[#allocation66_spill] sm:$0xff]  ;;  %v8300_v30 = vld [vmem:[#allocation67_spill] sm:$0xff] }
 0x81a   :  { %v7174_v13 = vadd.f32 %v3923_v56, %v3922_v34  ;;  %4112 = vmatpush1.msra.mxu0 %v8292_v9  ;;  %4183 = vmatpush1.msra.mxu1 %v8293_v41 }
 0x81b   :  { %4113 = vmatprep.subr.mxu0 %v8294_v44  ;;  %4184 = vmatprep.subr.mxu1 %v8295_v11 }
 0x81c   :  { %4114 = vmatpush1.msra.mxu0 %v8296_v57  ;;  %4185 = vmatpush1.msra.mxu1 %v8297_v12  ;;  %4629 = vtanh.f32 %v7174_v13 }
 0x81d   :  { %4115 = vmatprep.subr.mxu0 %v8298_v10  ;;  %4186 = vmatprep.subr.mxu1 %v8299_v17 }
 0x81e   :  { %4116 = vmatpush1.msra.mxu0 %v8300_v30  ;;  %4187 = vmatpush1.msra.mxu1 %v8301_v18  ;;  %v4628_v8 = vpop.eup %4627 }
 0x81f   :  { %4117 = vmatprep.subr.mxu0 %v8302_v49  ;;  %4188 = vmatprep.subr.mxu1 %v8303_v52 }
 0x820   :  { %4118 = vmatpush1.msra.mxu0 %v8304_v61  ;;  %4189 = vmatpush1.msra.mxu1 %v8305_v24 }
 0x821   :  { %4119 = vmatprep.subr.mxu0 %v8306_v58  ;;  %4190 = vmatprep.subr.mxu1 %v8307_v46 }
 0x822   :  { %4120 = vmatpush1.msra.mxu0 %v8308_v47  ;;  %4191 = vmatpush1.msra.mxu1 %v8309_v33 }
 0x823   :  { %4121 = vmatprep.subr.mxu0 %v8310_v54  ;;  %4192 = vmatprep.subr.mxu1 %v8225_v25 }
 0x824   :  { %4122 = vmatpush1.msra.mxu0 %v8311_v26  ;;  %4193 = vmatpush1.msra.mxu1 %v8227_v31  ;;  %v4304_v26 = vrot.slane %v7174_v13, 2 }
 0x825   :  { %4123 = vmatprep.subr.mxu0 %v8312_v55  ;;  %4194 = vmatprep.subr.mxu1 %v8229_v22  ;;  %v8315_v22 = vld [vmem:[#allocation18_spill] sm:$0xff] }
 0x826   :  { %4124 = vmatpush1.msra.mxu0 %v8313_v48  ;;  %4195 = vmatpush1.msra.mxu1 %v8314_v6 }
 0x827   :  { %4125 = vmatprep.subr.mxu0 %v8232_v7  ;;  %4196 = vmatprep.subr.mxu1 %v8233_v27 }
 0x828   :  { %4126 = vmatpush1.msra.mxu0 %v8234_v51  ;;  %4159 = vmatprep.mubr.f32.mxu0 %v7675_v32 }
 0x829   :  { %v4630_v25 = vpop.eup %4629  ;;  %4197 = vmatpush1.msra.mxu1 %v6879_v21  ;;  %4230 = vmatprep.mubr.f32.mxu1 %v7675_v32 }
 0x82a   :  { %v3926_v31 = vmul.f32 %v4630_v25, %v4628_v8 }
 0x82c   :  { %v3945_v37 = vrot.slane %v3926_v31, %v8315_v22  ;;  %v4093_v20 = vrot.slane %v3926_v31, 2 }
 0x82e   :  { %v3946_v23 = vcombine.high %v3945_v37, %v3945_v37  ;;  %4160 = vmatmul.mubr.f32.vlgmr.msra.gmra.mxu0 %v4093_v20  ;;  %4231 = vmatmul.mubr.f32.vlgmr.msra.gmra.mxu1 %v4093_v20 }
 0x830   :  { %4385 = vst [vmem:[%s7235_s5 + $0x6] sm:$0x3] %v3946_v23 }
 0x8c9   :  { %v4017_v27 = vpop.f32.mrf.mxu0  ;;  %v4088_v51 = vpop.f32.mrf.mxu1 }
 0x8ca   :  { %v4241_v7 = vrot.slane %v4017_v27, 2  ;;  %v4243_v15 = vrot.slane %v4088_v51, 2 }
 0x8cb   :  { %v4019_v2 = vpop.f32.mrf.mxu0  ;;  %v4090_v36 = vpop.f32.mrf.mxu1 }
 0x8cc   :  { %v4249_v62 = vadd.f32 %v4241_v7, %v8179_v53  ;;  %v4242_v21 = vrot.slane %v4019_v2, 2  ;;  %v4244_v5 = vrot.slane %v4090_v36, 2  ;;  %v4251_v39 = vadd.f32 %v4243_v15, %v8277_v16 }
 0x8ce   :  { %v4386_v45 = vmul.f32 -1.442695, %v4249_v62  ;;  %v4250_v32 = vadd.f32 %v4242_v21, %v8180_v4  ;;  %v4252_v38 = vadd.f32 %v4244_v5, %v8276_v29 }
 0x8d0   :  { %4631 = vpow2.f32 %v4386_v45  ;;  %v4387_v42 = vmul.f32 -1.442695, %v4250_v32  ;;  %v4388_v35 = vmul.f32 -1.442695, %v4252_v38 }
 0x8d2   :  { %4633 = vpow2.f32 %v4387_v42 }
 0x8d3   :  { %4635 = vpow2.f32 %v4388_v35 }
 0x8dd   :  { %v4632_v19 = vpop.eup %4631 }
 0x8de   :  { %v4260_v14 = vadd.f32 1.0, %v4632_v19 }
 0x8df   :  { %v4634_v40 = vpop.eup %4633 }
 0x8e0   :  { %4637 = vrcp.f32 %v4260_v14  ;;  %v4266_v53 = vadd.f32 1.0, %v4634_v40  ;;  %v4636_v4 = vpop.eup %4635 }
 0x8e1   :  { %4639 = vtanh.f32 %v4251_v39  ;;  %v4273_v0 = vadd.f32 1.0, %v4636_v4 }
 0x8e2   :  { %4641 = vrcp.f32 %v4266_v53 }
 0x8e3   :  { %4643 = vrcp.f32 %v4273_v0 }
 0x8ed   :  { %v4638_v50 = vpop.eup %4637 }
 0x8ee   :  { %v4640_v43 = vpop.eup %4639  ;;  %v4161_v56 = vpop.f32.mrf.mxu0 }
 0x8ef   :  { %v4642_v29 = vpop.eup %4641  ;;  %v4253_v34 = vadd.f32 %v4161_v56, %v8183_v60  ;;  %v4280_v9 = vmul.f32 %v4640_v43, %v4638_v50  ;;  %v4232_v12 = vpop.f32.mrf.mxu1 }
 0x8f0   :  { %v4279_v41 = vmul.f32 %v4642_v29, %v4277_v28  ;;  %v4163_v16 = vpop.f32.mrf.mxu0  ;;  %v4644_v18 = vpop.eup %4643  ;;  %v4255_v60 = vadd.f32 %v4232_v12, %v8099_v1 }
 0x8f1   :  { %v4389_v44 = vmul.f32 -1.442695, %v4253_v34  ;;  %v4254_v11 = vadd.f32 %v4163_v16, %v8097_v3  ;;  %v4234_v17 = vpop.f32.mrf.mxu1 }
 0x8f2   :  { %v4281_v57 = vadd.f32 %v4280_v9, %v4279_v41  ;;  %v4256_v59 = vadd.f32 %v4234_v17, %v8098_v63 }
 0x8f3   :  { %4645 = vpow2.f32 %v4389_v44  ;;  %v4390_v10 = vmul.f32 -1.442695, %v4254_v11 }
 0x8f4   :  { %4647 = vtanh.f32 %v4281_v57  ;;  %v4391_v30 = vmul.f32 -1.442695, %v4256_v59 }
 0x8f5   :  { %4649 = vpow2.f32 %v4390_v10 }
 0x8f6   :  { %4651 = vpow2.f32 %v4391_v30 }
 0x900   :  { %v4646_v49 = vpop.eup %4645 }
 0x901   :  { %v4648_v52 = vpop.eup %4647  ;;  %v4287_v61 = vadd.f32 1.0, %v4646_v49 }
 0x902   :  { %v4650_v24 = vpop.eup %4649  ;;  %v4283_v58 = vmul.f32 %v4648_v52, %v4644_v18 }
 0x903   :  { %4653 = vrcp.f32 %v4287_v61  ;;  %v4293_v3 = vadd.f32 1.0, %v4650_v24  ;;  %v4652_v63 = vpop.eup %4651 }
 0x904   :  { %v4312_v46 = vcombine.high %v4283_v58, %v4283_v58  ;;  %4655 = vtanh.f32 %v4255_v60  ;;  %v4300_v48 = vadd.f32 1.0, %v4652_v63 }
 0x905   :  { %4657 = vrcp.f32 %v4293_v3 }
 0x906   :  { %v4319_v47 = vrot.slane %v4312_v46, %v8315_v22  ;;  %4659 = vrcp.f32 %v4300_v48 }
 0x908   :  { %v4320_v33 = vcombine.high %v4319_v47, %v4319_v47 }
 0x90a   :  { %4392 = vst [vmem:[%s7235_s5 + $0x1c] sm:$0x3] %v4320_v33 }
 0x910   :  { %v4654_v54 = vpop.eup %4653 }
 0x911   :  { %v4656_v1 = vpop.eup %4655 }
 0x912   :  { %v4658_v55 = vpop.eup %4657  ;;  %v4307_v6 = vmul.f32 %v4656_v1, %v4654_v54 }
 0x913   :  { %v4306_v8 = vmul.f32 %v4658_v55, %v4304_v26  ;;  %v4660_v31 = vpop.eup %4659 }
 0x915   :  { %v4308_v25 = vadd.f32 %v4307_v6, %v4306_v8 }
 0x917   :  { %4661 = vtanh.f32 %v4308_v25 }
 0x924   :  { %v4662_v37 = vpop.eup %4661 }
 0x925   :  { %v4310_v22 = vmul.f32 %v4662_v37, %v4660_v31 }
 0x927   :  { %4323 = vst [vmem:[%s7235_s5 + $0x2] sm:$0x3] %v4310_v22 }
 0x928   :  { %4328 = vsyncpa [#allocation3], 1 }
 0x929   :  { %4329 = vsyncpa [#allocation5], 1 }
 0x92a   :  { %4330 = vsyncpa [#allocation8], 1 }

</bundles_post_ra>
